<compile_context>
chip_gen: v7x
topology: tpu7x:2x2x1
jax: 0.10.0
libtpu: 0.0.40
codegen_flags: <defaults>
</compile_context>

<pallas_src>
import numpy as np
import jax
import jax.numpy as jnp
from jax import lax
from jax.experimental import pallas as pl
from jax.experimental.pallas import tpu as pltpu


# ----------------------- host-side parameter preparation --------------------

def _fold_bn(conv_b, gamma, beta, mean, var, eps=1e-5):
    s = gamma / np.sqrt(var + eps)
    t = beta + (conv_b - mean) * s
    return s.astype(np.float32), t.astype(np.float32)


def _banded_conv_weights(w, scale, w_in):
    """Conv weight (Cout, Cin, K, K) + folded BN scale -> K banded GEMM mats.

    Activations live as rows of (H, W*Cin).  For each kh the conv is
    x_rows_shifted_by_kh @ B[kh] with B[kh] of shape (W_in*Cin, Wo*Cout) and
    B[kh][(wo+kw)*Cin + cin, wo*Cout + cout] = w[cout,cin,kh,kw] * scale[cout].
    """
    cout, cin, K, _ = w.shape
    wo = w_in - K + 1
    ws = (w * scale[:, None, None, None]).astype(np.float32)
    B = np.zeros((K, w_in * cin, wo * cout), np.float32)
    for kh in range(K):
        for kw in range(K):
            blk = ws[:, :, kh, kw].T                      # (Cin, Cout)
            for o in range(wo):
                r = (o + kw) * cin
                B[kh, r:r + cin, o * cout:(o + 1) * cout] = blk
    return B


def _shift_gather(bt, rows_out, rows_in, k):
    """G[kh][b*rows_out + r, b*rows_in + r + kh] = 1 (per-sample row shift+compact)."""
    G = np.zeros((k, bt * rows_out, bt * rows_in), np.float32)
    for kh in range(k):
        for b in range(bt):
            for r in range(rows_out):
                G[kh, b * rows_out + r, b * rows_in + r + kh] = 1.0
    return G


def _pool_row_select(bt, rows_out, rows_in):
    """P[j][b*rows_out + r, b*rows_in + 2r + j] = 1 (row half of 2x2 maxpool)."""
    P = np.zeros((2, bt * rows_out, bt * rows_in), np.float32)
    for j in range(2):
        for b in range(bt):
            for r in range(rows_out):
                P[j, b * rows_out + r, b * rows_in + 2 * r + j] = 1.0
    return P


def _pool_lane_select(w_in, c):
    """0/1 matrices implementing the lane half of a 2x2 maxpool on (H, W*C)."""
    wo = w_in // 2
    pw = np.zeros((2, w_in * c, wo * c), np.float32)
    eye = np.eye(c, dtype=np.float32)
    for o in range(wo):
        pw[0, (2 * o) * c:(2 * o + 1) * c, o * c:(o + 1) * c] = eye
        pw[1, (2 * o + 1) * c:(2 * o + 2) * c, o * c:(o + 1) * c] = eye
    return pw


def _fc_row_select(bt):
    """S[hh][b, b*4 + hh] = 1 (per-sample row gather for the folded fc1)."""
    S = np.zeros((4, bt, bt * 4), np.float32)
    for hh in range(4):
        for b in range(bt):
            S[hh, b, b * 4 + hh] = 1.0
    return S


def init_raw_params(key):
    ks = jax.random.split(key, 22)

    def nrm(k, shape, scale=0.1):
        return scale * jax.random.normal(k, shape, dtype=jnp.float32)

    r = {}
    r["conv1_w"], r["conv1_b"] = nrm(ks[0], (32, 1, 5, 5)), nrm(ks[1], (32,))
    r["bn1_g"], r["bn1_b"] = 1.0 + nrm(ks[2], (32,)), nrm(ks[3], (32,))
    r["bn1_m"] = nrm(ks[4], (32,))
    r["bn1_v"] = 0.5 + jax.random.uniform(ks[5], (32,), dtype=jnp.float32)

    r["conv2_w"], r["conv2_b"] = nrm(ks[6], (64, 32, 3, 3)), nrm(ks[7], (64,))
    r["bn2_g"], r["bn2_b"] = 1.0 + nrm(ks[8], (64,)), nrm(ks[9], (64,))
    r["bn2_m"] = nrm(ks[10], (64,))
    r["bn2_v"] = 0.5 + jax.random.uniform(ks[11], (64,), dtype=jnp.float32)

    r["conv3_w"], r["conv3_b"] = nrm(ks[12], (64, 64, 3, 3)), nrm(ks[13], (64,))
    r["bn3_g"], r["bn3_b"] = 1.0 + nrm(ks[14], (64,)), nrm(ks[15], (64,))
    r["bn3_m"] = nrm(ks[16], (64,))
    r["bn3_v"] = 0.5 + jax.random.uniform(ks[17], (64,), dtype=jnp.float32)

    r["fc1_w"], r["fc1_b"] = nrm(ks[18], (256, 64 * 4 * 4), 0.02), nrm(ks[19], (256,), 0.02)
    r["cls_w"], r["cls_b"] = nrm(ks[20], (10, 256), 0.02), nrm(ks[21], (10,), 0.02)
    return r


def prepare_params(raw, bt=2):
    """Fold BN, build banded conv / pool / gather matrices for a batch tile `bt`."""
    r = {k: np.asarray(v, np.float32) for k, v in raw.items()}
    bf = jnp.bfloat16
    f32 = jnp.float32
    p = {}

    s1, t1 = _fold_bn(r["conv1_b"], r["bn1_g"], r["bn1_b"], r["bn1_m"], r["bn1_v"])
    p["G1"] = jnp.asarray(_shift_gather(bt, 24, 28, 5), bf)                  # (5, 24bt, 28bt)
    p["W1"] = jnp.asarray(_banded_conv_weights(r["conv1_w"], s1, 28), bf)    # (5, 28, 768)
    p["PH1"] = jnp.asarray(_pool_row_select(bt, 12, 24), bf)                 # (2, 12bt, 24bt)
    p["PW1"] = jnp.asarray(_pool_lane_select(24, 32), bf)                    # (2, 768, 384)
    p["t1"] = jnp.asarray(np.tile(t1, 12)[None, :], f32)                     # (1, 384)  post-pool

    s2, t2 = _fold_bn(r["conv2_b"], r["bn2_g"], r["bn2_b"], r["bn2_m"], r["bn2_v"])
    p["G2"] = jnp.asarray(_shift_gather(bt, 10, 12, 3), bf)                  # (3, 10bt, 12bt)
    p["W2"] = jnp.asarray(_banded_conv_weights(r["conv2_w"], s2, 12), bf)    # (3, 384, 640)
    p["t2"] = jnp.asarray(np.tile(t2, 10)[None, :], f32)                     # (1, 640)

    s3, t3 = _fold_bn(r["conv3_b"], r["bn3_g"], r["bn3_b"], r["bn3_m"], r["bn3_v"])
    p["G3"] = jnp.asarray(_shift_gather(bt, 8, 10, 3), bf)                   # (3, 8bt, 10bt)
    p["W3"] = jnp.asarray(_banded_conv_weights(r["conv3_w"], s3, 10), bf)    # (3, 640, 512)
    p["PH3"] = jnp.asarray(_pool_row_select(bt, 4, 8), bf)                   # (2, 4bt, 8bt)
    p["PW3"] = jnp.asarray(_pool_lane_select(8, 64), bf)                     # (2, 512, 256)
    p["t3"] = jnp.asarray(np.tile(t3, 4)[None, :], f32)                      # (1, 256)  post-pool

    # fc1: fold the PyTorch NCHW flatten order (c*16 + h*4 + w) into the weight.
    p["S4"] = jnp.asarray(_fc_row_select(bt), bf)                            # (4, bt, 4bt)
    wf1 = r["fc1_w"].reshape(256, 64, 4, 4).transpose(2, 3, 1, 0).reshape(4, 4 * 64, 256)
    p["WF1"] = jnp.asarray(wf1, bf)                                          # (4, 256, 256)
    p["bf1"] = jnp.asarray(r["fc1_b"][None, :], f32)                         # (1, 256)

    # classifier, zero-padded to 128 output lanes for an unmasked store.
    wf2 = np.zeros((256, 128), np.float32)
    wf2[:, :10] = r["cls_w"].T
    bf2 = np.zeros((1, 128), np.float32)
    bf2[0, :10] = r["cls_b"]
    p["WF2"] = jnp.asarray(wf2, bf)                                          # (256, 128)
    p["bf2"] = jnp.asarray(bf2, f32)                                         # (1, 128)
    return p


# ------------------------------ fused kernel --------------------------------

def _usps_fused_kernel(x_ref,
                       g1_ref, w1_ref, ph1_ref, pw1_ref, t1_ref,
                       g2_ref, w2_ref, t2_ref,
                       g3_ref, w3_ref, t3_ref, ph3_ref, pw3_ref,
                       s4_ref, wf1_ref, bf1_ref, wf2_ref, bf2_ref,
                       feat_ref, logit_ref):
    bf = jnp.bfloat16

    def mm(a, b):
        return jnp.dot(a, b, preferred_element_type=jnp.float32)

    x = x_ref[0].astype(bf)                                               # (28*BT, 28)

    # conv1 5x5 (1->32), BN scale folded into W1; per-sample row shift via G1.
    acc = mm(mm(g1_ref[0], x).astype(bf), w1_ref[0])
    for kh in range(1, 5):
        acc = acc + mm(mm(g1_ref[kh], x).astype(bf), w1_ref[kh])
    y1 = acc.astype(bf)                                                   # (24*BT, 768)

    # 2x2 maxpool (rows via PH1, lanes via PW1), then BN shift + ReLU.
    h1 = jnp.maximum(mm(ph1_ref[0], y1), mm(ph1_ref[1], y1)).astype(bf)   # (12*BT, 768)
    p1 = jnp.maximum(mm(h1, pw1_ref[0]), mm(h1, pw1_ref[1]))              # (12*BT, 384)
    a1 = jnp.maximum(p1 + t1_ref[...], 0.0).astype(bf)

    # conv2 3x3 (32->64) + BN + ReLU.
    acc = mm(mm(g2_ref[0], a1).astype(bf), w2_ref[0])
    for kh in range(1, 3):
        acc = acc + mm(mm(g2_ref[kh], a1).astype(bf), w2_ref[kh])
    a2 = jnp.maximum(acc + t2_ref[...], 0.0).astype(bf)                   # (10*BT, 640)

    # conv3 3x3 (64->64); BN shift + ReLU are commuted past the pool below.
    acc = mm(mm(g3_ref[0], a2).astype(bf), w3_ref[0])
    for kh in range(1, 3):
        acc = acc + mm(mm(g3_ref[kh], a2).astype(bf), w3_ref[kh])
    y3 = acc.astype(bf)                                                    # (8*BT, 512)

    # 2x2 maxpool; relu(max(.)+t3) == max(relu(.+t3)) since t3 is constant per
    # pooled lane group.  TODO(synk): Dropout2d(p=0.5) is eval-mode identity.
    h3 = jnp.maximum(mm(ph3_ref[0], y3), mm(ph3_ref[1], y3)).astype(bf)    # (4*BT, 512)
    p3 = jnp.maximum(jnp.maximum(mm(h3, pw3_ref[0]), mm(h3, pw3_ref[1]))
                     + t3_ref[...], 0.0).astype(bf)                        # (4*BT, 256)

    # fc1 (1024 -> 256) + ReLU; NCHW flatten order folded into WF1, per-sample
    # row gather via S4 so all BT samples share each (256,256) matmul.
    fa = mm(mm(s4_ref[0], p3).astype(bf), wf1_ref[0])
    for hh in range(1, 4):
        fa = fa + mm(mm(s4_ref[hh], p3).astype(bf), wf1_ref[hh])
    feat = jnp.maximum(fa + bf1_ref[...], 0.0)                             # (BT, 256)

    # classifier, padded to 128 lanes -> unmasked lane-dense store.
    logits = mm(feat.astype(bf), wf2_ref[...]) + bf2_ref[...]              # (BT, 128)

    feat_ref[0] = feat
    logit_ref[0] = logits


def _full_spec(arr):
    zeros = (0,) * arr.ndim
    return pl.BlockSpec(tuple(arr.shape), lambda i, _z=zeros: _z)


_WEIGHT_NAMES = ("G1", "W1", "PH1", "PW1", "t1",
                 "G2", "W2", "t2",
                 "G3", "W3", "t3", "PH3", "PW3",
                 "S4", "WF1", "bf1", "WF2", "bf2")


def usps_ensembnet_forward(x_nchw, p):
    bt = p["G1"].shape[1] // 24          # samples per grid step (static from params)
    n = x_nchw.shape[0]
    n_pad = ((n + bt - 1) // bt) * bt
    if n_pad != n:
        x_nchw = jnp.pad(x_nchw, ((0, n_pad - n), (0, 0), (0, 0), (0, 0)))
    nb = n_pad // bt
    # (N,1,28,28) -> (nb, bt*28, 28): samples stacked along sublanes, W on lanes.
    x2 = x_nchw.astype(jnp.float32).reshape(nb, bt * 28, 28)

    weights = [p[k] for k in _WEIGHT_NAMES]

    grid_spec = pltpu.PrefetchScalarGridSpec(
        num_scalar_prefetch=0,
        grid=(nb,),
        in_specs=[pl.BlockSpec((1, bt * 28, 28), lambda i: (i, 0, 0))]
                + [_full_spec(w) for w in weights],
        out_specs=(pl.BlockSpec((1, bt, 256), lambda i: (i, 0, 0)),
                   pl.BlockSpec((1, bt, 128), lambda i: (i, 0, 0))),
    )
    feat, logits = pl.pallas_call(
        _usps_fused_kernel,
        grid_spec=grid_spec,
        out_shape=(jax.ShapeDtypeStruct((nb, bt, 256), jnp.float32),
                   jax.ShapeDtypeStruct((nb, bt, 128), jnp.float32)),
        compiler_params=pltpu.CompilerParams(
            dimension_semantics=("parallel",),
            vmem_limit_bytes=32 * 1024 * 1024),
    )(x2, *weights)
    return (feat.reshape(n_pad, 256)[:n],
            logits.reshape(n_pad, 128)[:n, :10])


# ------------------------------ pure-JAX reference --------------------------

def reference_forward(x, r):
    def conv_bn(z, w, b, g, beta, m, v):
        y = lax.conv_general_dilated(z, w, (1, 1), "VALID",
                                     dimension_numbers=("NCHW", "OIHW", "NCHW"))
        s = g / jnp.sqrt(v + 1e-5)
        return y * s.reshape(1, -1, 1, 1) + (beta + (b - m) * s).reshape(1, -1, 1, 1)

    def pool2(z):
        N, C, H, W = z.shape
        return jnp.max(z.reshape(N, C, H // 2, 2, W // 2, 2), axis=(3, 5))

    y = conv_bn(x, r["conv1_w"], r["conv1_b"], r["bn1_g"], r["bn1_b"], r["bn1_m"], r["bn1_v"])
    y = jnp.maximum(pool2(y), 0.0)
    y = jnp.maximum(conv_bn(y, r["conv2_w"], r["conv2_b"], r["bn2_g"], r["bn2_b"],
                            r["bn2_m"], r["bn2_v"]), 0.0)
    y = jnp.maximum(conv_bn(y, r["conv3_w"], r["conv3_b"], r["bn3_g"], r["bn3_b"],
                            r["bn3_m"], r["bn3_v"]), 0.0)
    y = pool2(y)
    flat = y.reshape(y.shape[0], -1)
    feat = jnp.maximum(flat @ r["fc1_w"].T + r["fc1_b"], 0.0)
    logits = feat @ r["cls_w"].T + r["cls_b"]
    return feat, logits


if __name__ == "__main__":
    key = jax.random.PRNGKey(0)
    kp, kx = jax.random.split(key)
    raw = init_raw_params(kp)
    prep = prepare_params(raw, bt=2)
    # USPS-style input resized to 28x28 so that 64*4*4 features match the FC.
    x = jax.random.normal(kx, (2, 1, 28, 28), dtype=jnp.float32)

    fwd = jax.jit(usps_ensembnet_forward)
    feat, logits = fwd(x, prep)
    jax.block_until_ready((feat, logits))

    assert feat.shape == (2, 256) and logits.shape == (2, 10)
    assert bool(jnp.all(jnp.isfinite(feat))) and bool(jnp.all(jnp.isfinite(logits)))

    rfeat, rlogits = jax.jit(reference_forward)(x, raw)
    err_f = float(jnp.max(jnp.abs(feat - rfeat)))
    err_l = float(jnp.max(jnp.abs(logits - rlogits)))
    assert err_f < 0.25 and err_l < 0.25, (err_f, err_l)

    print("KERNEL_OK")
</pallas_src>

<mosaic_0001>
module attributes {stable_mosaic.version = 11 : i64} {
  func.func @_usps_fused_kernel(%arg0: i32, %arg1: memref<1x56x28xf32, #tpu.memory_space<vmem>>, %arg2: memref<5x48x56xbf16, #tpu.memory_space<vmem>>, %arg3: memref<5x28x768xbf16, #tpu.memory_space<vmem>>, %arg4: memref<2x24x48xbf16, #tpu.memory_space<vmem>>, %arg5: memref<2x768x384xbf16, #tpu.memory_space<vmem>>, %arg6: memref<1x384xf32, #tpu.memory_space<vmem>>, %arg7: memref<3x20x24xbf16, #tpu.memory_space<vmem>>, %arg8: memref<3x384x640xbf16, #tpu.memory_space<vmem>>, %arg9: memref<1x640xf32, #tpu.memory_space<vmem>>, %arg10: memref<3x16x20xbf16, #tpu.memory_space<vmem>>, %arg11: memref<3x640x512xbf16, #tpu.memory_space<vmem>>, %arg12: memref<1x256xf32, #tpu.memory_space<vmem>>, %arg13: memref<2x8x16xbf16, #tpu.memory_space<vmem>>, %arg14: memref<2x512x256xbf16, #tpu.memory_space<vmem>>, %arg15: memref<4x2x8xbf16, #tpu.memory_space<vmem>>, %arg16: memref<4x256x256xbf16, #tpu.memory_space<vmem>>, %arg17: memref<1x256xf32, #tpu.memory_space<vmem>>, %arg18: memref<256x128xbf16, #tpu.memory_space<vmem>>, %arg19: memref<1x128xf32, #tpu.memory_space<vmem>>, %arg20: memref<1x2x256xf32, #tpu.memory_space<vmem>>, %arg21: memref<1x2x128xf32, #tpu.memory_space<vmem>>) attributes {dimension_semantics = [#tpu.dimension_semantics<parallel>], iteration_bounds = array<i64: 1>, scalar_prefetch = 0 : i64, scratch_operands = 0 : i64, tpu.core_type = #tpu.core_type<tc>, window_params = [{transform_indices = @transform_0, window_bounds = array<i64: 1, 56, 28>}, {pipeline_mode = #tpu.pipeline_mode<synchronous>, transform_indices = @transform_1, window_bounds = array<i64: 5, 48, 56>}, {pipeline_mode = #tpu.pipeline_mode<synchronous>, transform_indices = @transform_2, window_bounds = array<i64: 5, 28, 768>}, {pipeline_mode = #tpu.pipeline_mode<synchronous>, transform_indices = @transform_3, window_bounds = array<i64: 2, 24, 48>}, {pipeline_mode = #tpu.pipeline_mode<synchronous>, transform_indices = @transform_4, window_bounds = array<i64: 2, 768, 384>}, {pipeline_mode = #tpu.pipeline_mode<synchronous>, transform_indices = @transform_5, window_bounds = array<i64: 1, 384>}, {pipeline_mode = #tpu.pipeline_mode<synchronous>, transform_indices = @transform_6, window_bounds = array<i64: 3, 20, 24>}, {pipeline_mode = #tpu.pipeline_mode<synchronous>, transform_indices = @transform_7, window_bounds = array<i64: 3, 384, 640>}, {pipeline_mode = #tpu.pipeline_mode<synchronous>, transform_indices = @transform_8, window_bounds = array<i64: 1, 640>}, {pipeline_mode = #tpu.pipeline_mode<synchronous>, transform_indices = @transform_9, window_bounds = array<i64: 3, 16, 20>}, {pipeline_mode = #tpu.pipeline_mode<synchronous>, transform_indices = @transform_10, window_bounds = array<i64: 3, 640, 512>}, {pipeline_mode = #tpu.pipeline_mode<synchronous>, transform_indices = @transform_11, window_bounds = array<i64: 1, 256>}, {pipeline_mode = #tpu.pipeline_mode<synchronous>, transform_indices = @transform_12, window_bounds = array<i64: 2, 8, 16>}, {pipeline_mode = #tpu.pipeline_mode<synchronous>, transform_indices = @transform_13, window_bounds = array<i64: 2, 512, 256>}, {pipeline_mode = #tpu.pipeline_mode<synchronous>, transform_indices = @transform_14, window_bounds = array<i64: 4, 2, 8>}, {pipeline_mode = #tpu.pipeline_mode<synchronous>, transform_indices = @transform_15, window_bounds = array<i64: 4, 256, 256>}, {pipeline_mode = #tpu.pipeline_mode<synchronous>, transform_indices = @transform_16, window_bounds = array<i64: 1, 256>}, {pipeline_mode = #tpu.pipeline_mode<synchronous>, transform_indices = @transform_17, window_bounds = array<i64: 256, 128>}, {pipeline_mode = #tpu.pipeline_mode<synchronous>, transform_indices = @transform_18, window_bounds = array<i64: 1, 128>}, {transform_indices = @transform_19, window_bounds = array<i64: 1, 2, 256>}, {transform_indices = @transform_20, window_bounds = array<i64: 1, 2, 128>}]} {
    %c0 = arith.constant 0 : index
    %c0_0 = arith.constant 0 : index
    %c0_1 = arith.constant 0 : index
    %0 = vector.load %arg1[%c0, %c0_0, %c0_1] : memref<1x56x28xf32, #tpu.memory_space<vmem>>, vector<1x56x28xf32>
    %1 = vector.shape_cast %0 : vector<1x56x28xf32> to vector<56x28xf32>
    %2 = arith.truncf %1 : vector<56x28xf32> to vector<56x28xbf16>
    %c0_2 = arith.constant 0 : index
    %c0_3 = arith.constant 0 : index
    %c0_4 = arith.constant 0 : index
    %3 = vector.load %arg2[%c0_2, %c0_3, %c0_4] : memref<5x48x56xbf16, #tpu.memory_space<vmem>>, vector<1x48x56xbf16>
    %4 = vector.shape_cast %3 : vector<1x48x56xbf16> to vector<48x56xbf16>
    %cst = arith.constant dense<0.000000e+00> : vector<48x28xf32>
    %5 = tpu.matmul %4, %2, %cst {dimension_numbers = #tpu.dot_dimension_numbers<[1], [0], [0], [1], [0, 0, 1, 1], [], []>} : vector<48x56xbf16>, vector<56x28xbf16>, vector<48x28xf32> -> vector<48x28xf32>
    %6 = arith.truncf %5 : vector<48x28xf32> to vector<48x28xbf16>
    %c0_5 = arith.constant 0 : index
    %c0_6 = arith.constant 0 : index
    %c0_7 = arith.constant 0 : index
    %7 = vector.load %arg3[%c0_5, %c0_6, %c0_7] : memref<5x28x768xbf16, #tpu.memory_space<vmem>>, vector<1x28x768xbf16>
    %8 = vector.shape_cast %7 : vector<1x28x768xbf16> to vector<28x768xbf16>
    %cst_8 = arith.constant dense<0.000000e+00> : vector<48x768xf32>
    %9 = tpu.matmul %6, %8, %cst_8 {dimension_numbers = #tpu.dot_dimension_numbers<[1], [0], [0], [1], [0, 0, 1, 1], [], []>} : vector<48x28xbf16>, vector<28x768xbf16>, vector<48x768xf32> -> vector<48x768xf32>
    %c1 = arith.constant 1 : index
    %c0_9 = arith.constant 0 : index
    %c0_10 = arith.constant 0 : index
    %10 = vector.load %arg2[%c1, %c0_9, %c0_10] : memref<5x48x56xbf16, #tpu.memory_space<vmem>>, vector<1x48x56xbf16>
    %11 = vector.shape_cast %10 : vector<1x48x56xbf16> to vector<48x56xbf16>
    %cst_11 = arith.constant dense<0.000000e+00> : vector<48x28xf32>
    %12 = tpu.matmul %11, %2, %cst_11 {dimension_numbers = #tpu.dot_dimension_numbers<[1], [0], [0], [1], [0, 0, 1, 1], [], []>} : vector<48x56xbf16>, vector<56x28xbf16>, vector<48x28xf32> -> vector<48x28xf32>
    %13 = arith.truncf %12 : vector<48x28xf32> to vector<48x28xbf16>
    %c1_12 = arith.constant 1 : index
    %c0_13 = arith.constant 0 : index
    %c0_14 = arith.constant 0 : index
    %14 = vector.load %arg3[%c1_12, %c0_13, %c0_14] : memref<5x28x768xbf16, #tpu.memory_space<vmem>>, vector<1x28x768xbf16>
    %15 = vector.shape_cast %14 : vector<1x28x768xbf16> to vector<28x768xbf16>
    %cst_15 = arith.constant dense<0.000000e+00> : vector<48x768xf32>
    %16 = tpu.matmul %13, %15, %cst_15 {dimension_numbers = #tpu.dot_dimension_numbers<[1], [0], [0], [1], [0, 0, 1, 1], [], []>} : vector<48x28xbf16>, vector<28x768xbf16>, vector<48x768xf32> -> vector<48x768xf32>
    %17 = arith.addf %9, %16 : vector<48x768xf32>
    %c2 = arith.constant 2 : index
    %c0_16 = arith.constant 0 : index
    %c0_17 = arith.constant 0 : index
    %18 = vector.load %arg2[%c2, %c0_16, %c0_17] : memref<5x48x56xbf16, #tpu.memory_space<vmem>>, vector<1x48x56xbf16>
    %19 = vector.shape_cast %18 : vector<1x48x56xbf16> to vector<48x56xbf16>
    %cst_18 = arith.constant dense<0.000000e+00> : vector<48x28xf32>
    %20 = tpu.matmul %19, %2, %cst_18 {dimension_numbers = #tpu.dot_dimension_numbers<[1], [0], [0], [1], [0, 0, 1, 1], [], []>} : vector<48x56xbf16>, vector<56x28xbf16>, vector<48x28xf32> -> vector<48x28xf32>
    %21 = arith.truncf %20 : vector<48x28xf32> to vector<48x28xbf16>
    %c2_19 = arith.constant 2 : index
    %c0_20 = arith.constant 0 : index
    %c0_21 = arith.constant 0 : index
    %22 = vector.load %arg3[%c2_19, %c0_20, %c0_21] : memref<5x28x768xbf16, #tpu.memory_space<vmem>>, vector<1x28x768xbf16>
    %23 = vector.shape_cast %22 : vector<1x28x768xbf16> to vector<28x768xbf16>
    %cst_22 = arith.constant dense<0.000000e+00> : vector<48x768xf32>
    %24 = tpu.matmul %21, %23, %cst_22 {dimension_numbers = #tpu.dot_dimension_numbers<[1], [0], [0], [1], [0, 0, 1, 1], [], []>} : vector<48x28xbf16>, vector<28x768xbf16>, vector<48x768xf32> -> vector<48x768xf32>
    %25 = arith.addf %17, %24 : vector<48x768xf32>
    %c3 = arith.constant 3 : index
    %c0_23 = arith.constant 0 : index
    %c0_24 = arith.constant 0 : index
    %26 = vector.load %arg2[%c3, %c0_23, %c0_24] : memref<5x48x56xbf16, #tpu.memory_space<vmem>>, vector<1x48x56xbf16>
    %27 = vector.shape_cast %26 : vector<1x48x56xbf16> to vector<48x56xbf16>
    %cst_25 = arith.constant dense<0.000000e+00> : vector<48x28xf32>
    %28 = tpu.matmul %27, %2, %cst_25 {dimension_numbers = #tpu.dot_dimension_numbers<[1], [0], [0], [1], [0, 0, 1, 1], [], []>} : vector<48x56xbf16>, vector<56x28xbf16>, vector<48x28xf32> -> vector<48x28xf32>
    %29 = arith.truncf %28 : vector<48x28xf32> to vector<48x28xbf16>
    %c3_26 = arith.constant 3 : index
    %c0_27 = arith.constant 0 : index
    %c0_28 = arith.constant 0 : index
    %30 = vector.load %arg3[%c3_26, %c0_27, %c0_28] : memref<5x28x768xbf16, #tpu.memory_space<vmem>>, vector<1x28x768xbf16>
    %31 = vector.shape_cast %30 : vector<1x28x768xbf16> to vector<28x768xbf16>
    %cst_29 = arith.constant dense<0.000000e+00> : vector<48x768xf32>
    %32 = tpu.matmul %29, %31, %cst_29 {dimension_numbers = #tpu.dot_dimension_numbers<[1], [0], [0], [1], [0, 0, 1, 1], [], []>} : vector<48x28xbf16>, vector<28x768xbf16>, vector<48x768xf32> -> vector<48x768xf32>
    %33 = arith.addf %25, %32 : vector<48x768xf32>
    %c4 = arith.constant 4 : index
    %c0_30 = arith.constant 0 : index
    %c0_31 = arith.constant 0 : index
    %34 = vector.load %arg2[%c4, %c0_30, %c0_31] : memref<5x48x56xbf16, #tpu.memory_space<vmem>>, vector<1x48x56xbf16>
    %35 = vector.shape_cast %34 : vector<1x48x56xbf16> to vector<48x56xbf16>
    %cst_32 = arith.constant dense<0.000000e+00> : vector<48x28xf32>
    %36 = tpu.matmul %35, %2, %cst_32 {dimension_numbers = #tpu.dot_dimension_numbers<[1], [0], [0], [1], [0, 0, 1, 1], [], []>} : vector<48x56xbf16>, vector<56x28xbf16>, vector<48x28xf32> -> vector<48x28xf32>
    %37 = arith.truncf %36 : vector<48x28xf32> to vector<48x28xbf16>
    %c4_33 = arith.constant 4 : index
    %c0_34 = arith.constant 0 : index
    %c0_35 = arith.constant 0 : index
    %38 = vector.load %arg3[%c4_33, %c0_34, %c0_35] : memref<5x28x768xbf16, #tpu.memory_space<vmem>>, vector<1x28x768xbf16>
    %39 = vector.shape_cast %38 : vector<1x28x768xbf16> to vector<28x768xbf16>
    %cst_36 = arith.constant dense<0.000000e+00> : vector<48x768xf32>
    %40 = tpu.matmul %37, %39, %cst_36 {dimension_numbers = #tpu.dot_dimension_numbers<[1], [0], [0], [1], [0, 0, 1, 1], [], []>} : vector<48x28xbf16>, vector<28x768xbf16>, vector<48x768xf32> -> vector<48x768xf32>
    %41 = arith.addf %33, %40 : vector<48x768xf32>
    %42 = arith.truncf %41 : vector<48x768xf32> to vector<48x768xbf16>
    %c0_37 = arith.constant 0 : index
    %c0_38 = arith.constant 0 : index
    %c0_39 = arith.constant 0 : index
    %43 = vector.load %arg4[%c0_37, %c0_38, %c0_39] : memref<2x24x48xbf16, #tpu.memory_space<vmem>>, vector<1x24x48xbf16>
    %44 = vector.shape_cast %43 : vector<1x24x48xbf16> to vector<24x48xbf16>
    %cst_40 = arith.constant dense<0.000000e+00> : vector<24x768xf32>
    %45 = tpu.matmul %44, %42, %cst_40 {dimension_numbers = #tpu.dot_dimension_numbers<[1], [0], [0], [1], [0, 0, 1, 1], [], []>} : vector<24x48xbf16>, vector<48x768xbf16>, vector<24x768xf32> -> vector<24x768xf32>
    %c1_41 = arith.constant 1 : index
    %c0_42 = arith.constant 0 : index
    %c0_43 = arith.constant 0 : index
    %46 = vector.load %arg4[%c1_41, %c0_42, %c0_43] : memref<2x24x48xbf16, #tpu.memory_space<vmem>>, vector<1x24x48xbf16>
    %47 = vector.shape_cast %46 : vector<1x24x48xbf16> to vector<24x48xbf16>
    %cst_44 = arith.constant dense<0.000000e+00> : vector<24x768xf32>
    %48 = tpu.matmul %47, %42, %cst_44 {dimension_numbers = #tpu.dot_dimension_numbers<[1], [0], [0], [1], [0, 0, 1, 1], [], []>} : vector<24x48xbf16>, vector<48x768xbf16>, vector<24x768xf32> -> vector<24x768xf32>
    %49 = arith.maximumf %45, %48 : vector<24x768xf32>
    %50 = arith.truncf %49 : vector<24x768xf32> to vector<24x768xbf16>
    %c0_45 = arith.constant 0 : index
    %c0_46 = arith.constant 0 : index
    %c0_47 = arith.constant 0 : index
    %51 = vector.load %arg5[%c0_45, %c0_46, %c0_47] : memref<2x768x384xbf16, #tpu.memory_space<vmem>>, vector<1x768x384xbf16>
    %52 = vector.shape_cast %51 : vector<1x768x384xbf16> to vector<768x384xbf16>
    %cst_48 = arith.constant dense<0.000000e+00> : vector<24x384xf32>
    %53 = tpu.matmul %50, %52, %cst_48 {dimension_numbers = #tpu.dot_dimension_numbers<[1], [0], [0], [1], [0, 0, 1, 1], [], []>} : vector<24x768xbf16>, vector<768x384xbf16>, vector<24x384xf32> -> vector<24x384xf32>
    %c1_49 = arith.constant 1 : index
    %c0_50 = arith.constant 0 : index
    %c0_51 = arith.constant 0 : index
    %54 = vector.load %arg5[%c1_49, %c0_50, %c0_51] : memref<2x768x384xbf16, #tpu.memory_space<vmem>>, vector<1x768x384xbf16>
    %55 = vector.shape_cast %54 : vector<1x768x384xbf16> to vector<768x384xbf16>
    %cst_52 = arith.constant dense<0.000000e+00> : vector<24x384xf32>
    %56 = tpu.matmul %50, %55, %cst_52 {dimension_numbers = #tpu.dot_dimension_numbers<[1], [0], [0], [1], [0, 0, 1, 1], [], []>} : vector<24x768xbf16>, vector<768x384xbf16>, vector<24x384xf32> -> vector<24x384xf32>
    %57 = arith.maximumf %53, %56 : vector<24x384xf32>
    %c0_53 = arith.constant 0 : index
    %c0_54 = arith.constant 0 : index
    %58 = vector.load %arg6[%c0_53, %c0_54] : memref<1x384xf32, #tpu.memory_space<vmem>>, vector<1x384xf32>
    %59 = vector.broadcast %58 : vector<1x384xf32> to vector<24x384xf32>
    %60 = arith.addf %57, %59 : vector<24x384xf32>
    %cst_55 = arith.constant 0.000000e+00 : f32
    %61 = vector.broadcast %cst_55 : f32 to vector<24x384xf32>
    %62 = arith.maximumf %60, %61 : vector<24x384xf32>
    %63 = arith.truncf %62 : vector<24x384xf32> to vector<24x384xbf16>
    %c0_56 = arith.constant 0 : index
    %c0_57 = arith.constant 0 : index
    %c0_58 = arith.constant 0 : index
    %64 = vector.load %arg7[%c0_56, %c0_57, %c0_58] : memref<3x20x24xbf16, #tpu.memory_space<vmem>>, vector<1x20x24xbf16>
    %65 = vector.shape_cast %64 : vector<1x20x24xbf16> to vector<20x24xbf16>
    %cst_59 = arith.constant dense<0.000000e+00> : vector<20x384xf32>
    %66 = tpu.matmul %65, %63, %cst_59 {dimension_numbers = #tpu.dot_dimension_numbers<[1], [0], [0], [1], [0, 0, 1, 1], [], []>} : vector<20x24xbf16>, vector<24x384xbf16>, vector<20x384xf32> -> vector<20x384xf32>
    %67 = arith.truncf %66 : vector<20x384xf32> to vector<20x384xbf16>
    %c0_60 = arith.constant 0 : index
    %c0_61 = arith.constant 0 : index
    %c0_62 = arith.constant 0 : index
    %68 = vector.load %arg8[%c0_60, %c0_61, %c0_62] : memref<3x384x640xbf16, #tpu.memory_space<vmem>>, vector<1x384x640xbf16>
    %69 = vector.shape_cast %68 : vector<1x384x640xbf16> to vector<384x640xbf16>
    %cst_63 = arith.constant dense<0.000000e+00> : vector<20x640xf32>
    %70 = tpu.matmul %67, %69, %cst_63 {dimension_numbers = #tpu.dot_dimension_numbers<[1], [0], [0], [1], [0, 0, 1, 1], [], []>} : vector<20x384xbf16>, vector<384x640xbf16>, vector<20x640xf32> -> vector<20x640xf32>
    %c1_64 = arith.constant 1 : index
    %c0_65 = arith.constant 0 : index
    %c0_66 = arith.constant 0 : index
    %71 = vector.load %arg7[%c1_64, %c0_65, %c0_66] : memref<3x20x24xbf16, #tpu.memory_space<vmem>>, vector<1x20x24xbf16>
    %72 = vector.shape_cast %71 : vector<1x20x24xbf16> to vector<20x24xbf16>
    %cst_67 = arith.constant dense<0.000000e+00> : vector<20x384xf32>
    %73 = tpu.matmul %72, %63, %cst_67 {dimension_numbers = #tpu.dot_dimension_numbers<[1], [0], [0], [1], [0, 0, 1, 1], [], []>} : vector<20x24xbf16>, vector<24x384xbf16>, vector<20x384xf32> -> vector<20x384xf32>
    %74 = arith.truncf %73 : vector<20x384xf32> to vector<20x384xbf16>
    %c1_68 = arith.constant 1 : index
    %c0_69 = arith.constant 0 : index
    %c0_70 = arith.constant 0 : index
    %75 = vector.load %arg8[%c1_68, %c0_69, %c0_70] : memref<3x384x640xbf16, #tpu.memory_space<vmem>>, vector<1x384x640xbf16>
    %76 = vector.shape_cast %75 : vector<1x384x640xbf16> to vector<384x640xbf16>
    %cst_71 = arith.constant dense<0.000000e+00> : vector<20x640xf32>
    %77 = tpu.matmul %74, %76, %cst_71 {dimension_numbers = #tpu.dot_dimension_numbers<[1], [0], [0], [1], [0, 0, 1, 1], [], []>} : vector<20x384xbf16>, vector<384x640xbf16>, vector<20x640xf32> -> vector<20x640xf32>
    %78 = arith.addf %70, %77 : vector<20x640xf32>
    %c2_72 = arith.constant 2 : index
    %c0_73 = arith.constant 0 : index
    %c0_74 = arith.constant 0 : index
    %79 = vector.load %arg7[%c2_72, %c0_73, %c0_74] : memref<3x20x24xbf16, #tpu.memory_space<vmem>>, vector<1x20x24xbf16>
    %80 = vector.shape_cast %79 : vector<1x20x24xbf16> to vector<20x24xbf16>
    %cst_75 = arith.constant dense<0.000000e+00> : vector<20x384xf32>
    %81 = tpu.matmul %80, %63, %cst_75 {dimension_numbers = #tpu.dot_dimension_numbers<[1], [0], [0], [1], [0, 0, 1, 1], [], []>} : vector<20x24xbf16>, vector<24x384xbf16>, vector<20x384xf32> -> vector<20x384xf32>
    %82 = arith.truncf %81 : vector<20x384xf32> to vector<20x384xbf16>
    %c2_76 = arith.constant 2 : index
    %c0_77 = arith.constant 0 : index
    %c0_78 = arith.constant 0 : index
    %83 = vector.load %arg8[%c2_76, %c0_77, %c0_78] : memref<3x384x640xbf16, #tpu.memory_space<vmem>>, vector<1x384x640xbf16>
    %84 = vector.shape_cast %83 : vector<1x384x640xbf16> to vector<384x640xbf16>
    %cst_79 = arith.constant dense<0.000000e+00> : vector<20x640xf32>
    %85 = tpu.matmul %82, %84, %cst_79 {dimension_numbers = #tpu.dot_dimension_numbers<[1], [0], [0], [1], [0, 0, 1, 1], [], []>} : vector<20x384xbf16>, vector<384x640xbf16>, vector<20x640xf32> -> vector<20x640xf32>
    %86 = arith.addf %78, %85 : vector<20x640xf32>
    %c0_80 = arith.constant 0 : index
    %c0_81 = arith.constant 0 : index
    %87 = vector.load %arg9[%c0_80, %c0_81] : memref<1x640xf32, #tpu.memory_space<vmem>>, vector<1x640xf32>
    %88 = vector.broadcast %87 : vector<1x640xf32> to vector<20x640xf32>
    %89 = arith.addf %86, %88 : vector<20x640xf32>
    %cst_82 = arith.constant 0.000000e+00 : f32
    %90 = vector.broadcast %cst_82 : f32 to vector<20x640xf32>
    %91 = arith.maximumf %89, %90 : vector<20x640xf32>
    %92 = arith.truncf %91 : vector<20x640xf32> to vector<20x640xbf16>
    %c0_83 = arith.constant 0 : index
    %c0_84 = arith.constant 0 : index
    %c0_85 = arith.constant 0 : index
    %93 = vector.load %arg10[%c0_83, %c0_84, %c0_85] : memref<3x16x20xbf16, #tpu.memory_space<vmem>>, vector<1x16x20xbf16>
    %94 = vector.shape_cast %93 : vector<1x16x20xbf16> to vector<16x20xbf16>
    %cst_86 = arith.constant dense<0.000000e+00> : vector<16x640xf32>
    %95 = tpu.matmul %94, %92, %cst_86 {dimension_numbers = #tpu.dot_dimension_numbers<[1], [0], [0], [1], [0, 0, 1, 1], [], []>} : vector<16x20xbf16>, vector<20x640xbf16>, vector<16x640xf32> -> vector<16x640xf32>
    %96 = arith.truncf %95 : vector<16x640xf32> to vector<16x640xbf16>
    %c0_87 = arith.constant 0 : index
    %c0_88 = arith.constant 0 : index
    %c0_89 = arith.constant 0 : index
    %97 = vector.load %arg11[%c0_87, %c0_88, %c0_89] : memref<3x640x512xbf16, #tpu.memory_space<vmem>>, vector<1x640x512xbf16>
    %98 = vector.shape_cast %97 : vector<1x640x512xbf16> to vector<640x512xbf16>
    %cst_90 = arith.constant dense<0.000000e+00> : vector<16x512xf32>
    %99 = tpu.matmul %96, %98, %cst_90 {dimension_numbers = #tpu.dot_dimension_numbers<[1], [0], [0], [1], [0, 0, 1, 1], [], []>} : vector<16x640xbf16>, vector<640x512xbf16>, vector<16x512xf32> -> vector<16x512xf32>
    %c1_91 = arith.constant 1 : index
    %c0_92 = arith.constant 0 : index
    %c0_93 = arith.constant 0 : index
    %100 = vector.load %arg10[%c1_91, %c0_92, %c0_93] : memref<3x16x20xbf16, #tpu.memory_space<vmem>>, vector<1x16x20xbf16>
    %101 = vector.shape_cast %100 : vector<1x16x20xbf16> to vector<16x20xbf16>
    %cst_94 = arith.constant dense<0.000000e+00> : vector<16x640xf32>
    %102 = tpu.matmul %101, %92, %cst_94 {dimension_numbers = #tpu.dot_dimension_numbers<[1], [0], [0], [1], [0, 0, 1, 1], [], []>} : vector<16x20xbf16>, vector<20x640xbf16>, vector<16x640xf32> -> vector<16x640xf32>
    %103 = arith.truncf %102 : vector<16x640xf32> to vector<16x640xbf16>
    %c1_95 = arith.constant 1 : index
    %c0_96 = arith.constant 0 : index
    %c0_97 = arith.constant 0 : index
    %104 = vector.load %arg11[%c1_95, %c0_96, %c0_97] : memref<3x640x512xbf16, #tpu.memory_space<vmem>>, vector<1x640x512xbf16>
    %105 = vector.shape_cast %104 : vector<1x640x512xbf16> to vector<640x512xbf16>
    %cst_98 = arith.constant dense<0.000000e+00> : vector<16x512xf32>
    %106 = tpu.matmul %103, %105, %cst_98 {dimension_numbers = #tpu.dot_dimension_numbers<[1], [0], [0], [1], [0, 0, 1, 1], [], []>} : vector<16x640xbf16>, vector<640x512xbf16>, vector<16x512xf32> -> vector<16x512xf32>
    %107 = arith.addf %99, %106 : vector<16x512xf32>
    %c2_99 = arith.constant 2 : index
    %c0_100 = arith.constant 0 : index
    %c0_101 = arith.constant 0 : index
    %108 = vector.load %arg10[%c2_99, %c0_100, %c0_101] : memref<3x16x20xbf16, #tpu.memory_space<vmem>>, vector<1x16x20xbf16>
    %109 = vector.shape_cast %108 : vector<1x16x20xbf16> to vector<16x20xbf16>
    %cst_102 = arith.constant dense<0.000000e+00> : vector<16x640xf32>
    %110 = tpu.matmul %109, %92, %cst_102 {dimension_numbers = #tpu.dot_dimension_numbers<[1], [0], [0], [1], [0, 0, 1, 1], [], []>} : vector<16x20xbf16>, vector<20x640xbf16>, vector<16x640xf32> -> vector<16x640xf32>
    %111 = arith.truncf %110 : vector<16x640xf32> to vector<16x640xbf16>
    %c2_103 = arith.constant 2 : index
    %c0_104 = arith.constant 0 : index
    %c0_105 = arith.constant 0 : index
    %112 = vector.load %arg11[%c2_103, %c0_104, %c0_105] : memref<3x640x512xbf16, #tpu.memory_space<vmem>>, vector<1x640x512xbf16>
    %113 = vector.shape_cast %112 : vector<1x640x512xbf16> to vector<640x512xbf16>
    %cst_106 = arith.constant dense<0.000000e+00> : vector<16x512xf32>
    %114 = tpu.matmul %111, %113, %cst_106 {dimension_numbers = #tpu.dot_dimension_numbers<[1], [0], [0], [1], [0, 0, 1, 1], [], []>} : vector<16x640xbf16>, vector<640x512xbf16>, vector<16x512xf32> -> vector<16x512xf32>
    %115 = arith.addf %107, %114 : vector<16x512xf32>
    %116 = arith.truncf %115 : vector<16x512xf32> to vector<16x512xbf16>
    %c0_107 = arith.constant 0 : index
    %c0_108 = arith.constant 0 : index
    %c0_109 = arith.constant 0 : index
    %117 = vector.load %arg13[%c0_107, %c0_108, %c0_109] : memref<2x8x16xbf16, #tpu.memory_space<vmem>>, vector<1x8x16xbf16>
    %118 = vector.shape_cast %117 : vector<1x8x16xbf16> to vector<8x16xbf16>
    %cst_110 = arith.constant dense<0.000000e+00> : vector<8x512xf32>
    %119 = tpu.matmul %118, %116, %cst_110 {dimension_numbers = #tpu.dot_dimension_numbers<[1], [0], [0], [1], [0, 0, 1, 1], [], []>} : vector<8x16xbf16>, vector<16x512xbf16>, vector<8x512xf32> -> vector<8x512xf32>
    %c1_111 = arith.constant 1 : index
    %c0_112 = arith.constant 0 : index
    %c0_113 = arith.constant 0 : index
    %120 = vector.load %arg13[%c1_111, %c0_112, %c0_113] : memref<2x8x16xbf16, #tpu.memory_space<vmem>>, vector<1x8x16xbf16>
    %121 = vector.shape_cast %120 : vector<1x8x16xbf16> to vector<8x16xbf16>
    %cst_114 = arith.constant dense<0.000000e+00> : vector<8x512xf32>
    %122 = tpu.matmul %121, %116, %cst_114 {dimension_numbers = #tpu.dot_dimension_numbers<[1], [0], [0], [1], [0, 0, 1, 1], [], []>} : vector<8x16xbf16>, vector<16x512xbf16>, vector<8x512xf32> -> vector<8x512xf32>
    %123 = arith.maximumf %119, %122 : vector<8x512xf32>
    %124 = arith.truncf %123 : vector<8x512xf32> to vector<8x512xbf16>
    %c0_115 = arith.constant 0 : index
    %c0_116 = arith.constant 0 : index
    %c0_117 = arith.constant 0 : index
    %125 = vector.load %arg14[%c0_115, %c0_116, %c0_117] : memref<2x512x256xbf16, #tpu.memory_space<vmem>>, vector<1x512x256xbf16>
    %126 = vector.shape_cast %125 : vector<1x512x256xbf16> to vector<512x256xbf16>
    %cst_118 = arith.constant dense<0.000000e+00> : vector<8x256xf32>
    %127 = tpu.matmul %124, %126, %cst_118 {dimension_numbers = #tpu.dot_dimension_numbers<[1], [0], [0], [1], [0, 0, 1, 1], [], []>} : vector<8x512xbf16>, vector<512x256xbf16>, vector<8x256xf32> -> vector<8x256xf32>
    %c1_119 = arith.constant 1 : index
    %c0_120 = arith.constant 0 : index
    %c0_121 = arith.constant 0 : index
    %128 = vector.load %arg14[%c1_119, %c0_120, %c0_121] : memref<2x512x256xbf16, #tpu.memory_space<vmem>>, vector<1x512x256xbf16>
    %129 = vector.shape_cast %128 : vector<1x512x256xbf16> to vector<512x256xbf16>
    %cst_122 = arith.constant dense<0.000000e+00> : vector<8x256xf32>
    %130 = tpu.matmul %124, %129, %cst_122 {dimension_numbers = #tpu.dot_dimension_numbers<[1], [0], [0], [1], [0, 0, 1, 1], [], []>} : vector<8x512xbf16>, vector<512x256xbf16>, vector<8x256xf32> -> vector<8x256xf32>
    %131 = arith.maximumf %127, %130 : vector<8x256xf32>
    %c0_123 = arith.constant 0 : index
    %c0_124 = arith.constant 0 : index
    %132 = vector.load %arg12[%c0_123, %c0_124] : memref<1x256xf32, #tpu.memory_space<vmem>>, vector<1x256xf32>
    %133 = vector.broadcast %132 : vector<1x256xf32> to vector<8x256xf32>
    %134 = arith.addf %131, %133 : vector<8x256xf32>
    %cst_125 = arith.constant 0.000000e+00 : f32
    %135 = vector.broadcast %cst_125 : f32 to vector<8x256xf32>
    %136 = arith.maximumf %134, %135 : vector<8x256xf32>
    %137 = arith.truncf %136 : vector<8x256xf32> to vector<8x256xbf16>
    %c0_126 = arith.constant 0 : index
    %c0_127 = arith.constant 0 : index
    %c0_128 = arith.constant 0 : index
    %138 = vector.load %arg15[%c0_126, %c0_127, %c0_128] : memref<4x2x8xbf16, #tpu.memory_space<vmem>>, vector<1x2x8xbf16>
    %139 = vector.shape_cast %138 : vector<1x2x8xbf16> to vector<2x8xbf16>
    %cst_129 = arith.constant dense<0.000000e+00> : vector<2x256xf32>
    %140 = tpu.matmul %139, %137, %cst_129 {dimension_numbers = #tpu.dot_dimension_numbers<[1], [0], [0], [1], [0, 0, 1, 1], [], []>} : vector<2x8xbf16>, vector<8x256xbf16>, vector<2x256xf32> -> vector<2x256xf32>
    %141 = arith.truncf %140 : vector<2x256xf32> to vector<2x256xbf16>
    %c0_130 = arith.constant 0 : index
    %c0_131 = arith.constant 0 : index
    %c0_132 = arith.constant 0 : index
    %142 = vector.load %arg16[%c0_130, %c0_131, %c0_132] : memref<4x256x256xbf16, #tpu.memory_space<vmem>>, vector<1x256x256xbf16>
    %143 = vector.shape_cast %142 : vector<1x256x256xbf16> to vector<256x256xbf16>
    %cst_133 = arith.constant dense<0.000000e+00> : vector<2x256xf32>
    %144 = tpu.matmul %141, %143, %cst_133 {dimension_numbers = #tpu.dot_dimension_numbers<[1], [0], [0], [1], [0, 0, 1, 1], [], []>} : vector<2x256xbf16>, vector<256x256xbf16>, vector<2x256xf32> -> vector<2x256xf32>
    %c1_134 = arith.constant 1 : index
    %c0_135 = arith.constant 0 : index
    %c0_136 = arith.constant 0 : index
    %145 = vector.load %arg15[%c1_134, %c0_135, %c0_136] : memref<4x2x8xbf16, #tpu.memory_space<vmem>>, vector<1x2x8xbf16>
    %146 = vector.shape_cast %145 : vector<1x2x8xbf16> to vector<2x8xbf16>
    %cst_137 = arith.constant dense<0.000000e+00> : vector<2x256xf32>
    %147 = tpu.matmul %146, %137, %cst_137 {dimension_numbers = #tpu.dot_dimension_numbers<[1], [0], [0], [1], [0, 0, 1, 1], [], []>} : vector<2x8xbf16>, vector<8x256xbf16>, vector<2x256xf32> -> vector<2x256xf32>
    %148 = arith.truncf %147 : vector<2x256xf32> to vector<2x256xbf16>
    %c1_138 = arith.constant 1 : index
    %c0_139 = arith.constant 0 : index
    %c0_140 = arith.constant 0 : index
    %149 = vector.load %arg16[%c1_138, %c0_139, %c0_140] : memref<4x256x256xbf16, #tpu.memory_space<vmem>>, vector<1x256x256xbf16>
    %150 = vector.shape_cast %149 : vector<1x256x256xbf16> to vector<256x256xbf16>
    %cst_141 = arith.constant dense<0.000000e+00> : vector<2x256xf32>
    %151 = tpu.matmul %148, %150, %cst_141 {dimension_numbers = #tpu.dot_dimension_numbers<[1], [0], [0], [1], [0, 0, 1, 1], [], []>} : vector<2x256xbf16>, vector<256x256xbf16>, vector<2x256xf32> -> vector<2x256xf32>
    %152 = arith.addf %144, %151 : vector<2x256xf32>
    %c2_142 = arith.constant 2 : index
    %c0_143 = arith.constant 0 : index
    %c0_144 = arith.constant 0 : index
    %153 = vector.load %arg15[%c2_142, %c0_143, %c0_144] : memref<4x2x8xbf16, #tpu.memory_space<vmem>>, vector<1x2x8xbf16>
    %154 = vector.shape_cast %153 : vector<1x2x8xbf16> to vector<2x8xbf16>
    %cst_145 = arith.constant dense<0.000000e+00> : vector<2x256xf32>
    %155 = tpu.matmul %154, %137, %cst_145 {dimension_numbers = #tpu.dot_dimension_numbers<[1], [0], [0], [1], [0, 0, 1, 1], [], []>} : vector<2x8xbf16>, vector<8x256xbf16>, vector<2x256xf32> -> vector<2x256xf32>
    %156 = arith.truncf %155 : vector<2x256xf32> to vector<2x256xbf16>
    %c2_146 = arith.constant 2 : index
    %c0_147 = arith.constant 0 : index
    %c0_148 = arith.constant 0 : index
    %157 = vector.load %arg16[%c2_146, %c0_147, %c0_148] : memref<4x256x256xbf16, #tpu.memory_space<vmem>>, vector<1x256x256xbf16>
    %158 = vector.shape_cast %157 : vector<1x256x256xbf16> to vector<256x256xbf16>
    %cst_149 = arith.constant dense<0.000000e+00> : vector<2x256xf32>
    %159 = tpu.matmul %156, %158, %cst_149 {dimension_numbers = #tpu.dot_dimension_numbers<[1], [0], [0], [1], [0, 0, 1, 1], [], []>} : vector<2x256xbf16>, vector<256x256xbf16>, vector<2x256xf32> -> vector<2x256xf32>
    %160 = arith.addf %152, %159 : vector<2x256xf32>
    %c3_150 = arith.constant 3 : index
    %c0_151 = arith.constant 0 : index
    %c0_152 = arith.constant 0 : index
    %161 = vector.load %arg15[%c3_150, %c0_151, %c0_152] : memref<4x2x8xbf16, #tpu.memory_space<vmem>>, vector<1x2x8xbf16>
    %162 = vector.shape_cast %161 : vector<1x2x8xbf16> to vector<2x8xbf16>
    %cst_153 = arith.constant dense<0.000000e+00> : vector<2x256xf32>
    %163 = tpu.matmul %162, %137, %cst_153 {dimension_numbers = #tpu.dot_dimension_numbers<[1], [0], [0], [1], [0, 0, 1, 1], [], []>} : vector<2x8xbf16>, vector<8x256xbf16>, vector<2x256xf32> -> vector<2x256xf32>
    %164 = arith.truncf %163 : vector<2x256xf32> to vector<2x256xbf16>
    %c3_154 = arith.constant 3 : index
    %c0_155 = arith.constant 0 : index
    %c0_156 = arith.constant 0 : index
    %165 = vector.load %arg16[%c3_154, %c0_155, %c0_156] : memref<4x256x256xbf16, #tpu.memory_space<vmem>>, vector<1x256x256xbf16>
    %166 = vector.shape_cast %165 : vector<1x256x256xbf16> to vector<256x256xbf16>
    %cst_157 = arith.constant dense<0.000000e+00> : vector<2x256xf32>
    %167 = tpu.matmul %164, %166, %cst_157 {dimension_numbers = #tpu.dot_dimension_numbers<[1], [0], [0], [1], [0, 0, 1, 1], [], []>} : vector<2x256xbf16>, vector<256x256xbf16>, vector<2x256xf32> -> vector<2x256xf32>
    %168 = arith.addf %160, %167 : vector<2x256xf32>
    %c0_158 = arith.constant 0 : index
    %c0_159 = arith.constant 0 : index
    %169 = vector.load %arg17[%c0_158, %c0_159] : memref<1x256xf32, #tpu.memory_space<vmem>>, vector<1x256xf32>
    %170 = vector.broadcast %169 : vector<1x256xf32> to vector<2x256xf32>
    %171 = arith.addf %168, %170 : vector<2x256xf32>
    %cst_160 = arith.constant 0.000000e+00 : f32
    %172 = vector.broadcast %cst_160 : f32 to vector<2x256xf32>
    %173 = arith.maximumf %171, %172 : vector<2x256xf32>
    %174 = arith.truncf %173 : vector<2x256xf32> to vector<2x256xbf16>
    %c0_161 = arith.constant 0 : index
    %c0_162 = arith.constant 0 : index
    %175 = vector.load %arg18[%c0_161, %c0_162] : memref<256x128xbf16, #tpu.memory_space<vmem>>, vector<256x128xbf16>
    %cst_163 = arith.constant dense<0.000000e+00> : vector<2x128xf32>
    %176 = tpu.matmul %174, %175, %cst_163 {dimension_numbers = #tpu.dot_dimension_numbers<[1], [0], [0], [1], [0, 0, 1, 1], [], []>} : vector<2x256xbf16>, vector<256x128xbf16>, vector<2x128xf32> -> vector<2x128xf32>
    %c0_164 = arith.constant 0 : index
    %c0_165 = arith.constant 0 : index
    %177 = vector.load %arg19[%c0_164, %c0_165] : memref<1x128xf32, #tpu.memory_space<vmem>>, vector<1x128xf32>
    %178 = vector.broadcast %177 : vector<1x128xf32> to vector<2x128xf32>
    %179 = arith.addf %176, %178 : vector<2x128xf32>
    %c0_166 = arith.constant 0 : index
    %c0_167 = arith.constant 0 : index
    %c0_168 = arith.constant 0 : index
    %180 = vector.load %arg20[%c0_166, %c0_167, %c0_168] : memref<1x2x256xf32, #tpu.memory_space<vmem>>, vector<1x2x256xf32>
    %181 = vector.shape_cast %180 : vector<1x2x256xf32> to vector<2x256xf32>
    %182 = vector.shape_cast %173 : vector<2x256xf32> to vector<1x2x256xf32>
    tpu.vector_store %arg20[%c0_166, %c0_167, %c0_168], %182 {strides = array<i32>} : memref<1x2x256xf32, #tpu.memory_space<vmem>>, vector<1x2x256xf32>,
    %c0_169 = arith.constant 0 : index
    %c0_170 = arith.constant 0 : index
    %c0_171 = arith.constant 0 : index
    %183 = vector.load %arg21[%c0_169, %c0_170, %c0_171] : memref<1x2x128xf32, #tpu.memory_space<vmem>>, vector<1x2x128xf32>
    %184 = vector.shape_cast %183 : vector<1x2x128xf32> to vector<2x128xf32>
    %185 = vector.shape_cast %179 : vector<2x128xf32> to vector<1x2x128xf32>
    tpu.vector_store %arg21[%c0_169, %c0_170, %c0_171], %185 {strides = array<i32>} : memref<1x2x128xf32, #tpu.memory_space<vmem>>, vector<1x2x128xf32>,
    return
  }
  func.func @transform_0(%arg0: i32) -> (i32, i32, i32) {
    %c0_i32 = arith.constant 0 : i32
    %c0_i32_0 = arith.constant 0 : i32
    %c0_i32_1 = arith.constant 0 : i32
    return %arg0, %c0_i32, %c0_i32_0 : i32, i32, i32
  }
  func.func @transform_1(%arg0: i32) -> (i32, i32, i32) {
    %c0_i32 = arith.constant 0 : i32
    %c0_i32_0 = arith.constant 0 : i32
    %c0_i32_1 = arith.constant 0 : i32
    %c0_i32_2 = arith.constant 0 : i32
    return %c0_i32, %c0_i32_0, %c0_i32_1 : i32, i32, i32
  }
  func.func @transform_2(%arg0: i32) -> (i32, i32, i32) {
    %c0_i32 = arith.constant 0 : i32
    %c0_i32_0 = arith.constant 0 : i32
    %c0_i32_1 = arith.constant 0 : i32
    %c0_i32_2 = arith.constant 0 : i32
    return %c0_i32, %c0_i32_0, %c0_i32_1 : i32, i32, i32
  }
  func.func @transform_3(%arg0: i32) -> (i32, i32, i32) {
    %c0_i32 = arith.constant 0 : i32
    %c0_i32_0 = arith.constant 0 : i32
    %c0_i32_1 = arith.constant 0 : i32
    %c0_i32_2 = arith.constant 0 : i32
    return %c0_i32, %c0_i32_0, %c0_i32_1 : i32, i32, i32
  }
  func.func @transform_4(%arg0: i32) -> (i32, i32, i32) {
    %c0_i32 = arith.constant 0 : i32
    %c0_i32_0 = arith.constant 0 : i32
    %c0_i32_1 = arith.constant 0 : i32
    %c0_i32_2 = arith.constant 0 : i32
    return %c0_i32, %c0_i32_0, %c0_i32_1 : i32, i32, i32
  }
  func.func @transform_5(%arg0: i32) -> (i32, i32) {
    %c0_i32 = arith.constant 0 : i32
    %c0_i32_0 = arith.constant 0 : i32
    %c0_i32_1 = arith.constant 0 : i32
    return %c0_i32, %c0_i32_0 : i32, i32
  }
  func.func @transform_6(%arg0: i32) -> (i32, i32, i32) {
    %c0_i32 = arith.constant 0 : i32
    %c0_i32_0 = arith.constant 0 : i32
    %c0_i32_1 = arith.constant 0 : i32
    %c0_i32_2 = arith.constant 0 : i32
    return %c0_i32, %c0_i32_0, %c0_i32_1 : i32, i32, i32
  }
  func.func @transform_7(%arg0: i32) -> (i32, i32, i32) {
    %c0_i32 = arith.constant 0 : i32
    %c0_i32_0 = arith.constant 0 : i32
    %c0_i32_1 = arith.constant 0 : i32
    %c0_i32_2 = arith.constant 0 : i32
    return %c0_i32, %c0_i32_0, %c0_i32_1 : i32, i32, i32
  }
  func.func @transform_8(%arg0: i32) -> (i32, i32) {
    %c0_i32 = arith.constant 0 : i32
    %c0_i32_0 = arith.constant 0 : i32
    %c0_i32_1 = arith.constant 0 : i32
    return %c0_i32, %c0_i32_0 : i32, i32
  }
  func.func @transform_9(%arg0: i32) -> (i32, i32, i32) {
    %c0_i32 = arith.constant 0 : i32
    %c0_i32_0 = arith.constant 0 : i32
    %c0_i32_1 = arith.constant 0 : i32
    %c0_i32_2 = arith.constant 0 : i32
    return %c0_i32, %c0_i32_0, %c0_i32_1 : i32, i32, i32
  }
  func.func @transform_10(%arg0: i32) -> (i32, i32, i32) {
    %c0_i32 = arith.constant 0 : i32
    %c0_i32_0 = arith.constant 0 : i32
    %c0_i32_1 = arith.constant 0 : i32
    %c0_i32_2 = arith.constant 0 : i32
    return %c0_i32, %c0_i32_0, %c0_i32_1 : i32, i32, i32
  }
  func.func @transform_11(%arg0: i32) -> (i32, i32) {
    %c0_i32 = arith.constant 0 : i32
    %c0_i32_0 = arith.constant 0 : i32
    %c0_i32_1 = arith.constant 0 : i32
    return %c0_i32, %c0_i32_0 : i32, i32
  }
  func.func @transform_12(%arg0: i32) -> (i32, i32, i32) {
    %c0_i32 = arith.constant 0 : i32
    %c0_i32_0 = arith.constant 0 : i32
    %c0_i32_1 = arith.constant 0 : i32
    %c0_i32_2 = arith.constant 0 : i32
    return %c0_i32, %c0_i32_0, %c0_i32_1 : i32, i32, i32
  }
  func.func @transform_13(%arg0: i32) -> (i32, i32, i32) {
    %c0_i32 = arith.constant 0 : i32
    %c0_i32_0 = arith.constant 0 : i32
    %c0_i32_1 = arith.constant 0 : i32
    %c0_i32_2 = arith.constant 0 : i32
    return %c0_i32, %c0_i32_0, %c0_i32_1 : i32, i32, i32
  }
  func.func @transform_14(%arg0: i32) -> (i32, i32, i32) {
    %c0_i32 = arith.constant 0 : i32
    %c0_i32_0 = arith.constant 0 : i32
    %c0_i32_1 = arith.constant 0 : i32
    %c0_i32_2 = arith.constant 0 : i32
    return %c0_i32, %c0_i32_0, %c0_i32_1 : i32, i32, i32
  }
  func.func @transform_15(%arg0: i32) -> (i32, i32, i32) {
    %c0_i32 = arith.constant 0 : i32
    %c0_i32_0 = arith.constant 0 : i32
    %c0_i32_1 = arith.constant 0 : i32
    %c0_i32_2 = arith.constant 0 : i32
    return %c0_i32, %c0_i32_0, %c0_i32_1 : i32, i32, i32
  }
  func.func @transform_16(%arg0: i32) -> (i32, i32) {
    %c0_i32 = arith.constant 0 : i32
    %c0_i32_0 = arith.constant 0 : i32
    %c0_i32_1 = arith.constant 0 : i32
    return %c0_i32, %c0_i32_0 : i32, i32
  }
  func.func @transform_17(%arg0: i32) -> (i32, i32) {
    %c0_i32 = arith.constant 0 : i32
    %c0_i32_0 = arith.constant 0 : i32
    %c0_i32_1 = arith.constant 0 : i32
    return %c0_i32, %c0_i32_0 : i32, i32
  }
  func.func @transform_18(%arg0: i32) -> (i32, i32) {
    %c0_i32 = arith.constant 0 : i32
    %c0_i32_0 = arith.constant 0 : i32
    %c0_i32_1 = arith.constant 0 : i32
    return %c0_i32, %c0_i32_0 : i32, i32
  }
  func.func @transform_19(%arg0: i32) -> (i32, i32, i32) {
    %c0_i32 = arith.constant 0 : i32
    %c0_i32_0 = arith.constant 0 : i32
    %c0_i32_1 = arith.constant 0 : i32
    return %arg0, %c0_i32, %c0_i32_0 : i32, i32, i32
  }
  func.func @transform_20(%arg0: i32) -> (i32, i32, i32) {
    %c0_i32 = arith.constant 0 : i32
    %c0_i32_0 = arith.constant 0 : i32
    %c0_i32_1 = arith.constant 0 : i32
    return %arg0, %c0_i32, %c0_i32_0 : i32, i32, i32
  }
}

</mosaic_0001>

<bundles_post_ra>
// kernel: usps_ensembnet_forward.1
= control target key start
LH: loop header
LB: loop body
LE: loop exit
PB: predicated region body
PF: predicated region fallthrough
CT: control target
= control target key end

     0   :  { %s22018_s0 = inlined_call_operand.hbm [shape: f32[1,56,28], index: 0, kind: input, shape index: {}]   ;;  %s22019_s1 = inlined_call_operand.hbm [shape: bf16[5,48,56], index: 1, kind: input, shape index: {}]   ;;  %s22020_s2 = inlined_call_operand.hbm [shape: bf16[5,28,768], index: 2, kind: input, shape index: {}]   ;;  %s22021_s3 = inlined_call_operand.hbm [shape: bf16[2,24,48], index: 3, kind: input, shape index: {}]   ;;  %s22022_s4 = inlined_call_operand.hbm [shape: bf16[2,768,384], index: 4, kind: input, shape index: {}]   ;;  %s22023_s5 = inlined_call_operand.hbm [shape: f32[1,384], index: 5, kind: input, shape index: {}]   ;;  %s22024_s6 = inlined_call_operand.hbm [shape: bf16[3,20,24], index: 6, kind: input, shape index: {}]   ;;  %s22025_s7 = inlined_call_operand.hbm [shape: bf16[3,384,640], index: 7, kind: input, shape index: {}]   ;;  %s22026_s8 = inlined_call_operand.hbm [shape: f32[1,640], index: 8, kind: input, shape index: {}]   ;;  %s22027_s9 = inlined_call_operand.hbm [shape: bf16[3,16,20], index: 9, kind: input, shape index: {}]   ;;  %s22028_s10 = inlined_call_operand.hbm [shape: bf16[3,640,512], index: 10, kind: input, shape index: {}]   ;;  %s22029_s11 = inlined_call_operand.hbm [shape: f32[1,256], index: 11, kind: input, shape index: {}]   ;;  %s22030_s12 = inlined_call_operand.hbm [shape: bf16[2,8,16], index: 12, kind: input, shape index: {}]   ;;  %s22031_s13 = inlined_call_operand.hbm [shape: bf16[2,512,256], index: 13, kind: input, shape index: {}]   ;;  %s22032_s14 = inlined_call_operand.hbm [shape: bf16[4,2,8], index: 14, kind: input, shape index: {}]   ;;  %s22033_s15 = inlined_call_operand.hbm [shape: bf16[4,256,256], index: 15, kind: input, shape index: {}]   ;;  %s22034_s16 = inlined_call_operand.hbm [shape: f32[1,256], index: 16, kind: input, shape index: {}]   ;;  %s22035_s17 = inlined_call_operand.hbm [shape: bf16[256,128], index: 17, kind: input, shape index: {}]   ;;  %s22036_s18 = inlined_call_operand.hbm [shape: f32[1,128], index: 18, kind: input, shape index: {}]   ;;  %s22037_s19 = inlined_call_operand.hbm [shape: f32[1,2,256], index: 19, kind: output, shape index: {0}]   ;;  %s22038_s20 = inlined_call_operand.hbm [shape: f32[1,2,128], index: 20, kind: output, shape index: {1}]  }
   0x1   :  { %22047 = sst [smem:[#allocation47_spill]] %s22018_s0 }
   0x2   :  { %22048 = sst [smem:[#allocation48_spill]] %s22019_s1 }
   0x3   :  { %22049 = sst [smem:[#allocation49_spill]] %s22020_s2 }
   0x4   :  { %22050 = sst [smem:[#allocation50_spill]] %s22021_s3 }
   0x5   :  { %22051 = sst [smem:[#allocation51_spill]] %s22022_s4 }
   0x6   :  { %22052 = sst [smem:[#allocation52_spill]] %s22036_s18 }
   0x7   :  { %22053 = sst [smem:[#allocation53_spill]] %s22037_s19 }
   0x8   :  { %22054 = sst [smem:[#allocation54_spill]] %s22038_s20 }
   0x9   :  { %26 = vsyncpa [#allocation3], 0 }
   0xa   :  { %27 = vsyncpa [#allocation6], 0 }
   0xb   :  { %28 = vsyncpa [#allocation9], 0 }
   0xc   :  { %29 = vsyncpa [#allocation12], 0 }
   0xd   :  { %30 = vsyncpa [#allocation15], 0 }
   0xe   :  { %31 = vsyncpa [#allocation18], 0 }
   0xf   :  { %32 = vsyncpa [#allocation21], 0 }
  0x10   :  { %33 = vsyncpa [#allocation24], 0 }
  0x11   :  { %34 = vsyncpa [#allocation27], 0 }
  0x12   :  { %35 = vsyncpa [#allocation30], 0 }
  0x13   :  { %36 = vsyncpa [#allocation4], 0 }
  0x14   :  { %37 = vsyncpa [#allocation34], 0  ;;  %s20693_s1 = smov [#allocation5]   ;;  %s22055_s2 = sld [smem:[#allocation48_spill]] }
  0x15   :  { %s55_s22 = sshll.u32 %s20693_s1, 4  ;;  %s56_s22 = int_to_ptr.vmem [resolvable:$true] %s55_s22 }
  0x1a   :  { %s20207_s25 = scalar_lea.hbm %s22055_s2, 1920 }
  0x1b   :  { %p20208_p0 = scmp.ne.s32.totalorder %s22055_s2, %s20207_s25  ;;  %p20211_p1 = scmp.lt.u32.totalorder %s20207_s25, %s22055_s2 }
  0x1d   :  { %p20213_p2 = pnand %p20211_p1, %p20208_p0 }
  0x1f   :  { %20216 = shalt.err (!%p20213_p2)
}
  0x20   :  { %s20217_s4 = scalar_lea.vmem %s56_s22, 1920  ;;  %p20222_p4 = scmp.lt.s32.totalorder %s56_s22, %s56_s22 }
  0x21   :  { %p20218_p3 = scmp.ne.s32.totalorder %s56_s22, %s20217_s4  ;;  %p20223_p5 = scmp.lt.s32.totalorder %s20217_s4, %s20217_s4 }
  0x23   :  { %p20224_p6 = por %p20223_p5, %p20222_p4 }
  0x25   :  { %p20225_p7 = pnand %p20224_p6, %p20218_p3 }
  0x27   :  { %20228 = shalt.err (!%p20225_p7)
}
  0x28   :  { %s20694_s29 = smov 64   ;;  %s20695_s30 = smov 4  }
  0x29   :  { %61 = dma.hbm_to_vmem [thread:$0]  %s22055_s2, 1920, %s56_s22, [#allocation6], %s20694_s29, %s20694_s29, %s20695_s30  }
  0x2a   :  { %s20696_s1 = smov [#allocation8]   ;;  %s20697_s24 = smov [#allocation11]  }
  0x2b   :  { %s79_s23 = sshll.u32 %s20696_s1, 4  ;;  %s104_s25 = sshll.u32 %s20697_s24, 4  ;;  %s80_s23 = int_to_ptr.vmem [resolvable:$true] %s79_s23  ;;  %s105_s25 = int_to_ptr.vmem [resolvable:$true] %s104_s25 }
  0x2c   :  { %s22056_s27 = sld [smem:[#allocation50_spill]] }
  0x32   :  { %s20229_s28 = scalar_lea.hbm %s22056_s27, 384 }
  0x33   :  { %p20230_p8 = scmp.ne.s32.totalorder %s22056_s27, %s20229_s28  ;;  %p20233_p9 = scmp.lt.u32.totalorder %s20229_s28, %s22056_s27 }
  0x35   :  { %p20235_p10 = pnand %p20233_p9, %p20230_p8 }
  0x37   :  { %20238 = shalt.err (!%p20235_p10)
}
  0x38   :  { %s20239_s22 = scalar_lea.vmem %s80_s23, 384  ;;  %p20244_p12 = scmp.lt.s32.totalorder %s80_s23, %s80_s23 }
  0x39   :  { %p20240_p11 = scmp.ne.s32.totalorder %s80_s23, %s20239_s22  ;;  %p20245_p13 = scmp.lt.s32.totalorder %s20239_s22, %s20239_s22 }
  0x3b   :  { %p20246_p0 = por %p20245_p13, %p20244_p12 }
  0x3d   :  { %p20247_p1 = pnand %p20246_p0, %p20240_p11 }
  0x3f   :  { %20250 = shalt.err (!%p20247_p1)
}
  0x40   :  { %85 = dma.hbm_to_vmem [thread:$0]  %s22056_s27, 384, %s80_s23, [#allocation9], %s20694_s29, %s20694_s29, %s20695_s30  }
  0x41   :  { %s20251_s19 = scalar_lea.hbm %s22023_s5, 48 }
  0x42   :  { %p20252_p2 = scmp.ne.s32.totalorder %s22023_s5, %s20251_s19  ;;  %p20255_p3 = scmp.lt.u32.totalorder %s20251_s19, %s22023_s5 }
  0x44   :  { %p20257_p4 = pnand %p20255_p3, %p20252_p2 }
  0x46   :  { %20260 = shalt.err (!%p20257_p4)
}
  0x47   :  { %s20261_s26 = scalar_lea.vmem %s105_s25, 48  ;;  %s20265_s28 = scalar_lea.vmem %s105_s25, 64 }
  0x48   :  { %p20262_p5 = scmp.ne.s32.totalorder %s105_s25, %s20261_s26  ;;  %p20266_p6 = scmp.lt.s32.totalorder %s105_s25, %s105_s25 }
  0x49   :  { %p20267_p7 = scmp.lt.s32.totalorder %s20265_s28, %s20261_s26 }
  0x4b   :  { %p20268_p8 = por %p20267_p7, %p20266_p6 }
  0x4d   :  { %p20269_p9 = pnand %p20268_p8, %p20262_p5 }
  0x4f   :  { %20272 = shalt.err (!%p20269_p9)
}
  0x50   :  { %107 = dma.hbm_to_vmem [thread:$0]  %s22023_s5, 48, %s105_s25, [#allocation12]  }
  0x51   :  { %s20698_s4 = smov [#allocation14]   ;;  %s20273_s20 = scalar_lea.hbm %s22025_s7, 46080 }
  0x52   :  { %s125_s22 = sshll.u32 %s20698_s4, 4  ;;  %p20274_p10 = scmp.ne.s32.totalorder %s22025_s7, %s20273_s20  ;;  %s126_s22 = int_to_ptr.vmem [resolvable:$true] %s125_s22 }
  0x53   :  { %p20277_p11 = scmp.lt.u32.totalorder %s20273_s20, %s22025_s7 }
  0x55   :  { %p20279_p12 = pnand %p20277_p11, %p20274_p10 }
  0x57   :  { %20282 = shalt.err (!%p20279_p12)
}
  0x58   :  { %s20283_s24 = scalar_lea.vmem %s126_s22, 46080  ;;  %p20288_p0 = scmp.lt.s32.totalorder %s126_s22, %s126_s22 }
  0x59   :  { %p20284_p13 = scmp.ne.s32.totalorder %s126_s22, %s20283_s24  ;;  %p20289_p1 = scmp.lt.s32.totalorder %s20283_s24, %s20283_s24 }
  0x5b   :  { %p20290_p2 = por %p20289_p1, %p20288_p0 }
  0x5d   :  { %p20291_p3 = pnand %p20290_p2, %p20284_p13 }
  0x5f   :  { %20294 = shalt.err (!%p20291_p3)
}
  0x60   :  { %s20699_s5 = smov 320   ;;  %s20700_s25 = smov 20  }
  0x61   :  { %131 = dma.hbm_to_vmem [thread:$0]  %s22025_s7, 46080, %s126_s22, [#allocation15], %s20699_s5, %s20699_s5, %s20700_s25  }
  0x62   :  { %s20701_s28 = smov [#allocation17]   ;;  %s20702_s27 = smov [#allocation20]  }
  0x63   :  { %s147_s23 = sshll.u32 %s20701_s28, 4  ;;  %s172_s4 = sshll.u32 %s20702_s27, 4  ;;  %s148_s23 = int_to_ptr.vmem [resolvable:$true] %s147_s23  ;;  %s173_s4 = int_to_ptr.vmem [resolvable:$true] %s172_s4 }
  0x64   :  { %s20295_s20 = scalar_lea.hbm %s22027_s9, 384 }
  0x65   :  { %p20296_p4 = scmp.ne.s32.totalorder %s22027_s9, %s20295_s20  ;;  %p20299_p5 = scmp.lt.u32.totalorder %s20295_s20, %s22027_s9 }
  0x67   :  { %p20301_p6 = pnand %p20299_p5, %p20296_p4 }
  0x69   :  { %20304 = shalt.err (!%p20301_p6)
}
  0x6a   :  { %s20305_s7 = scalar_lea.vmem %s148_s23, 384  ;;  %p20310_p8 = scmp.lt.s32.totalorder %s148_s23, %s148_s23 }
  0x6b   :  { %p20306_p7 = scmp.ne.s32.totalorder %s148_s23, %s20305_s7  ;;  %p20311_p9 = scmp.lt.s32.totalorder %s20305_s7, %s20305_s7 }
  0x6d   :  { %p20312_p10 = por %p20311_p9, %p20310_p8 }
  0x6f   :  { %p20313_p11 = pnand %p20312_p10, %p20306_p7 }
  0x71   :  { %20316 = shalt.err (!%p20313_p11)
}
  0x72   :  { %153 = dma.hbm_to_vmem [thread:$0]  %s22027_s9, 384, %s148_s23, [#allocation18], %s20694_s29, %s20694_s29, %s20695_s30  }
  0x73   :  { %s20317_s3 = scalar_lea.hbm %s22029_s11, 32 }
  0x74   :  { %p20318_p12 = scmp.ne.s32.totalorder %s22029_s11, %s20317_s3  ;;  %p20321_p13 = scmp.lt.u32.totalorder %s20317_s3, %s22029_s11 }
  0x76   :  { %p20323_p0 = pnand %p20321_p13, %p20318_p12 }
  0x78   :  { %20326 = shalt.err (!%p20323_p0)
}
  0x79   :  { %s20327_s0 = scalar_lea.vmem %s173_s4, 32  ;;  %p20332_p2 = scmp.lt.s32.totalorder %s173_s4, %s173_s4 }
  0x7a   :  { %p20328_p1 = scmp.ne.s32.totalorder %s173_s4, %s20327_s0  ;;  %p20333_p3 = scmp.lt.s32.totalorder %s20327_s0, %s20327_s0 }
  0x7c   :  { %p20334_p4 = por %p20333_p3, %p20332_p2 }
  0x7e   :  { %p20335_p5 = pnand %p20334_p4, %p20328_p1 }
  0x80   :  { %20338 = shalt.err (!%p20335_p5)
}
  0x81   :  { %175 = dma.hbm_to_vmem [thread:$0]  %s22029_s11, 32, %s173_s4, [#allocation21]  }
  0x82   :  { %s20703_s20 = smov [#allocation23]   ;;  %s20704_s19 = smov [#allocation26]  }
  0x83   :  { %s193_s18 = sshll.u32 %s20703_s20, 4  ;;  %s217_s21 = sshll.u32 %s20704_s19, 4  ;;  %s194_s18 = int_to_ptr.vmem [resolvable:$true] %s193_s18  ;;  %s20916_s21 = int_to_ptr.vmem [resolvable:$true] %s217_s21 }
  0x84   :  { %s20339_s22 = scalar_lea.hbm %s22031_s13, 16384 }
  0x85   :  { %p20340_p6 = scmp.ne.s32.totalorder %s22031_s13, %s20339_s22  ;;  %p20343_p7 = scmp.lt.u32.totalorder %s20339_s22, %s22031_s13 }
  0x87   :  { %p20345_p8 = pnand %p20343_p7, %p20340_p6 }
  0x89   :  { %20348 = shalt.err (!%p20345_p8)
}
  0x8a   :  { %s20349_s11 = scalar_lea.vmem %s194_s18, 16384  ;;  %p20354_p10 = scmp.lt.s32.totalorder %s194_s18, %s194_s18 }
  0x8b   :  { %p20350_p9 = scmp.ne.s32.totalorder %s194_s18, %s20349_s11  ;;  %p20355_p11 = scmp.lt.s32.totalorder %s20349_s11, %s20349_s11 }
  0x8d   :  { %p20356_p12 = por %p20355_p11, %p20354_p10 }
  0x8f   :  { %p20357_p13 = pnand %p20356_p12, %p20350_p9 }
  0x91   :  { %20360 = shalt.err (!%p20357_p13)
}
  0x92   :  { %s20705_s4 = smov 128   ;;  %s20706_s26 = smov 8  }
  0x93   :  { %199 = dma.hbm_to_vmem [thread:$0]  %s22031_s13, 16384, %s194_s18, [#allocation24], %s20705_s4, %s20705_s4, %s20706_s26  }
  0x94   :  { %s20361_s9 = scalar_lea.hbm %s22033_s15, 16384 }
  0x95   :  { %p20362_p0 = scmp.ne.s32.totalorder %s22033_s15, %s20361_s9  ;;  %p20365_p1 = scmp.lt.u32.totalorder %s20361_s9, %s22033_s15 }
  0x97   :  { %p20367_p2 = pnand %p20365_p1, %p20362_p0 }
  0x99   :  { %20370 = shalt.err (!%p20367_p2)
}
  0x9a   :  { %s20371_s7 = scalar_lea.vmem %s20916_s21, 16384  ;;  %p20376_p4 = scmp.lt.s32.totalorder %s20916_s21, %s20916_s21 }
  0x9b   :  { %p20372_p3 = scmp.ne.s32.totalorder %s20916_s21, %s20371_s7  ;;  %p20377_p5 = scmp.lt.s32.totalorder %s20371_s7, %s20371_s7 }
  0x9d   :  { %p20378_p6 = por %p20377_p5, %p20376_p4 }
  0x9f   :  { %p20379_p7 = pnand %p20378_p6, %p20372_p3 }
  0xa1   :  { %20382 = shalt.err (!%p20379_p7)
}
  0xa2   :  { %223 = dma.hbm_to_vmem [thread:$0]  %s22033_s15, 16384, %s20916_s21, [#allocation27], %s20705_s4, %s20705_s4, %s20706_s26  }
  0xa3   :  { %s20707_s22 = smov [#allocation29]   ;;  %s20708_s5 = smov [#allocation2]  }
  0xa4   :  { %s239_s24 = sshll.u32 %s20707_s22, 4  ;;  %s43_s25 = sshll.u32 %s20708_s5, 4  ;;  %s240_s24 = int_to_ptr.vmem [resolvable:$true] %s239_s24  ;;  %s20953_s25 = int_to_ptr.vmem [resolvable:$true] %s43_s25 }
  0xa5   :  { %s20383_s28 = scalar_lea.hbm %s22035_s17, 2048 }
  0xa6   :  { %p20384_p8 = scmp.ne.s32.totalorder %s22035_s17, %s20383_s28  ;;  %p20387_p9 = scmp.lt.u32.totalorder %s20383_s28, %s22035_s17 }
  0xa8   :  { %p20389_p10 = pnand %p20387_p9, %p20384_p8 }
  0xaa   :  { %20392 = shalt.err (!%p20389_p10)
}
  0xab   :  { %s20393_s15 = scalar_lea.vmem %s240_s24, 2048  ;;  %p20398_p12 = scmp.lt.s32.totalorder %s240_s24, %s240_s24 }
  0xac   :  { %p20394_p11 = scmp.ne.s32.totalorder %s240_s24, %s20393_s15  ;;  %p20399_p13 = scmp.lt.s32.totalorder %s20393_s15, %s20393_s15 }
  0xae   :  { %p20400_p0 = por %p20399_p13, %p20398_p12 }
  0xb0   :  { %p20401_p1 = pnand %p20400_p0, %p20394_p11 }
  0xb2   :  { %20404 = shalt.err (!%p20401_p1)
}
  0xb3   :  { %245 = dma.hbm_to_vmem [thread:$0]  %s22035_s17, 2048, %s240_s24, [#allocation30], %s20694_s29, %s20694_s29, %s20695_s30  }
  0xb4   :  { %s22057_s1 = sld [smem:[#allocation47_spill]] }
  0xba   :  { %s20405_s7 = scalar_lea.hbm %s22057_s1, 896 }
  0xbb   :  { %p20406_p2 = scmp.ne.s32.totalorder %s22057_s1, %s20405_s7  ;;  %p20409_p3 = scmp.lt.u32.totalorder %s20405_s7, %s22057_s1 }
  0xbd   :  { %p20411_p4 = pnand %p20409_p3, %p20406_p2 }
  0xbf   :  { %20414 = shalt.err (!%p20411_p4)
}
  0xc0   :  { %s20415_s3 = scalar_lea.vmem %s20953_s25, 896  ;;  %p20420_p6 = scmp.lt.s32.totalorder %s20953_s25, %s20953_s25 }
  0xc1   :  { %p20416_p5 = scmp.ne.s32.totalorder %s20953_s25, %s20415_s3  ;;  %p20421_p7 = scmp.lt.s32.totalorder %s20415_s3, %s20415_s3 }
  0xc3   :  { %p20422_p8 = por %p20421_p7, %p20420_p6 }
  0xc5   :  { %p20423_p9 = pnand %p20422_p8, %p20416_p5 }
  0xc7   :  { %20426 = shalt.err (!%p20423_p9)
}
  0xc8   :  { %49 = dma.hbm_to_vmem [thread:$0]  %s22057_s1, 896, %s20953_s25, [#allocation3], %s20705_s4, %s20705_s4, %s20706_s26  }
  0xc9   :  { %s20709_s11 = smov [#allocation7]   ;;  %s22058_s0 = sld [smem:[#allocation49_spill]] }
  0xca   :  { %s67_s28 = sshll.u32 %s20709_s11, 4  ;;  %s68_s28 = int_to_ptr.vmem [resolvable:$true] %s67_s28 }
  0xcf   :  { %s20427_s9 = scalar_lea.hbm %s22058_s0, 7680 }
  0xd0   :  { %p20428_p10 = scmp.ne.s32.totalorder %s22058_s0, %s20427_s9  ;;  %p20431_p11 = scmp.lt.u32.totalorder %s20427_s9, %s22058_s0 }
  0xd2   :  { %p20433_p12 = pnand %p20431_p11, %p20428_p10 }
  0xd4   :  { %20436 = shalt.err (!%p20433_p12)
}
  0xd5   :  { %s20437_s19 = scalar_lea.vmem %s68_s28, 7680  ;;  %p20442_p0 = scmp.lt.s32.totalorder %s68_s28, %s68_s28 }
  0xd6   :  { %p20438_p13 = scmp.ne.s32.totalorder %s68_s28, %s20437_s19  ;;  %p20443_p1 = scmp.lt.s32.totalorder %s20437_s19, %s20437_s19 }
  0xd8   :  { %p20444_p2 = por %p20443_p1, %p20442_p0 }
  0xda   :  { %p20445_p3 = pnand %p20444_p2, %p20438_p13 }
  0xdc   :  { %20448 = shalt.err (!%p20445_p3)
}
  0xdd   :  { %s20710_s4 = smov 384   ;;  %s20711_s26 = smov 24  }
  0xde   :  { %73 = dma.hbm_to_vmem [thread:$0]  %s22058_s0, 7680, %s68_s28, [#allocation6], %s20710_s4, %s20710_s4, %s20711_s26  }
  0xdf   :  { %s20712_s7 = smov [#allocation10]   ;;  %s22059_s5 = sld [smem:[#allocation51_spill]] }
  0xe0   :  { %s91_s13 = sshll.u32 %s20712_s7, 4  ;;  %s92_s13 = int_to_ptr.vmem [resolvable:$true] %s91_s13 }
  0xe5   :  { %s20449_s3 = scalar_lea.hbm %s22059_s5, 36864 }
  0xe6   :  { %p20450_p4 = scmp.ne.s32.totalorder %s22059_s5, %s20449_s3  ;;  %p20453_p5 = scmp.lt.u32.totalorder %s20449_s3, %s22059_s5 }
  0xe8   :  { %p20455_p6 = pnand %p20453_p5, %p20450_p4 }
  0xea   :  { %20458 = shalt.err (!%p20455_p6)
}
  0xeb   :  { %s20459_s2 = scalar_lea.vmem %s92_s13, 36864  ;;  %p20464_p8 = scmp.lt.s32.totalorder %s92_s13, %s92_s13 }
  0xec   :  { %p20460_p7 = scmp.ne.s32.totalorder %s92_s13, %s20459_s2  ;;  %p20465_p9 = scmp.lt.s32.totalorder %s20459_s2, %s20459_s2 }
  0xee   :  { %p20466_p10 = por %p20465_p9, %p20464_p8 }
  0xf0   :  { %p20467_p11 = pnand %p20466_p10, %p20460_p7 }
  0xf2   :  { %20470 = shalt.err (!%p20467_p11)
}
  0xf3   :  { %s20713_s28 = smov 192   ;;  %s20714_s0 = smov 12  }
  0xf4   :  { %97 = dma.hbm_to_vmem [thread:$0]  %s22059_s5, 36864, %s92_s13, [#allocation9], %s20713_s28, %s20713_s28, %s20714_s0  }
  0xf5   :  { %s20715_s21 = smov [#allocation13]   ;;  %s20716_s20 = smov [#allocation16]  }
  0xf6   :  { %s113_s23 = sshll.u32 %s20715_s21, 4  ;;  %s138_s19 = sshll.u32 %s20716_s20, 4  ;;  %s114_s23 = int_to_ptr.vmem [resolvable:$true] %s113_s23  ;;  %s139_s19 = int_to_ptr.vmem [resolvable:$true] %s138_s19 }
  0xf7   :  { %s20471_s25 = scalar_lea.hbm %s22024_s6, 576 }
  0xf8   :  { %p20472_p12 = scmp.ne.s32.totalorder %s22024_s6, %s20471_s25  ;;  %p20475_p13 = scmp.lt.u32.totalorder %s20471_s25, %s22024_s6 }
  0xfa   :  { %p20477_p0 = pnand %p20475_p13, %p20472_p12 }
  0xfc   :  { %20480 = shalt.err (!%p20477_p0)
}
  0xfd   :  { %s20481_s13 = scalar_lea.vmem %s114_s23, 576  ;;  %p20486_p2 = scmp.lt.s32.totalorder %s114_s23, %s114_s23 }
  0xfe   :  { %p20482_p1 = scmp.ne.s32.totalorder %s114_s23, %s20481_s13  ;;  %p20487_p3 = scmp.lt.s32.totalorder %s20481_s13, %s20481_s13 }
 0x100   :  { %p20488_p4 = por %p20487_p3, %p20486_p2 }
 0x102   :  { %p20489_p5 = pnand %p20488_p4, %p20482_p1 }
 0x104   :  { %20492 = shalt.err (!%p20489_p5)
}
 0x105   :  { %119 = dma.hbm_to_vmem [thread:$0]  %s22024_s6, 576, %s114_s23, [#allocation12], %s20694_s29, %s20694_s29, %s20695_s30  }
 0x106   :  { %s20493_s11 = scalar_lea.hbm %s22026_s8, 80 }
 0x107   :  { %p20494_p6 = scmp.ne.s32.totalorder %s22026_s8, %s20493_s11  ;;  %p20497_p7 = scmp.lt.u32.totalorder %s20493_s11, %s22026_s8 }
 0x109   :  { %p20499_p8 = pnand %p20497_p7, %p20494_p6 }
 0x10b   :  { %20502 = shalt.err (!%p20499_p8)
}
 0x10c   :  { %s20503_s9 = scalar_lea.vmem %s139_s19, 80  ;;  %s20507_s15 = scalar_lea.vmem %s139_s19, 96 }
 0x10d   :  { %p20504_p9 = scmp.ne.s32.totalorder %s139_s19, %s20503_s9  ;;  %p20508_p10 = scmp.lt.s32.totalorder %s139_s19, %s139_s19 }
 0x10e   :  { %p20509_p11 = scmp.lt.s32.totalorder %s20507_s15, %s20503_s9 }
 0x110   :  { %p20510_p12 = por %p20509_p11, %p20508_p10 }
 0x112   :  { %p20511_p13 = pnand %p20510_p12, %p20504_p9 }
 0x114   :  { %20514 = shalt.err (!%p20511_p13)
}
 0x115   :  { %141 = dma.hbm_to_vmem [thread:$0]  %s22026_s8, 80, %s139_s19, [#allocation15]  }
 0x116   :  { %s20717_s23 = smov [#allocation19]   ;;  %s20515_s25 = scalar_lea.hbm %s22028_s10, 61440 }
 0x117   :  { %s159_s20 = sshll.u32 %s20717_s23, 4  ;;  %p20516_p0 = scmp.ne.s32.totalorder %s22028_s10, %s20515_s25  ;;  %s160_s20 = int_to_ptr.vmem [resolvable:$true] %s159_s20 }
 0x118   :  { %p20519_p1 = scmp.lt.u32.totalorder %s20515_s25, %s22028_s10 }
 0x11a   :  { %p20521_p2 = pnand %p20519_p1, %p20516_p0 }
 0x11c   :  { %20524 = shalt.err (!%p20521_p2)
}
 0x11d   :  { %s20525_s13 = scalar_lea.vmem %s160_s20, 61440  ;;  %p20530_p4 = scmp.lt.s32.totalorder %s160_s20, %s160_s20 }
 0x11e   :  { %p20526_p3 = scmp.ne.s32.totalorder %s160_s20, %s20525_s13  ;;  %p20531_p5 = scmp.lt.s32.totalorder %s20525_s13, %s20525_s13 }
 0x120   :  { %p20532_p6 = por %p20531_p5, %p20530_p4 }
 0x122   :  { %p20533_p7 = pnand %p20532_p6, %p20526_p3 }
 0x124   :  { %20536 = shalt.err (!%p20533_p7)
}
 0x125   :  { %s20718_s8 = smov 256   ;;  %s20719_s19 = smov 16  }
 0x126   :  { %165 = dma.hbm_to_vmem [thread:$0]  %s22028_s10, 61440, %s160_s20, [#allocation18], %s20718_s8, %s20718_s8, %s20719_s19  }
 0x127   :  { %s20720_s17 = smov [#allocation22]   ;;  %s20721_s11 = smov [#allocation25]  }
 0x128   :  { %s181_s24 = sshll.u32 %s20720_s17, 4  ;;  %s205_s27 = sshll.u32 %s20721_s11, 4  ;;  %s182_s24 = int_to_ptr.vmem [resolvable:$true] %s181_s24  ;;  %s206_s27 = int_to_ptr.vmem [resolvable:$true] %s205_s27 }
 0x129   :  { %s20537_s0 = scalar_lea.hbm %s22030_s12, 128 }
 0x12a   :  { %p20538_p8 = scmp.ne.s32.totalorder %s22030_s12, %s20537_s0  ;;  %p20541_p9 = scmp.lt.u32.totalorder %s20537_s0, %s22030_s12 }
 0x12c   :  { %p20543_p10 = pnand %p20541_p9, %p20538_p8 }
 0x12e   :  { %20546 = shalt.err (!%p20543_p10)
}
 0x12f   :  { %s20547_s10 = scalar_lea.vmem %s182_s24, 128  ;;  %p20552_p12 = scmp.lt.s32.totalorder %s182_s24, %s182_s24 }
 0x130   :  { %p20548_p11 = scmp.ne.s32.totalorder %s182_s24, %s20547_s10  ;;  %p20553_p13 = scmp.lt.s32.totalorder %s20547_s10, %s20547_s10 }
 0x132   :  { %p20554_p0 = por %p20553_p13, %p20552_p12 }
 0x134   :  { %p20555_p1 = pnand %p20554_p0, %p20548_p11 }
 0x136   :  { %20558 = shalt.err (!%p20555_p1)
}
 0x137   :  { %187 = dma.hbm_to_vmem [thread:$0]  %s22030_s12, 128, %s182_s24, [#allocation21], %s20694_s29, %s20694_s29, %s20695_s30  }
 0x138   :  { %s20559_s25 = scalar_lea.hbm %s22032_s14, 64 }
 0x139   :  { %p20560_p2 = scmp.ne.s32.totalorder %s22032_s14, %s20559_s25  ;;  %p20563_p3 = scmp.lt.u32.totalorder %s20559_s25, %s22032_s14 }
 0x13b   :  { %p20565_p4 = pnand %p20563_p3, %p20560_p2 }
 0x13d   :  { %20568 = shalt.err (!%p20565_p4)
}
 0x13e   :  { %s20569_s13 = scalar_lea.vmem %s206_s27, 64  ;;  %p20574_p6 = scmp.lt.s32.totalorder %s206_s27, %s206_s27 }
 0x13f   :  { %p20570_p5 = scmp.ne.s32.totalorder %s206_s27, %s20569_s13  ;;  %p20575_p7 = scmp.lt.s32.totalorder %s20569_s13, %s20569_s13 }
 0x141   :  { %p20576_p8 = por %p20575_p7, %p20574_p6 }
 0x143   :  { %p20577_p9 = pnand %p20576_p8, %p20570_p5 }
 0x145   :  { %20580 = shalt.err (!%p20577_p9)
}
 0x146   :  { %s20722_s12 = smov 1   ;;  %s20723_s8 = smov [#allocation28]  }
 0x147   :  { %211 = dma.hbm_to_vmem [thread:$0]  %s22032_s14, 64, %s206_s27, [#allocation24], %s20719_s19, %s20719_s19, %s20722_s12  }
 0x148   :  { %s230_s5 = sshll.u32 %s20723_s8, 4  ;;  %s20724_s3 = smov [#allocation31]   ;;  %s231_s5 = int_to_ptr.vmem [resolvable:$true] %s230_s5 }
 0x149   :  { %s252_s17 = sshll.u32 %s20724_s3, 4  ;;  %s20581_s2 = scalar_lea.hbm %s22034_s16, 32  ;;  %s253_s17 = int_to_ptr.vmem [resolvable:$true] %s252_s17 }
 0x14a   :  { %p20582_p10 = scmp.ne.s32.totalorder %s22034_s16, %s20581_s2  ;;  %p20585_p11 = scmp.lt.u32.totalorder %s20581_s2, %s22034_s16 }
 0x14c   :  { %p20587_p12 = pnand %p20585_p11, %p20582_p10 }
 0x14e   :  { %20590 = shalt.err (!%p20587_p12)
}
 0x14f   :  { %s20591_s14 = scalar_lea.vmem %s231_s5, 32  ;;  %p20596_p0 = scmp.lt.s32.totalorder %s231_s5, %s231_s5 }
 0x150   :  { %p20592_p13 = scmp.ne.s32.totalorder %s231_s5, %s20591_s14  ;;  %p20597_p1 = scmp.lt.s32.totalorder %s20591_s14, %s20591_s14 }
 0x152   :  { %p20598_p2 = por %p20597_p1, %p20596_p0 }
 0x154   :  { %p20599_p3 = pnand %p20598_p2, %p20592_p13 }
 0x156   :  { %20602 = shalt.err (!%p20599_p3)
}
 0x157   :  { %233 = dma.hbm_to_vmem [thread:$0]  %s22034_s16, 32, %s231_s5, [#allocation27]  }
 0x158   :  { %s22060_s10 = sld [smem:[#allocation52_spill]] }
 0x15e   :  { %s20603_s23 = scalar_lea.hbm %s22060_s10, 16 }
 0x15f   :  { %p20604_p4 = scmp.ne.s32.totalorder %s22060_s10, %s20603_s23  ;;  %p20607_p5 = scmp.lt.u32.totalorder %s20603_s23, %s22060_s10 }
 0x161   :  { %p20609_p6 = pnand %p20607_p5, %p20604_p4 }
 0x163   :  { %20612 = shalt.err (!%p20609_p6)
}
 0x164   :  { %s20613_s1 = scalar_lea.vmem %s253_s17, 16  ;;  %s20617_s7 = scalar_lea.vmem %s253_s17, 32 }
 0x165   :  { %p20614_p7 = scmp.ne.s32.totalorder %s253_s17, %s20613_s1  ;;  %p20618_p8 = scmp.lt.s32.totalorder %s253_s17, %s253_s17 }
 0x166   :  { %p20619_p9 = scmp.lt.s32.totalorder %s20617_s7, %s20613_s1 }
 0x168   :  { %p20620_p10 = por %p20619_p9, %p20618_p8 }
 0x16a   :  { %p20621_p11 = pnand %p20620_p10, %p20614_p7 }
 0x16c   :  { %20624 = shalt.err (!%p20621_p11)
}
 0x16d   :  { %255 = dma.hbm_to_vmem [thread:$0]  %s22060_s10, 16, %s253_s17, [#allocation30]  }
 0x16e   :  { %20669 = dma.done.wait [#allocation3], 896  }
 0x16f   :  { %20670 = vsyncadd [#allocation3], 4294966400 }
 0x170   :  { %20671 = dma.done.wait [#allocation6], 9600  }
 0x171   :  { %20672 = vsyncadd [#allocation6], 4294957696 }
 0x172   :  { %20673 = dma.done.wait [#allocation9], 37248  }
 0x173   :  { %20674 = vsyncadd [#allocation9], 4294930048 }
 0x174   :  { %20675 = dma.done.wait [#allocation12], 624  }
 0x175   :  { %20676 = vsyncadd [#allocation12], 4294966672 }
 0x176   :  { %20677 = dma.done.wait [#allocation15], 46160  }
 0x177   :  { %20678 = vsyncadd [#allocation15], 4294921136 }
 0x178   :  { %20679 = dma.done.wait [#allocation18], 61824  }
 0x179   :  { %20680 = vsyncadd [#allocation18], 4294905472 }
 0x17a   :  { %20681 = dma.done.wait [#allocation21], 160  }
 0x17b   :  { %20682 = vsyncadd [#allocation21], 4294967136 }
 0x17c   :  { %20683 = dma.done.wait [#allocation24], 16448  }
 0x17d   :  { %20684 = vsyncadd [#allocation24], 4294950848 }
 0x17e   :  { %20685 = dma.done.wait [#allocation27], 16416  }
 0x17f   :  { %20686 = vsyncadd [#allocation27], 4294950880 }
 0x180   :  { %20687 = dma.done.wait [#allocation30], 2064  }
 0x181   :  { %20688 = vsyncadd [#allocation30], 4294965232  ;;  %v20725_v0 = vmov 0.0   ;;  %vm20726_vm0 = vmmov 0   ;;  %v314_v1 = vld [vmem:[#allocation2] sm:$0xff]  ;;  %v315_v2 = vld [vmem:[#allocation2 + $0x8] sm:$0xff] }
 0x182   :  { %17537 = vmatprep.subr.bf16.mxu0 %v20725_v0  ;;  %17545 = vmatprep.mubr.msk.bf16.mxu0 %vm20726_vm0, %v20725_v0  ;;  %v316_v3 = vld [vmem:[#allocation2 + $0x10] sm:$0xff]  ;;  %v21113_v4 = vpack.c.bf16 %v315_v2, %v314_v1  ;;  %v317_v5 = vld [vmem:[#allocation2 + $0x18] sm:$0xff]  ;;  %v318_v7 = vld [vmem:[#allocation2 + $0x20] sm:$0xff]  ;;  %vm356_vm1 = vcmask 1043456   ;;  %vm346_vm2 = vcmask 457728   ;;  %vm600_vm3 = vcmask 1045504  }
 0x183   :  { %17745 = vmatprep.subr.bf16.mxu1 %v20725_v0  ;;  %17569 = vmatprep.mubr.msk.bf16.mxu1 %vm20726_vm0, %v20725_v0  ;;  %v21116_v6 = vpack.c.bf16 %v317_v5, %v316_v3  ;;  %v319_v8 = vld [vmem:[#allocation2 + $0x28] sm:$0xff]  ;;  %v320_v9 = vld [vmem:[#allocation2 + $0x30] sm:$0xff]  ;;  %v18081_v13 = vld [vmem:[#allocation5] sm:$0xff]   ;;  %v20727_v29 = vmov 0   ;;  %vm590_vm4 = vcmask 228352   ;;  %vm2337_vm5 = vcmask 392192  }
 0x184   :  { %17538 = vmatpush3.bf16.msra.mxu0 %v21113_v4  ;;  %17749 = vmatpush3.bf16.msra.mxu1 %v21113_v4  ;;  %v21122_v10 = vpack.c.bf16 %v319_v8, %v318_v7  ;;  %v324_v11 = vpack.c.bf16 %v320_v9, %v320_v9  ;;  %v18085_v14 = vld [vmem:[#allocation5 + $0x20] sm:$0xff]   ;;  %v18082_v15 = vld [vmem:[#allocation5 + $0x8] sm:$0xff]   ;;  %v18083_v17 = vld [vmem:[#allocation5 + $0x10] sm:$0xff]   ;;  %vm5274_vm6 = vcmask 195584   ;;  %vm8940_vm7 = vcmask 1041408   ;;  %s20728_s22 = smov [#allocation32]  }
 0x185   :  { %17539 = vmatprep.subr.bf16.mxu0 %v20725_v0  ;;  %17746 = vmatprep.subr.bf16.mxu1 %v20725_v0  ;;  %v18086_v16 = vld [vmem:[#allocation5 + $0x28] sm:$0xff]   ;;  %v18084_v18 = vld [vmem:[#allocation5 + $0x18] sm:$0xff]   ;;  %vm8936_vm8 = vcmask 162816   ;;  %vm13043_vm9 = vcmask 130048   ;;  %vm14178_vm10 = vcmask 64512   ;;  %s15526_s13 = sshll.u32 %s20728_s22, 4  ;;  %s15527_s13 = int_to_ptr.vmem [resolvable:$true] %s15526_s13 }
 0x186   :  { %v21131_v12 = vsel %vm356_vm1, %v324_v11, 0  ;;  %v18087_v19 = vld [vmem:[#allocation7 + $0x68] ss:$24 sps:$4 sm:$0xff]   ;;  %v18089_v20 = vld [vmem:[#allocation7 + $0x6c] ss:$24 sps:$4 sm:$0xff]   ;;  %s20625_s12 = scalar_lea.vmem %s15527_s13, 64  ;;  %p20630_p13 = scmp.lt.s32.totalorder %s15527_s13, %s15527_s13 }
 0x187   :  { %v18090_v21 = vld [vmem:[#allocation7 + $0x60] ss:$24 sps:$4 sm:$0xff]   ;;  %v18092_v22 = vld [vmem:[#allocation7 + $0x64] ss:$24 sps:$4 sm:$0xff]   ;;  %v18104_v31 = vld [vmem:[#allocation7 + $0x74] ss:$24 sps:$4 sm:$0xff]   ;;  %p20626_p12 = scmp.ne.s32.totalorder %s15527_s13, %s20625_s12  ;;  %p20631_p0 = scmp.lt.s32.totalorder %s20625_s12, %s20625_s12 }
 0x188   :  { %17540 = vmatpush3.bf16.msra.mxu0 %v21116_v6  ;;  %17750 = vmatpush3.bf16.msra.mxu1 %v21116_v6  ;;  %v18093_v23 = vld [vmem:[#allocation7 + $0x94] ss:$24 sps:$4 sm:$0x3f]   ;;  %v18097_v25 = vld [vmem:[#allocation7 + $0x90] ss:$24 sps:$4 sm:$0x3f]  }
 0x189   :  { %17541 = vmatprep.subr.bf16.mxu0 %v20725_v0  ;;  %17747 = vmatprep.subr.bf16.mxu1 %v20725_v0  ;;  %v18095_v24 = vld [vmem:[#allocation7 + $0x9c] ss:$24 sps:$4 sm:$0x3f]   ;;  %v18098_v26 = vld [vmem:[#allocation7 + $0x98] ss:$24 sps:$4 sm:$0x3f]   ;;  %p20632_p1 = por %p20631_p0, %p20630_p13 }
 0x18a   :  { %v602_v27 = vsel %vm600_vm3, %v18097_v25, 0  ;;  %v608_v28 = vsel %vm600_vm3, %v18098_v26, 0  ;;  %v18101_v30 = vld [vmem:[#allocation7 + $0xc] ss:$24 sps:$4 sm:$0xff]   ;;  %v18099_v61 = vld [vmem:[#allocation7 + $0x8] ss:$24 sps:$4 sm:$0xff]  }
 0x18b   :  { %v18107_v57 = vld [vmem:[#allocation7 + $0x38] ss:$24 sps:$4 sm:$0x3f]   ;;  %v18105_v1 = vld [vmem:[#allocation7 + $0x3c] ss:$24 sps:$4 sm:$0x3f]   ;;  %p20633_p2 = pnand %p20632_p1, %p20626_p12 }
 0x18c   :  { %17542 = vmatpush3.bf16.msra.mxu0 %v21122_v10  ;;  %17751 = vmatpush3.bf16.msra.mxu1 %v21122_v10  ;;  %v18110_v58 = vld [vmem:[#allocation7 + $0xa0] ss:$24 sps:$4 sm:$0x3f]   ;;  %v18102_v62 = vld [vmem:[#allocation7 + $0x70] ss:$24 sps:$4 sm:$0xff]   ;;  %v878_v7 = vsel %vm600_vm3, %v18107_v57, 0 }
 0x18d   :  { %17543 = vmatprep.subr.bf16.mxu0 %v20725_v0  ;;  %17748 = vmatprep.subr.bf16.mxu1 %v20725_v0  ;;  %v18108_v2 = vld [vmem:[#allocation7 + $0xa4] ss:$24 sps:$4 sm:$0x3f]   ;;  %v614_v8 = vsel %vm600_vm3, %v18110_v58, 0  ;;  %v18111_v11 = vld [vmem:[#allocation7] ss:$24 sps:$4 sm:$0xff]  }
 0x18e   :  { %v18113_v9 = vld [vmem:[#allocation7 + $0x4] ss:$24 sps:$4 sm:$0xff]   ;;  %v18144_v57 = vld [vmem:[#allocation5 + $0x48] sm:$0xff]   ;;  %v18147_v58 = vld [vmem:[#allocation7 + $0x128] ss:$24 sps:$4 sm:$0xff]  }
 0x18f   :  { %v18131_v25 = vld [vmem:[#allocation7 + $0xc4] ss:$24 sps:$4 sm:$0xff]  }
 0x190   :  { %17544 = vmatpush3.bf16.msra.mxu0 %v21131_v12  ;;  %17752 = vmatpush3.bf16.msra.mxu1 %v21131_v12  ;;  %v18118_v26 = vld [vmem:[#allocation5 + $0x38] sm:$0xff]  }
 0x191   :  { %17557 = vmatprep.subr.bf16.mxu0 %v20725_v0  ;;  %682 = vmatprep.subr.bf16.mxu1 %v18089_v20  ;;  %v18119_v20 = vld [vmem:[#allocation7 + $0x10] ss:$24 sps:$4 sm:$0xff]  }
 0x193   :  { %17546 = vmatmul.mubr.msk.bf16.vlgmr.msra.gmra.mrb[0].mxu0 %vm346_vm2, %v18081_v13  ;;  %17570 = vmatmul.mubr.msk.bf16.vlgmr.msra.gmra.mrb[0].mxu1 %vm346_vm2, %v18085_v14  ;;  %v18114_v13 = vld [vmem:[#allocation7 + $0x34] ss:$24 sps:$4 sm:$0x3f]   ;;  %v18116_v14 = vld [vmem:[#allocation7 + $0x30] ss:$24 sps:$4 sm:$0x3f]  }
 0x194   :  { %17549 = vmatprep.mubr.msk.bf16.mxu0 %vm20726_vm0, %v20725_v0  ;;  %17558 = vmatpush3.bf16.msra.mxu0 %v21113_v4 }
 0x195   :  { %17559 = vmatprep.subr.bf16.mxu0 %v20725_v0  ;;  %17573 = vmatprep.mubr.msk.bf16.mxu1 %vm20726_vm0, %v20725_v0 }
 0x196   :  { %683 = vmatpush1.bf16.msra.mxu1 %v18087_v19  ;;  %v18125_v19 = vld [vmem:[#allocation7 + $0x40] ss:$24 sps:$4 sm:$0x3f]  }
 0x197   :  { %15586 = vmatprep.subr.msk.bf16.mxu1 %vm600_vm3, %v18095_v24  ;;  %v884_v24 = vsel %vm600_vm3, %v18125_v19, 0 }
 0x198   :  { %17560 = vmatpush3.bf16.msra.mxu0 %v21116_v6 }
 0x199   :  { %17561 = vmatprep.subr.bf16.mxu0 %v20725_v0 }
 0x19a   :  { %685 = vmatpush1.bf16.msra.mxu1 %v608_v28  ;;  %v18129_v28 = vld [vmem:[#allocation7 + $0xc0] ss:$24 sps:$4 sm:$0xff]  }
 0x19b   :  { %17550 = vmatmul.mubr.msk.bf16.gmra.mrb[4].mxu0 %vm346_vm2, %v18082_v15  ;;  %17574 = vmatmul.mubr.msk.bf16.gmra.mrb[4].mxu1 %vm346_vm2, %v18086_v16  ;;  %v18121_v15 = vld [vmem:[#allocation7 + $0x14] ss:$24 sps:$4 sm:$0xff]   ;;  %v872_v16 = vsel %vm600_vm3, %v18116_v14, 0 }
 0x19c   :  { %17553 = vmatprep.mubr.msk.bf16.mxu0 %vm20726_vm0, %v20725_v0  ;;  %17562 = vmatpush3.bf16.msra.mxu0 %v21122_v10 }
 0x19d   :  { %17563 = vmatprep.subr.bf16.mxu0 %v20725_v0  ;;  %714 = vmatprep.mubr.bf16.mxu1 %v20727_v29 }
 0x19e   :  { %952 = vmatprep.subr.bf16.mxu1 %v18101_v30  ;;  %v18134_v30 = vld [vmem:[#allocation7 + $0xf8] ss:$24 sps:$4 sm:$0x3f]  }
 0x1a0   :  { %17564 = vmatpush3.bf16.msra.mxu0 %v21131_v12 }
 0x1a1   :  { %619 = vmatprep.subr.bf16.mxu0 %v18092_v22  ;;  %v18123_v22 = vld [vmem:[#allocation7 + $0x44] ss:$24 sps:$4 sm:$0x3f]  }
 0x1a3   :  { %17554 = vmatmul.mubr.msk.bf16.gmra.mrb[8].mxu0 %vm346_vm2, %v18083_v17  ;;  %v18128_v17 = vld [vmem:[#allocation7 + $0xcc] ss:$24 sps:$4 sm:$0xff]  }
 0x1a4   :  { %17565 = vmatprep.mubr.msk.bf16.mxu0 %vm20726_vm0, %v20725_v0 }
 0x1ab   :  { %17566 = vmatmul.mubr.msk.bf16.vlgmr.msra.gmra.mrb[12].mxu0 %vm346_vm2, %v18084_v18  ;;  %v18117_v18 = vld [vmem:[#allocation5 + $0x30] sm:$0xff]  }
 0x1ac   :  { %620 = vmatpush1.bf16.msra.mxu0 %v18090_v21  ;;  %651 = vmatprep.mubr.bf16.mxu0 %v20727_v29  ;;  %v18126_v21 = vld [vmem:[#allocation7 + $0xc8] ss:$24 sps:$4 sm:$0xff]  }
 0x1ad   :  { %15582 = vmatprep.subr.msk.bf16.mxu0 %vm600_vm3, %v18093_v23  ;;  %v18132_v23 = vld [vmem:[#allocation7 + $0xfc] ss:$24 sps:$4 sm:$0x3f]  }
 0x1b0   :  { %622 = vmatpush1.bf16.msra.mxu0 %v602_v27  ;;  %v18122_v27 = vld [vmem:[#allocation5 + $0x40] sm:$0xff]  }
 0x1b1   :  { %745 = vmatprep.subr.bf16.mxu0 %v18104_v31  ;;  %v18135_v31 = vld [vmem:[#allocation7 + $0xf4] ss:$24 sps:$4 sm:$0x3f]  }
 0x266   :  { %v394_v32 = vpop.f32.mrb[0].mxu0  ;;  %v505_v33 = vpop.f32.mrb[0].mxu1 }
 0x267   :  { %v17547_v34 = vpop.f32.mrb[1].mxu0  ;;  %v17571_v35 = vpop.f32.mrb[1].mxu1 }
 0x268   :  { %v397_v36 = vpop.f32.mrb[2].mxu0  ;;  %v508_v37 = vpop.f32.mrb[2].mxu1  ;;  %v18140_v35 = vld [vmem:[#allocation7 + $0xd4] ss:$24 sps:$4 sm:$0xff]  }
 0x269   :  { %v21164_v38 = vpack.c.bf16 %v397_v36, %v394_v32  ;;  %v17548_v39 = vpop.f32.mrb[3].mxu0  ;;  %v21166_v40 = vpack.c.bf16 %v508_v37, %v505_v33  ;;  %v17572_v41 = vpop.f32.mrb[3].mxu1  ;;  %v18137_v32 = vld [vmem:[#allocation7 + $0xf0] ss:$24 sps:$4 sm:$0x3f]   ;;  %v1252_v33 = vsel %vm600_vm3, %v18134_v30, 0 }
 0x26a   :  { %v1246_v34 = vsel %vm600_vm3, %v18137_v32, 0  ;;  %v18143_v41 = vld [vmem:[#allocation7 + $0x100] ss:$24 sps:$4 sm:$0x3f]  }
 0x26b   :  { %v18168_v30 = vld [vmem:[#allocation7 + $0x180] ss:$24 sps:$4 sm:$0xff]   ;;  %v18174_v32 = vld [vmem:[#allocation7 + $0x1b4] ss:$24 sps:$4 sm:$0x3f]  }
 0x26e   :  { %v402_v42 = vpop.f32.mrb[4].mxu0  ;;  %v513_v43 = vpop.f32.mrb[4].mxu1 }
 0x26f   :  { %v17551_v44 = vpop.f32.mrb[5].mxu0  ;;  %v17575_v45 = vpop.f32.mrb[5].mxu1 }
 0x270   :  { %v405_v46 = vpop.f32.mrb[6].mxu0  ;;  %v516_v47 = vpop.f32.mrb[6].mxu1  ;;  %v18152_v44 = vld [vmem:[#allocation7 + $0x124] ss:$24 sps:$4 sm:$0xff]  }
 0x271   :  { %v21168_v48 = vpack.c.bf16 %v405_v46, %v402_v42  ;;  %v17552_v49 = vpop.f32.mrb[7].mxu0  ;;  %v21170_v50 = vpack.c.bf16 %v516_v47, %v513_v43  ;;  %v17576_v51 = vpop.f32.mrb[7].mxu1  ;;  %v1258_v46 = vsel %vm600_vm3, %v18143_v41, 0 }
 0x272   :  { %v18149_v51 = vld [vmem:[#allocation7 + $0x12c] ss:$24 sps:$4 sm:$0xff]  }
 0x276   :  { %v410_v52 = vpop.f32.mrb[8].mxu0 }
 0x277   :  { %v17555_v53 = vpop.f32.mrb[9].mxu0 }
 0x278   :  { %v413_v54 = vpop.f32.mrb[10].mxu0 }
 0x279   :  { %v21172_v55 = vpack.c.bf16 %v413_v54, %v410_v52  ;;  %v17556_v56 = vpop.f32.mrb[11].mxu0 }
 0x27e   :  { %v497_v59 = vpop.f32.mrb[12].mxu0 }
 0x27f   :  { %v17567_v60 = vpop.f32.mrb[13].mxu0 }
 0x280   :  { %v500_v63 = vpop.f32.mrb[14].mxu0  ;;  %v18153_v60 = vld [vmem:[#allocation7 + $0x15c] ss:$24 sps:$4 sm:$0x3f]  }
 0x281   :  { %v520_v3 = vpack.c.bf16 %v500_v63, %v497_v59  ;;  %v17568_v5 = vpop.f32.mrb[15].mxu0  ;;  %v18150_v59 = vld [vmem:[#allocation7 + $0x120] ss:$24 sps:$4 sm:$0xff]  }
 0x282   :  { %v18155_v63 = vld [vmem:[#allocation7 + $0x158] ss:$24 sps:$4 sm:$0x3f]  }
 0x283   :  { %15583 = vmatmul.mubr.msk.bf16.vlgmr.msra.gmra.mrb[16].mxu0 %vm590_vm4, %v520_v3  ;;  %15587 = vmatmul.mubr.msk.bf16.vlgmr.msra.gmra.mrb[8].mxu1 %vm590_vm4, %v520_v3 }
 0x284   :  { %661 = vmatprep.mubr.bf16.mxu0 %v20727_v29  ;;  %724 = vmatprep.mubr.bf16.mxu1 %v20727_v29 }
 0x285   :  { %953 = vmatpush1.bf16.msra.mxu1 %v18099_v61  ;;  %746 = vmatpush1.bf16.msra.mxu0 %v18102_v62  ;;  %v18145_v61 = vld [vmem:[#allocation5 + $0x50] sm:$0xff]   ;;  %v18146_v62 = vld [vmem:[#allocation5 + $0x58] sm:$0xff]  }
 0x286   :  { %15610 = vmatprep.subr.msk.bf16.mxu1 %vm600_vm3, %v18105_v1  ;;  %15590 = vmatprep.subr.msk.bf16.mxu0 %vm600_vm3, %v18108_v2  ;;  %v18156_v1 = vld [vmem:[#allocation7 + $0x154] ss:$24 sps:$4 sm:$0x3f]   ;;  %v18158_v2 = vld [vmem:[#allocation7 + $0x150] ss:$24 sps:$4 sm:$0x3f]  }
 0x287   :  { %v1656_v5 = vsel %vm600_vm3, %v18158_v2, 0 }
 0x289   :  { %955 = vmatpush1.bf16.msra.mxu1 %v878_v7  ;;  %748 = vmatpush1.bf16.msra.mxu0 %v614_v8  ;;  %v18161_v7 = vld [vmem:[#allocation7 + $0x134] ss:$24 sps:$4 sm:$0xff]  }
 0x28a   :  { %17577 = vmatprep.subr.bf16.mxu1 %v20725_v0  ;;  %889 = vmatprep.subr.bf16.mxu0 %v18113_v9 }
 0x28b   :  { %15584 = vmatmul.mubr.msk.bf16.gmra.mrb[20].mxu0 %vm590_vm4, %v21166_v40  ;;  %15588 = vmatmul.mubr.msk.bf16.gmra.mrb[12].mxu1 %vm590_vm4, %v21166_v40 }
 0x28c   :  { %671 = vmatprep.mubr.bf16.mxu0 %v20727_v29  ;;  %734 = vmatprep.mubr.bf16.mxu1 %v20727_v29 }
 0x293   :  { %15585 = vmatmul.mubr.msk.bf16.gmra.mrb[24].mxu0 %vm590_vm4, %v21170_v50  ;;  %15589 = vmatmul.mubr.msk.bf16.gmra.mrb[16].mxu1 %vm590_vm4, %v21170_v50 }
 0x294   :  { %777 = vmatprep.mubr.bf16.mxu0 %v20727_v29  ;;  %984 = vmatprep.mubr.bf16.mxu1 %v20727_v29 }
 0x29b   :  { %15591 = vmatmul.mubr.msk.bf16.vlgmr.msra.gmra.mrb[28].mxu0 %vm590_vm4, %v520_v3  ;;  %15611 = vmatmul.mubr.msk.bf16.vlgmr.msra.gmra.mrb[8].mxu1 %vm590_vm4, %v21164_v38  ;;  %v1662_v3 = vsel %vm600_vm3, %v18155_v63, 0 }
 0x29c   :  { %787 = vmatprep.mubr.bf16.mxu0 %v20727_v29  ;;  %994 = vmatprep.mubr.bf16.mxu1 %v20727_v29 }
 0x29d   :  { %17578 = vmatpush3.bf16.msra.mxu1 %v21113_v4  ;;  %890 = vmatpush1.bf16.msra.mxu0 %v18111_v11 }
 0x29e   :  { %17579 = vmatprep.subr.bf16.mxu1 %v20725_v0  ;;  %15606 = vmatprep.subr.msk.bf16.mxu0 %vm600_vm3, %v18114_v13 }
 0x2a1   :  { %17580 = vmatpush3.bf16.msra.mxu1 %v21116_v6  ;;  %892 = vmatpush1.bf16.msra.mxu0 %v872_v16  ;;  %v18162_v16 = vld [vmem:[#allocation7 + $0x164] ss:$24 sps:$4 sm:$0x3f]  }
 0x2a2   :  { %17581 = vmatprep.subr.bf16.mxu1 %v20725_v0  ;;  %1015 = vmatprep.subr.bf16.mxu0 %v18121_v15  ;;  %v18159_v15 = vld [vmem:[#allocation7 + $0x130] ss:$24 sps:$4 sm:$0xff]  }
 0x2a3   :  { %15592 = vmatmul.mubr.msk.bf16.gmra.mrb[32].mxu0 %vm590_vm4, %v21166_v40  ;;  %15612 = vmatmul.mubr.msk.bf16.gmra.mrb[12].mxu1 %vm590_vm4, %v21168_v48  ;;  %v18141_v40 = vld [vmem:[#allocation7 + $0x104] ss:$24 sps:$4 sm:$0x3f]  }
 0x2a4   :  { %797 = vmatprep.mubr.bf16.mxu0 %v20727_v29  ;;  %1004 = vmatprep.mubr.bf16.mxu1 %v20727_v29 }
 0x2a5   :  { %17582 = vmatpush3.bf16.msra.mxu1 %v21122_v10 }
 0x2a6   :  { %17583 = vmatprep.subr.bf16.mxu1 %v20725_v0 }
 0x2a9   :  { %17584 = vmatpush3.bf16.msra.mxu1 %v21131_v12 }
 0x2aa   :  { %1326 = vmatprep.subr.bf16.mxu1 %v18128_v17  ;;  %v18164_v17 = vld [vmem:[#allocation7 + $0x160] ss:$24 sps:$4 sm:$0x3f]  }
 0x2ab   :  { %15593 = vmatmul.mubr.msk.bf16.gmra.mrb[36].mxu0 %vm590_vm4, %v21170_v50  ;;  %15613 = vmatmul.mubr.msk.bf16.gmra.mrb[16].mxu1 %vm590_vm4, %v21172_v55  ;;  %v1668_v19 = vsel %vm600_vm3, %v18164_v17, 0 }
 0x2ac   :  { %921 = vmatprep.mubr.bf16.mxu0 %v20727_v29  ;;  %17585 = vmatprep.mubr.msk.bf16.mxu1 %vm20726_vm0, %v20725_v0 }
 0x2b3   :  { %15607 = vmatmul.mubr.msk.bf16.vlgmr.msra.gmra.mrb[16].mxu0 %vm590_vm4, %v21164_v38  ;;  %17586 = vmatmul.mubr.msk.bf16.vlgmr.msra.gmra.mrb[20].mxu1 %vm346_vm2, %v18117_v18 }
 0x2b4   :  { %931 = vmatprep.mubr.bf16.mxu0 %v20727_v29  ;;  %17589 = vmatprep.mubr.msk.bf16.mxu1 %vm20726_vm0, %v20725_v0 }
 0x2b5   :  { %1016 = vmatpush1.bf16.msra.mxu0 %v18119_v20  ;;  %1327 = vmatpush1.bf16.msra.mxu1 %v18126_v21  ;;  %v18170_v20 = vld [vmem:[#allocation7 + $0x184] ss:$24 sps:$4 sm:$0xff]  }
 0x2b6   :  { %15614 = vmatprep.subr.msk.bf16.mxu0 %vm600_vm3, %v18123_v22  ;;  %15640 = vmatprep.subr.msk.bf16.mxu1 %vm600_vm3, %v18132_v23 }
 0x2b9   :  { %1018 = vmatpush1.bf16.msra.mxu0 %v884_v24  ;;  %1329 = vmatpush1.bf16.msra.mxu1 %v1252_v33  ;;  %v18167_v33 = vld [vmem:[#allocation5 + $0x70] sm:$0xff]  }
 0x2ba   :  { %1263 = vmatprep.subr.bf16.mxu0 %v18131_v25  ;;  %17597 = vmatprep.subr.bf16.mxu1 %v20725_v0  ;;  %v18173_v25 = vld [vmem:[#allocation7 + $0x18c] ss:$24 sps:$4 sm:$0xff]  }
 0x2bb   :  { %15608 = vmatmul.mubr.msk.bf16.gmra.mrb[20].mxu0 %vm590_vm4, %v21168_v48  ;;  %17590 = vmatmul.mubr.msk.bf16.gmra.mrb[24].mxu1 %vm346_vm2, %v18118_v26 }
 0x2bc   :  { %941 = vmatprep.mubr.bf16.mxu0 %v20727_v29  ;;  %17593 = vmatprep.mubr.msk.bf16.mxu1 %vm20726_vm0, %v20725_v0 }
 0x2c3   :  { %15609 = vmatmul.mubr.msk.bf16.gmra.mrb[24].mxu0 %vm590_vm4, %v21172_v55  ;;  %17594 = vmatmul.mubr.msk.bf16.gmra.mrb[28].mxu1 %vm346_vm2, %v18122_v27 }
 0x2c4   :  { %1047 = vmatprep.mubr.bf16.mxu0 %v20727_v29  ;;  %1358 = vmatprep.mubr.bf16.mxu1 %v20727_v29 }
 0x2cb   :  { %15615 = vmatmul.mubr.msk.bf16.vlgmr.msra.gmra.mrb[28].mxu0 %vm590_vm4, %v21164_v38  ;;  %v18138_v38 = vld [vmem:[#allocation7 + $0xd0] ss:$24 sps:$4 sm:$0xff]  }
 0x2cc   :  { %1057 = vmatprep.mubr.bf16.mxu0 %v20727_v29  ;;  %1264 = vmatpush1.bf16.msra.mxu0 %v18129_v28 }
 0x2cd   :  { %15636 = vmatprep.subr.msk.bf16.mxu0 %vm600_vm3, %v18135_v31  ;;  %v18171_v31 = vld [vmem:[#allocation7 + $0x188] ss:$24 sps:$4 sm:$0xff]  }
 0x2d0   :  { %1266 = vmatpush1.bf16.msra.mxu0 %v1246_v34  ;;  %v18176_v34 = vld [vmem:[#allocation7 + $0x1b0] ss:$24 sps:$4 sm:$0x3f]  }
 0x2d1   :  { %1389 = vmatprep.subr.bf16.mxu0 %v18140_v35  ;;  %v18177_v35 = vld [vmem:[#allocation7 + $0x1bc] ss:$24 sps:$4 sm:$0x3f]  }
 0x2d3   :  { %15616 = vmatmul.mubr.msk.bf16.gmra.mrb[32].mxu0 %vm590_vm4, %v21168_v48 }
 0x2d4   :  { %1067 = vmatprep.mubr.bf16.mxu0 %v20727_v29 }
 0x2db   :  { %15617 = vmatmul.mubr.msk.bf16.gmra.mrb[36].mxu0 %vm590_vm4, %v21172_v55 }
 0x2dc   :  { %1295 = vmatprep.mubr.bf16.mxu0 %v20727_v29 }
 0x386   :  { %v1143_v36 = vpop.f32.mrb[20].mxu1 }
 0x387   :  { %v17587_v37 = vpop.f32.mrb[21].mxu1 }
 0x388   :  { %v1146_v39 = vpop.f32.mrb[22].mxu1  ;;  %v2066_v37 = vsel %vm600_vm3, %v18176_v34, 0  ;;  %v21370_v34 = vld [vmem:[#allocation8 + $0xc] sm:$0xff]  }
 0x389   :  { %v1166_v42 = vpack.c.bf16 %v1146_v39, %v1143_v36  ;;  %v17588_v43 = vpop.f32.mrb[23].mxu1  ;;  %v18179_v36 = vld [vmem:[#allocation7 + $0x1b8] ss:$24 sps:$4 sm:$0x3f]   ;;  %v18182_v39 = vld [vmem:[#allocation7 + $0x194] ss:$24 sps:$4 sm:$0xff]  }
 0x38b   :  { %15637 = vmatmul.mubr.msk.bf16.vlgmr.msra.gmra.mrb[16].mxu0 %vm590_vm4, %v1166_v42  ;;  %15641 = vmatmul.mubr.msk.bf16.vlgmr.msra.gmra.mrb[8].mxu1 %vm590_vm4, %v1166_v42 }
 0x38c   :  { %1305 = vmatprep.mubr.bf16.mxu0 %v20727_v29  ;;  %1368 = vmatprep.mubr.bf16.mxu1 %v20727_v29 }
 0x38d   :  { %17598 = vmatpush3.bf16.msra.mxu1 %v21113_v4  ;;  %1390 = vmatpush1.bf16.msra.mxu0 %v18138_v38  ;;  %v2072_v38 = vsel %vm600_vm3, %v18179_v36, 0 }
 0x38e   :  { %v1151_v45 = vpop.f32.mrb[24].mxu1  ;;  %17599 = vmatprep.subr.bf16.mxu1 %v20725_v0  ;;  %15644 = vmatprep.subr.msk.bf16.mxu0 %vm600_vm3, %v18141_v40 }
 0x38f   :  { %v17591_v47 = vpop.f32.mrb[25].mxu1 }
 0x390   :  { %v1154_v48 = vpop.f32.mrb[26].mxu1  ;;  %v18185_v47 = vld [vmem:[#allocation7 + $0x1c0] ss:$24 sps:$4 sm:$0x3f]  }
 0x391   :  { %v1167_v49 = vpack.c.bf16 %v1154_v48, %v1151_v45  ;;  %v17592_v50 = vpop.f32.mrb[27].mxu1  ;;  %17600 = vmatpush3.bf16.msra.mxu1 %v21116_v6  ;;  %1392 = vmatpush1.bf16.msra.mxu0 %v1258_v46  ;;  %v18180_v45 = vld [vmem:[#allocation7 + $0x190] ss:$24 sps:$4 sm:$0xff]   ;;  %v18183_v46 = vld [vmem:[#allocation7 + $0x1c4] ss:$24 sps:$4 sm:$0x3f]  }
 0x392   :  { %17601 = vmatprep.subr.bf16.mxu1 %v20725_v0  ;;  %1673 = vmatprep.subr.bf16.mxu0 %v18152_v44 }
 0x393   :  { %15638 = vmatmul.mubr.msk.bf16.gmra.mrb[20].mxu0 %vm590_vm4, %v1167_v49  ;;  %15642 = vmatmul.mubr.msk.bf16.gmra.mrb[12].mxu1 %vm590_vm4, %v1167_v49 }
 0x394   :  { %1315 = vmatprep.mubr.bf16.mxu0 %v20727_v29  ;;  %1378 = vmatprep.mubr.bf16.mxu1 %v20727_v29 }
 0x395   :  { %17602 = vmatpush3.bf16.msra.mxu1 %v21122_v10 }
 0x396   :  { %v1159_v52 = vpop.f32.mrb[28].mxu1  ;;  %17603 = vmatprep.subr.bf16.mxu1 %v20725_v0 }
 0x397   :  { %v17595_v53 = vpop.f32.mrb[29].mxu1 }
 0x398   :  { %v1162_v54 = vpop.f32.mrb[30].mxu1 }
 0x399   :  { %v1168_v55 = vpack.c.bf16 %v1162_v54, %v1159_v52  ;;  %v17596_v56 = vpop.f32.mrb[31].mxu1  ;;  %17604 = vmatpush3.bf16.msra.mxu1 %v21131_v12 }
 0x39a   :  { %1736 = vmatprep.subr.bf16.mxu1 %v18149_v51 }
 0x39b   :  { %15639 = vmatmul.mubr.msk.bf16.gmra.mrb[24].mxu0 %vm590_vm4, %v1168_v55  ;;  %15643 = vmatmul.mubr.msk.bf16.gmra.mrb[16].mxu1 %vm590_vm4, %v1168_v55 }
 0x39c   :  { %1421 = vmatprep.mubr.bf16.mxu0 %v20727_v29  ;;  %17605 = vmatprep.mubr.msk.bf16.mxu1 %vm20726_vm0, %v20725_v0 }
 0x3a3   :  { %15645 = vmatmul.mubr.msk.bf16.vlgmr.msra.gmra.mrb[28].mxu0 %vm590_vm4, %v1166_v42  ;;  %17606 = vmatmul.mubr.msk.bf16.vlgmr.msra.gmra.mrb[32].mxu1 %vm346_vm2, %v18144_v57 }
 0x3a4   :  { %1431 = vmatprep.mubr.bf16.mxu0 %v20727_v29  ;;  %17609 = vmatprep.mubr.msk.bf16.mxu1 %vm20726_vm0, %v20725_v0 }
 0x3a5   :  { %1737 = vmatpush1.bf16.msra.mxu1 %v18147_v58  ;;  %1674 = vmatpush1.bf16.msra.mxu0 %v18150_v59 }
 0x3a6   :  { %15670 = vmatprep.subr.msk.bf16.mxu1 %vm600_vm3, %v18153_v60  ;;  %15666 = vmatprep.subr.msk.bf16.mxu0 %vm600_vm3, %v18156_v1 }
 0x3a9   :  { %1739 = vmatpush1.bf16.msra.mxu1 %v1662_v3  ;;  %1676 = vmatpush1.bf16.msra.mxu0 %v1656_v5 }
 0x3aa   :  { %17617 = vmatprep.subr.bf16.mxu1 %v20725_v0  ;;  %1799 = vmatprep.subr.bf16.mxu0 %v18161_v7 }
 0x3ab   :  { %15646 = vmatmul.mubr.msk.bf16.gmra.mrb[32].mxu0 %vm590_vm4, %v1167_v49  ;;  %17610 = vmatmul.mubr.msk.bf16.gmra.mrb[36].mxu1 %vm346_vm2, %v18145_v61  ;;  %v2078_v49 = vsel %vm600_vm3, %v18185_v47, 0 }
 0x3ac   :  { %1441 = vmatprep.mubr.bf16.mxu0 %v20727_v29  ;;  %17613 = vmatprep.mubr.msk.bf16.mxu1 %vm20726_vm0, %v20725_v0 }
 0x3b3   :  { %15647 = vmatmul.mubr.msk.bf16.gmra.mrb[36].mxu0 %vm590_vm4, %v1168_v55  ;;  %17614 = vmatmul.mubr.msk.bf16.gmra.mrb[40].mxu1 %vm346_vm2, %v18146_v62 }
 0x3b4   :  { %1705 = vmatprep.mubr.bf16.mxu0 %v20727_v29  ;;  %1768 = vmatprep.mubr.bf16.mxu1 %v20727_v29 }
 0x476   :  { %v1553_v8 = vpop.f32.mrb[32].mxu1 }
 0x477   :  { %v17607_v9 = vpop.f32.mrb[33].mxu1 }
 0x478   :  { %v1556_v11 = vpop.f32.mrb[34].mxu1 }
 0x479   :  { %v1576_v13 = vpack.c.bf16 %v1556_v11, %v1553_v8  ;;  %v17608_v14 = vpop.f32.mrb[35].mxu1 }
 0x47b   :  { %15667 = vmatmul.mubr.msk.bf16.vlgmr.msra.gmra.mrb[16].mxu0 %vm590_vm4, %v1576_v13  ;;  %15671 = vmatmul.mubr.msk.bf16.vlgmr.msra.gmra.mrb[8].mxu1 %vm590_vm4, %v1576_v13 }
 0x47c   :  { %1715 = vmatprep.mubr.bf16.mxu0 %v20727_v29  ;;  %1778 = vmatprep.mubr.bf16.mxu1 %v20727_v29 }
 0x47d   :  { %17618 = vmatpush3.bf16.msra.mxu1 %v21113_v4  ;;  %1800 = vmatpush1.bf16.msra.mxu0 %v18159_v15 }
 0x47e   :  { %v1561_v18 = vpop.f32.mrb[36].mxu1  ;;  %17619 = vmatprep.subr.bf16.mxu1 %v20725_v0  ;;  %15674 = vmatprep.subr.msk.bf16.mxu0 %vm600_vm3, %v18162_v16 }
 0x47f   :  { %v17611_v21 = vpop.f32.mrb[37].mxu1 }
 0x480   :  { %v1564_v22 = vpop.f32.mrb[38].mxu1 }
 0x481   :  { %v1577_v23 = vpack.c.bf16 %v1564_v22, %v1561_v18  ;;  %v17612_v24 = vpop.f32.mrb[39].mxu1  ;;  %17620 = vmatpush3.bf16.msra.mxu1 %v21116_v6  ;;  %1802 = vmatpush1.bf16.msra.mxu0 %v1668_v19 }
 0x482   :  { %17621 = vmatprep.subr.bf16.mxu1 %v20725_v0  ;;  %2083 = vmatprep.subr.bf16.mxu0 %v18170_v20 }
 0x483   :  { %15668 = vmatmul.mubr.msk.bf16.gmra.mrb[20].mxu0 %vm590_vm4, %v1577_v23  ;;  %15672 = vmatmul.mubr.msk.bf16.gmra.mrb[12].mxu1 %vm590_vm4, %v1577_v23 }
 0x484   :  { %1725 = vmatprep.mubr.bf16.mxu0 %v20727_v29  ;;  %1788 = vmatprep.mubr.bf16.mxu1 %v20727_v29 }
 0x485   :  { %17622 = vmatpush3.bf16.msra.mxu1 %v21122_v10  ;;  %v18165_v10 = vld [vmem:[#allocation5 + $0x60] sm:$0xff]  }
 0x486   :  { %v1569_v4 = vpop.f32.mrb[40].mxu1  ;;  %17623 = vmatprep.subr.bf16.mxu1 %v20725_v0 }
 0x487   :  { %v17615_v26 = vpop.f32.mrb[41].mxu1 }
 0x488   :  { %v1572_v6 = vpop.f32.mrb[42].mxu1 }
 0x489   :  { %v1578_v27 = vpack.c.bf16 %v1572_v6, %v1569_v4  ;;  %v17616_v28 = vpop.f32.mrb[43].mxu1  ;;  %17624 = vmatpush3.bf16.msra.mxu1 %v21131_v12  ;;  %v18166_v12 = vld [vmem:[#allocation5 + $0x68] sm:$0xff]  }
 0x48a   :  { %2146 = vmatprep.subr.bf16.mxu1 %v18173_v25 }
 0x48b   :  { %15669 = vmatmul.mubr.msk.bf16.gmra.mrb[24].mxu0 %vm590_vm4, %v1578_v27  ;;  %15673 = vmatmul.mubr.msk.bf16.gmra.mrb[16].mxu1 %vm590_vm4, %v1578_v27 }
 0x48c   :  { %1831 = vmatprep.mubr.bf16.mxu0 %v20727_v29  ;;  %17625 = vmatprep.mubr.msk.bf16.mxu1 %vm20726_vm0, %v20725_v0 }
 0x493   :  { %15675 = vmatmul.mubr.msk.bf16.vlgmr.msra.gmra.mrb[28].mxu0 %vm590_vm4, %v1576_v13  ;;  %17626 = vmatmul.mubr.msk.bf16.vlgmr.msra.gmra.mrb[44].mxu1 %vm346_vm2, %v18165_v10 }
 0x494   :  { %1841 = vmatprep.mubr.bf16.mxu0 %v20727_v29  ;;  %17629 = vmatprep.mubr.msk.bf16.mxu1 %vm20726_vm0, %v20725_v0 }
 0x495   :  { %2084 = vmatpush1.bf16.msra.mxu0 %v18168_v30  ;;  %2147 = vmatpush1.bf16.msra.mxu1 %v18171_v31 }
 0x496   :  { %15696 = vmatprep.subr.msk.bf16.mxu0 %vm600_vm3, %v18174_v32  ;;  %15700 = vmatprep.subr.msk.bf16.mxu1 %vm600_vm3, %v18177_v35 }
 0x499   :  { %2086 = vmatpush1.bf16.msra.mxu0 %v2066_v37  ;;  %2149 = vmatpush1.bf16.msra.mxu1 %v2072_v38 }
 0x49a   :  { %2209 = vmatprep.subr.bf16.mxu0 %v18182_v39 }
 0x49b   :  { %15676 = vmatmul.mubr.msk.bf16.gmra.mrb[32].mxu0 %vm590_vm4, %v1577_v23  ;;  %17630 = vmatmul.mubr.msk.bf16.gmra.mrb[48].mxu1 %vm346_vm2, %v18166_v12 }
 0x49c   :  { %1851 = vmatprep.mubr.bf16.mxu0 %v20727_v29  ;;  %17633 = vmatprep.mubr.msk.bf16.mxu1 %vm20726_vm0, %v20725_v0 }
 0x4a3   :  { %15677 = vmatmul.mubr.msk.bf16.gmra.mrb[36].mxu0 %vm590_vm4, %v1578_v27  ;;  %17634 = vmatmul.mubr.msk.bf16.gmra.mrb[52].mxu1 %vm346_vm2, %v18167_v33  ;;  %v21368_v33 = vld [vmem:[#allocation8] sm:$0xff]  }
 0x4a4   :  { %2115 = vmatprep.mubr.bf16.mxu0 %v20727_v29  ;;  %2178 = vmatprep.mubr.bf16.mxu1 %v20727_v29 }
 0x566   :  { %v1963_v40 = vpop.f32.mrb[44].mxu1 }
 0x567   :  { %v17627_v41 = vpop.f32.mrb[45].mxu1 }
 0x568   :  { %v1966_v42 = vpop.f32.mrb[46].mxu1  ;;  %v21381_v41 = vld [vmem:[#allocation8 + $0x8] ss:$0 sps:$4 sm:$0xff]  }
 0x569   :  { %v1986_v43 = vpack.c.bf16 %v1966_v42, %v1963_v40  ;;  %v17628_v44 = vpop.f32.mrb[47].mxu1  ;;  %v21383_v42 = vld [vmem:[#allocation8 + $0x14] ss:$0 sps:$4 sm:$0xff]  }
 0x56b   :  { %15697 = vmatmul.mubr.msk.bf16.vlgmr.msra.gmra.mrb[16].mxu0 %vm590_vm4, %v1986_v43  ;;  %15701 = vmatmul.mubr.msk.bf16.vlgmr.msra.gmra.mrb[8].mxu1 %vm590_vm4, %v1986_v43 }
 0x56c   :  { %2125 = vmatprep.mubr.bf16.mxu0 %v20727_v29  ;;  %2188 = vmatprep.mubr.bf16.mxu1 %v20727_v29 }
 0x56d   :  { %2210 = vmatpush1.bf16.msra.mxu0 %v18180_v45 }
 0x56e   :  { %v1971_v48 = vpop.f32.mrb[48].mxu1  ;;  %15704 = vmatprep.subr.msk.bf16.mxu0 %vm600_vm3, %v18183_v46 }
 0x56f   :  { %v17631_v50 = vpop.f32.mrb[49].mxu1 }
 0x570   :  { %v1974_v51 = vpop.f32.mrb[50].mxu1 }
 0x571   :  { %v1987_v52 = vpack.c.bf16 %v1974_v51, %v1971_v48  ;;  %v17632_v53 = vpop.f32.mrb[51].mxu1  ;;  %2212 = vmatpush1.bf16.msra.mxu0 %v2078_v49 }
 0x573   :  { %15698 = vmatmul.mubr.msk.bf16.gmra.mrb[20].mxu0 %vm590_vm4, %v1987_v52  ;;  %15702 = vmatmul.mubr.msk.bf16.gmra.mrb[12].mxu1 %vm590_vm4, %v1987_v52 }
 0x574   :  { %2135 = vmatprep.mubr.bf16.mxu0 %v20727_v29  ;;  %2198 = vmatprep.mubr.bf16.mxu1 %v20727_v29 }
 0x576   :  { %v1979_v54 = vpop.f32.mrb[52].mxu1 }
 0x577   :  { %v17635_v55 = vpop.f32.mrb[53].mxu1 }
 0x578   :  { %v1982_v56 = vpop.f32.mrb[54].mxu1  ;;  %v18217_v55 = vld [vmem:[#allocation10 + $0xc8] ss:$12 sps:$4 sm:$0xff]  }
 0x579   :  { %v1988_v57 = vpack.c.bf16 %v1982_v56, %v1979_v54  ;;  %v17636_v58 = vpop.f32.mrb[55].mxu1  ;;  %v18218_v56 = vld [vmem:[#allocation10 + $0x8] ss:$12 sps:$4 sm:$0xff]  }
 0x57a   :  { %v18223_v58 = vld [vmem:[#allocation10 + $0x20] ss:$12 sps:$4 sm:$0xff]  }
 0x57b   :  { %15699 = vmatmul.mubr.msk.bf16.gmra.mrb[24].mxu0 %vm590_vm4, %v1988_v57  ;;  %15703 = vmatmul.mubr.msk.bf16.gmra.mrb[16].mxu1 %vm590_vm4, %v1988_v57 }
 0x57c   :  { %2241 = vmatprep.mubr.bf16.mxu0 %v20727_v29  ;;  %2376 = vmatprep.mubr.bf16.mxu1 %v20727_v29 }
 0x583   :  { %15705 = vmatmul.mubr.msk.bf16.vlgmr.msra.gmra.mrb[28].mxu0 %vm590_vm4, %v1986_v43 }
 0x584   :  { %2251 = vmatprep.mubr.bf16.mxu0 %v20727_v29 }
 0x58b   :  { %15706 = vmatmul.mubr.msk.bf16.gmra.mrb[32].mxu0 %vm590_vm4, %v1987_v52 }
 0x58c   :  { %2261 = vmatprep.mubr.bf16.mxu0 %v20727_v29 }
 0x593   :  { %15707 = vmatmul.mubr.msk.bf16.gmra.mrb[36].mxu0 %vm590_vm4, %v1988_v57  ;;  %v18222_v57 = vld [vmem:[#allocation10 + $0xe0] ss:$12 sps:$4 sm:$0xff]  }
 0x594   :  { %2547 = vmatprep.mubr.bf16.mxu0 %v20727_v29 }
 0x63e   :  { %v2117_v59 = vpop.f32.mrb[16].mxu0  ;;  %v2180_v60 = vpop.f32.mrb[8].mxu1 }
 0x63f   :  { %v2119_v61 = vpop.f32.mrb[17].mxu0  ;;  %v2182_v62 = vpop.f32.mrb[9].mxu1 }
 0x640   :  { %v2121_v63 = vpop.f32.mrb[18].mxu0  ;;  %v2184_v1 = vpop.f32.mrb[10].mxu1 }
 0x641   :  { %v2308_v2 = vpack.c.bf16 %v2121_v63, %v2117_v59  ;;  %v21356_v3 = vpack.c.bf16 %v2184_v1, %v2180_v60  ;;  %v2123_v5 = vpop.f32.mrb[19].mxu0  ;;  %v2186_v7 = vpop.f32.mrb[11].mxu1  ;;  %v18227_v59 = vld [vmem:[#allocation10 + $0xf8] ss:$12 sps:$4 sm:$0xff]   ;;  %v18237_v63 = vld [vmem:[#allocation10 + $0x128] ss:$12 sps:$4 sm:$0xff]  }
 0x642   :  { %v2309_v8 = vpack.c.bf16 %v2123_v5, %v2119_v61  ;;  %v21358_v9 = vpack.c.bf16 %v2186_v7, %v2182_v62  ;;  %v18228_v60 = vld [vmem:[#allocation10 + $0x38] ss:$12 sps:$4 sm:$0xff]   ;;  %v18232_v61 = vld [vmem:[#allocation10 + $0x110] ss:$12 sps:$4 sm:$0xff]   ;;  %v18243_v5 = vld [vmem:[#allocation10 + $0x80] ss:$12 sps:$4 sm:$0xff]  }
 0x643   :  { %v18233_v62 = vld [vmem:[#allocation10 + $0x50] ss:$12 sps:$4 sm:$0xff]   ;;  %v18190_v7 = vld [vmem:[#allocation10] ss:$12 sps:$4 sm:$0xff]  }
 0x644   :  { %2344 = vmatprep.subr.bf16.mxu1 %v2309_v8  ;;  %2515 = vmatprep.subr.bf16.mxu0 %v2309_v8  ;;  %v18192_v1 = vld [vmem:[#allocation10 + $0x4] ss:$12 sps:$4 sm:$0xff]   ;;  %v18195_v8 = vld [vmem:[#allocation10 + $0x1c] ss:$12 sps:$4 sm:$0xff]  }
 0x645   :  { %2345 = vmatpush1.bf16.msra.mxu1 %v2308_v2  ;;  %2516 = vmatpush1.bf16.msra.mxu0 %v2308_v2  ;;  %v18238_v2 = vld [vmem:[#allocation10 + $0x68] ss:$12 sps:$4 sm:$0xff]  }
 0x646   :  { %v2127_v11 = vpop.f32.mrb[20].mxu0  ;;  %v2190_v13 = vpop.f32.mrb[12].mxu1 }
 0x647   :  { %v2129_v14 = vpop.f32.mrb[21].mxu0  ;;  %v2192_v15 = vpop.f32.mrb[13].mxu1 }
 0x648   :  { %v2131_v16 = vpop.f32.mrb[22].mxu0  ;;  %v2194_v17 = vpop.f32.mrb[14].mxu1 }
 0x649   :  { %v2314_v18 = vpack.c.bf16 %v2131_v16, %v2127_v11  ;;  %v21360_v19 = vpack.c.bf16 %v2194_v17, %v2190_v13  ;;  %v2133_v20 = vpop.f32.mrb[23].mxu0  ;;  %v2196_v21 = vpop.f32.mrb[15].mxu1  ;;  %v18198_v11 = vld [vmem:[#allocation10 + $0x34] ss:$12 sps:$4 sm:$0xff]   ;;  %v18196_v13 = vld [vmem:[#allocation10 + $0x30] ss:$12 sps:$4 sm:$0xff]  }
 0x64a   :  { %v2315_v22 = vpack.c.bf16 %v2133_v20, %v2129_v14  ;;  %v21362_v23 = vpack.c.bf16 %v2196_v21, %v2192_v15  ;;  %v18201_v14 = vld [vmem:[#allocation10 + $0x4c] ss:$12 sps:$4 sm:$0xff]   ;;  %v18199_v15 = vld [vmem:[#allocation10 + $0x48] ss:$12 sps:$4 sm:$0xff]   ;;  %v18204_v16 = vld [vmem:[#allocation10 + $0x64] ss:$12 sps:$4 sm:$0xff]  }
 0x64b   :  { %v18202_v17 = vld [vmem:[#allocation10 + $0x60] ss:$12 sps:$4 sm:$0xff]   ;;  %v18208_v21 = vld [vmem:[#allocation10 + $0x90] ss:$12 sps:$4 sm:$0xff]  }
 0x64c   :  { %2346 = vmatprep.subr.bf16.mxu1 %v2315_v22  ;;  %2517 = vmatprep.subr.bf16.mxu0 %v2315_v22  ;;  %v18210_v20 = vld [vmem:[#allocation10 + $0x94] ss:$12 sps:$4 sm:$0xff]   ;;  %v18213_v22 = vld [vmem:[#allocation10 + $0xac] ss:$12 sps:$4 sm:$0xff]  }
 0x64d   :  { %2347 = vmatpush1.bf16.msra.mxu1 %v2314_v18  ;;  %2518 = vmatpush1.bf16.msra.mxu0 %v2314_v18  ;;  %v18207_v18 = vld [vmem:[#allocation10 + $0x7c] ss:$12 sps:$4 sm:$0xff]  }
 0x64e   :  { %v2137_v24 = vpop.f32.mrb[24].mxu0  ;;  %v2200_v4 = vpop.f32.mrb[16].mxu1 }
 0x64f   :  { %v2139_v25 = vpop.f32.mrb[25].mxu0  ;;  %v2202_v26 = vpop.f32.mrb[17].mxu1 }
 0x650   :  { %v2141_v6 = vpop.f32.mrb[26].mxu0  ;;  %v2204_v27 = vpop.f32.mrb[18].mxu1 }
 0x651   :  { %v2320_v28 = vpack.c.bf16 %v2141_v6, %v2137_v24  ;;  %v21364_v10 = vpack.c.bf16 %v2204_v27, %v2200_v4  ;;  %v2143_v30 = vpop.f32.mrb[27].mxu0  ;;  %v2206_v31 = vpop.f32.mrb[19].mxu1  ;;  %v18216_v24 = vld [vmem:[#allocation10 + $0xc4] ss:$12 sps:$4 sm:$0xff]   ;;  %v18214_v4 = vld [vmem:[#allocation10 + $0xc0] ss:$12 sps:$4 sm:$0xff]  }
 0x652   :  { %v2321_v32 = vpack.c.bf16 %v2143_v30, %v2139_v25  ;;  %v21366_v12 = vpack.c.bf16 %v2206_v31, %v2202_v26  ;;  %v18221_v25 = vld [vmem:[#allocation10 + $0xdc] ss:$12 sps:$4 sm:$0xff]   ;;  %v18219_v26 = vld [vmem:[#allocation10 + $0xd8] ss:$12 sps:$4 sm:$0xff]   ;;  %v18226_v6 = vld [vmem:[#allocation10 + $0xf4] ss:$12 sps:$4 sm:$0xff]  }
 0x653   :  { %v18247_v27 = vld [vmem:[#allocation10 + $0x158] ss:$12 sps:$4 sm:$0xff]   ;;  %v18252_v31 = vld [vmem:[#allocation10 + $0x170] ss:$12 sps:$4 sm:$0xff]  }
 0x654   :  { %2348 = vmatprep.subr.bf16.mxu1 %v2321_v32  ;;  %2519 = vmatprep.subr.bf16.mxu0 %v2321_v32  ;;  %v18231_v30 = vld [vmem:[#allocation10 + $0x10c] ss:$12 sps:$4 sm:$0xff]   ;;  %v18253_v32 = vld [vmem:[#allocation10 + $0xb0] ss:$12 sps:$4 sm:$0xff]  }
 0x655   :  { %2349 = vmatpush1.bf16.msra.mxu1 %v2320_v28  ;;  %2520 = vmatpush1.bf16.msra.mxu0 %v2320_v28  ;;  %v18248_v28 = vld [vmem:[#allocation10 + $0x98] ss:$12 sps:$4 sm:$0xff]  }
 0x656   :  { %v2243_v35 = vpop.f32.mrb[28].mxu0  ;;  %2395 = vmatprep.subr.bf16.mxu1 %v21358_v9 }
 0x657   :  { %v2245_v36 = vpop.f32.mrb[29].mxu0 }
 0x658   :  { %v2247_v37 = vpop.f32.mrb[30].mxu0  ;;  %15710 = vmatmul.mubr.msk.bf16.vlgmr.msra.gmra.mrb[56].mxu1 %vm2337_vm5, %v21368_v33  ;;  %15718 = vmatmul.mubr.msk.bf16.vlgmr.msra.gmra.mrb[40].mxu0 %vm2337_vm5, %v21370_v34 }
 0x659   :  { %v2312_v38 = vpack.c.bf16 %v2247_v37, %v2243_v35  ;;  %v2249_v39 = vpop.f32.mrb[31].mxu0  ;;  %2396 = vmatpush1.bf16.msra.mxu1 %v21356_v3  ;;  %2386 = vmatprep.mubr.bf16.mxu1 %v20727_v29  ;;  %v18241_v35 = vld [vmem:[#allocation10 + $0x13c] ss:$12 sps:$4 sm:$0xff]   ;;  %v18246_v37 = vld [vmem:[#allocation10 + $0x154] ss:$12 sps:$4 sm:$0xff]  }
 0x65a   :  { %v2313_v40 = vpack.c.bf16 %v2249_v39, %v2245_v36  ;;  %2397 = vmatprep.subr.bf16.mxu1 %v21362_v23  ;;  %2557 = vmatprep.mubr.bf16.mxu0 %v20727_v29  ;;  %v18239_v36 = vld [vmem:[#allocation10 + $0x138] ss:$12 sps:$4 sm:$0xff]  }
 0x65b   :  { %v18251_v39 = vld [vmem:[#allocation10 + $0x16c] ss:$12 sps:$4 sm:$0xff]  }
 0x65c   :  { %2617 = vmatprep.subr.bf16.mxu0 %v2313_v40 }
 0x65d   :  { %2398 = vmatpush1.bf16.msra.mxu1 %v21360_v19  ;;  %2618 = vmatpush1.bf16.msra.mxu0 %v2312_v38 }
 0x65e   :  { %v2253_v43 = vpop.f32.mrb[32].mxu0  ;;  %2399 = vmatprep.subr.bf16.mxu1 %v21366_v12 }
 0x65f   :  { %v2255_v44 = vpop.f32.mrb[33].mxu0 }
 0x660   :  { %v2257_v45 = vpop.f32.mrb[34].mxu0  ;;  %15711 = vmatmul.mubr.msk.bf16.gmra.mrb[60].mxu1 %vm2337_vm5, %v21381_v41  ;;  %15719 = vmatmul.mubr.msk.bf16.gmra.mrb[44].mxu0 %vm2337_vm5, %v21383_v42 }
 0x661   :  { %v2318_v46 = vpack.c.bf16 %v2257_v45, %v2253_v43  ;;  %v2259_v47 = vpop.f32.mrb[35].mxu0  ;;  %2400 = vmatpush1.bf16.msra.mxu1 %v21364_v10  ;;  %2427 = vmatprep.mubr.bf16.mxu1 %v20727_v29 }
 0x662   :  { %v2319_v48 = vpack.c.bf16 %v2259_v47, %v2255_v44  ;;  %2446 = vmatprep.subr.bf16.mxu1 %v2313_v40  ;;  %2649 = vmatprep.mubr.bf16.mxu0 %v20727_v29  ;;  %v18249_v40 = vld [vmem:[#allocation10 + $0x168] ss:$12 sps:$4 sm:$0xff]  }
 0x664   :  { %2619 = vmatprep.subr.bf16.mxu0 %v2319_v48 }
 0x665   :  { %2620 = vmatpush1.bf16.msra.mxu0 %v2318_v46 }
 0x666   :  { %v2263_v49 = vpop.f32.mrb[36].mxu0 }
 0x667   :  { %v2265_v50 = vpop.f32.mrb[37].mxu0 }
 0x668   :  { %v2267_v51 = vpop.f32.mrb[38].mxu0  ;;  %15712 = vmatmul.mubr.msk.bf16.vlgmr.msra.gmra.mrb[64].mxu1 %vm2337_vm5, %v21368_v33 }
 0x669   :  { %v2324_v52 = vpack.c.bf16 %v2267_v51, %v2263_v49  ;;  %2447 = vmatpush1.bf16.msra.mxu1 %v2312_v38  ;;  %v2269_v53 = vpop.f32.mrb[39].mxu0  ;;  %2437 = vmatprep.mubr.bf16.mxu1 %v20727_v29  ;;  %v18244_v38 = vld [vmem:[#allocation10 + $0x150] ss:$12 sps:$4 sm:$0xff]  }
 0x66a   :  { %v2325_v54 = vpack.c.bf16 %v2269_v53, %v2265_v50  ;;  %2448 = vmatprep.subr.bf16.mxu1 %v2319_v48 }
 0x66c   :  { %2621 = vmatprep.subr.bf16.mxu0 %v2325_v54 }
 0x66d   :  { %2449 = vmatpush1.bf16.msra.mxu1 %v2318_v46  ;;  %2622 = vmatpush1.bf16.msra.mxu0 %v2324_v52 }
 0x66e   :  { %2450 = vmatprep.subr.bf16.mxu1 %v2325_v54  ;;  %17212 = vmatprep.subr.bf16.mxu0 %v18217_v55 }
 0x670   :  { %15713 = vmatmul.mubr.msk.bf16.gmra.mrb[68].mxu1 %vm2337_vm5, %v21381_v41  ;;  %15722 = vmatmul.mubr.msk.bf16.vlgmr.msra.gmra.mrb[48].mxu0 %vm2337_vm5, %v21370_v34 }
 0x671   :  { %2451 = vmatpush1.bf16.msra.mxu1 %v2324_v52  ;;  %2478 = vmatprep.mubr.bf16.mxu1 %v20727_v29 }
 0x672   :  { %2566 = vmatprep.subr.bf16.mxu1 %v21358_v9  ;;  %2659 = vmatprep.mubr.bf16.mxu0 %v20727_v29  ;;  %v18193_v9 = vld [vmem:[#allocation10 + $0x18] ss:$12 sps:$4 sm:$0xff]  }
 0x673   :  { %17213 = vmatpush3.bf16.msra.mxu0 %v18218_v56 }
 0x674   :  { %17214 = vmatprep.subr.bf16.mxu0 %v18222_v57  ;;  %v18254_v57 = vld [vmem:[#allocation10 + $0x180] ss:$12 sps:$4 sm:$0xff]  }
 0x677   :  { %17215 = vmatpush3.bf16.msra.mxu0 %v18223_v58  ;;  %v18270_v58 = vld [vmem:[#allocation10 + $0x188] ss:$12 sps:$4 sm:$0xff]  }
 0x678   :  { %15714 = vmatmul.mubr.msk.bf16.vlgmr.msra.gmra.mrb[72].mxu1 %vm2337_vm5, %v21368_v33  ;;  %15723 = vmatmul.mubr.msk.bf16.gmra.mrb[52].mxu0 %vm2337_vm5, %v21383_v42  ;;  %v18236_v33 = vld [vmem:[#allocation10 + $0x124] ss:$12 sps:$4 sm:$0xff]  }
 0x679   :  { %2567 = vmatpush1.bf16.msra.mxu1 %v21356_v3  ;;  %2488 = vmatprep.mubr.bf16.mxu1 %v20727_v29  ;;  %v18242_v3 = vld [vmem:[#allocation10 + $0x140] ss:$12 sps:$4 sm:$0xff]  }
 0x67a   :  { %2568 = vmatprep.subr.bf16.mxu1 %v21362_v23  ;;  %17216 = vmatprep.subr.bf16.mxu0 %v18227_v59  ;;  %v18211_v23 = vld [vmem:[#allocation10 + $0xa8] ss:$12 sps:$4 sm:$0xff]  }
 0x67b   :  { %17217 = vmatpush3.bf16.msra.mxu0 %v18228_v60  ;;  %v18259_v59 = vld [vmem:[#allocation10 + $0x19c] ss:$12 sps:$4 sm:$0xff]   ;;  %v18274_v60 = vld [vmem:[#allocation10 + $0x260] ss:$12 sps:$4 sm:$0xff]  }
 0x67c   :  { %17218 = vmatprep.subr.bf16.mxu0 %v18232_v61 }
 0x67d   :  { %2569 = vmatpush1.bf16.msra.mxu1 %v21360_v19  ;;  %v18205_v19 = vld [vmem:[#allocation10 + $0x78] ss:$12 sps:$4 sm:$0xff]  }
 0x67e   :  { %2570 = vmatprep.subr.bf16.mxu1 %v21366_v12  ;;  %v18229_v12 = vld [vmem:[#allocation10 + $0x108] ss:$12 sps:$4 sm:$0xff]  }
 0x67f   :  { %17219 = vmatpush3.bf16.msra.mxu0 %v18233_v62 }
 0x680   :  { %15715 = vmatmul.mubr.msk.bf16.gmra.mrb[76].mxu1 %vm2337_vm5, %v21381_v41  ;;  %17220 = vmatprep.subr.bf16.mxu0 %v18237_v63  ;;  %v18256_v41 = vld [vmem:[#allocation10 + $0x184] ss:$12 sps:$4 sm:$0xff]  }
 0x681   :  { %2571 = vmatpush1.bf16.msra.mxu1 %v21364_v10  ;;  %2598 = vmatprep.mubr.bf16.mxu1 %v20727_v29  ;;  %v18224_v10 = vld [vmem:[#allocation10 + $0xf0] ss:$12 sps:$4 sm:$0xff]  }
 0x682   :  { %3658 = vmatprep.subr.bf16.mxu1 %v18192_v1 }
 0x683   :  { %17221 = vmatpush3.bf16.msra.mxu0 %v18238_v2 }
 0x684   :  { %17222 = vmatprep.subr.bf16.mxu0 %v18242_v3 }
 0x687   :  { %17223 = vmatpush3.bf16.msra.mxu0 %v18243_v5 }
 0x688   :  { %15720 = vmatmul.mubr.msk.bf16.vlgmr.msra.gmra.mrb[80].mxu1 %vm2337_vm5, %v21370_v34  ;;  %17224 = vmatprep.subr.bf16.mxu0 %v18247_v27  ;;  %v18234_v34 = vld [vmem:[#allocation10 + $0x120] ss:$12 sps:$4 sm:$0xff]   ;;  %v18289_v27 = vld [vmem:[#allocation10 + $0x2a8] ss:$12 sps:$4 sm:$0xff]  }
 0x689   :  { %2608 = vmatprep.mubr.bf16.mxu1 %v20727_v29  ;;  %3659 = vmatpush1.bf16.msra.mxu1 %v18190_v7  ;;  %v18257_v7 = vld [vmem:[#allocation10 + $0x198] ss:$12 sps:$4 sm:$0xff]  }
 0x68a   :  { %3660 = vmatprep.subr.bf16.mxu1 %v18195_v8 }
 0x68b   :  { %17225 = vmatpush3.bf16.msra.mxu0 %v18248_v28  ;;  %v18266_v28 = vld [vmem:[#allocation10 + $0x1e0] ss:$12 sps:$4 sm:$0xff]  }
 0x68c   :  { %17226 = vmatprep.subr.bf16.mxu0 %v18252_v31 }
 0x68d   :  { %3661 = vmatpush1.bf16.msra.mxu1 %v18193_v9 }
 0x68e   :  { %3662 = vmatprep.subr.bf16.mxu1 %v18198_v11  ;;  %v18262_v11 = vld [vmem:[#allocation10 + $0x1b4] ss:$12 sps:$4 sm:$0xff]  }
 0x68f   :  { %17227 = vmatpush3.bf16.msra.mxu0 %v18253_v32  ;;  %v18290_v32 = vld [vmem:[#allocation10 + $0x1e8] ss:$12 sps:$4 sm:$0xff]  }
 0x690   :  { %15721 = vmatmul.mubr.msk.bf16.gmra.mrb[84].mxu1 %vm2337_vm5, %v21383_v42  ;;  %v18269_v42 = vld [vmem:[#allocation10 + $0x248] ss:$12 sps:$4 sm:$0xff]  }
 0x691   :  { %3663 = vmatpush1.bf16.msra.mxu1 %v18196_v13  ;;  %17240 = vmatprep.subr.bf16.mxu0 %v18269_v42  ;;  %v18299_v42 = vld [vmem:[#allocation10 + $0x2d8] ss:$12 sps:$4 sm:$0xff]  }
 0x692   :  { %3664 = vmatprep.subr.bf16.mxu1 %v18201_v14 }
 0x695   :  { %3665 = vmatpush1.bf16.msra.mxu1 %v18199_v15  ;;  %v18275_v15 = vld [vmem:[#allocation10 + $0x1a0] ss:$12 sps:$4 sm:$0xff]  }
 0x696   :  { %3666 = vmatprep.subr.bf16.mxu1 %v18204_v16  ;;  %v18260_v16 = vld [vmem:[#allocation10 + $0x1b0] ss:$12 sps:$4 sm:$0xff]  }
 0x699   :  { %3667 = vmatpush1.bf16.msra.mxu1 %v18202_v17  ;;  %v18279_v17 = vld [vmem:[#allocation10 + $0x278] ss:$12 sps:$4 sm:$0xff]  }
 0x69a   :  { %3668 = vmatprep.subr.bf16.mxu1 %v18207_v18 }
 0x69d   :  { %3669 = vmatpush1.bf16.msra.mxu1 %v18205_v19  ;;  %v18265_v19 = vld [vmem:[#allocation10 + $0x1cc] ss:$12 sps:$4 sm:$0xff]  }
 0x69e   :  { %3670 = vmatprep.subr.bf16.mxu1 %v18210_v20 }
 0x6a1   :  { %3671 = vmatpush1.bf16.msra.mxu1 %v18208_v21  ;;  %v18280_v21 = vld [vmem:[#allocation10 + $0x1b8] ss:$12 sps:$4 sm:$0xff]  }
 0x6a2   :  { %3672 = vmatprep.subr.bf16.mxu1 %v18213_v22 }
 0x6a5   :  { %3673 = vmatpush1.bf16.msra.mxu1 %v18211_v23  ;;  %v18284_v23 = vld [vmem:[#allocation10 + $0x290] ss:$12 sps:$4 sm:$0xff]  }
 0x6a6   :  { %3674 = vmatprep.subr.bf16.mxu1 %v18216_v24 }
 0x6a9   :  { %3675 = vmatpush1.bf16.msra.mxu1 %v18214_v4  ;;  %v18263_v4 = vld [vmem:[#allocation10 + $0x1c8] ss:$12 sps:$4 sm:$0xff]  }
 0x6aa   :  { %3676 = vmatprep.subr.bf16.mxu1 %v18221_v25 }
 0x6ad   :  { %3677 = vmatpush1.bf16.msra.mxu1 %v18219_v26  ;;  %v18268_v26 = vld [vmem:[#allocation10 + $0x1e4] ss:$12 sps:$4 sm:$0xff]  }
 0x6ae   :  { %3678 = vmatprep.subr.bf16.mxu1 %v18226_v6  ;;  %v18285_v6 = vld [vmem:[#allocation10 + $0x1d0] ss:$12 sps:$4 sm:$0xff]  }
 0x6b1   :  { %3679 = vmatpush1.bf16.msra.mxu1 %v18224_v10  ;;  %v18273_v10 = vld [vmem:[#allocation10 + $0x1fc] ss:$12 sps:$4 sm:$0xff]  }
 0x6b2   :  { %3680 = vmatprep.subr.bf16.mxu1 %v18231_v30 }
 0x6b5   :  { %3681 = vmatpush1.bf16.msra.mxu1 %v18229_v12 }
 0x6b6   :  { %3682 = vmatprep.subr.bf16.mxu1 %v18236_v33 }
 0x6b9   :  { %3683 = vmatpush1.bf16.msra.mxu1 %v18234_v34  ;;  %v18294_v34 = vld [vmem:[#allocation10 + $0x2c0] ss:$12 sps:$4 sm:$0xff]  }
 0x6ba   :  { %3684 = vmatprep.subr.bf16.mxu1 %v18241_v35 }
 0x6bd   :  { %3685 = vmatpush1.bf16.msra.mxu1 %v18239_v36  ;;  %v18271_v36 = vld [vmem:[#allocation10 + $0x1f8] ss:$12 sps:$4 sm:$0xff]  }
 0x6be   :  { %3686 = vmatprep.subr.bf16.mxu1 %v18246_v37 }
 0x6c1   :  { %3687 = vmatpush1.bf16.msra.mxu1 %v18244_v38 }
 0x6c2   :  { %3688 = vmatprep.subr.bf16.mxu1 %v18251_v39  ;;  %v18278_v39 = vld [vmem:[#allocation10 + $0x214] ss:$12 sps:$4 sm:$0xff]  }
 0x6c5   :  { %3689 = vmatpush1.bf16.msra.mxu1 %v18249_v40 }
 0x6c6   :  { %3709 = vmatprep.subr.bf16.mxu1 %v18256_v41  ;;  %v18295_v41 = vld [vmem:[#allocation10 + $0x200] ss:$12 sps:$4 sm:$0xff]  }
 0x72b   :  { %v2378_v43 = vpop.f32.mrb[56].mxu1  ;;  %v2549_v44 = vpop.f32.mrb[40].mxu0 }
 0x72c   :  { %v2668_v45 = vmax.f32 %v2378_v43, %v2549_v44  ;;  %v2380_v46 = vpop.f32.mrb[57].mxu1  ;;  %v2551_v47 = vpop.f32.mrb[41].mxu0  ;;  %v18276_v43 = vld [vmem:[#allocation10 + $0x210] ss:$12 sps:$4 sm:$0xff]   ;;  %v18283_v44 = vld [vmem:[#allocation10 + $0x22c] ss:$12 sps:$4 sm:$0xff]  }
 0x72d   :  { %v2669_v48 = vmax.f32 %v2380_v46, %v2551_v47  ;;  %v2382_v49 = vpop.f32.mrb[58].mxu1  ;;  %v2553_v50 = vpop.f32.mrb[42].mxu0  ;;  %v18300_v47 = vld [vmem:[#allocation10 + $0x218] ss:$12 sps:$4 sm:$0xff]  }
 0x72e   :  { %v2674_v51 = vmax.f32 %v2382_v49, %v2553_v50  ;;  %v2384_v52 = vpop.f32.mrb[59].mxu1  ;;  %v2555_v53 = vpop.f32.mrb[43].mxu0 }
 0x72f   :  { %v2675_v54 = vmax.f32 %v2384_v52, %v2555_v53 }
 0x730   :  { %v21422_v55 = vpack.c.bf16 %v2674_v51, %v2668_v45  ;;  %v18304_v51 = vld [vmem:[#allocation10 + $0x2f0] ss:$12 sps:$4 sm:$0xff]  }
 0x731   :  { %v21424_v56 = vpack.c.bf16 %v2675_v54, %v2669_v48  ;;  %v18281_v54 = vld [vmem:[#allocation10 + $0x228] ss:$12 sps:$4 sm:$0xff]  }
 0x733   :  { %v2388_v61 = vpop.f32.mrb[60].mxu1  ;;  %v2559_v62 = vpop.f32.mrb[44].mxu0  ;;  %3690 = vmatprep.mubr.bf16.mxu1 %v21424_v56  ;;  %3843 = vmatprep.mubr.bf16.mxu0 %v21424_v56 }
 0x734   :  { %v2680_v63 = vmax.f32 %v2388_v61, %v2559_v62  ;;  %v2390_v1 = vpop.f32.mrb[61].mxu1  ;;  %v2561_v2 = vpop.f32.mrb[45].mxu0  ;;  %3691 = vmatmul.mubr.bf16.vlgmr.msra.gmra.mrb[88].mxu1 %v21422_v55  ;;  %3844 = vmatmul.mubr.bf16.vlgmr.msra.gmra.mrb[56].mxu0 %v21422_v55 }
 0x735   :  { %v2681_v3 = vmax.f32 %v2390_v1, %v2561_v2  ;;  %3710 = vmatpush1.bf16.msra.mxu1 %v18254_v57  ;;  %v2392_v5 = vpop.f32.mrb[62].mxu1  ;;  %17241 = vmatpush3.bf16.msra.mxu0 %v18270_v58  ;;  %v2563_v8 = vpop.f32.mrb[46].mxu0  ;;  %v18309_v2 = vld [vmem:[#allocation10 + $0x3c8] ss:$12 sps:$4 sm:$0xff]  }
 0x736   :  { %v2393_v9 = vpop.f32.mrb[63].mxu1  ;;  %3711 = vmatprep.subr.bf16.mxu1 %v18259_v59  ;;  %17242 = vmatprep.subr.bf16.mxu0 %v18274_v60  ;;  %v2564_v13 = vpop.f32.mrb[47].mxu0  ;;  %v21433_v18 = vpack.c.bf16 %v2680_v63, %v2680_v63  ;;  %v18288_v60 = vld [vmem:[#allocation10 + $0x244] ss:$12 sps:$4 sm:$0xff]   ;;  %v18286_v5 = vld [vmem:[#allocation10 + $0x240] ss:$12 sps:$4 sm:$0xff]  }
 0x737   :  { %v21430_v14 = vpack.c.bf16 %v2681_v3, %v2681_v3  ;;  %v18305_v63 = vld [vmem:[#allocation10 + $0x230] ss:$12 sps:$4 sm:$0xff]  }
 0x739   :  { %3712 = vmatpush1.bf16.msra.mxu1 %v18257_v7  ;;  %3700 = vmatprep.mubr.bf16.mxu1 %v21430_v14  ;;  %v18293_v7 = vld [vmem:[#allocation10 + $0x25c] ss:$12 sps:$4 sm:$0xff]  }
 0x73a   :  { %3851 = vmatprep.mubr.bf16.mxu0 %v21430_v14  ;;  %3713 = vmatprep.subr.bf16.mxu1 %v18262_v11 }
 0x73b   :  { %v21436_v20 = vpop.f32.mrb[64].mxu1  ;;  %17243 = vmatpush3.bf16.msra.mxu0 %v18275_v15 }
 0x73c   :  { %v21438_v22 = vpop.f32.mrb[65].mxu1  ;;  %3701 = vmatmul.mubr.bf16.gmra.mrb[92].mxu1 %v21433_v18  ;;  %3852 = vmatmul.mubr.bf16.gmra.mrb[60].mxu0 %v21433_v18 }
 0x73d   :  { %3714 = vmatpush1.bf16.msra.mxu1 %v18260_v16  ;;  %v21442_v24 = vpop.f32.mrb[66].mxu1  ;;  %17244 = vmatprep.subr.bf16.mxu0 %v18279_v17  ;;  %v18291_v16 = vld [vmem:[#allocation10 + $0x258] ss:$12 sps:$4 sm:$0xff]  }
 0x73e   :  { %v21444_v25 = vpop.f32.mrb[67].mxu1  ;;  %3715 = vmatprep.subr.bf16.mxu1 %v18265_v19  ;;  %v18298_v19 = vld [vmem:[#allocation10 + $0x274] ss:$12 sps:$4 sm:$0xff]  }
 0x73f   :  { %17245 = vmatpush3.bf16.msra.mxu0 %v18280_v21  ;;  %v18296_v21 = vld [vmem:[#allocation10 + $0x270] ss:$12 sps:$4 sm:$0xff]  }
 0x740   :  { %17246 = vmatprep.subr.bf16.mxu0 %v18284_v23  ;;  %v18303_v23 = vld [vmem:[#allocation10 + $0x28c] ss:$12 sps:$4 sm:$0xff]  }
 0x741   :  { %3716 = vmatpush1.bf16.msra.mxu1 %v18263_v4 }
 0x742   :  { %3717 = vmatprep.subr.bf16.mxu1 %v18268_v26 }
 0x743   :  { %v21446_v30 = vpop.f32.mrb[68].mxu1  ;;  %v2651_v31 = vpop.f32.mrb[48].mxu0  ;;  %17247 = vmatpush3.bf16.msra.mxu0 %v18285_v6 }
 0x744   :  { %v21448_v12 = vpop.f32.mrb[69].mxu1  ;;  %v2653_v33 = vpop.f32.mrb[49].mxu0  ;;  %17248 = vmatprep.subr.bf16.mxu0 %v18289_v27 }
 0x745   :  { %3718 = vmatpush1.bf16.msra.mxu1 %v18266_v28  ;;  %v2443_v35 = vpop.f32.mrb[70].mxu1  ;;  %v2655_v37 = vpop.f32.mrb[50].mxu0 }
 0x746   :  { %v2444_v38 = vpop.f32.mrb[71].mxu1  ;;  %3719 = vmatprep.subr.bf16.mxu1 %v18273_v10  ;;  %v2657_v40 = vpop.f32.mrb[51].mxu0  ;;  %v18301_v10 = vld [vmem:[#allocation10 + $0x288] ss:$12 sps:$4 sm:$0xff]  }
 0x747   :  { %17249 = vmatpush3.bf16.msra.mxu0 %v18290_v32  ;;  %v18313_v38 = vld [vmem:[#allocation10 + $0x2bc] ss:$12 sps:$4 sm:$0xff]  }
 0x748   :  { %17250 = vmatprep.subr.bf16.mxu0 %v18294_v34 }
 0x749   :  { %3720 = vmatpush1.bf16.msra.mxu1 %v18271_v36 }
 0x74a   :  { %3721 = vmatprep.subr.bf16.mxu1 %v18278_v39 }
 0x74b   :  { %v2480_v45 = vpop.f32.mrb[72].mxu1  ;;  %v2661_v46 = vpop.f32.mrb[52].mxu0  ;;  %17251 = vmatpush3.bf16.msra.mxu0 %v18295_v41  ;;  %v18311_v41 = vld [vmem:[#allocation10 + $0x2b8] ss:$12 sps:$4 sm:$0xff]  }
 0x74c   :  { %v2672_v48 = vmax.f32 %v2480_v45, %v2651_v31  ;;  %v2482_v49 = vpop.f32.mrb[73].mxu1  ;;  %v2663_v50 = vpop.f32.mrb[53].mxu0  ;;  %17252 = vmatprep.subr.bf16.mxu0 %v18299_v42  ;;  %v18315_v42 = vld [vmem:[#allocation10 + $0x320] ss:$12 sps:$4 sm:$0xff]  }
 0x74d   :  { %v2673_v52 = vmax.f32 %v2482_v49, %v2653_v33  ;;  %3722 = vmatpush1.bf16.msra.mxu1 %v18276_v43  ;;  %v2484_v53 = vpop.f32.mrb[74].mxu1  ;;  %v2665_v57 = vpop.f32.mrb[54].mxu0  ;;  %v18308_v33 = vld [vmem:[#allocation10 + $0x2a4] ss:$12 sps:$4 sm:$0xff]  }
 0x74e   :  { %v2678_v58 = vmax.f32 %v2484_v53, %v2655_v37  ;;  %v2486_v59 = vpop.f32.mrb[75].mxu1  ;;  %3723 = vmatprep.subr.bf16.mxu1 %v18283_v44  ;;  %v2666_v61 = vpop.f32.mrb[55].mxu0  ;;  %v18306_v37 = vld [vmem:[#allocation10 + $0x2a0] ss:$12 sps:$4 sm:$0xff]   ;;  %v18328_v53 = vld [vmem:[#allocation10 + $0x304] ss:$12 sps:$4 sm:$0xff]  }
 0x74f   :  { %v2679_v62 = vmax.f32 %v2486_v59, %v2657_v40  ;;  %17253 = vmatpush3.bf16.msra.mxu0 %v18300_v47  ;;  %v18318_v44 = vld [vmem:[#allocation10 + $0x2d4] ss:$12 sps:$4 sm:$0xff]   ;;  %v18319_v47 = vld [vmem:[#allocation10 + $0x3f8] ss:$12 sps:$4 sm:$0xff]   ;;  %v18333_v59 = vld [vmem:[#allocation10 + $0x31c] ss:$12 sps:$4 sm:$0xff]  }
 0x750   :  { %v21450_v1 = vpack.c.bf16 %v2678_v58, %v2672_v48  ;;  %17254 = vmatprep.subr.bf16.mxu0 %v18304_v51  ;;  %v18320_v48 = vld [vmem:[#allocation10 + $0x338] ss:$12 sps:$4 sm:$0xff]   ;;  %v18321_v51 = vld [vmem:[#allocation10 + $0x2e8] ss:$12 sps:$4 sm:$0xff]   ;;  %v18326_v57 = vld [vmem:[#allocation10 + $0x300] ss:$12 sps:$4 sm:$0xff]  }
 0x751   :  { %v21452_v3 = vpack.c.bf16 %v2679_v62, %v2673_v52  ;;  %3724 = vmatpush1.bf16.msra.mxu1 %v18281_v54  ;;  %v18325_v52 = vld [vmem:[#allocation10 + $0x350] ss:$12 sps:$4 sm:$0xff]   ;;  %v18329_v54 = vld [vmem:[#allocation10 + $0x428] ss:$12 sps:$4 sm:$0xff]   ;;  %v18331_v61 = vld [vmem:[#allocation10 + $0x318] ss:$12 sps:$4 sm:$0xff]  }
 0x752   :  { %3725 = vmatprep.subr.bf16.mxu1 %v18288_v60  ;;  %v18330_v58 = vld [vmem:[#allocation10 + $0x368] ss:$12 sps:$4 sm:$0xff]   ;;  %v18334_v60 = vld [vmem:[#allocation10 + $0x440] ss:$12 sps:$4 sm:$0xff]  }
 0x753   :  { %v2490_v8 = vpop.f32.mrb[76].mxu1  ;;  %17255 = vmatpush3.bf16.msra.mxu0 %v18305_v63  ;;  %v18335_v62 = vld [vmem:[#allocation10 + $0x380] ss:$12 sps:$4 sm:$0xff]  }
 0x754   :  { %v21454_v9 = vmax.f32 %v2490_v8, %v2661_v46  ;;  %v2492_v11 = vpop.f32.mrb[77].mxu1  ;;  %17268 = vmatprep.subr.bf16.mxu0 %v18309_v2  ;;  %v18338_v63 = vld [vmem:[#allocation10 + $0x334] ss:$12 sps:$4 sm:$0xff]   ;;  %v18339_v2 = vld [vmem:[#allocation10 + $0x458] ss:$12 sps:$4 sm:$0xff]  }
 0x755   :  { %v21456_v13 = vmax.f32 %v2492_v11, %v2663_v50  ;;  %3726 = vmatpush1.bf16.msra.mxu1 %v18286_v5  ;;  %v2494_v15 = vpop.f32.mrb[78].mxu1  ;;  %v18324_v50 = vld [vmem:[#allocation10 + $0x410] ss:$12 sps:$4 sm:$0xff]   ;;  %v18343_v8 = vld [vmem:[#allocation10 + $0x34c] ss:$12 sps:$4 sm:$0xff]  }
 0x756   :  { %v2495_v17 = vpop.f32.mrb[79].mxu1  ;;  %3727 = vmatprep.subr.bf16.mxu1 %v18293_v7  ;;  %v18336_v5 = vld [vmem:[#allocation10 + $0x330] ss:$12 sps:$4 sm:$0xff]   ;;  %v18340_v7 = vld [vmem:[#allocation10 + $0x398] ss:$12 sps:$4 sm:$0xff]  }
 0x757   :  { %v18344_v11 = vld [vmem:[#allocation10 + $0x470] ss:$12 sps:$4 sm:$0xff]   ;;  %v18341_v15 = vld [vmem:[#allocation10 + $0x348] ss:$12 sps:$4 sm:$0xff]  }
 0x758   :  { %v18348_v17 = vld [vmem:[#allocation10 + $0x364] ss:$12 sps:$4 sm:$0xff]  }
 0x759   :  { %3728 = vmatpush1.bf16.msra.mxu1 %v18291_v16  ;;  %v18345_v16 = vld [vmem:[#allocation10 + $0x3b0] ss:$12 sps:$4 sm:$0xff]  }
 0x75a   :  { %3729 = vmatprep.subr.bf16.mxu1 %v18298_v19  ;;  %v18351_v19 = vld [vmem:[#allocation10 + $0x484] ss:$12 sps:$4 sm:$0xff]  }
 0x75b   :  { %v2600_v4 = vpop.f32.mrb[80].mxu1 }
 0x75c   :  { %v2670_v26 = vmax.f32 %v21436_v20, %v2600_v4  ;;  %v2602_v6 = vpop.f32.mrb[81].mxu1  ;;  %v18310_v20 = vld [vmem:[#allocation10 + $0x308] ss:$12 sps:$4 sm:$0xff]  }
 0x75d   :  { %v2671_v27 = vmax.f32 %v21438_v22, %v2602_v6  ;;  %3730 = vmatpush1.bf16.msra.mxu1 %v18296_v21  ;;  %v2604_v28 = vpop.f32.mrb[82].mxu1  ;;  %v18314_v22 = vld [vmem:[#allocation10 + $0x3e0] ss:$12 sps:$4 sm:$0xff]   ;;  %v18354_v4 = vld [vmem:[#allocation10 + $0x37c] ss:$12 sps:$4 sm:$0xff]   ;;  %v21484_v6 = vpack.c.bf16 %v21456_v13, %v21456_v13  ;;  %v21490_v13 = vpack.c.bf16 %v21454_v9, %v21454_v9 }
 0x75e   :  { %v2676_v31 = vmax.f32 %v21442_v24, %v2604_v28  ;;  %v2606_v32 = vpop.f32.mrb[83].mxu1  ;;  %3731 = vmatprep.subr.bf16.mxu1 %v18303_v23  ;;  %v18346_v21 = vld [vmem:[#allocation10 + $0x360] ss:$12 sps:$4 sm:$0xff]   ;;  %v18355_v28 = vld [vmem:[#allocation10 + $0x498] ss:$12 sps:$4 sm:$0xff]  }
 0x75f   :  { %v2677_v34 = vmax.f32 %v21444_v25, %v2606_v32  ;;  %v18349_v23 = vld [vmem:[#allocation10 + $0x480] ss:$12 sps:$4 sm:$0xff]   ;;  %v18358_v32 = vld [vmem:[#allocation10 + $0x390] ss:$12 sps:$4 sm:$0xff]  }
 0x760   :  { %v21462_v35 = vpack.c.bf16 %v2676_v31, %v2670_v26  ;;  %v18357_v26 = vld [vmem:[#allocation10 + $0x49c] ss:$12 sps:$4 sm:$0xff]   ;;  %v18363_v31 = vld [vmem:[#allocation10 + $0x4b4] ss:$12 sps:$4 sm:$0xff]  }
 0x761   :  { %v21464_v36 = vpack.c.bf16 %v2677_v34, %v2671_v27  ;;  %3732 = vmatpush1.bf16.msra.mxu1 %v18301_v10  ;;  %v18352_v27 = vld [vmem:[#allocation10 + $0x378] ss:$12 sps:$4 sm:$0xff]   ;;  %v18360_v10 = vld [vmem:[#allocation10 + $0x394] ss:$12 sps:$4 sm:$0xff]  }
 0x762   :  { %3733 = vmatprep.subr.bf16.mxu1 %v18308_v33  ;;  %v18361_v33 = vld [vmem:[#allocation10 + $0x4b0] ss:$12 sps:$4 sm:$0xff]   ;;  %v18366_v34 = vld [vmem:[#allocation10 + $0x3ac] ss:$12 sps:$4 sm:$0xff]  }
 0x763   :  { %v2610_v39 = vpop.f32.mrb[84].mxu1  ;;  %3741 = vmatprep.mubr.bf16.mxu1 %v21464_v36  ;;  %3891 = vmatprep.mubr.bf16.mxu0 %v21464_v36  ;;  %v18373_v9 = vld [vmem:[#allocation10 + $0x4e0] ss:$12 sps:$4 sm:$0xff]  }
 0x764   :  { %v2682_v24 = vmax.f32 %v21446_v30, %v2610_v39  ;;  %v2612_v40 = vpop.f32.mrb[85].mxu1  ;;  %3892 = vmatmul.mubr.bf16.vlgmr.msra.gmra.mrb[64].mxu0 %v21462_v35  ;;  %v18316_v30 = vld [vmem:[#allocation10 + $0x2d0] ss:$12 sps:$4 sm:$0xff]  }
 0x765   :  { %v2683_v25 = vmax.f32 %v21448_v12, %v2612_v40  ;;  %3734 = vmatpush1.bf16.msra.mxu1 %v18306_v37  ;;  %17269 = vmatpush3.bf16.msra.mxu0 %v18310_v20  ;;  %v2614_v43 = vpop.f32.mrb[86].mxu1  ;;  %v18323_v12 = vld [vmem:[#allocation10 + $0x2ec] ss:$12 sps:$4 sm:$0xff]   ;;  %v18364_v20 = vld [vmem:[#allocation10 + $0x3a8] ss:$12 sps:$4 sm:$0xff]  }
 0x766   :  { %3735 = vmatprep.subr.bf16.mxu1 %v18313_v38  ;;  %17270 = vmatprep.subr.bf16.mxu0 %v18314_v22  ;;  %v2615_v45 = vpop.f32.mrb[87].mxu1  ;;  %v21473_v49 = vpack.c.bf16 %v2682_v24, %v2682_v24  ;;  %v18369_v37 = vld [vmem:[#allocation10 + $0x4cc] ss:$12 sps:$4 sm:$0xff]   ;;  %v18367_v38 = vld [vmem:[#allocation10 + $0x4c8] ss:$12 sps:$4 sm:$0xff]  }
 0x767   :  { %v21471_v46 = vpack.c.bf16 %v2683_v25, %v2683_v25  ;;  %v18372_v22 = vld [vmem:[#allocation10 + $0x3c4] ss:$12 sps:$4 sm:$0xff]   ;;  %v18370_v24 = vld [vmem:[#allocation10 + $0x3c0] ss:$12 sps:$4 sm:$0xff]   ;;  %v18378_v40 = vld [vmem:[#allocation10 + $0x3dc] ss:$12 sps:$4 sm:$0xff]  }
 0x768   :  { %v18375_v39 = vld [vmem:[#allocation10 + $0x4e4] ss:$12 sps:$4 sm:$0xff]   ;;  %v18381_v25 = vld [vmem:[#allocation10 + $0x4fc] ss:$12 sps:$4 sm:$0xff]   ;;  %v18384_v43 = vld [vmem:[#allocation10 + $0x3f4] ss:$12 sps:$4 sm:$0xff]  }
 0x769   :  { %3736 = vmatpush1.bf16.msra.mxu1 %v18311_v41  ;;  %17271 = vmatpush3.bf16.msra.mxu0 %v18315_v42  ;;  %v18376_v41 = vld [vmem:[#allocation10 + $0x3d8] ss:$12 sps:$4 sm:$0xff]   ;;  %v18382_v45 = vld [vmem:[#allocation10 + $0x3f0] ss:$12 sps:$4 sm:$0xff]  }
 0x76a   :  { %3899 = vmatprep.mubr.bf16.mxu0 %v21471_v46  ;;  %3737 = vmatprep.subr.bf16.mxu1 %v18318_v44  ;;  %v18379_v42 = vld [vmem:[#allocation10 + $0x4f8] ss:$12 sps:$4 sm:$0xff]   ;;  %v18387_v44 = vld [vmem:[#allocation10 + $0x514] ss:$12 sps:$4 sm:$0xff]  }
 0x76b   :  { %17272 = vmatprep.subr.bf16.mxu0 %v18319_v47  ;;  %v18385_v47 = vld [vmem:[#allocation10 + $0x510] ss:$12 sps:$4 sm:$0xff]  }
 0x76c   :  { %3900 = vmatmul.mubr.bf16.gmra.mrb[68].mxu0 %v21473_v49 }
 0x76d   :  { %3738 = vmatpush1.bf16.msra.mxu1 %v18316_v30  ;;  %17273 = vmatpush3.bf16.msra.mxu0 %v18320_v48  ;;  %v18390_v30 = vld [vmem:[#allocation10 + $0x40c] ss:$12 sps:$4 sm:$0xff]  }
 0x76e   :  { %3939 = vmatprep.mubr.bf16.mxu0 %v21452_v3  ;;  %3739 = vmatprep.subr.bf16.mxu1 %v18323_v12  ;;  %v18393_v48 = vld [vmem:[#allocation10 + $0x52c] ss:$12 sps:$4 sm:$0xff]   ;;  %v18388_v12 = vld [vmem:[#allocation10 + $0x408] ss:$12 sps:$4 sm:$0xff]  }
 0x76f   :  { %17274 = vmatprep.subr.bf16.mxu0 %v18324_v50  ;;  %v18391_v50 = vld [vmem:[#allocation10 + $0x528] ss:$12 sps:$4 sm:$0xff]  }
 0x771   :  { %3740 = vmatpush1.bf16.msra.mxu1 %v18321_v51  ;;  %17275 = vmatpush3.bf16.msra.mxu0 %v18325_v52  ;;  %v18396_v51 = vld [vmem:[#allocation10 + $0x424] ss:$12 sps:$4 sm:$0xff]  }
 0x772   :  { %3760 = vmatprep.subr.bf16.mxu1 %v18328_v53  ;;  %17276 = vmatprep.subr.bf16.mxu0 %v18329_v54  ;;  %v18399_v52 = vld [vmem:[#allocation10 + $0x544] ss:$12 sps:$4 sm:$0xff]   ;;  %v18394_v53 = vld [vmem:[#allocation10 + $0x420] ss:$12 sps:$4 sm:$0xff]  }
 0x773   :  { %v18397_v54 = vld [vmem:[#allocation10 + $0x540] ss:$12 sps:$4 sm:$0xff]  }
 0x774   :  { %3742 = vmatmul.mubr.bf16.vlgmr.msra.gmra.mrb[88].mxu1 %v21462_v35 }
 0x775   :  { %3751 = vmatprep.mubr.bf16.mxu1 %v21471_v46  ;;  %3761 = vmatpush1.bf16.msra.mxu1 %v18326_v57  ;;  %v18402_v57 = vld [vmem:[#allocation10 + $0x43c] ss:$12 sps:$4 sm:$0xff]  }
 0x776   :  { %17277 = vmatpush3.bf16.msra.mxu0 %v18330_v58  ;;  %3762 = vmatprep.subr.bf16.mxu1 %v18333_v59  ;;  %v18405_v58 = vld [vmem:[#allocation10 + $0x55c] ss:$12 sps:$4 sm:$0xff]   ;;  %v18400_v59 = vld [vmem:[#allocation10 + $0x438] ss:$12 sps:$4 sm:$0xff]  }
 0x777   :  { %17278 = vmatprep.subr.bf16.mxu0 %v18334_v60  ;;  %v18403_v60 = vld [vmem:[#allocation10 + $0x558] ss:$12 sps:$4 sm:$0xff]  }
 0x779   :  { %3763 = vmatpush1.bf16.msra.mxu1 %v18331_v61  ;;  %v18408_v61 = vld [vmem:[#allocation10 + $0x454] ss:$12 sps:$4 sm:$0xff]  }
 0x77a   :  { %17279 = vmatpush3.bf16.msra.mxu0 %v18335_v62  ;;  %3764 = vmatprep.subr.bf16.mxu1 %v18338_v63  ;;  %v18411_v62 = vld [vmem:[#allocation10 + $0x574] ss:$12 sps:$4 sm:$0xff]   ;;  %v18406_v63 = vld [vmem:[#allocation10 + $0x450] ss:$12 sps:$4 sm:$0xff]  }
 0x77b   :  { %17280 = vmatprep.subr.bf16.mxu0 %v18339_v2  ;;  %v18409_v2 = vld [vmem:[#allocation10 + $0x570] ss:$12 sps:$4 sm:$0xff]  }
 0x77c   :  { %3752 = vmatmul.mubr.bf16.gmra.mrb[92].mxu1 %v21473_v49 }
 0x77d   :  { %3765 = vmatpush1.bf16.msra.mxu1 %v18336_v5  ;;  %3792 = vmatprep.mubr.bf16.mxu1 %v21452_v3  ;;  %v18414_v5 = vld [vmem:[#allocation10 + $0x46c] ss:$12 sps:$4 sm:$0xff]  }
 0x77e   :  { %17281 = vmatpush3.bf16.msra.mxu0 %v18340_v7  ;;  %3766 = vmatprep.subr.bf16.mxu1 %v18343_v8  ;;  %v18417_v7 = vld [vmem:[#allocation10 + $0x58c] ss:$12 sps:$4 sm:$0xff]   ;;  %v18412_v8 = vld [vmem:[#allocation10 + $0x468] ss:$12 sps:$4 sm:$0xff]  }
 0x77f   :  { %17282 = vmatprep.subr.bf16.mxu0 %v18344_v11  ;;  %v18415_v11 = vld [vmem:[#allocation10 + $0x588] ss:$12 sps:$4 sm:$0xff]  }
 0x781   :  { %3767 = vmatpush1.bf16.msra.mxu1 %v18341_v15  ;;  %v18421_v15 = vld [vmem:[#allocation10 + $0x548] ss:$12 sps:$4 sm:$0xff]  }
 0x782   :  { %17283 = vmatpush3.bf16.msra.mxu0 %v18345_v16  ;;  %3768 = vmatprep.subr.bf16.mxu1 %v18348_v17  ;;  %v18420_v16 = vld [vmem:[#allocation10 + $0x5a4] ss:$12 sps:$4 sm:$0xff]   ;;  %v18422_v17 = vld [vmem:[#allocation10 + $0x488] ss:$12 sps:$4 sm:$0xff]  }
 0x783   :  { %4916 = vmatprep.subr.bf16.mxu0 %v18351_v19  ;;  %v18418_v19 = vld [vmem:[#allocation10 + $0x5a0] ss:$12 sps:$4 sm:$0xff]  }
 0x785   :  { %3940 = vmatmul.mubr.bf16.vlgmr.msra.gmra.mrb[72].mxu0 %v21450_v1  ;;  %3769 = vmatpush1.bf16.msra.mxu1 %v18346_v21  ;;  %v18426_v21 = vld [vmem:[#allocation10 + $0x560] ss:$12 sps:$4 sm:$0xff]  }
 0x786   :  { %3947 = vmatprep.mubr.bf16.mxu0 %v21484_v6  ;;  %4917 = vmatpush1.bf16.msra.mxu0 %v18349_v23  ;;  %v18425_v23 = vld [vmem:[#allocation10 + $0x5bc] ss:$12 sps:$4 sm:$0xff]  }
 0x787   :  { %3770 = vmatprep.subr.bf16.mxu1 %v18354_v4  ;;  %4918 = vmatprep.subr.bf16.mxu0 %v18357_v26  ;;  %v18427_v4 = vld [vmem:[#allocation10 + $0x4a0] ss:$12 sps:$4 sm:$0xff]   ;;  %v18423_v26 = vld [vmem:[#allocation10 + $0x5b8] ss:$12 sps:$4 sm:$0xff]  }
 0x789   :  { %3771 = vmatpush1.bf16.msra.mxu1 %v18352_v27  ;;  %v18431_v27 = vld [vmem:[#allocation10 + $0x578] ss:$12 sps:$4 sm:$0xff]  }
 0x78a   :  { %4919 = vmatpush1.bf16.msra.mxu0 %v18355_v28  ;;  %3772 = vmatprep.subr.bf16.mxu1 %v18360_v10  ;;  %v18430_v28 = vld [vmem:[#allocation10 + $0x5d4] ss:$12 sps:$4 sm:$0xff]   ;;  %v18432_v10 = vld [vmem:[#allocation10 + $0x4b8] ss:$12 sps:$4 sm:$0xff]  }
 0x78b   :  { %4920 = vmatprep.subr.bf16.mxu0 %v18363_v31  ;;  %v18428_v31 = vld [vmem:[#allocation10 + $0x5d0] ss:$12 sps:$4 sm:$0xff]  }
 0x78d   :  { %3948 = vmatmul.mubr.bf16.gmra.mrb[76].mxu0 %v21490_v13  ;;  %3773 = vmatpush1.bf16.msra.mxu1 %v18358_v32  ;;  %v18436_v32 = vld [vmem:[#allocation10 + $0x590] ss:$12 sps:$4 sm:$0xff]  }
 0x78e   :  { %4921 = vmatpush1.bf16.msra.mxu0 %v18361_v33  ;;  %4948 = vmatprep.mubr.bf16.mxu0 %v21424_v56  ;;  %v18435_v33 = vld [vmem:[#allocation10 + $0x5ec] ss:$12 sps:$4 sm:$0xff]  }
 0x78f   :  { %3774 = vmatprep.subr.bf16.mxu1 %v18366_v34  ;;  %4922 = vmatprep.subr.bf16.mxu0 %v18369_v37  ;;  %v18437_v34 = vld [vmem:[#allocation10 + $0x4d0] ss:$12 sps:$4 sm:$0xff]   ;;  %v18433_v37 = vld [vmem:[#allocation10 + $0x5e8] ss:$12 sps:$4 sm:$0xff]  }
 0x791   :  { %3775 = vmatpush1.bf16.msra.mxu1 %v18364_v20  ;;  %v18441_v20 = vld [vmem:[#allocation10 + $0x5a8] ss:$12 sps:$4 sm:$0xff]  }
 0x792   :  { %4923 = vmatpush1.bf16.msra.mxu0 %v18367_v38  ;;  %3776 = vmatprep.subr.bf16.mxu1 %v18372_v22  ;;  %v18440_v38 = vld [vmem:[#allocation10 + $0x604] ss:$12 sps:$4 sm:$0xff]   ;;  %v18442_v22 = vld [vmem:[#allocation10 + $0x4e8] ss:$12 sps:$4 sm:$0xff]  }
 0x793   :  { %4924 = vmatprep.subr.bf16.mxu0 %v18375_v39  ;;  %v18438_v39 = vld [vmem:[#allocation10 + $0x600] ss:$12 sps:$4 sm:$0xff]  }
 0x795   :  { %3777 = vmatpush1.bf16.msra.mxu1 %v18370_v24  ;;  %v18445_v24 = vld [vmem:[#allocation10 + $0x61c] ss:$12 sps:$4 sm:$0xff]  }
 0x796   :  { %4925 = vmatpush1.bf16.msra.mxu0 %v18373_v9  ;;  %3778 = vmatprep.subr.bf16.mxu1 %v18378_v40  ;;  %v18446_v9 = vld [vmem:[#allocation10 + $0x5c0] ss:$12 sps:$4 sm:$0xff]  }
 0x797   :  { %4926 = vmatprep.subr.bf16.mxu0 %v18381_v25  ;;  %v18447_v40 = vld [vmem:[#allocation10 + $0x500] ss:$12 sps:$4 sm:$0xff]   ;;  %v18451_v25 = vld [vmem:[#allocation10 + $0x5d8] ss:$12 sps:$4 sm:$0xff]  }
 0x799   :  { %3779 = vmatpush1.bf16.msra.mxu1 %v18376_v41  ;;  %v18450_v41 = vld [vmem:[#allocation10 + $0x634] ss:$12 sps:$4 sm:$0xff]  }
 0x79a   :  { %4927 = vmatpush1.bf16.msra.mxu0 %v18379_v42  ;;  %3780 = vmatprep.subr.bf16.mxu1 %v18384_v43  ;;  %v18452_v42 = vld [vmem:[#allocation10 + $0x518] ss:$12 sps:$4 sm:$0xff]   ;;  %v18448_v43 = vld [vmem:[#allocation10 + $0x630] ss:$12 sps:$4 sm:$0xff]  }
 0x79b   :  { %4928 = vmatprep.subr.bf16.mxu0 %v18387_v44  ;;  %v18455_v44 = vld [vmem:[#allocation10 + $0x64c] ss:$12 sps:$4 sm:$0xff]  }
 0x79d   :  { %3781 = vmatpush1.bf16.msra.mxu1 %v18382_v45  ;;  %v18456_v45 = vld [vmem:[#allocation10 + $0x5f0] ss:$12 sps:$4 sm:$0xff]  }
 0x79e   :  { %4929 = vmatpush1.bf16.msra.mxu0 %v18385_v47  ;;  %3782 = vmatprep.subr.bf16.mxu1 %v18390_v30  ;;  %v18457_v47 = vld [vmem:[#allocation10 + $0x530] ss:$12 sps:$4 sm:$0xff]   ;;  %v18453_v30 = vld [vmem:[#allocation10 + $0x648] ss:$12 sps:$4 sm:$0xff]  }
 0x79f   :  { %4930 = vmatprep.subr.bf16.mxu0 %v18393_v48  ;;  %v18461_v48 = vld [vmem:[#allocation10 + $0x6c8] ss:$12 sps:$4 sm:$0xff]  }
 0x7a1   :  { %3783 = vmatpush1.bf16.msra.mxu1 %v18388_v12  ;;  %v18460_v12 = vld [vmem:[#allocation10 + $0x664] ss:$12 sps:$4 sm:$0xff]  }
 0x7a2   :  { %4931 = vmatpush1.bf16.msra.mxu0 %v18391_v50  ;;  %3784 = vmatprep.subr.bf16.mxu1 %v18396_v51  ;;  %v18462_v50 = vld [vmem:[#allocation10 + $0x608] ss:$12 sps:$4 sm:$0xff]   ;;  %v18458_v51 = vld [vmem:[#allocation10 + $0x660] ss:$12 sps:$4 sm:$0xff]  }
 0x7a3   :  { %4932 = vmatprep.subr.bf16.mxu0 %v18399_v52  ;;  %v18466_v52 = vld [vmem:[#allocation10 + $0x6e0] ss:$12 sps:$4 sm:$0xff]  }
 0x7a5   :  { %3785 = vmatpush1.bf16.msra.mxu1 %v18394_v53  ;;  %v18465_v53 = vld [vmem:[#allocation10 + $0x67c] ss:$12 sps:$4 sm:$0xff]  }
 0x7a6   :  { %4933 = vmatpush1.bf16.msra.mxu0 %v18397_v54  ;;  %3786 = vmatprep.subr.bf16.mxu1 %v18402_v57  ;;  %v18467_v54 = vld [vmem:[#allocation10 + $0x620] ss:$12 sps:$4 sm:$0xff]   ;;  %v18463_v57 = vld [vmem:[#allocation10 + $0x678] ss:$12 sps:$4 sm:$0xff]  }
 0x7a7   :  { %4934 = vmatprep.subr.bf16.mxu0 %v18405_v58  ;;  %v18471_v58 = vld [vmem:[#allocation10 + $0x6f8] ss:$12 sps:$4 sm:$0xff]  }
 0x7a9   :  { %3787 = vmatpush1.bf16.msra.mxu1 %v18400_v59  ;;  %v18470_v59 = vld [vmem:[#allocation10 + $0x694] ss:$12 sps:$4 sm:$0xff]  }
 0x7aa   :  { %4935 = vmatpush1.bf16.msra.mxu0 %v18403_v60  ;;  %3788 = vmatprep.subr.bf16.mxu1 %v18408_v61  ;;  %v18472_v60 = vld [vmem:[#allocation10 + $0x638] ss:$12 sps:$4 sm:$0xff]   ;;  %v18468_v61 = vld [vmem:[#allocation10 + $0x690] ss:$12 sps:$4 sm:$0xff]  }
 0x7ab   :  { %4936 = vmatprep.subr.bf16.mxu0 %v18411_v62  ;;  %v18476_v62 = vld [vmem:[#allocation10 + $0x710] ss:$12 sps:$4 sm:$0xff]  }
 0x7ad   :  { %3789 = vmatpush1.bf16.msra.mxu1 %v18406_v63  ;;  %v18475_v63 = vld [vmem:[#allocation10 + $0x6ac] ss:$12 sps:$4 sm:$0xff]  }
 0x7ae   :  { %4937 = vmatpush1.bf16.msra.mxu0 %v18409_v2  ;;  %3790 = vmatprep.subr.bf16.mxu1 %v18414_v5  ;;  %v18481_v2 = vld [vmem:[#allocation10 + $0x728] ss:$12 sps:$4 sm:$0xff]   ;;  %v18480_v5 = vld [vmem:[#allocation10 + $0x6c4] ss:$12 sps:$4 sm:$0xff]  }
 0x7af   :  { %4938 = vmatprep.subr.bf16.mxu0 %v18417_v7  ;;  %v18482_v7 = vld [vmem:[#allocation10 + $0x668] ss:$12 sps:$4 sm:$0xff]  }
 0x7b1   :  { %3791 = vmatpush1.bf16.msra.mxu1 %v18412_v8  ;;  %v18478_v8 = vld [vmem:[#allocation10 + $0x6c0] ss:$12 sps:$4 sm:$0xff]  }
 0x7b2   :  { %4939 = vmatpush1.bf16.msra.mxu0 %v18415_v11  ;;  %17296 = vmatprep.subr.bf16.mxu1 %v18421_v15  ;;  %v18486_v11 = vld [vmem:[#allocation10 + $0x740] ss:$12 sps:$4 sm:$0xff]   ;;  %v18485_v15 = vld [vmem:[#allocation10 + $0x6dc] ss:$12 sps:$4 sm:$0xff]  }
 0x7b3   :  { %4940 = vmatprep.subr.bf16.mxu0 %v18420_v16  ;;  %v18483_v16 = vld [vmem:[#allocation10 + $0x6d8] ss:$12 sps:$4 sm:$0xff]  }
 0x7b4   :  { %3793 = vmatmul.mubr.bf16.vlgmr.msra.gmra.mrb[88].mxu1 %v21450_v1 }
 0x7b5   :  { %3802 = vmatprep.mubr.bf16.mxu1 %v21484_v6  ;;  %17297 = vmatpush3.bf16.msra.mxu1 %v18422_v17  ;;  %v18490_v17 = vld [vmem:[#allocation10 + $0x6f4] ss:$12 sps:$4 sm:$0xff]  }
 0x7b6   :  { %4941 = vmatpush1.bf16.msra.mxu0 %v18418_v19  ;;  %17298 = vmatprep.subr.bf16.mxu1 %v18426_v21  ;;  %v18492_v19 = vld [vmem:[#allocation10 + $0x698] ss:$12 sps:$4 sm:$0xff]   ;;  %v18488_v21 = vld [vmem:[#allocation10 + $0x6f0] ss:$12 sps:$4 sm:$0xff]  }
 0x7b7   :  { %4942 = vmatprep.subr.bf16.mxu0 %v18425_v23  ;;  %v18496_v23 = vld [vmem:[#allocation10 + $0x770] ss:$12 sps:$4 sm:$0xff]  }
 0x7b9   :  { %17299 = vmatpush3.bf16.msra.mxu1 %v18427_v4  ;;  %v18495_v4 = vld [vmem:[#allocation10 + $0x70c] ss:$12 sps:$4 sm:$0xff]  }
 0x7ba   :  { %4943 = vmatpush1.bf16.msra.mxu0 %v18423_v26  ;;  %17300 = vmatprep.subr.bf16.mxu1 %v18431_v27  ;;  %v18497_v26 = vld [vmem:[#allocation10 + $0x6b0] ss:$12 sps:$4 sm:$0xff]   ;;  %v18493_v27 = vld [vmem:[#allocation10 + $0x708] ss:$12 sps:$4 sm:$0xff]  }
 0x7bb   :  { %4944 = vmatprep.subr.bf16.mxu0 %v18430_v28  ;;  %v18501_v28 = vld [vmem:[#allocation10 + $0x848] ss:$12 sps:$4 sm:$0xff]  }
 0x7bc   :  { %3803 = vmatmul.mubr.bf16.gmra.mrb[92].mxu1 %v21490_v13 }
 0x7bd   :  { %17301 = vmatpush3.bf16.msra.mxu1 %v18432_v10  ;;  %5101 = vmatprep.mubr.bf16.mxu1 %v21424_v56  ;;  %v18443_v56 = vld [vmem:[#allocation10 + $0x618] ss:$12 sps:$4 sm:$0xff]  }
 0x7be   :  { %4945 = vmatpush1.bf16.msra.mxu0 %v18428_v31  ;;  %17302 = vmatprep.subr.bf16.mxu1 %v18436_v32  ;;  %v18500_v10 = vld [vmem:[#allocation10 + $0x724] ss:$12 sps:$4 sm:$0xff]   ;;  %v18502_v31 = vld [vmem:[#allocation10 + $0x788] ss:$12 sps:$4 sm:$0xff]   ;;  %v18498_v32 = vld [vmem:[#allocation10 + $0x720] ss:$12 sps:$4 sm:$0xff]  }
 0x7bf   :  { %4946 = vmatprep.subr.bf16.mxu0 %v18435_v33  ;;  %v18506_v33 = vld [vmem:[#allocation10 + $0x860] ss:$12 sps:$4 sm:$0xff]  }
 0x7c1   :  { %17303 = vmatpush3.bf16.msra.mxu1 %v18437_v34  ;;  %v18505_v34 = vld [vmem:[#allocation10 + $0x73c] ss:$12 sps:$4 sm:$0xff]  }
 0x7c2   :  { %4947 = vmatpush1.bf16.msra.mxu0 %v18433_v37  ;;  %17304 = vmatprep.subr.bf16.mxu1 %v18441_v20  ;;  %v18507_v37 = vld [vmem:[#allocation10 + $0x7a0] ss:$12 sps:$4 sm:$0xff]   ;;  %v18503_v20 = vld [vmem:[#allocation10 + $0x738] ss:$12 sps:$4 sm:$0xff]  }
 0x7c3   :  { %4967 = vmatprep.subr.bf16.mxu0 %v18440_v38  ;;  %v18511_v38 = vld [vmem:[#allocation10 + $0x878] ss:$12 sps:$4 sm:$0xff]  }
 0x7c5   :  { %4949 = vmatmul.mubr.bf16.vlgmr.msra.gmra.mrb[80].mxu0 %v21422_v55  ;;  %17305 = vmatpush3.bf16.msra.mxu1 %v18442_v22  ;;  %v18510_v22 = vld [vmem:[#allocation10 + $0x754] ss:$12 sps:$4 sm:$0xff]  }
 0x7c6   :  { %4958 = vmatprep.mubr.bf16.mxu0 %v21430_v14  ;;  %4968 = vmatpush1.bf16.msra.mxu0 %v18438_v39  ;;  %v18512_v39 = vld [vmem:[#allocation10 + $0x7b8] ss:$12 sps:$4 sm:$0xff]  }
 0x7c7   :  { %4969 = vmatprep.subr.bf16.mxu0 %v18445_v24  ;;  %17306 = vmatprep.subr.bf16.mxu1 %v18446_v9  ;;  %v18508_v24 = vld [vmem:[#allocation10 + $0x750] ss:$12 sps:$4 sm:$0xff]  }
 0x7c8   :  { %v18516_v9 = vld [vmem:[#allocation10 + $0x890] ss:$12 sps:$4 sm:$0xff]  }
 0x7c9   :  { %17307 = vmatpush3.bf16.msra.mxu1 %v18447_v40  ;;  %v18515_v40 = vld [vmem:[#allocation10 + $0x76c] ss:$12 sps:$4 sm:$0xff]  }
 0x7ca   :  { %4970 = vmatpush1.bf16.msra.mxu0 %v18443_v56  ;;  %17308 = vmatprep.subr.bf16.mxu1 %v18451_v25  ;;  %v18517_v56 = vld [vmem:[#allocation10 + $0x7d0] ss:$12 sps:$4 sm:$0xff]   ;;  %v18513_v25 = vld [vmem:[#allocation10 + $0x768] ss:$12 sps:$4 sm:$0xff]  }
 0x7cb   :  { %4971 = vmatprep.subr.bf16.mxu0 %v18450_v41  ;;  %v18521_v41 = vld [vmem:[#allocation10 + $0x8a8] ss:$12 sps:$4 sm:$0xff]  }
 0x7cd   :  { %4959 = vmatmul.mubr.bf16.gmra.mrb[84].mxu0 %v21433_v18  ;;  %17309 = vmatpush3.bf16.msra.mxu1 %v18452_v42  ;;  %v18520_v42 = vld [vmem:[#allocation10 + $0x784] ss:$12 sps:$4 sm:$0xff]  }
 0x7ce   :  { %4972 = vmatpush1.bf16.msra.mxu0 %v18448_v43  ;;  %4999 = vmatprep.mubr.bf16.mxu0 %v21464_v36  ;;  %v18522_v43 = vld [vmem:[#allocation10 + $0x7e8] ss:$12 sps:$4 sm:$0xff]  }
 0x7cf   :  { %4973 = vmatprep.subr.bf16.mxu0 %v18455_v44  ;;  %17310 = vmatprep.subr.bf16.mxu1 %v18456_v45  ;;  %v18518_v44 = vld [vmem:[#allocation10 + $0x780] ss:$12 sps:$4 sm:$0xff]   ;;  %v18525_v45 = vld [vmem:[#allocation10 + $0x79c] ss:$12 sps:$4 sm:$0xff]  }
 0x7d1   :  { %17311 = vmatpush3.bf16.msra.mxu1 %v18457_v47  ;;  %v18526_v47 = vld [vmem:[#allocation10 + $0x8c0] ss:$12 sps:$4 sm:$0xff]  }
 0x7d2   :  { %4974 = vmatpush1.bf16.msra.mxu0 %v18453_v30  ;;  %17324 = vmatprep.subr.bf16.mxu1 %v18461_v48  ;;  %v18527_v30 = vld [vmem:[#allocation10 + $0x800] ss:$12 sps:$4 sm:$0xff]   ;;  %v18523_v48 = vld [vmem:[#allocation10 + $0x798] ss:$12 sps:$4 sm:$0xff]  }
 0x7d3   :  { %4975 = vmatprep.subr.bf16.mxu0 %v18460_v12  ;;  %v18531_v12 = vld [vmem:[#allocation10 + $0x8d8] ss:$12 sps:$4 sm:$0xff]  }
 0x7d4   :  { %5102 = vmatmul.mubr.bf16.vlgmr.msra.gmra.mrb[96].mxu1 %v21422_v55  ;;  %v18477_v55 = vld [vmem:[#allocation10 + $0x650] ss:$12 sps:$4 sm:$0xff]  }
 0x7d5   :  { %5109 = vmatprep.mubr.bf16.mxu1 %v21430_v14  ;;  %17325 = vmatpush3.bf16.msra.mxu1 %v18462_v50  ;;  %v18473_v14 = vld [vmem:[#allocation10 + $0x6a8] ss:$12 sps:$4 sm:$0xff]  }
 0x7d6   :  { %4976 = vmatpush1.bf16.msra.mxu0 %v18458_v51  ;;  %17326 = vmatprep.subr.bf16.mxu1 %v18466_v52  ;;  %v18530_v51 = vld [vmem:[#allocation10 + $0x7b4] ss:$12 sps:$4 sm:$0xff]  }
 0x7d7   :  { %4977 = vmatprep.subr.bf16.mxu0 %v18465_v53 }
 0x7d9   :  { %17327 = vmatpush3.bf16.msra.mxu1 %v18467_v54 }
 0x7da   :  { %4978 = vmatpush1.bf16.msra.mxu0 %v18463_v57  ;;  %17328 = vmatprep.subr.bf16.mxu1 %v18471_v58  ;;  %v18532_v57 = vld [vmem:[#allocation10 + $0x818] ss:$12 sps:$4 sm:$0xff]  }
 0x7db   :  { %4979 = vmatprep.subr.bf16.mxu0 %v18470_v59 }
 0x7dc   :  { %5110 = vmatmul.mubr.bf16.gmra.mrb[100].mxu1 %v21433_v18  ;;  %v18487_v18 = vld [vmem:[#allocation10 + $0x680] ss:$12 sps:$4 sm:$0xff]  }
 0x7dd   :  { %17329 = vmatpush3.bf16.msra.mxu1 %v18472_v60  ;;  %5149 = vmatprep.mubr.bf16.mxu1 %v21464_v36  ;;  %v18491_v36 = vld [vmem:[#allocation10 + $0x758] ss:$12 sps:$4 sm:$0xff]   ;;  %v18536_v60 = vld [vmem:[#allocation10 + $0x8f0] ss:$12 sps:$4 sm:$0xff]  }
 0x7de   :  { %4980 = vmatpush1.bf16.msra.mxu0 %v18468_v61  ;;  %17330 = vmatprep.subr.bf16.mxu1 %v18476_v62  ;;  %v18537_v61 = vld [vmem:[#allocation10 + $0x830] ss:$12 sps:$4 sm:$0xff]   ;;  %v18533_v62 = vld [vmem:[#allocation10 + $0x7c8] ss:$12 sps:$4 sm:$0xff]  }
 0x7df   :  { %4981 = vmatprep.subr.bf16.mxu0 %v18475_v63 }
 0x7e1   :  { %17331 = vmatpush3.bf16.msra.mxu1 %v18477_v55  ;;  %v18540_v55 = vld [vmem:[#allocation10 + $0x7e4] ss:$12 sps:$4 sm:$0xff]  }
 0x7e2   :  { %4982 = vmatpush1.bf16.msra.mxu0 %v18473_v14  ;;  %17332 = vmatprep.subr.bf16.mxu1 %v18481_v2 }
 0x7e3   :  { %4983 = vmatprep.subr.bf16.mxu0 %v18480_v5 }
 0x7e5   :  { %17333 = vmatpush3.bf16.msra.mxu1 %v18482_v7 }
 0x7e6   :  { %4984 = vmatpush1.bf16.msra.mxu0 %v18478_v8  ;;  %17334 = vmatprep.subr.bf16.mxu1 %v18486_v11  ;;  %v18538_v8 = vld [vmem:[#allocation10 + $0x7e0] ss:$12 sps:$4 sm:$0xff]  }
 0x7e7   :  { %4985 = vmatprep.subr.bf16.mxu0 %v18485_v15  ;;  %v18546_v11 = vld [vmem:[#allocation10 + $0x814] ss:$12 sps:$4 sm:$0xff]   ;;  %v18544_v15 = vld [vmem:[#allocation10 + $0x810] ss:$12 sps:$4 sm:$0xff]  }
 0x7e9   :  { %17335 = vmatpush3.bf16.msra.mxu1 %v18487_v18  ;;  %v18549_v18 = vld [vmem:[#allocation10 + $0x82c] ss:$12 sps:$4 sm:$0xff]  }
 0x7ea   :  { %4986 = vmatpush1.bf16.msra.mxu0 %v18483_v16  ;;  %17336 = vmatprep.subr.bf16.mxu1 %v18491_v36  ;;  %v18547_v16 = vld [vmem:[#allocation10 + $0x828] ss:$12 sps:$4 sm:$0xff]   ;;  %v18552_v36 = vld [vmem:[#allocation10 + $0x844] ss:$12 sps:$4 sm:$0xff]  }
 0x7eb   :  { %4987 = vmatprep.subr.bf16.mxu0 %v18490_v17  ;;  %v18550_v17 = vld [vmem:[#allocation10 + $0x840] ss:$12 sps:$4 sm:$0xff]  }
 0x7ed   :  { %17337 = vmatpush3.bf16.msra.mxu1 %v18492_v19  ;;  %v18555_v19 = vld [vmem:[#allocation10 + $0x85c] ss:$12 sps:$4 sm:$0xff]  }
 0x7ee   :  { %4988 = vmatpush1.bf16.msra.mxu0 %v18488_v21  ;;  %17338 = vmatprep.subr.bf16.mxu1 %v18496_v23  ;;  %v18553_v21 = vld [vmem:[#allocation10 + $0x858] ss:$12 sps:$4 sm:$0xff]   ;;  %v18558_v23 = vld [vmem:[#allocation10 + $0x874] ss:$12 sps:$4 sm:$0xff]  }
 0x7ef   :  { %4989 = vmatprep.subr.bf16.mxu0 %v18495_v4  ;;  %v18556_v4 = vld [vmem:[#allocation10 + $0x870] ss:$12 sps:$4 sm:$0xff]  }
 0x7f1   :  { %17339 = vmatpush3.bf16.msra.mxu1 %v18497_v26  ;;  %v18561_v26 = vld [vmem:[#allocation10 + $0x88c] ss:$12 sps:$4 sm:$0xff]  }
 0x7f2   :  { %4990 = vmatpush1.bf16.msra.mxu0 %v18493_v27  ;;  %17352 = vmatprep.subr.bf16.mxu1 %v18501_v28  ;;  %v18559_v27 = vld [vmem:[#allocation10 + $0x888] ss:$12 sps:$4 sm:$0xff]   ;;  %v18564_v28 = vld [vmem:[#allocation10 + $0x8a4] ss:$12 sps:$4 sm:$0xff]  }
 0x7f3   :  { %4991 = vmatprep.subr.bf16.mxu0 %v18500_v10  ;;  %v18562_v10 = vld [vmem:[#allocation10 + $0x8a0] ss:$12 sps:$4 sm:$0xff]  }
 0x7f4   :  { %5150 = vmatmul.mubr.bf16.vlgmr.msra.gmra.mrb[104].mxu1 %v21462_v35 }
 0x7f5   :  { %5157 = vmatprep.mubr.bf16.mxu1 %v21471_v46  ;;  %17353 = vmatpush3.bf16.msra.mxu1 %v18502_v31  ;;  %v18567_v31 = vld [vmem:[#allocation10 + $0x8bc] ss:$12 sps:$4 sm:$0xff]  }
 0x7f6   :  { %4992 = vmatpush1.bf16.msra.mxu0 %v18498_v32  ;;  %17354 = vmatprep.subr.bf16.mxu1 %v18506_v33  ;;  %v18565_v32 = vld [vmem:[#allocation10 + $0x8b8] ss:$12 sps:$4 sm:$0xff]  }
 0x7f7   :  { %4993 = vmatprep.subr.bf16.mxu0 %v18505_v34  ;;  %v18570_v34 = vld [vmem:[#allocation10 + $0x8d4] ss:$12 sps:$4 sm:$0xff]  }
 0x7f9   :  { %17355 = vmatpush3.bf16.msra.mxu1 %v18507_v37 }
 0x7fa   :  { %4994 = vmatpush1.bf16.msra.mxu0 %v18503_v20  ;;  %17356 = vmatprep.subr.bf16.mxu1 %v18511_v38 }
 0x7fb   :  { %4995 = vmatprep.subr.bf16.mxu0 %v18510_v22 }
 0x7fc   :  { %5158 = vmatmul.mubr.bf16.gmra.mrb[108].mxu1 %v21473_v49 }
 0x7fd   :  { %17357 = vmatpush3.bf16.msra.mxu1 %v18512_v39  ;;  %5197 = vmatprep.mubr.bf16.mxu1 %v21452_v3  ;;  %v18568_v39 = vld [vmem:[#allocation10 + $0x8d0] ss:$12 sps:$4 sm:$0xff]  }
 0x7fe   :  { %4996 = vmatpush1.bf16.msra.mxu0 %v18508_v24  ;;  %17358 = vmatprep.subr.bf16.mxu1 %v18516_v9 }
 0x7ff   :  { %4997 = vmatprep.subr.bf16.mxu0 %v18515_v40  ;;  %v18573_v40 = vld [vmem:[#allocation10 + $0x8ec] ss:$12 sps:$4 sm:$0xff]  }
 0x801   :  { %17359 = vmatpush3.bf16.msra.mxu1 %v18517_v56 }
 0x802   :  { %4998 = vmatpush1.bf16.msra.mxu0 %v18513_v25  ;;  %17360 = vmatprep.subr.bf16.mxu1 %v18521_v41  ;;  %v18571_v25 = vld [vmem:[#allocation10 + $0x8e8] ss:$12 sps:$4 sm:$0xff]  }
 0x803   :  { %5018 = vmatprep.subr.bf16.mxu0 %v18520_v42 }
 0x805   :  { %5000 = vmatmul.mubr.bf16.vlgmr.msra.gmra.mrb[80].mxu0 %v21462_v35  ;;  %17361 = vmatpush3.bf16.msra.mxu1 %v18522_v43  ;;  %v18528_v35 = vld [vmem:[#allocation10 + $0x7b0] ss:$12 sps:$4 sm:$0xff]  }
 0x806   :  { %5009 = vmatprep.mubr.bf16.mxu0 %v21471_v46  ;;  %5019 = vmatpush1.bf16.msra.mxu0 %v18518_v44  ;;  %v18535_v46 = vld [vmem:[#allocation10 + $0x7cc] ss:$12 sps:$4 sm:$0xff]  }
 0x807   :  { %v17228_v50 = vpop.f32.mrb[56].mxu0  ;;  %5020 = vmatprep.subr.bf16.mxu0 %v18525_v45  ;;  %17362 = vmatprep.subr.bf16.mxu1 %v18526_v47 }
 0x808   :  { %v17229_v52 = vpop.f32.mrb[57].mxu0 }
 0x809   :  { %v21512_v53 = vadd.f32 %v17229_v52, %v17228_v50  ;;  %17363 = vmatpush3.bf16.msra.mxu1 %v18527_v30  ;;  %v17231_v54 = vpop.f32.mrb[58].mxu0 }
 0x80a   :  { %5021 = vmatpush1.bf16.msra.mxu0 %v18523_v48  ;;  %v17232_v58 = vpop.f32.mrb[59].mxu0  ;;  %17364 = vmatprep.subr.bf16.mxu1 %v18531_v12 }
 0x80b   :  { %v21514_v59 = vadd.f32 %v17232_v58, %v17231_v54  ;;  %5022 = vmatprep.subr.bf16.mxu0 %v18530_v51 }
 0x80d   :  { %5010 = vmatmul.mubr.bf16.gmra.mrb[84].mxu0 %v21473_v49  ;;  %17365 = vmatpush3.bf16.msra.mxu1 %v18532_v57  ;;  %v18543_v49 = vld [vmem:[#allocation10 + $0x7fc] ss:$12 sps:$4 sm:$0xff]  }
 0x80e   :  { %5023 = vmatpush1.bf16.msra.mxu0 %v18528_v35  ;;  %5050 = vmatprep.mubr.bf16.mxu0 %v21452_v3  ;;  %v18541_v3 = vld [vmem:[#allocation10 + $0x7f8] ss:$12 sps:$4 sm:$0xff]  }
 0x80f   :  { %v17234_v63 = vpop.f32.mrb[60].mxu0  ;;  %5024 = vmatprep.subr.bf16.mxu0 %v18535_v46  ;;  %17366 = vmatprep.subr.bf16.mxu1 %v18536_v60 }
 0x810   :  { %v17235_v14 = vpop.f32.mrb[61].mxu0 }
 0x811   :  { %v21518_v2 = vadd.f32 %v17235_v14, %v17234_v63  ;;  %17367 = vmatpush3.bf16.msra.mxu1 %v18537_v61  ;;  %v17237_v5 = vpop.f32.mrb[62].mxu0 }
 0x812   :  { %5025 = vmatpush1.bf16.msra.mxu0 %v18533_v62  ;;  %v17238_v7 = vpop.f32.mrb[63].mxu0 }
 0x813   :  { %5026 = vmatprep.subr.bf16.mxu0 %v18540_v55 }
 0x814   :  { %5198 = vmatmul.mubr.bf16.vlgmr.msra.gmra.mrb[112].mxu1 %v21450_v1 }
 0x815   :  { %5205 = vmatprep.mubr.bf16.mxu1 %v21484_v6 }
 0x816   :  { %5027 = vmatpush1.bf16.msra.mxu0 %v18538_v8 }
 0x817   :  { %5028 = vmatprep.subr.bf16.mxu0 %v18543_v49 }
 0x81a   :  { %5029 = vmatpush1.bf16.msra.mxu0 %v18541_v3 }
 0x81b   :  { %5030 = vmatprep.subr.bf16.mxu0 %v18546_v11 }
 0x81c   :  { %5206 = vmatmul.mubr.bf16.gmra.mrb[116].mxu1 %v21490_v13 }
 0x81d   :  { %5322 = vmatprep.mubr.bf16.mxu1 %v20727_v29 }
 0x81e   :  { %5031 = vmatpush1.bf16.msra.mxu0 %v18544_v15 }
 0x81f   :  { %5032 = vmatprep.subr.bf16.mxu0 %v18549_v18 }
 0x822   :  { %5033 = vmatpush1.bf16.msra.mxu0 %v18547_v16 }
 0x823   :  { %5034 = vmatprep.subr.bf16.mxu0 %v18552_v36 }
 0x826   :  { %5035 = vmatpush1.bf16.msra.mxu0 %v18550_v17 }
 0x827   :  { %5036 = vmatprep.subr.bf16.mxu0 %v18555_v19 }
 0x82a   :  { %5037 = vmatpush1.bf16.msra.mxu0 %v18553_v21 }
 0x82b   :  { %5038 = vmatprep.subr.bf16.mxu0 %v18558_v23 }
 0x82e   :  { %5039 = vmatpush1.bf16.msra.mxu0 %v18556_v4 }
 0x82f   :  { %5040 = vmatprep.subr.bf16.mxu0 %v18561_v26 }
 0x832   :  { %5041 = vmatpush1.bf16.msra.mxu0 %v18559_v27 }
 0x833   :  { %5042 = vmatprep.subr.bf16.mxu0 %v18564_v28 }
 0x836   :  { %5043 = vmatpush1.bf16.msra.mxu0 %v18562_v10 }
 0x837   :  { %v17256_v33 = vpop.f32.mrb[64].mxu0  ;;  %5044 = vmatprep.subr.bf16.mxu0 %v18567_v31 }
 0x838   :  { %v17257_v37 = vpop.f32.mrb[65].mxu0 }
 0x839   :  { %v17258_v20 = vadd.f32 %v17257_v37, %v17256_v33  ;;  %v17259_v38 = vpop.f32.mrb[66].mxu0 }
 0x83a   :  { %5045 = vmatpush1.bf16.msra.mxu0 %v18565_v32  ;;  %v17260_v22 = vpop.f32.mrb[67].mxu0 }
 0x83b   :  { %v3894_v24 = vadd.f32 %v17258_v20, %v21512_v53  ;;  %v17261_v9 = vadd.f32 %v17260_v22, %v17259_v38  ;;  %5046 = vmatprep.subr.bf16.mxu0 %v18570_v34  ;;  %v5224_v38 = vlaneseq }
 0x83d   :  { %v3897_v56 = vadd.f32 %v17261_v9, %v21514_v59  ;;  %v21548_v22 = vshrl.u32 %v5224_v38, 7 }
 0x83e   :  { %5047 = vmatpush1.bf16.msra.mxu0 %v18568_v39 }
 0x83f   :  { %v17262_v41 = vpop.f32.mrb[68].mxu0  ;;  %5048 = vmatprep.subr.bf16.mxu0 %v18573_v40  ;;  %v21551_v40 = vld [vmem:[#allocation11] sm:$0x7] }
 0x840   :  { %v17263_v42 = vpop.f32.mrb[69].mxu0 }
 0x841   :  { %v17264_v43 = vadd.f32 %v17263_v42, %v17262_v41  ;;  %v17265_v44 = vpop.f32.mrb[70].mxu0 }
 0x842   :  { %5049 = vmatpush1.bf16.msra.mxu0 %v18571_v25  ;;  %v17266_v45 = vpop.f32.mrb[71].mxu0 }
 0x843   :  { %v3902_v47 = vadd.f32 %v17264_v43, %v21518_v2 }
 0x845   :  { %5051 = vmatmul.mubr.bf16.vlgmr.msra.gmra.mrb[80].mxu0 %v21450_v1  ;;  %v21532_v1 = vld [vmem:[#allocation13] sm:$0xff]  }
 0x846   :  { %5060 = vmatprep.mubr.bf16.mxu0 %v21484_v6 }
 0x84d   :  { %5061 = vmatmul.mubr.bf16.gmra.mrb[84].mxu0 %v21490_v13 }
 0x84e   :  { %17641 = vmatprep.mubr.msk.bf16.mxu0 %vm5274_vm6, %v21532_v1 }
 0x858   :  { %v17284_v30 = vpop.f32.mrb[72].mxu0 }
 0x859   :  { %v17285_v48 = vpop.f32.mrb[73].mxu0 }
 0x85a   :  { %v17286_v12 = vadd.f32 %v17285_v48, %v17284_v30  ;;  %v17287_v50 = vpop.f32.mrb[74].mxu0 }
 0x85b   :  { %v17288_v51 = vpop.f32.mrb[75].mxu0 }
 0x85c   :  { %v3942_v52 = vadd.f32 %v17286_v12, %v3894_v24  ;;  %v17289_v53 = vadd.f32 %v17288_v51, %v17287_v50  ;;  %v5234_v24 = vsub.s32 2, %v21548_v22 }
 0x85e   :  { %v3945_v54 = vadd.f32 %v17289_v53, %v3897_v56  ;;  %v5235_v43 = vrot.slane %v21551_v40, %v5234_v24 }
 0x860   :  { %v17290_v57 = vpop.f32.mrb[76].mxu0 }
 0x861   :  { %v17291_v58 = vpop.f32.mrb[77].mxu0 }
 0x862   :  { %v17292_v35 = vadd.f32 %v17291_v58, %v17290_v57  ;;  %v17293_v59 = vpop.f32.mrb[78].mxu0 }
 0x863   :  { %v17294_v46 = vpop.f32.mrb[79].mxu0 }
 0x864   :  { %v21530_v60 = vadd.f32 %v17292_v35, %v3902_v47 }
 0x887   :  { %v21536_v6 = vpop.f32.mrb[88].mxu1 }
 0x888   :  { %v21538_v13 = vpop.f32.mrb[89].mxu1 }
 0x889   :  { %v21540_v61 = vpop.f32.mrb[90].mxu1 }
 0x88a   :  { %v21542_v62 = vpop.f32.mrb[91].mxu1 }
 0x88f   :  { %v21544_v63 = vpop.f32.mrb[92].mxu1 }
 0x890   :  { %v21546_v55 = vpop.f32.mrb[93].mxu1 }
 0x891   :  { %v3808_v14 = vpop.f32.mrb[94].mxu1 }
 0x892   :  { %v3809_v2 = vpop.f32.mrb[95].mxu1 }
 0x8a7   :  { %v17312_v5 = vpop.f32.mrb[96].mxu1 }
 0x8a8   :  { %v17313_v7 = vpop.f32.mrb[97].mxu1 }
 0x8a9   :  { %v17314_v8 = vadd.f32 %v17313_v7, %v17312_v5  ;;  %v17315_v49 = vpop.f32.mrb[98].mxu1 }
 0x8aa   :  { %v17316_v3 = vpop.f32.mrb[99].mxu1 }
 0x8ab   :  { %v17317_v11 = vadd.f32 %v17316_v3, %v17315_v49  ;;  %v18583_v49 = vld [vmem:[#allocation14 + $0x3cc] ss:$20 sps:$4 sm:$0xff]   ;;  %v18581_v3 = vld [vmem:[#allocation14 + $0x3c8] ss:$20 sps:$4 sm:$0xff]  }
 0x8af   :  { %v17318_v15 = vpop.f32.mrb[100].mxu1 }
 0x8b0   :  { %v17319_v18 = vpop.f32.mrb[101].mxu1 }
 0x8b1   :  { %v17320_v16 = vadd.f32 %v17319_v18, %v17318_v15  ;;  %v17321_v36 = vpop.f32.mrb[102].mxu1  ;;  %v18589_v15 = vld [vmem:[#allocation14 + $0x3f4] ss:$20 sps:$4 sm:$0xff]   ;;  %v18587_v18 = vld [vmem:[#allocation14 + $0x3f0] ss:$20 sps:$4 sm:$0xff]  }
 0x8b2   :  { %v17322_v17 = vpop.f32.mrb[103].mxu1  ;;  %v18593_v36 = vld [vmem:[#allocation14 + $0x418] ss:$20 sps:$4 sm:$0xff]  }
 0x8b3   :  { %v18601_v17 = vld [vmem:[#allocation14 + $0x444] ss:$20 sps:$4 sm:$0xff]  }
 0x8c7   :  { %v17340_v19 = vpop.f32.mrb[104].mxu1 }
 0x8c8   :  { %v17341_v21 = vpop.f32.mrb[105].mxu1 }
 0x8c9   :  { %v17342_v23 = vadd.f32 %v17341_v21, %v17340_v19  ;;  %v17343_v4 = vpop.f32.mrb[106].mxu1  ;;  %v18599_v19 = vld [vmem:[#allocation14 + $0x440] ss:$20 sps:$4 sm:$0xff]   ;;  %v21588_v21 = vsub.s32 0, %v21548_v22 }
 0x8ca   :  { %v17344_v26 = vpop.f32.mrb[107].mxu1 }
 0x8cb   :  { %v5152_v27 = vadd.f32 %v17342_v23, %v17314_v8  ;;  %v17345_v28 = vadd.f32 %v17344_v26, %v17343_v4  ;;  %v21569_v8 = vld [vmem:[#allocation13 + $0x8] ss:$0 sps:$4 sm:$0x33]   ;;  %v18607_v23 = vld [vmem:[#allocation14 + $0x46c] ss:$20 sps:$4 sm:$0xff]   ;;  %v21591_v4 = vsub.s32 1, %v21548_v22 }
 0x8cc   :  { %v18605_v26 = vld [vmem:[#allocation14 + $0x468] ss:$20 sps:$4 sm:$0xff]  }
 0x8cd   :  { %v5155_v10 = vadd.f32 %v17345_v28, %v17317_v11  ;;  %v21583_v11 = vld [vmem:[#allocation13 + $0x14] ss:$0 sps:$4 sm:$0x33]   ;;  %v18613_v28 = vld [vmem:[#allocation14 + $0x494] ss:$20 sps:$4 sm:$0xff]  }
 0x8cf   :  { %v17346_v31 = vpop.f32.mrb[108].mxu1 }
 0x8d0   :  { %v17347_v32 = vpop.f32.mrb[109].mxu1 }
 0x8d1   :  { %v17348_v33 = vadd.f32 %v17347_v32, %v17346_v31  ;;  %v17349_v34 = vpop.f32.mrb[110].mxu1  ;;  %v5231_v31 = vrot.slane %v21551_v40, %v21591_v4 }
 0x8d2   :  { %v17350_v37 = vpop.f32.mrb[111].mxu1 }
 0x8d3   :  { %v5160_v20 = vadd.f32 %v17348_v33, %v17320_v16  ;;  %v18595_v16 = vld [vmem:[#allocation14 + $0x41c] ss:$20 sps:$4 sm:$0xff]  }
 0x8e7   :  { %v17368_v39 = vpop.f32.mrb[112].mxu1 }
 0x8e8   :  { %v17369_v9 = vpop.f32.mrb[113].mxu1 }
 0x8e9   :  { %v17370_v56 = vadd.f32 %v17369_v9, %v17368_v39  ;;  %v17371_v25 = vpop.f32.mrb[114].mxu1 }
 0x8ea   :  { %v17372_v41 = vpop.f32.mrb[115].mxu1 }
 0x8eb   :  { %v5200_v42 = vadd.f32 %v17370_v56, %v5152_v27  ;;  %v17373_v44 = vadd.f32 %v17372_v41, %v17371_v25  ;;  %v5227_v27 = vrot.slane %v21551_v40, %v21588_v21  ;;  %v18619_v56 = vld [vmem:[#allocation14 + $0x4bc] ss:$20 sps:$4 sm:$0xff]   ;;  %v18617_v40 = vld [vmem:[#allocation14 + $0x4b8] ss:$20 sps:$4 sm:$0xff]  }
 0x8ed   :  { %v5215_v45 = vmax.f32 %v3942_v52, %v5200_v42  ;;  %v5203_v47 = vadd.f32 %v17373_v44, %v5155_v10 }
 0x8ef   :  { %v5241_v30 = vadd.f32 %v5235_v43, %v5215_v45  ;;  %v5218_v48 = vmax.f32 %v3945_v54, %v5203_v47  ;;  %v17374_v12 = vpop.f32.mrb[116].mxu1 }
 0x8f0   :  { %v17375_v50 = vpop.f32.mrb[117].mxu1 }
 0x8f1   :  { %v5244_v51 = vadd.f32 %v5235_v43, %v5218_v48  ;;  %v17376_v53 = vadd.f32 %v17375_v50, %v17374_v12  ;;  %v17377_v57 = vpop.f32.mrb[118].mxu1  ;;  %v5250_v35 = vmax.f32 %v5241_v30, 0.0 }
 0x8f2   :  { %v17378_v58 = vpop.f32.mrb[119].mxu1 }
 0x8f3   :  { %v5253_v59 = vmax.f32 %v5244_v51, 0.0  ;;  %v5208_v46 = vadd.f32 %v17376_v53, %v5160_v20  ;;  %v18611_v20 = vld [vmem:[#allocation14 + $0x490] ss:$20 sps:$4 sm:$0xff]   ;;  %v18623_v53 = vld [vmem:[#allocation14 + $0x4e0] ss:$20 sps:$4 sm:$0xff]  }
 0x8f5   :  { %v21556_v14 = vpack.c.bf16 %v5253_v59, %v5250_v35  ;;  %v5221_v2 = vmax.f32 %v21530_v60, %v5208_v46  ;;  %v21573_v60 = vld [vmem:[#allocation13 + $0xc] sm:$0xff]  }
 0x8f6   :  { %v18631_v35 = vld [vmem:[#allocation14 + $0x50c] ss:$20 sps:$4 sm:$0xff]  }
 0x8f7   :  { %v5247_v5 = vadd.f32 %v5235_v43, %v5221_v2  ;;  %17637 = vmatprep.subr.bf16.mxu0 %v21556_v14 }
 0x8f8   :  { %17638 = vmatpush3.bf16.msra.mxu0 %v21556_v14 }
 0x8f9   :  { %v5256_v52 = vmax.f32 %v5247_v5, 0.0 }
 0x8fb   :  { %v21561_v54 = vpack.c.bf16 %v5256_v52, %v5256_v52 }
 0x8fd   :  { %18041 = vmatprep.subr.msk.bf16.mxu0 %vm356_vm1, %v21561_v54  ;;  %v21567_v7 = vsel %vm356_vm1, %v21561_v54, 0 }
 0x8fe   :  { %17640 = vmatpush3.bf16.msra.mxu0 %v21567_v7 }
 0x8ff   :  { %17645 = vmatprep.subr.bf16.mxu0 %v21556_v14 }
 0x901   :  { %17642 = vmatmul.mubr.msk.bf16.vlgmr.msra.gmra.mrb[88].mxu0 %vm5274_vm6, %v21569_v8 }
 0x902   :  { %17646 = vmatpush3.bf16.msra.mxu0 %v21556_v14  ;;  %17649 = vmatprep.mubr.msk.bf16.mxu0 %vm5274_vm6, %v21573_v60 }
 0x903   :  { %18042 = vmatprep.subr.msk.bf16.mxu0 %vm356_vm1, %v21561_v54 }
 0x906   :  { %17648 = vmatpush3.bf16.msra.mxu0 %v21567_v7 }
 0x907   :  { %6533 = vmatprep.subr.bf16.mxu0 %v18583_v49 }
 0x909   :  { %17650 = vmatmul.mubr.msk.bf16.vlgmr.msra.gmra.mrb[92].mxu0 %vm5274_vm6, %v21583_v11 }
 0x90a   :  { %6534 = vmatpush1.bf16.msra.mxu0 %v18581_v3  ;;  %v18635_v3 = vld [vmem:[#allocation14 + $0x530] ss:$20 sps:$4 sm:$0xff]  }
 0x90b   :  { %6535 = vmatprep.subr.bf16.mxu0 %v18589_v15  ;;  %v18643_v15 = vld [vmem:[#allocation14 + $0x55c] ss:$20 sps:$4 sm:$0xff]  }
 0x90e   :  { %6536 = vmatpush1.bf16.msra.mxu0 %v18587_v18  ;;  %v18641_v18 = vld [vmem:[#allocation14 + $0x558] ss:$20 sps:$4 sm:$0xff]  }
 0x90f   :  { %6537 = vmatprep.subr.bf16.mxu0 %v18595_v16  ;;  %v18580_v16 = vld [vmem:[#allocation14 + $0x3c4] ss:$20 sps:$4 sm:$0xff]  }
 0x912   :  { %6538 = vmatpush1.bf16.msra.mxu0 %v18593_v36  ;;  %v18586_v36 = vld [vmem:[#allocation14 + $0x3ec] ss:$20 sps:$4 sm:$0xff]  }
 0x913   :  { %6539 = vmatprep.subr.bf16.mxu0 %v18601_v17  ;;  %v18584_v17 = vld [vmem:[#allocation14 + $0x3e8] ss:$20 sps:$4 sm:$0xff]  }
 0x916   :  { %6540 = vmatpush1.bf16.msra.mxu0 %v18599_v19  ;;  %v18592_v19 = vld [vmem:[#allocation14 + $0x414] ss:$20 sps:$4 sm:$0xff]  }
 0x917   :  { %6541 = vmatprep.subr.bf16.mxu0 %v18607_v23  ;;  %v18590_v23 = vld [vmem:[#allocation14 + $0x410] ss:$20 sps:$4 sm:$0xff]  }
 0x918   :  { %v5052_v10 = vpop.f32.mrb[80].mxu0 }
 0x919   :  { %v5213_v32 = vmax.f32 %v21536_v6, %v5052_v10  ;;  %v5054_v33 = vpop.f32.mrb[81].mxu0  ;;  %v18608_v10 = vld [vmem:[#allocation14 + $0x488] ss:$20 sps:$4 sm:$0xff]  }
 0x91a   :  { %v5214_v34 = vmax.f32 %v21538_v13, %v5054_v33  ;;  %v5056_v37 = vpop.f32.mrb[82].mxu0  ;;  %6542 = vmatpush1.bf16.msra.mxu0 %v18605_v26  ;;  %v18625_v13 = vld [vmem:[#allocation14 + $0x4e4] ss:$20 sps:$4 sm:$0xff]   ;;  %v18598_v26 = vld [vmem:[#allocation14 + $0x43c] ss:$20 sps:$4 sm:$0xff]  }
 0x91b   :  { %v5239_v38 = vadd.f32 %v5227_v27, %v5213_v32  ;;  %v5216_v39 = vmax.f32 %v21540_v61, %v5056_v37  ;;  %v5058_v9 = vpop.f32.mrb[83].mxu0  ;;  %6543 = vmatprep.subr.bf16.mxu0 %v18613_v28  ;;  %v18602_v28 = vld [vmem:[#allocation14 + $0x460] ss:$20 sps:$4 sm:$0xff]   ;;  %v18614_v32 = vld [vmem:[#allocation14 + $0x4b0] ss:$20 sps:$4 sm:$0xff]  }
 0x91c   :  { %v5240_v25 = vadd.f32 %v5231_v31, %v5214_v34  ;;  %v5217_v41 = vmax.f32 %v21542_v62, %v5058_v9  ;;  %v18622_v33 = vld [vmem:[#allocation14 + $0x4dc] ss:$20 sps:$4 sm:$0xff]   ;;  %v18620_v34 = vld [vmem:[#allocation14 + $0x4d8] ss:$20 sps:$4 sm:$0xff]   ;;  %v18626_v37 = vld [vmem:[#allocation14 + $0x500] ss:$20 sps:$4 sm:$0xff]  }
 0x91d   :  { %v5242_v42 = vadd.f32 %v5227_v27, %v5216_v39  ;;  %v5248_v6 = vmax.f32 %v5239_v38, 0.0  ;;  %v18632_v38 = vld [vmem:[#allocation14 + $0x528] ss:$20 sps:$4 sm:$0xff]   ;;  %v18638_v9 = vld [vmem:[#allocation14 + $0x550] ss:$20 sps:$4 sm:$0xff]  }
 0x91e   :  { %v5243_v43 = vadd.f32 %v5231_v31, %v5217_v41  ;;  %6544 = vmatpush1.bf16.msra.mxu0 %v18611_v20  ;;  %v5249_v45 = vmax.f32 %v5240_v25, 0.0  ;;  %v18634_v20 = vld [vmem:[#allocation14 + $0x52c] ss:$20 sps:$4 sm:$0xff]   ;;  %v18640_v39 = vld [vmem:[#allocation14 + $0x554] ss:$20 sps:$4 sm:$0xff]  }
 0x91f   :  { %v5251_v44 = vmax.f32 %v5242_v42, 0.0  ;;  %6545 = vmatprep.subr.bf16.mxu0 %v18619_v56  ;;  %v18646_v56 = vld [vmem:[#allocation14 + $0x57c] ss:$20 sps:$4 sm:$0xff]   ;;  %v18649_v25 = vld [vmem:[#allocation14 + $0x584] ss:$20 sps:$4 sm:$0xff]  }
 0x920   :  { %v5252_v47 = vmax.f32 %v5243_v43, 0.0  ;;  %v5062_v30 = vpop.f32.mrb[84].mxu0  ;;  %v18644_v41 = vld [vmem:[#allocation14 + $0x578] ss:$20 sps:$4 sm:$0xff]   ;;  %v18647_v42 = vld [vmem:[#allocation14 + $0x580] ss:$20 sps:$4 sm:$0xff]  }
 0x921   :  { %v21601_v48 = vpack.c.bf16 %v5251_v44, %v5248_v6  ;;  %v5219_v61 = vmax.f32 %v21544_v63, %v5062_v30  ;;  %v5064_v12 = vpop.f32.mrb[85].mxu0  ;;  %v18629_v63 = vld [vmem:[#allocation14 + $0x508] ss:$20 sps:$4 sm:$0xff]   ;;  %v18650_v43 = vld [vmem:[#allocation14 + $0x5a0] ss:$20 sps:$4 sm:$0xff]  }
 0x922   :  { %v5220_v50 = vmax.f32 %v21546_v55, %v5064_v12  ;;  %v5066_v51 = vpop.f32.mrb[86].mxu0  ;;  %v21605_v62 = vpack.c.bf16 %v5252_v47, %v5249_v45  ;;  %6546 = vmatpush1.bf16.msra.mxu0 %v18617_v40  ;;  %v18637_v55 = vld [vmem:[#allocation14 + $0x534] ss:$20 sps:$4 sm:$0xff]   ;;  %v18652_v40 = vld [vmem:[#allocation14 + $0x5a4] ss:$20 sps:$4 sm:$0xff]  }
 0x923   :  { %v5245_v57 = vadd.f32 %v5227_v27, %v5219_v61  ;;  %v5067_v58 = vpop.f32.mrb[87].mxu0  ;;  %6547 = vmatprep.subr.bf16.mxu0 %v18625_v13  ;;  %v18604_v27 = vld [vmem:[#allocation14 + $0x464] ss:$20 sps:$4 sm:$0xff]   ;;  %v18653_v6 = vld [vmem:[#allocation14 + $0x5a8] ss:$20 sps:$4 sm:$0xff]  }
 0x924   :  { %v5246_v59 = vadd.f32 %v5231_v31, %v5220_v50  ;;  %5290 = vmatprep.subr.bf16.mxu1 %v21605_v62  ;;  %v18616_v31 = vld [vmem:[#allocation14 + $0x4b4] ss:$20 sps:$4 sm:$0xff]   ;;  %v18655_v44 = vld [vmem:[#allocation14 + $0x5ac] ss:$20 sps:$4 sm:$0xff]   ;;  %v18659_v30 = vld [vmem:[#allocation14 + $0x5d0] ss:$20 sps:$4 sm:$0xff]  }
 0x925   :  { %v5254_v46 = vmax.f32 %v5245_v57, 0.0  ;;  %5291 = vmatpush1.bf16.msra.mxu1 %v21601_v48  ;;  %v18658_v13 = vld [vmem:[#allocation14 + $0x5cc] ss:$20 sps:$4 sm:$0xff]   ;;  %v18661_v45 = vld [vmem:[#allocation14 + $0x5d4] ss:$20 sps:$4 sm:$0xff]  }
 0x926   :  { %v5255_v2 = vmax.f32 %v5246_v59, 0.0  ;;  %6548 = vmatpush1.bf16.msra.mxu0 %v18623_v53  ;;  %v18656_v47 = vld [vmem:[#allocation14 + $0x5c8] ss:$20 sps:$4 sm:$0xff]   ;;  %v18662_v61 = vld [vmem:[#allocation14 + $0x5f0] ss:$20 sps:$4 sm:$0xff]  }
 0x927   :  { %v5260_v5 = vpack.c.bf16 %v5254_v46, %v5254_v46  ;;  %6549 = vmatprep.subr.bf16.mxu0 %v18631_v35  ;;  %v18664_v12 = vld [vmem:[#allocation14 + $0x5f4] ss:$20 sps:$4 sm:$0xff]   ;;  %v18665_v50 = vld [vmem:[#allocation14 + $0x5f8] ss:$20 sps:$4 sm:$0xff]   ;;  %v18667_v51 = vld [vmem:[#allocation14 + $0x5fc] ss:$20 sps:$4 sm:$0xff]  }
 0x928   :  { %v21609_v52 = vpack.c.bf16 %v5255_v2, %v5255_v2  ;;  %v18670_v53 = vld [vmem:[#allocation14 + $0x61c] ss:$20 sps:$4 sm:$0xff]   ;;  %v18673_v57 = vld [vmem:[#allocation14 + $0x624] ss:$20 sps:$4 sm:$0xff]   ;;  %v18671_v35 = vld [vmem:[#allocation14 + $0x620] ss:$20 sps:$4 sm:$0xff]  }
 0x929   :  { %v21612_v49 = vsel %vm356_vm1, %v5260_v5, 0  ;;  %v18668_v58 = vld [vmem:[#allocation14 + $0x618] ss:$20 sps:$4 sm:$0xff]  }
 0x92a   :  { %16014 = vmatprep.subr.msk.bf16.mxu1 %vm356_vm1, %v21609_v52  ;;  %6550 = vmatpush1.bf16.msra.mxu0 %v18629_v63  ;;  %v18676_v59 = vld [vmem:[#allocation14 + $0x644] ss:$20 sps:$4 sm:$0xff]   ;;  %v18679_v46 = vld [vmem:[#allocation14 + $0x64c] ss:$20 sps:$4 sm:$0xff]  }
 0x92b   :  { %5293 = vmatpush1.bf16.msra.mxu1 %v21612_v49  ;;  %6551 = vmatprep.subr.bf16.mxu0 %v18637_v55 }
 0x92c   :  { %5557 = vmatprep.subr.bf16.mxu1 %v21605_v62 }
 0x92e   :  { %16015 = vmatmul.mubr.msk.bf16.vlgmr.msra.gmra.mrb[120].mxu1 %vm5274_vm6, %v21532_v1  ;;  %6552 = vmatpush1.bf16.msra.mxu0 %v18635_v3  ;;  %v18578_v1 = vld [vmem:[#allocation14 + $0x3c0] ss:$20 sps:$4 sm:$0xff]  }
 0x92f   :  { %5558 = vmatpush1.bf16.msra.mxu1 %v21601_v48  ;;  %5332 = vmatprep.mubr.bf16.mxu1 %v20727_v29 }
 0x930   :  { %16021 = vmatprep.subr.msk.bf16.mxu1 %vm356_vm1, %v21609_v52  ;;  %6553 = vmatprep.subr.bf16.mxu0 %v18643_v15 }
 0x932   :  { %6554 = vmatpush1.bf16.msra.mxu0 %v18641_v18 }
 0x933   :  { %5560 = vmatpush1.bf16.msra.mxu1 %v21612_v49  ;;  %6555 = vmatprep.subr.bf16.mxu0 %v18649_v25  ;;  %v18680_v25 = vld [vmem:[#allocation14 + $0x668] ss:$20 sps:$4 sm:$0xff]  }
 0x934   :  { %6431 = vmatprep.subr.bf16.mxu1 %v18580_v16 }
 0x936   :  { %16016 = vmatmul.mubr.msk.bf16.gmra.mrb[124].mxu1 %vm5274_vm6, %v21569_v8  ;;  %v18596_v8 = vld [vmem:[#allocation14 + $0x438] ss:$20 sps:$4 sm:$0xff]   ;;  %6556 = vmatpush1.bf16.msra.mxu0 %v18647_v42 }
 0x937   :  { %5589 = vmatprep.mubr.bf16.mxu1 %v20727_v29  ;;  %6557 = vmatprep.subr.bf16.mxu0 %v18655_v44 }
 0x93a   :  { %6558 = vmatpush1.bf16.msra.mxu0 %v18653_v6 }
 0x93b   :  { %6559 = vmatprep.subr.bf16.mxu0 %v18661_v45 }
 0x93e   :  { %16022 = vmatmul.mubr.msk.bf16.vlgmr.msra.gmra.mrb[128].mxu1 %vm5274_vm6, %v21573_v60  ;;  %v18610_v60 = vld [vmem:[#allocation14 + $0x48c] ss:$20 sps:$4 sm:$0xff]   ;;  %6560 = vmatpush1.bf16.msra.mxu0 %v18659_v30  ;;  %v18686_v30 = vld [vmem:[#allocation14 + $0x690] ss:$20 sps:$4 sm:$0xff]  }
 0x93f   :  { %5599 = vmatprep.mubr.bf16.mxu1 %v20727_v29  ;;  %6432 = vmatpush1.bf16.msra.mxu1 %v18578_v1 }
 0x940   :  { %6433 = vmatprep.subr.bf16.mxu1 %v18586_v36  ;;  %6561 = vmatprep.subr.bf16.mxu0 %v18667_v51  ;;  %v18692_v51 = vld [vmem:[#allocation14 + $0x6b8] ss:$20 sps:$4 sm:$0xff]  }
 0x942   :  { %6562 = vmatpush1.bf16.msra.mxu0 %v18665_v50  ;;  %v18697_v50 = vld [vmem:[#allocation14 + $0x6c4] ss:$20 sps:$4 sm:$0xff]  }
 0x943   :  { %6434 = vmatpush1.bf16.msra.mxu1 %v18584_v17  ;;  %6563 = vmatprep.subr.bf16.mxu0 %v18673_v57  ;;  %v18700_v57 = vld [vmem:[#allocation14 + $0x6e4] ss:$20 sps:$4 sm:$0xff]  }
 0x944   :  { %6435 = vmatprep.subr.bf16.mxu1 %v18592_v19 }
 0x946   :  { %16023 = vmatmul.mubr.msk.bf16.gmra.mrb[132].mxu1 %vm5274_vm6, %v21583_v11  ;;  %v18628_v11 = vld [vmem:[#allocation14 + $0x504] ss:$20 sps:$4 sm:$0xff]   ;;  %6564 = vmatpush1.bf16.msra.mxu0 %v18671_v35  ;;  %v18698_v35 = vld [vmem:[#allocation14 + $0x6e0] ss:$20 sps:$4 sm:$0xff]  }
 0x947   :  { %6436 = vmatpush1.bf16.msra.mxu1 %v18590_v23  ;;  %6584 = vmatprep.subr.bf16.mxu0 %v18679_v46  ;;  %v18706_v46 = vld [vmem:[#allocation14 + $0x70c] ss:$20 sps:$4 sm:$0xff]  }
 0x948   :  { %6437 = vmatprep.subr.bf16.mxu1 %v18598_v26 }
 0x94b   :  { %6438 = vmatpush1.bf16.msra.mxu1 %v18596_v8 }
 0x94c   :  { %6439 = vmatprep.subr.bf16.mxu1 %v18604_v27 }
 0x94f   :  { %6440 = vmatpush1.bf16.msra.mxu1 %v18602_v28 }
 0x950   :  { %6441 = vmatprep.subr.bf16.mxu1 %v18610_v60 }
 0x953   :  { %6442 = vmatpush1.bf16.msra.mxu1 %v18608_v10 }
 0x954   :  { %6443 = vmatprep.subr.bf16.mxu1 %v18616_v31 }
 0x957   :  { %6444 = vmatpush1.bf16.msra.mxu1 %v18614_v32 }
 0x958   :  { %6445 = vmatprep.subr.bf16.mxu1 %v18622_v33 }
 0x95b   :  { %6446 = vmatpush1.bf16.msra.mxu1 %v18620_v34 }
 0x95c   :  { %6447 = vmatprep.subr.bf16.mxu1 %v18628_v11 }
 0x95f   :  { %6448 = vmatpush1.bf16.msra.mxu1 %v18626_v37 }
 0x960   :  { %6449 = vmatprep.subr.bf16.mxu1 %v18634_v20 }
 0x963   :  { %6450 = vmatpush1.bf16.msra.mxu1 %v18632_v38  ;;  %v18674_v38 = vld [vmem:[#allocation14 + $0x640] ss:$20 sps:$4 sm:$0xff]  }
 0x964   :  { %6451 = vmatprep.subr.bf16.mxu1 %v18640_v39  ;;  %v18677_v39 = vld [vmem:[#allocation14 + $0x648] ss:$20 sps:$4 sm:$0xff]  }
 0x967   :  { %6452 = vmatpush1.bf16.msra.mxu1 %v18638_v9  ;;  %v18682_v9 = vld [vmem:[#allocation14 + $0x66c] ss:$20 sps:$4 sm:$0xff]  }
 0x968   :  { %6453 = vmatprep.subr.bf16.mxu1 %v18646_v56  ;;  %v18685_v56 = vld [vmem:[#allocation14 + $0x674] ss:$20 sps:$4 sm:$0xff]  }
 0x96b   :  { %6454 = vmatpush1.bf16.msra.mxu1 %v18644_v41  ;;  %v18683_v41 = vld [vmem:[#allocation14 + $0x670] ss:$20 sps:$4 sm:$0xff]  }
 0x96c   :  { %6455 = vmatprep.subr.bf16.mxu1 %v18652_v40  ;;  %v18691_v40 = vld [vmem:[#allocation14 + $0x69c] ss:$20 sps:$4 sm:$0xff]  }
 0x96f   :  { %6456 = vmatpush1.bf16.msra.mxu1 %v18650_v43  ;;  %v18688_v43 = vld [vmem:[#allocation14 + $0x694] ss:$20 sps:$4 sm:$0xff]  }
 0x970   :  { %6457 = vmatprep.subr.bf16.mxu1 %v18658_v13 }
 0x973   :  { %6458 = vmatpush1.bf16.msra.mxu1 %v18656_v47 }
 0x974   :  { %6459 = vmatprep.subr.bf16.mxu1 %v18664_v12  ;;  %v18694_v12 = vld [vmem:[#allocation14 + $0x6bc] ss:$20 sps:$4 sm:$0xff]  }
 0x977   :  { %6460 = vmatpush1.bf16.msra.mxu1 %v18662_v61  ;;  %v18689_v61 = vld [vmem:[#allocation14 + $0x698] ss:$20 sps:$4 sm:$0xff]  }
 0x978   :  { %6461 = vmatprep.subr.bf16.mxu1 %v18670_v53  ;;  %v18695_v53 = vld [vmem:[#allocation14 + $0x6c0] ss:$20 sps:$4 sm:$0xff]  }
 0x97b   :  { %6462 = vmatpush1.bf16.msra.mxu1 %v18668_v58  ;;  %v18703_v58 = vld [vmem:[#allocation14 + $0x6ec] ss:$20 sps:$4 sm:$0xff]  }
 0x97c   :  { %6482 = vmatprep.subr.bf16.mxu1 %v18676_v59  ;;  %v18701_v59 = vld [vmem:[#allocation14 + $0x6e8] ss:$20 sps:$4 sm:$0xff]  }
 0x9d4   :  { %v21633_v2 = vpop.f32.mrb[88].mxu0 }
 0x9d5   :  { %v5375_v63 = vpop.f32.mrb[89].mxu0 }
 0x9d6   :  { %v17644_v5 = vpop.f32.mrb[90].mxu0 }
 0x9d7   :  { %v5378_v55 = vpop.f32.mrb[91].mxu0  ;;  %v18704_v5 = vld [vmem:[#allocation14 + $0x708] ss:$20 sps:$4 sm:$0xff]  }
 0x9d8   :  { %v21635_v3 = vpack.c.bf16 %v5378_v55, %v5375_v63  ;;  %v18709_v63 = vld [vmem:[#allocation14 + $0x714] ss:$20 sps:$4 sm:$0xff]   ;;  %v18707_v55 = vld [vmem:[#allocation14 + $0x710] ss:$20 sps:$4 sm:$0xff]  }
 0x9dc   :  { %v21637_v15 = vpop.f32.mrb[92].mxu0 }
 0x9dd   :  { %v5642_v18 = vpop.f32.mrb[93].mxu0 }
 0x9de   :  { %v17652_v16 = vpop.f32.mrb[94].mxu0 }
 0x9df   :  { %v5645_v1 = vpop.f32.mrb[95].mxu0  ;;  %v18715_v16 = vld [vmem:[#allocation14 + $0x73c] ss:$20 sps:$4 sm:$0xff]  }
 0x9e0   :  { %v21639_v36 = vpack.c.bf16 %v5645_v1, %v5642_v18  ;;  %v18712_v18 = vld [vmem:[#allocation14 + $0x734] ss:$20 sps:$4 sm:$0xff]   ;;  %v18710_v1 = vld [vmem:[#allocation14 + $0x730] ss:$20 sps:$4 sm:$0xff]  }
 0xa01   :  { %v5324_v17 = vpop.f32.mrb[120].mxu1 }
 0xa02   :  { %v5326_v19 = vpop.f32.mrb[121].mxu1 }
 0xa03   :  { %v5328_v23 = vpop.f32.mrb[122].mxu1 }
 0xa04   :  { %v21641_v26 = vpack.c.bf16 %v5328_v23, %v5324_v17  ;;  %v5330_v8 = vpop.f32.mrb[123].mxu1  ;;  %v18713_v17 = vld [vmem:[#allocation14 + $0x738] ss:$20 sps:$4 sm:$0xff]  }
 0xa05   :  { %v21643_v27 = vpack.c.bf16 %v5330_v8, %v5326_v19  ;;  %v18718_v19 = vld [vmem:[#allocation14 + $0x75c] ss:$20 sps:$4 sm:$0xff]   ;;  %v18721_v23 = vld [vmem:[#allocation14 + $0x764] ss:$20 sps:$4 sm:$0xff]  }
 0xa06   :  { %v18716_v8 = vld [vmem:[#allocation14 + $0x758] ss:$20 sps:$4 sm:$0xff]  }
 0xa09   :  { %v21645_v28 = vpop.f32.mrb[124].mxu1 }
 0xa0a   :  { %v21647_v60 = vpop.f32.mrb[125].mxu1 }
 0xa0b   :  { %v5338_v10 = vpop.f32.mrb[126].mxu1 }
 0xa0c   :  { %v5339_v31 = vpop.f32.mrb[127].mxu1  ;;  %v18719_v10 = vld [vmem:[#allocation14 + $0x760] ss:$20 sps:$4 sm:$0xff]  }
 0xa0d   :  { %v18722_v31 = vld [vmem:[#allocation14 + $0x510] ss:$20 sps:$4 sm:$0xff]  }
 0xa11   :  { %v5591_v32 = vpop.f32.mrb[128].mxu1 }
 0xa12   :  { %v5593_v33 = vpop.f32.mrb[129].mxu1 }
 0xa13   :  { %v5595_v34 = vpop.f32.mrb[130].mxu1 }
 0xa14   :  { %v21649_v11 = vpack.c.bf16 %v5595_v34, %v5591_v32  ;;  %v5597_v37 = vpop.f32.mrb[131].mxu1  ;;  %v18723_v32 = vld [vmem:[#allocation14 + $0x650] ss:$20 sps:$4 sm:$0xff]   ;;  %v18725_v34 = vld [vmem:[#allocation14 + $0x538] ss:$20 sps:$4 sm:$0xff]  }
 0xa15   :  { %v21651_v20 = vpack.c.bf16 %v5597_v37, %v5593_v33  ;;  %v18724_v33 = vld [vmem:[#allocation14 + $0x3d0] ss:$20 sps:$4 sm:$0xff]   ;;  %v18726_v37 = vld [vmem:[#allocation14 + $0x678] ss:$20 sps:$4 sm:$0xff]  }
 0xa17   :  { %6463 = vmatprep.mubr.bf16.mxu1 %v21651_v20  ;;  %6565 = vmatprep.mubr.bf16.mxu0 %v21651_v20 }
 0xa18   :  { %6464 = vmatmul.mubr.bf16.vlgmr.msra.gmra.mrb[136].mxu1 %v21649_v11  ;;  %6566 = vmatmul.mubr.bf16.vlgmr.msra.gmra.mrb[96].mxu0 %v21649_v11 }
 0xa19   :  { %6483 = vmatpush1.bf16.msra.mxu1 %v18674_v38  ;;  %6585 = vmatpush1.bf16.msra.mxu0 %v18677_v39  ;;  %v5601_v42 = vpop.f32.mrb[132].mxu1  ;;  %v18727_v38 = vld [vmem:[#allocation14 + $0x3f8] ss:$20 sps:$4 sm:$0xff]   ;;  %v18728_v39 = vld [vmem:[#allocation14 + $0x560] ss:$20 sps:$4 sm:$0xff]  }
 0xa1a   :  { %6484 = vmatprep.subr.bf16.mxu1 %v18682_v9  ;;  %6586 = vmatprep.subr.bf16.mxu0 %v18685_v56  ;;  %v5603_v6 = vpop.f32.mrb[133].mxu1  ;;  %v21659_v45 = vpack.c.bf16 %v5601_v42, %v5601_v42  ;;  %v18729_v9 = vld [vmem:[#allocation14 + $0x6a0] ss:$20 sps:$4 sm:$0xff]   ;;  %v18732_v42 = vld [vmem:[#allocation14 + $0x6c8] ss:$20 sps:$4 sm:$0xff]  }
 0xa1b   :  { %v21657_v44 = vpack.c.bf16 %v5603_v6, %v5603_v6  ;;  %v5605_v13 = vpop.f32.mrb[134].mxu1  ;;  %v18730_v56 = vld [vmem:[#allocation14 + $0x420] ss:$20 sps:$4 sm:$0xff]   ;;  %v18735_v6 = vld [vmem:[#allocation14 + $0x6f0] ss:$20 sps:$4 sm:$0xff]  }
 0xa1c   :  { %v5606_v47 = vpop.f32.mrb[135].mxu1  ;;  %v18736_v13 = vld [vmem:[#allocation14 + $0x470] ss:$20 sps:$4 sm:$0xff]  }
 0xa1d   :  { %6485 = vmatpush1.bf16.msra.mxu1 %v18680_v25  ;;  %6587 = vmatpush1.bf16.msra.mxu0 %v18683_v41  ;;  %v5661_v25 = vpack.c.bf16 %v21637_v15, %v21637_v15  ;;  %v18731_v41 = vld [vmem:[#allocation14 + $0x588] ss:$20 sps:$4 sm:$0xff]   ;;  %v18737_v15 = vld [vmem:[#allocation14 + $0x5d8] ss:$20 sps:$4 sm:$0xff]  }
 0xa1e   :  { %6486 = vmatprep.subr.bf16.mxu1 %v18688_v43  ;;  %6588 = vmatprep.subr.bf16.mxu0 %v18691_v40  ;;  %v18733_v43 = vld [vmem:[#allocation14 + $0x448] ss:$20 sps:$4 sm:$0xff]   ;;  %v18734_v40 = vld [vmem:[#allocation14 + $0x5b0] ss:$20 sps:$4 sm:$0xff]   ;;  %v18738_v47 = vld [vmem:[#allocation14 + $0x718] ss:$20 sps:$4 sm:$0xff]  }
 0xa1f   :  { %6473 = vmatprep.mubr.bf16.mxu1 %v21657_v44  ;;  %6575 = vmatprep.mubr.bf16.mxu0 %v21657_v44 }
 0xa20   :  { %6474 = vmatmul.mubr.bf16.gmra.mrb[140].mxu1 %v21659_v45  ;;  %6576 = vmatmul.mubr.bf16.gmra.mrb[100].mxu0 %v21659_v45 }
 0xa21   :  { %6487 = vmatpush1.bf16.msra.mxu1 %v18686_v30  ;;  %6589 = vmatpush1.bf16.msra.mxu0 %v18689_v61  ;;  %v18739_v30 = vld [vmem:[#allocation14 + $0x498] ss:$20 sps:$4 sm:$0xff]   ;;  %v18741_v61 = vld [vmem:[#allocation14 + $0x740] ss:$20 sps:$4 sm:$0xff]  }
 0xa22   :  { %6488 = vmatprep.subr.bf16.mxu1 %v18694_v12  ;;  %6590 = vmatprep.subr.bf16.mxu0 %v18697_v50  ;;  %v18743_v12 = vld [vmem:[#allocation14 + $0x628] ss:$20 sps:$4 sm:$0xff]  }
 0xa23   :  { %6514 = vmatprep.mubr.bf16.mxu1 %v20727_v29  ;;  %6616 = vmatprep.mubr.bf16.mxu0 %v20727_v29  ;;  %v18744_v50 = vld [vmem:[#allocation14 + $0x768] ss:$20 sps:$4 sm:$0xff]  }
 0xa25   :  { %6489 = vmatpush1.bf16.msra.mxu1 %v18692_v51  ;;  %6591 = vmatpush1.bf16.msra.mxu0 %v18695_v53  ;;  %v18745_v51 = vld [vmem:[#allocation14 + $0x4e8] ss:$20 sps:$4 sm:$0xff]   ;;  %v18748_v53 = vld [vmem:[#allocation14 + $0x4] ss:$20 sps:$4 sm:$0xff]  }
 0xa26   :  { %6490 = vmatprep.subr.bf16.mxu1 %v18700_v57  ;;  %6592 = vmatprep.subr.bf16.mxu0 %v18703_v58  ;;  %v18751_v57 = vld [vmem:[#allocation14 + $0xc] ss:$20 sps:$4 sm:$0xff]  }
 0xa27   :  { %v18746_v58 = vld [vmem:[#allocation14] ss:$20 sps:$4 sm:$0xff]  }
 0xa29   :  { %6491 = vmatpush1.bf16.msra.mxu1 %v18698_v35  ;;  %6593 = vmatpush1.bf16.msra.mxu0 %v18701_v59  ;;  %v18749_v35 = vld [vmem:[#allocation14 + $0x8] ss:$20 sps:$4 sm:$0xff]   ;;  %v18754_v59 = vld [vmem:[#allocation14 + $0x2c] ss:$20 sps:$4 sm:$0xff]  }
 0xa2a   :  { %6492 = vmatprep.subr.bf16.mxu1 %v18706_v46  ;;  %6594 = vmatprep.subr.bf16.mxu0 %v18709_v63  ;;  %v18757_v46 = vld [vmem:[#allocation14 + $0x34] ss:$20 sps:$4 sm:$0xff]  }
 0xa2b   :  { %v18752_v63 = vld [vmem:[#allocation14 + $0x28] ss:$20 sps:$4 sm:$0xff]  }
 0xa2d   :  { %6493 = vmatpush1.bf16.msra.mxu1 %v18704_v5  ;;  %6595 = vmatpush1.bf16.msra.mxu0 %v18707_v55  ;;  %v18755_v5 = vld [vmem:[#allocation14 + $0x30] ss:$20 sps:$4 sm:$0xff]   ;;  %v18760_v55 = vld [vmem:[#allocation14 + $0x54] ss:$20 sps:$4 sm:$0xff]  }
 0xa2e   :  { %6494 = vmatprep.subr.bf16.mxu1 %v18712_v18  ;;  %6596 = vmatprep.subr.bf16.mxu0 %v18715_v16  ;;  %v18763_v18 = vld [vmem:[#allocation14 + $0x5c] ss:$20 sps:$4 sm:$0xff]  }
 0xa2f   :  { %v18758_v16 = vld [vmem:[#allocation14 + $0x50] ss:$20 sps:$4 sm:$0xff]  }
 0xa31   :  { %6495 = vmatpush1.bf16.msra.mxu1 %v18710_v1  ;;  %6597 = vmatpush1.bf16.msra.mxu0 %v18713_v17  ;;  %v18761_v1 = vld [vmem:[#allocation14 + $0x58] ss:$20 sps:$4 sm:$0xff]  }
 0xa32   :  { %6496 = vmatprep.subr.bf16.mxu1 %v18718_v19  ;;  %6598 = vmatprep.subr.bf16.mxu0 %v18721_v23  ;;  %v18769_v17 = vld [vmem:[#allocation14 + $0x84] ss:$20 sps:$4 sm:$0xff]   ;;  %v18767_v19 = vld [vmem:[#allocation14 + $0x80] ss:$20 sps:$4 sm:$0xff]  }
 0xa33   :  { %v18772_v23 = vld [vmem:[#allocation14 + $0xa4] ss:$20 sps:$4 sm:$0xff]  }
 0xa35   :  { %6497 = vmatpush1.bf16.msra.mxu1 %v18716_v8  ;;  %6599 = vmatpush1.bf16.msra.mxu0 %v18719_v10  ;;  %v18775_v8 = vld [vmem:[#allocation14 + $0xac] ss:$20 sps:$4 sm:$0xff]  }
 0xa36   :  { %17388 = vmatprep.subr.bf16.mxu1 %v18722_v31  ;;  %17653 = vmatprep.subr.bf16.mxu0 %v18723_v32  ;;  %v18770_v10 = vld [vmem:[#allocation14 + $0xa0] ss:$20 sps:$4 sm:$0xff]   ;;  %v18773_v31 = vld [vmem:[#allocation14 + $0xa8] ss:$20 sps:$4 sm:$0xff]  }
 0xa38   :  { %6515 = vmatmul.mubr.bf16.vlgmr.msra.gmra.mrb[136].mxu1 %v21639_v36  ;;  %6617 = vmatmul.mubr.bf16.vlgmr.msra.gmra.mrb[96].mxu0 %v21639_v36 }
 0xa39   :  { %17389 = vmatpush3.bf16.msra.mxu1 %v18724_v33  ;;  %17654 = vmatpush3.bf16.msra.mxu0 %v18723_v32  ;;  %v18778_v32 = vld [vmem:[#allocation14 + $0xcc] ss:$20 sps:$4 sm:$0xff]   ;;  %v18781_v33 = vld [vmem:[#allocation14 + $0xd4] ss:$20 sps:$4 sm:$0xff]  }
 0xa3a   :  { %17390 = vmatprep.subr.bf16.mxu1 %v18725_v34  ;;  %17655 = vmatprep.subr.bf16.mxu0 %v18726_v37  ;;  %v18779_v34 = vld [vmem:[#allocation14 + $0xd0] ss:$20 sps:$4 sm:$0xff]  }
 0xa3b   :  { %6524 = vmatprep.mubr.bf16.mxu1 %v20727_v29  ;;  %6626 = vmatprep.mubr.bf16.mxu0 %v20727_v29 }
 0xa3d   :  { %17391 = vmatpush3.bf16.msra.mxu1 %v18727_v38  ;;  %17656 = vmatpush3.bf16.msra.mxu0 %v18726_v37  ;;  %v18784_v37 = vld [vmem:[#allocation14 + $0xf4] ss:$20 sps:$4 sm:$0xff]   ;;  %v18787_v38 = vld [vmem:[#allocation14 + $0xfc] ss:$20 sps:$4 sm:$0xff]  }
 0xa3e   :  { %17392 = vmatprep.subr.bf16.mxu1 %v18728_v39  ;;  %17657 = vmatprep.subr.bf16.mxu0 %v18729_v9  ;;  %v18782_v39 = vld [vmem:[#allocation14 + $0xf0] ss:$20 sps:$4 sm:$0xff]  }
 0xa40   :  { %6525 = vmatmul.mubr.bf16.gmra.mrb[144].mxu1 %v5661_v25  ;;  %6627 = vmatmul.mubr.bf16.gmra.mrb[104].mxu0 %v5661_v25 }
 0xa41   :  { %17393 = vmatpush3.bf16.msra.mxu1 %v18730_v56  ;;  %6667 = vmatprep.mubr.bf16.mxu1 %v21651_v20  ;;  %v18740_v20 = vld [vmem:[#allocation14 + $0x600] ss:$20 sps:$4 sm:$0xff]   ;;  %v18790_v56 = vld [vmem:[#allocation14 + $0x11c] ss:$20 sps:$4 sm:$0xff]  }
 0xa42   :  { %17658 = vmatpush3.bf16.msra.mxu0 %v18729_v9  ;;  %17669 = vmatprep.mubr.bf16.mxu0 %v21639_v36  ;;  %v18742_v36 = vld [vmem:[#allocation14 + $0x4c0] ss:$20 sps:$4 sm:$0xff]   ;;  %v18785_v9 = vld [vmem:[#allocation14 + $0xf8] ss:$20 sps:$4 sm:$0xff]  }
 0xa43   :  { %17394 = vmatprep.subr.bf16.mxu1 %v18731_v41  ;;  %17659 = vmatprep.subr.bf16.mxu0 %v18732_v42  ;;  %v18788_v41 = vld [vmem:[#allocation14 + $0x118] ss:$20 sps:$4 sm:$0xff]  }
 0xa45   :  { %17395 = vmatpush3.bf16.msra.mxu1 %v18733_v43  ;;  %v18796_v43 = vld [vmem:[#allocation14 + $0x144] ss:$20 sps:$4 sm:$0xff]  }
 0xa46   :  { %17660 = vmatpush3.bf16.msra.mxu0 %v18732_v42  ;;  %17396 = vmatprep.subr.bf16.mxu1 %v18734_v40  ;;  %v18791_v42 = vld [vmem:[#allocation14 + $0x120] ss:$20 sps:$4 sm:$0xff]  }
 0xa47   :  { %17661 = vmatprep.subr.bf16.mxu0 %v18735_v6  ;;  %v18799_v40 = vld [vmem:[#allocation14 + $0x14c] ss:$20 sps:$4 sm:$0xff]  }
 0xa49   :  { %17397 = vmatpush3.bf16.msra.mxu1 %v18736_v13  ;;  %v18797_v13 = vld [vmem:[#allocation14 + $0x148] ss:$20 sps:$4 sm:$0xff]  }
 0xa4a   :  { %17662 = vmatpush3.bf16.msra.mxu0 %v18735_v6  ;;  %17398 = vmatprep.subr.bf16.mxu1 %v18737_v15  ;;  %v18794_v6 = vld [vmem:[#allocation14 + $0x140] ss:$20 sps:$4 sm:$0xff]  }
 0xa4b   :  { %17663 = vmatprep.subr.bf16.mxu0 %v18738_v47  ;;  %v18802_v15 = vld [vmem:[#allocation14 + $0x16c] ss:$20 sps:$4 sm:$0xff]  }
 0xa4d   :  { %17399 = vmatpush3.bf16.msra.mxu1 %v18739_v30  ;;  %v18800_v30 = vld [vmem:[#allocation14 + $0x168] ss:$20 sps:$4 sm:$0xff]  }
 0xa4e   :  { %17664 = vmatpush3.bf16.msra.mxu0 %v18738_v47  ;;  %17400 = vmatprep.subr.bf16.mxu1 %v18740_v20  ;;  %v18805_v47 = vld [vmem:[#allocation14 + $0x174] ss:$20 sps:$4 sm:$0xff]   ;;  %v18803_v20 = vld [vmem:[#allocation14 + $0x170] ss:$20 sps:$4 sm:$0xff]  }
 0xa4f   :  { %17665 = vmatprep.subr.bf16.mxu0 %v18741_v61 }
 0xa51   :  { %17401 = vmatpush3.bf16.msra.mxu1 %v18742_v36  ;;  %v18811_v36 = vld [vmem:[#allocation14 + $0x19c] ss:$20 sps:$4 sm:$0xff]  }
 0xa52   :  { %17666 = vmatpush3.bf16.msra.mxu0 %v18741_v61  ;;  %17402 = vmatprep.subr.bf16.mxu1 %v18743_v12  ;;  %v18808_v61 = vld [vmem:[#allocation14 + $0x194] ss:$20 sps:$4 sm:$0xff]   ;;  %v18806_v12 = vld [vmem:[#allocation14 + $0x190] ss:$20 sps:$4 sm:$0xff]  }
 0xa53   :  { %17667 = vmatprep.subr.bf16.mxu0 %v18744_v50 }
 0xa55   :  { %17403 = vmatpush3.bf16.msra.mxu1 %v18745_v51  ;;  %v18814_v51 = vld [vmem:[#allocation14 + $0x1bc] ss:$20 sps:$4 sm:$0xff]  }
 0xa56   :  { %17668 = vmatpush3.bf16.msra.mxu0 %v18744_v50  ;;  %7355 = vmatprep.subr.bf16.mxu1 %v18748_v53  ;;  %v18809_v50 = vld [vmem:[#allocation14 + $0x198] ss:$20 sps:$4 sm:$0xff]  }
 0xa57   :  { %7457 = vmatprep.subr.bf16.mxu0 %v18751_v57  ;;  %v18817_v53 = vld [vmem:[#allocation14 + $0x1c4] ss:$20 sps:$4 sm:$0xff]  }
 0xa58   :  { %6668 = vmatmul.mubr.bf16.vlgmr.msra.gmra.mrb[148].mxu1 %v21649_v11  ;;  %v18766_v11 = vld [vmem:[#allocation14 + $0x7c] ss:$20 sps:$4 sm:$0xff]   ;;  %v18812_v57 = vld [vmem:[#allocation14 + $0x1b8] ss:$20 sps:$4 sm:$0xff]  }
 0xa59   :  { %17670 = vmatmul.mubr.bf16.vlgmr.msra.gmra.mrb[108].mxu0 %v5661_v25  ;;  %6675 = vmatprep.mubr.bf16.mxu1 %v21657_v44  ;;  %v18764_v44 = vld [vmem:[#allocation14 + $0x78] ss:$20 sps:$4 sm:$0xff]  }
 0xa5a   :  { %7356 = vmatpush1.bf16.msra.mxu1 %v18746_v58  ;;  %7458 = vmatpush1.bf16.msra.mxu0 %v18749_v35  ;;  %v18793_v25 = vld [vmem:[#allocation14 + $0x124] ss:$20 sps:$4 sm:$0xff]   ;;  %v18815_v58 = vld [vmem:[#allocation14 + $0x1c0] ss:$20 sps:$4 sm:$0xff]  }
 0xa5b   :  { %7489 = vmatprep.mubr.bf16.mxu0 %v21643_v27  ;;  %7357 = vmatprep.subr.bf16.mxu1 %v18754_v59  ;;  %v18820_v35 = vld [vmem:[#allocation14 + $0x1e4] ss:$20 sps:$4 sm:$0xff]   ;;  %v18823_v59 = vld [vmem:[#allocation14 + $0x1ec] ss:$20 sps:$4 sm:$0xff]  }
 0xa5c   :  { %7459 = vmatprep.subr.bf16.mxu0 %v18757_v46  ;;  %v18818_v46 = vld [vmem:[#allocation14 + $0x1e0] ss:$20 sps:$4 sm:$0xff]  }
 0xa5e   :  { %7358 = vmatpush1.bf16.msra.mxu1 %v18752_v63  ;;  %7460 = vmatpush1.bf16.msra.mxu0 %v18755_v5  ;;  %v18821_v63 = vld [vmem:[#allocation14 + $0x1e8] ss:$20 sps:$4 sm:$0xff]   ;;  %v18826_v5 = vld [vmem:[#allocation14 + $0x20c] ss:$20 sps:$4 sm:$0xff]  }
 0xa5f   :  { %7359 = vmatprep.subr.bf16.mxu1 %v18760_v55  ;;  %7461 = vmatprep.subr.bf16.mxu0 %v18763_v18  ;;  %v18829_v55 = vld [vmem:[#allocation14 + $0x214] ss:$20 sps:$4 sm:$0xff]  }
 0xa60   :  { %6676 = vmatmul.mubr.bf16.gmra.mrb[152].mxu1 %v21659_v45  ;;  %v18776_v45 = vld [vmem:[#allocation14 + $0xc8] ss:$20 sps:$4 sm:$0xff]  }
 0xa61   :  { %7387 = vmatprep.mubr.bf16.mxu1 %v21643_v27  ;;  %v18824_v18 = vld [vmem:[#allocation14 + $0x208] ss:$20 sps:$4 sm:$0xff]  }
 0xa62   :  { %7360 = vmatpush1.bf16.msra.mxu1 %v18758_v16  ;;  %7462 = vmatpush1.bf16.msra.mxu0 %v18761_v1  ;;  %v18827_v16 = vld [vmem:[#allocation14 + $0x210] ss:$20 sps:$4 sm:$0xff]   ;;  %v18832_v1 = vld [vmem:[#allocation14 + $0x234] ss:$20 sps:$4 sm:$0xff]  }
 0xa63   :  { %7361 = vmatprep.subr.bf16.mxu1 %v18766_v11  ;;  %7463 = vmatprep.subr.bf16.mxu0 %v18769_v17  ;;  %v18835_v11 = vld [vmem:[#allocation14 + $0x23c] ss:$20 sps:$4 sm:$0xff]  }
 0xa64   :  { %v18830_v17 = vld [vmem:[#allocation14 + $0x230] ss:$20 sps:$4 sm:$0xff]  }
 0xa66   :  { %7362 = vmatpush1.bf16.msra.mxu1 %v18764_v44  ;;  %7464 = vmatpush1.bf16.msra.mxu0 %v18767_v19  ;;  %v18833_v44 = vld [vmem:[#allocation14 + $0x238] ss:$20 sps:$4 sm:$0xff]   ;;  %v18838_v19 = vld [vmem:[#allocation14 + $0x25c] ss:$20 sps:$4 sm:$0xff]  }
 0xa67   :  { %7363 = vmatprep.subr.bf16.mxu1 %v18772_v23  ;;  %7465 = vmatprep.subr.bf16.mxu0 %v18775_v8  ;;  %v18841_v23 = vld [vmem:[#allocation14 + $0x264] ss:$20 sps:$4 sm:$0xff]  }
 0xa68   :  { %v18836_v8 = vld [vmem:[#allocation14 + $0x258] ss:$20 sps:$4 sm:$0xff]  }
 0xa6a   :  { %7364 = vmatpush1.bf16.msra.mxu1 %v18770_v10  ;;  %7466 = vmatpush1.bf16.msra.mxu0 %v18773_v31  ;;  %v18839_v10 = vld [vmem:[#allocation14 + $0x260] ss:$20 sps:$4 sm:$0xff]   ;;  %v18844_v31 = vld [vmem:[#allocation14 + $0x284] ss:$20 sps:$4 sm:$0xff]  }
 0xa6b   :  { %7365 = vmatprep.subr.bf16.mxu1 %v18778_v32  ;;  %7467 = vmatprep.subr.bf16.mxu0 %v18781_v33  ;;  %v18847_v32 = vld [vmem:[#allocation14 + $0x28c] ss:$20 sps:$4 sm:$0xff]  }
 0xa6c   :  { %v18842_v33 = vld [vmem:[#allocation14 + $0x280] ss:$20 sps:$4 sm:$0xff]  }
 0xa6e   :  { %7366 = vmatpush1.bf16.msra.mxu1 %v18776_v45  ;;  %7468 = vmatpush1.bf16.msra.mxu0 %v18779_v34  ;;  %v18845_v45 = vld [vmem:[#allocation14 + $0x288] ss:$20 sps:$4 sm:$0xff]   ;;  %v21682_v34 = vpack.c.bf16 %v21647_v60, %v21647_v60  ;;  %v18854_v60 = vld [vmem:[#allocation14 + $0x2d0] ss:$20 sps:$4 sm:$0xff]  }
 0xa6f   :  { %7367 = vmatprep.subr.bf16.mxu1 %v18784_v37  ;;  %7469 = vmatprep.subr.bf16.mxu0 %v18787_v38  ;;  %v18850_v37 = vld [vmem:[#allocation14 + $0x2ac] ss:$20 sps:$4 sm:$0xff]   ;;  %v18853_v38 = vld [vmem:[#allocation14 + $0x2b4] ss:$20 sps:$4 sm:$0xff]  }
 0xa72   :  { %7368 = vmatpush1.bf16.msra.mxu1 %v18782_v39  ;;  %7470 = vmatpush1.bf16.msra.mxu0 %v18785_v9  ;;  %v18848_v39 = vld [vmem:[#allocation14 + $0x2a8] ss:$20 sps:$4 sm:$0xff]   ;;  %v18851_v9 = vld [vmem:[#allocation14 + $0x2b0] ss:$20 sps:$4 sm:$0xff]  }
 0xa73   :  { %7369 = vmatprep.subr.bf16.mxu1 %v18790_v56  ;;  %7471 = vmatprep.subr.bf16.mxu0 %v18793_v25  ;;  %v18856_v56 = vld [vmem:[#allocation14 + $0x2d4] ss:$20 sps:$4 sm:$0xff]   ;;  %v18859_v25 = vld [vmem:[#allocation14 + $0x2dc] ss:$20 sps:$4 sm:$0xff]  }
 0xa76   :  { %7370 = vmatpush1.bf16.msra.mxu1 %v18788_v41  ;;  %7472 = vmatpush1.bf16.msra.mxu0 %v18791_v42  ;;  %v21690_v41 = vpack.c.bf16 %v21645_v28, %v21645_v28  ;;  %v18857_v42 = vld [vmem:[#allocation14 + $0x2d8] ss:$20 sps:$4 sm:$0xff]  }
 0xa77   :  { %7371 = vmatprep.subr.bf16.mxu1 %v18796_v43  ;;  %7473 = vmatprep.subr.bf16.mxu0 %v18799_v40  ;;  %v18862_v43 = vld [vmem:[#allocation14 + $0x2fc] ss:$20 sps:$4 sm:$0xff]   ;;  %v18865_v40 = vld [vmem:[#allocation14 + $0x304] ss:$20 sps:$4 sm:$0xff]   ;;  %v18871_v28 = vld [vmem:[#allocation14 + $0x32c] ss:$20 sps:$4 sm:$0xff]  }
 0xa7a   :  { %7372 = vmatpush1.bf16.msra.mxu1 %v18794_v6  ;;  %7474 = vmatpush1.bf16.msra.mxu0 %v18797_v13  ;;  %v18860_v6 = vld [vmem:[#allocation14 + $0x2f8] ss:$20 sps:$4 sm:$0xff]   ;;  %v18863_v13 = vld [vmem:[#allocation14 + $0x300] ss:$20 sps:$4 sm:$0xff]  }
 0xa7b   :  { %7373 = vmatprep.subr.bf16.mxu1 %v18802_v15  ;;  %7475 = vmatprep.subr.bf16.mxu0 %v18805_v47  ;;  %v18868_v15 = vld [vmem:[#allocation14 + $0x324] ss:$20 sps:$4 sm:$0xff]   ;;  %v18866_v47 = vld [vmem:[#allocation14 + $0x320] ss:$20 sps:$4 sm:$0xff]  }
 0xa7e   :  { %7374 = vmatpush1.bf16.msra.mxu1 %v18800_v30  ;;  %7476 = vmatpush1.bf16.msra.mxu0 %v18803_v20  ;;  %v18869_v30 = vld [vmem:[#allocation14 + $0x328] ss:$20 sps:$4 sm:$0xff]   ;;  %v18874_v20 = vld [vmem:[#allocation14 + $0x34c] ss:$20 sps:$4 sm:$0xff]  }
 0xa7f   :  { %7375 = vmatprep.subr.bf16.mxu1 %v18808_v61  ;;  %7477 = vmatprep.subr.bf16.mxu0 %v18811_v36  ;;  %v18877_v61 = vld [vmem:[#allocation14 + $0x354] ss:$20 sps:$4 sm:$0xff]  }
 0xa80   :  { %v18872_v36 = vld [vmem:[#allocation14 + $0x348] ss:$20 sps:$4 sm:$0xff]  }
 0xa82   :  { %7376 = vmatpush1.bf16.msra.mxu1 %v18806_v12  ;;  %7478 = vmatpush1.bf16.msra.mxu0 %v18809_v50  ;;  %v18875_v12 = vld [vmem:[#allocation14 + $0x350] ss:$20 sps:$4 sm:$0xff]   ;;  %v18880_v50 = vld [vmem:[#allocation14 + $0x374] ss:$20 sps:$4 sm:$0xff]  }
 0xa83   :  { %7377 = vmatprep.subr.bf16.mxu1 %v18814_v51  ;;  %7479 = vmatprep.subr.bf16.mxu0 %v18817_v53  ;;  %v18883_v51 = vld [vmem:[#allocation14 + $0x37c] ss:$20 sps:$4 sm:$0xff]  }
 0xa84   :  { %v18878_v53 = vld [vmem:[#allocation14 + $0x370] ss:$20 sps:$4 sm:$0xff]  }
 0xa86   :  { %7378 = vmatpush1.bf16.msra.mxu1 %v18812_v57  ;;  %7480 = vmatpush1.bf16.msra.mxu0 %v18815_v58  ;;  %v18881_v57 = vld [vmem:[#allocation14 + $0x378] ss:$20 sps:$4 sm:$0xff]   ;;  %v18886_v58 = vld [vmem:[#allocation14 + $0x39c] ss:$20 sps:$4 sm:$0xff]  }
 0xa87   :  { %7379 = vmatprep.subr.bf16.mxu1 %v18820_v35  ;;  %7481 = vmatprep.subr.bf16.mxu0 %v18823_v59  ;;  %v18889_v35 = vld [vmem:[#allocation14 + $0x3a4] ss:$20 sps:$4 sm:$0xff]  }
 0xa88   :  { %v18884_v59 = vld [vmem:[#allocation14 + $0x398] ss:$20 sps:$4 sm:$0xff]  }
 0xa8a   :  { %7380 = vmatpush1.bf16.msra.mxu1 %v18818_v46  ;;  %7482 = vmatpush1.bf16.msra.mxu0 %v18821_v63  ;;  %v18887_v46 = vld [vmem:[#allocation14 + $0x3a0] ss:$20 sps:$4 sm:$0xff]   ;;  %v18890_v63 = vld [vmem:[#allocation14 + $0x150] ss:$20 sps:$4 sm:$0xff]  }
 0xa8b   :  { %7381 = vmatprep.subr.bf16.mxu1 %v18826_v5  ;;  %7483 = vmatprep.subr.bf16.mxu0 %v18829_v55  ;;  %v18891_v5 = vld [vmem:[#allocation14 + $0x290] ss:$20 sps:$4 sm:$0xff]  }
 0xa8c   :  { %v18892_v55 = vld [vmem:[#allocation14 + $0x10] ss:$20 sps:$4 sm:$0xff]  }
 0xa8e   :  { %7382 = vmatpush1.bf16.msra.mxu1 %v18824_v18  ;;  %7484 = vmatpush1.bf16.msra.mxu0 %v18827_v16  ;;  %v18893_v18 = vld [vmem:[#allocation14 + $0x178] ss:$20 sps:$4 sm:$0xff]  }
 0xa8f   :  { %7383 = vmatprep.subr.bf16.mxu1 %v18832_v1  ;;  %7485 = vmatprep.subr.bf16.mxu0 %v18835_v11  ;;  %v18894_v16 = vld [vmem:[#allocation14 + $0x2b8] ss:$20 sps:$4 sm:$0xff]   ;;  %v18896_v11 = vld [vmem:[#allocation14 + $0x1a0] ss:$20 sps:$4 sm:$0xff]  }
 0xa90   :  { %v18895_v1 = vld [vmem:[#allocation14 + $0x38] ss:$20 sps:$4 sm:$0xff]  }
 0xa92   :  { %7384 = vmatpush1.bf16.msra.mxu1 %v18830_v17  ;;  %7486 = vmatpush1.bf16.msra.mxu0 %v18833_v44  ;;  %v18897_v17 = vld [vmem:[#allocation14 + $0x2e0] ss:$20 sps:$4 sm:$0xff]  }
 0xa93   :  { %7385 = vmatprep.subr.bf16.mxu1 %v18838_v19  ;;  %7487 = vmatprep.subr.bf16.mxu0 %v18841_v23  ;;  %v18898_v44 = vld [vmem:[#allocation14 + $0x60] ss:$20 sps:$4 sm:$0xff]   ;;  %v5394_v19 = vpack.c.bf16 %v21633_v2, %v21633_v2  ;;  %v18899_v23 = vld [vmem:[#allocation14 + $0x1c8] ss:$20 sps:$4 sm:$0xff]   ;;  %v18904_v2 = vld [vmem:[#allocation14 + $0xb0] ss:$20 sps:$4 sm:$0xff]  }
 0xa96   :  { %7386 = vmatpush1.bf16.msra.mxu1 %v18836_v8  ;;  %7488 = vmatpush1.bf16.msra.mxu0 %v18839_v10  ;;  %v18900_v8 = vld [vmem:[#allocation14 + $0x308] ss:$20 sps:$4 sm:$0xff]  }
 0xa97   :  { %7406 = vmatprep.subr.bf16.mxu1 %v18844_v31  ;;  %7508 = vmatprep.subr.bf16.mxu0 %v18847_v32  ;;  %v18901_v10 = vld [vmem:[#allocation14 + $0x88] ss:$20 sps:$4 sm:$0xff]   ;;  %v18902_v31 = vld [vmem:[#allocation14 + $0x1f0] ss:$20 sps:$4 sm:$0xff]  }
 0xa98   :  { %v18903_v32 = vld [vmem:[#allocation14 + $0x330] ss:$20 sps:$4 sm:$0xff]  }
 0xa99   :  { %7388 = vmatmul.mubr.bf16.vlgmr.msra.gmra.mrb[136].mxu1 %v21641_v26  ;;  %7490 = vmatmul.mubr.bf16.vlgmr.msra.gmra.mrb[96].mxu0 %v21641_v26 }
 0xa9a   :  { %7397 = vmatprep.mubr.bf16.mxu1 %v21682_v34  ;;  %7407 = vmatpush1.bf16.msra.mxu1 %v18842_v33  ;;  %v18905_v33 = vld [vmem:[#allocation14 + $0x218] ss:$20 sps:$4 sm:$0xff]  }
 0xa9b   :  { %7499 = vmatprep.mubr.bf16.mxu0 %v21682_v34  ;;  %7509 = vmatpush1.bf16.msra.mxu0 %v18845_v45  ;;  %v18906_v45 = vld [vmem:[#allocation14 + $0x358] ss:$20 sps:$4 sm:$0xff]  }
 0xa9c   :  { %7408 = vmatprep.subr.bf16.mxu1 %v18850_v37  ;;  %7510 = vmatprep.subr.bf16.mxu0 %v18853_v38  ;;  %v18907_v37 = vld [vmem:[#allocation14 + $0xd8] ss:$20 sps:$4 sm:$0xff]   ;;  %v18908_v38 = vld [vmem:[#allocation14 + $0x240] ss:$20 sps:$4 sm:$0xff]  }
 0xa9e   :  { %7409 = vmatpush1.bf16.msra.mxu1 %v18848_v39  ;;  %v18910_v39 = vld [vmem:[#allocation14 + $0x100] ss:$20 sps:$4 sm:$0xff]  }
 0xa9f   :  { %7511 = vmatpush1.bf16.msra.mxu0 %v18851_v9  ;;  %7410 = vmatprep.subr.bf16.mxu1 %v18856_v56  ;;  %v18912_v9 = vld [vmem:[#allocation14 + $0x3a8] ss:$20 sps:$4 sm:$0xff]  }
 0xaa0   :  { %7512 = vmatprep.subr.bf16.mxu0 %v18859_v25  ;;  %v18913_v56 = vld [vmem:[#allocation14 + $0x128] ss:$20 sps:$4 sm:$0xff]   ;;  %v18914_v25 = vld [vmem:[#allocation13 + $0x18] sm:$0xff]  }
 0xaa1   :  { %7398 = vmatmul.mubr.bf16.gmra.mrb[156].mxu1 %v21690_v41  ;;  %7500 = vmatmul.mubr.bf16.gmra.mrb[112].mxu0 %v21690_v41 }
 0xaa2   :  { %7411 = vmatpush1.bf16.msra.mxu1 %v18854_v60  ;;  %7438 = vmatprep.mubr.bf16.mxu1 %v20727_v29  ;;  %v18916_v60 = vld [vmem:[#allocation14 + $0x780] ss:$20 sps:$4 sm:$0xff]  }
 0xaa3   :  { %7513 = vmatpush1.bf16.msra.mxu0 %v18857_v42  ;;  %7412 = vmatprep.subr.bf16.mxu1 %v18862_v43  ;;  %v18919_v42 = vld [vmem:[#allocation14 + $0x788] ss:$20 sps:$4 sm:$0xff]   ;;  %v18921_v43 = vld [vmem:[#allocation14 + $0x78c] ss:$20 sps:$4 sm:$0xff]  }
 0xaa4   :  { %7514 = vmatprep.subr.bf16.mxu0 %v18865_v40  ;;  %7540 = vmatprep.mubr.bf16.mxu0 %v20727_v29  ;;  %v18924_v40 = vld [vmem:[#allocation14 + $0x7ac] ss:$20 sps:$4 sm:$0xff]  }
 0xaa6   :  { %7413 = vmatpush1.bf16.msra.mxu1 %v18860_v6  ;;  %v18927_v6 = vld [vmem:[#allocation14 + $0x7b4] ss:$20 sps:$4 sm:$0xff]  }
 0xaa7   :  { %7515 = vmatpush1.bf16.msra.mxu0 %v18863_v13  ;;  %7414 = vmatprep.subr.bf16.mxu1 %v18868_v15  ;;  %v18922_v13 = vld [vmem:[#allocation14 + $0x7a8] ss:$20 sps:$4 sm:$0xff]   ;;  %v18925_v15 = vld [vmem:[#allocation14 + $0x7b0] ss:$20 sps:$4 sm:$0xff]  }
 0xaa8   :  { %7516 = vmatprep.subr.bf16.mxu0 %v18871_v28  ;;  %v18930_v28 = vld [vmem:[#allocation14 + $0x7d4] ss:$20 sps:$4 sm:$0xff]  }
 0xaaa   :  { %7415 = vmatpush1.bf16.msra.mxu1 %v18866_v47  ;;  %v18933_v47 = vld [vmem:[#allocation14 + $0x7dc] ss:$20 sps:$4 sm:$0xff]  }
 0xaab   :  { %7517 = vmatpush1.bf16.msra.mxu0 %v18869_v30  ;;  %7416 = vmatprep.subr.bf16.mxu1 %v18874_v20  ;;  %v18928_v30 = vld [vmem:[#allocation14 + $0x7d0] ss:$20 sps:$4 sm:$0xff]   ;;  %v18931_v20 = vld [vmem:[#allocation14 + $0x7d8] ss:$20 sps:$4 sm:$0xff]  }
 0xaac   :  { %7518 = vmatprep.subr.bf16.mxu0 %v18877_v61  ;;  %v18936_v61 = vld [vmem:[#allocation14 + $0x7fc] ss:$20 sps:$4 sm:$0xff]  }
 0xaae   :  { %7417 = vmatpush1.bf16.msra.mxu1 %v18872_v36  ;;  %v18939_v36 = vld [vmem:[#allocation14 + $0x804] ss:$20 sps:$4 sm:$0xff]  }
 0xaaf   :  { %7519 = vmatpush1.bf16.msra.mxu0 %v18875_v12  ;;  %7418 = vmatprep.subr.bf16.mxu1 %v18880_v50  ;;  %v18934_v12 = vld [vmem:[#allocation14 + $0x7f8] ss:$20 sps:$4 sm:$0xff]   ;;  %v18937_v50 = vld [vmem:[#allocation14 + $0x800] ss:$20 sps:$4 sm:$0xff]  }
 0xab0   :  { %7520 = vmatprep.subr.bf16.mxu0 %v18883_v51  ;;  %v18942_v51 = vld [vmem:[#allocation14 + $0x824] ss:$20 sps:$4 sm:$0xff]  }
 0xab2   :  { %7419 = vmatpush1.bf16.msra.mxu1 %v18878_v53  ;;  %v18945_v53 = vld [vmem:[#allocation14 + $0x82c] ss:$20 sps:$4 sm:$0xff]  }
 0xab3   :  { %7521 = vmatpush1.bf16.msra.mxu0 %v18881_v57  ;;  %7420 = vmatprep.subr.bf16.mxu1 %v18886_v58  ;;  %v18940_v57 = vld [vmem:[#allocation14 + $0x820] ss:$20 sps:$4 sm:$0xff]   ;;  %v18943_v58 = vld [vmem:[#allocation14 + $0x828] ss:$20 sps:$4 sm:$0xff]  }
 0xab4   :  { %7522 = vmatprep.subr.bf16.mxu0 %v18889_v35  ;;  %v18948_v35 = vld [vmem:[#allocation14 + $0x84c] ss:$20 sps:$4 sm:$0xff]  }
 0xab6   :  { %7421 = vmatpush1.bf16.msra.mxu1 %v18884_v59  ;;  %v18951_v59 = vld [vmem:[#allocation14 + $0x854] ss:$20 sps:$4 sm:$0xff]  }
 0xab7   :  { %7523 = vmatpush1.bf16.msra.mxu0 %v18887_v46  ;;  %17426 = vmatprep.subr.bf16.mxu1 %v18890_v63  ;;  %v18946_v46 = vld [vmem:[#allocation14 + $0x848] ss:$20 sps:$4 sm:$0xff]   ;;  %v18949_v63 = vld [vmem:[#allocation14 + $0x850] ss:$20 sps:$4 sm:$0xff]  }
 0xab8   :  { %17673 = vmatprep.subr.bf16.mxu0 %v18891_v5 }
 0xab9   :  { %7439 = vmatmul.mubr.bf16.vlgmr.msra.gmra.mrb[136].mxu1 %v21635_v3 }
 0xaba   :  { %7541 = vmatmul.mubr.bf16.vlgmr.msra.gmra.mrb[96].mxu0 %v21635_v3  ;;  %17427 = vmatpush3.bf16.msra.mxu1 %v18892_v55  ;;  %v18957_v55 = vld [vmem:[#allocation14 + $0x87c] ss:$20 sps:$4 sm:$0xff]  }
 0xabb   :  { %17674 = vmatpush3.bf16.msra.mxu0 %v18891_v5  ;;  %17428 = vmatprep.subr.bf16.mxu1 %v18893_v18  ;;  %v18954_v5 = vld [vmem:[#allocation14 + $0x874] ss:$20 sps:$4 sm:$0xff]   ;;  %v18952_v18 = vld [vmem:[#allocation14 + $0x870] ss:$20 sps:$4 sm:$0xff]  }
 0xabc   :  { %17675 = vmatprep.subr.bf16.mxu0 %v18894_v16  ;;  %7448 = vmatprep.mubr.bf16.mxu1 %v20727_v29 }
 0xabd   :  { %7550 = vmatprep.mubr.bf16.mxu0 %v20727_v29 }
 0xabe   :  { %17429 = vmatpush3.bf16.msra.mxu1 %v18895_v1 }
 0xabf   :  { %17676 = vmatpush3.bf16.msra.mxu0 %v18894_v16  ;;  %17430 = vmatprep.subr.bf16.mxu1 %v18896_v11  ;;  %v18955_v16 = vld [vmem:[#allocation14 + $0x878] ss:$20 sps:$4 sm:$0xff]  }
 0xac0   :  { %17677 = vmatprep.subr.bf16.mxu0 %v18897_v17 }
 0xac1   :  { %7449 = vmatmul.mubr.bf16.gmra.mrb[160].mxu1 %v5394_v19 }
 0xac2   :  { %7551 = vmatmul.mubr.bf16.gmra.mrb[116].mxu0 %v5394_v19  ;;  %17431 = vmatpush3.bf16.msra.mxu1 %v18898_v44 }
 0xac3   :  { %7591 = vmatprep.mubr.bf16.mxu1 %v21643_v27  ;;  %17678 = vmatpush3.bf16.msra.mxu0 %v18897_v17  ;;  %v18909_v27 = vld [vmem:[#allocation14 + $0x380] ss:$20 sps:$4 sm:$0xff]  }
 0xac4   :  { %17689 = vmatprep.mubr.bf16.mxu0 %v21635_v3  ;;  %17432 = vmatprep.subr.bf16.mxu1 %v18899_v23  ;;  %v18911_v3 = vld [vmem:[#allocation14 + $0x268] ss:$20 sps:$4 sm:$0xff]  }
 0xac5   :  { %17679 = vmatprep.subr.bf16.mxu0 %v18900_v8 }
 0xac6   :  { %17433 = vmatpush3.bf16.msra.mxu1 %v18901_v10 }
 0xac7   :  { %17680 = vmatpush3.bf16.msra.mxu0 %v18900_v8  ;;  %17434 = vmatprep.subr.bf16.mxu1 %v18902_v31 }
 0xac8   :  { %17681 = vmatprep.subr.bf16.mxu0 %v18903_v32 }
 0xaca   :  { %17435 = vmatpush3.bf16.msra.mxu1 %v18904_v2 }
 0xacb   :  { %17682 = vmatpush3.bf16.msra.mxu0 %v18903_v32  ;;  %17436 = vmatprep.subr.bf16.mxu1 %v18905_v33 }
 0xacc   :  { %17683 = vmatprep.subr.bf16.mxu0 %v18906_v45 }
 0xace   :  { %17437 = vmatpush3.bf16.msra.mxu1 %v18907_v37  ;;  %v18963_v37 = vld [vmem:[#allocation14 + $0x8a4] ss:$20 sps:$4 sm:$0xff]  }
 0xacf   :  { %17684 = vmatpush3.bf16.msra.mxu0 %v18906_v45  ;;  %17438 = vmatprep.subr.bf16.mxu1 %v18908_v38  ;;  %v18960_v45 = vld [vmem:[#allocation14 + $0x89c] ss:$20 sps:$4 sm:$0xff]   ;;  %v18958_v38 = vld [vmem:[#allocation14 + $0x898] ss:$20 sps:$4 sm:$0xff]  }
 0xad0   :  { %17685 = vmatprep.subr.bf16.mxu0 %v18909_v27 }
 0xad2   :  { %17439 = vmatpush3.bf16.msra.mxu1 %v18910_v39  ;;  %v18966_v39 = vld [vmem:[#allocation14 + $0x8c4] ss:$20 sps:$4 sm:$0xff]  }
 0xad3   :  { %17686 = vmatpush3.bf16.msra.mxu0 %v18909_v27  ;;  %17440 = vmatprep.subr.bf16.mxu1 %v18911_v3  ;;  %v18961_v27 = vld [vmem:[#allocation14 + $0x8a0] ss:$20 sps:$4 sm:$0xff]  }
 0xad4   :  { %17687 = vmatprep.subr.bf16.mxu0 %v18912_v9  ;;  %v18964_v3 = vld [vmem:[#allocation14 + $0x8c0] ss:$20 sps:$4 sm:$0xff]  }
 0xad6   :  { %17441 = vmatpush3.bf16.msra.mxu1 %v18913_v56  ;;  %v18969_v56 = vld [vmem:[#allocation14 + $0x8cc] ss:$20 sps:$4 sm:$0xff]  }
 0xad7   :  { %17688 = vmatpush3.bf16.msra.mxu0 %v18912_v9  ;;  %17693 = vmatprep.subr.bf16.mxu1 %v21556_v14  ;;  %v18967_v9 = vld [vmem:[#allocation14 + $0x8c8] ss:$20 sps:$4 sm:$0xff]  }
 0xad8   :  { %7673 = vmatprep.subr.bf16.mxu0 %v21605_v62 }
 0xad9   :  { %7592 = vmatmul.mubr.bf16.vlgmr.msra.gmra.mrb[164].mxu1 %v21641_v26 }
 0xada   :  { %17690 = vmatmul.mubr.bf16.vlgmr.msra.gmra.mrb[120].mxu0 %v5394_v19  ;;  %7599 = vmatprep.mubr.bf16.mxu1 %v21682_v34 }
 0xadb   :  { %7674 = vmatpush1.bf16.msra.mxu0 %v21601_v48  ;;  %17694 = vmatpush3.bf16.msra.mxu1 %v21556_v14  ;;  %v18915_v14 = vld [vmem:[#allocation13 + $0x20] ss:$0 sps:$4 sm:$0x33]  }
 0xadc   :  { %16268 = vmatprep.subr.msk.bf16.mxu0 %vm356_vm1, %v21609_v52  ;;  %18043 = vmatprep.subr.msk.bf16.mxu1 %vm356_vm1, %v21561_v54 }
 0xadd   :  { %7705 = vmatprep.mubr.bf16.mxu0 %v20727_v29 }
 0xadf   :  { %7676 = vmatpush1.bf16.msra.mxu0 %v21612_v49  ;;  %17696 = vmatpush3.bf16.msra.mxu1 %v21567_v7 }
 0xae0   :  { %8649 = vmatprep.subr.bf16.mxu0 %v18921_v43  ;;  %v18993_v43 = vld [vmem:[#allocation14 + $0x96c] ss:$20 sps:$4 sm:$0xff]  }
 0xae1   :  { %7600 = vmatmul.mubr.bf16.gmra.mrb[168].mxu1 %v21690_v41  ;;  %v18918_v41 = vld [vmem:[#allocation14 + $0x784] ss:$20 sps:$4 sm:$0xff]  }
 0xae2   :  { %16269 = vmatmul.mubr.msk.bf16.vlgmr.msra.gmra.mrb[124].mxu0 %vm5274_vm6, %v18914_v25  ;;  %17697 = vmatprep.mubr.msk.bf16.mxu1 %vm5274_vm6, %v18914_v25  ;;  %v18972_v25 = vld [vmem:[#allocation14 + $0x8ec] ss:$20 sps:$4 sm:$0xff]  }
 0xae3   :  { %7715 = vmatprep.mubr.bf16.mxu0 %v20727_v29  ;;  %8547 = vmatprep.subr.bf16.mxu1 %v18918_v41  ;;  %v18985_v41 = vld [vmem:[#allocation14 + $0x940] ss:$20 sps:$4 sm:$0xff]  }
 0xae4   :  { %8650 = vmatpush1.bf16.msra.mxu0 %v18919_v42  ;;  %v18990_v42 = vld [vmem:[#allocation14 + $0x964] ss:$20 sps:$4 sm:$0xff]  }
 0xae5   :  { %8651 = vmatprep.subr.bf16.mxu0 %v18927_v6  ;;  %v18991_v6 = vld [vmem:[#allocation14 + $0x968] ss:$20 sps:$4 sm:$0xff]  }
 0xae8   :  { %8652 = vmatpush1.bf16.msra.mxu0 %v18925_v15 }
 0xae9   :  { %17698 = vmatmul.mubr.msk.bf16.vlgmr.msra.gmra.mrb[172].mxu1 %vm5274_vm6, %v18915_v14  ;;  %8653 = vmatprep.subr.bf16.mxu0 %v18933_v47 }
 0xaea   :  { %16270 = vmatmul.mubr.msk.bf16.gmra.mrb[128].mxu0 %vm5274_vm6, %v18915_v14  ;;  %8548 = vmatpush1.bf16.msra.mxu1 %v18916_v60  ;;  %v18975_v14 = vld [vmem:[#allocation14 + $0x8f4] ss:$20 sps:$4 sm:$0xff]   ;;  %v18982_v60 = vld [vmem:[#allocation14 + $0x938] ss:$20 sps:$4 sm:$0xff]  }
 0xaeb   :  { %8549 = vmatprep.subr.bf16.mxu1 %v18924_v40  ;;  %v18988_v40 = vld [vmem:[#allocation14 + $0x960] ss:$20 sps:$4 sm:$0xff]  }
 0xaec   :  { %8654 = vmatpush1.bf16.msra.mxu0 %v18931_v20 }
 0xaed   :  { %8655 = vmatprep.subr.bf16.mxu0 %v18939_v36 }
 0xaee   :  { %8550 = vmatpush1.bf16.msra.mxu1 %v18922_v13 }
 0xaef   :  { %8551 = vmatprep.subr.bf16.mxu1 %v18930_v28 }
 0xaf0   :  { %8656 = vmatpush1.bf16.msra.mxu0 %v18937_v50  ;;  %v18999_v50 = vld [vmem:[#allocation14 + $0x994] ss:$20 sps:$4 sm:$0xff]  }
 0xaf1   :  { %8657 = vmatprep.subr.bf16.mxu0 %v18945_v53 }
 0xaf2   :  { %8552 = vmatpush1.bf16.msra.mxu1 %v18928_v30 }
 0xaf3   :  { %v21723_v54 = vpop.f32.mrb[140].mxu1  ;;  %v21725_v48 = vpop.f32.mrb[100].mxu0  ;;  %8553 = vmatprep.subr.bf16.mxu1 %v18936_v61 }
 0xaf4   :  { %v21727_v62 = vpop.f32.mrb[141].mxu1  ;;  %v21729_v7 = vpop.f32.mrb[101].mxu0  ;;  %8658 = vmatpush1.bf16.msra.mxu0 %v18943_v58  ;;  %v18994_v58 = vld [vmem:[#allocation14 + $0x988] ss:$20 sps:$4 sm:$0xff]  }
 0xaf5   :  { %v6479_v52 = vpop.f32.mrb[142].mxu1  ;;  %v6581_v49 = vpop.f32.mrb[102].mxu0  ;;  %8659 = vmatprep.subr.bf16.mxu0 %v18951_v59 }
 0xaf6   :  { %v6480_v26 = vpop.f32.mrb[143].mxu1  ;;  %v6582_v34 = vpop.f32.mrb[103].mxu0  ;;  %8554 = vmatpush1.bf16.msra.mxu1 %v18934_v12  ;;  %v18976_v52 = vld [vmem:[#allocation14 + $0x910] ss:$20 sps:$4 sm:$0xff]   ;;  %v18979_v49 = vld [vmem:[#allocation14 + $0x918] ss:$20 sps:$4 sm:$0xff]  }
 0xaf7   :  { %8555 = vmatprep.subr.bf16.mxu1 %v18942_v51  ;;  %v18984_v26 = vld [vmem:[#allocation14 + $0x93c] ss:$20 sps:$4 sm:$0xff]   ;;  %v18987_v34 = vld [vmem:[#allocation14 + $0x944] ss:$20 sps:$4 sm:$0xff]   ;;  %v18996_v12 = vld [vmem:[#allocation14 + $0x98c] ss:$20 sps:$4 sm:$0xff]  }
 0xaf8   :  { %8660 = vmatpush1.bf16.msra.mxu0 %v18949_v63  ;;  %v19005_v63 = vld [vmem:[#allocation14 + $0x9bc] ss:$20 sps:$4 sm:$0xff]  }
 0xaf9   :  { %8661 = vmatprep.subr.bf16.mxu0 %v18957_v55  ;;  %v19000_v55 = vld [vmem:[#allocation14 + $0x9b0] ss:$20 sps:$4 sm:$0xff]  }
 0xafa   :  { %8556 = vmatpush1.bf16.msra.mxu1 %v18940_v57 }
 0xafb   :  { %8557 = vmatprep.subr.bf16.mxu1 %v18948_v35  ;;  %v18997_v35 = vld [vmem:[#allocation14 + $0x990] ss:$20 sps:$4 sm:$0xff]  }
 0xafc   :  { %8662 = vmatpush1.bf16.msra.mxu0 %v18955_v16 }
 0xafd   :  { %8663 = vmatprep.subr.bf16.mxu0 %v18963_v37  ;;  %v19017_v37 = vld [vmem:[#allocation14 + $0xa0c] ss:$20 sps:$4 sm:$0xff]  }
 0xafe   :  { %8558 = vmatpush1.bf16.msra.mxu1 %v18946_v46  ;;  %v19002_v46 = vld [vmem:[#allocation14 + $0x9b4] ss:$20 sps:$4 sm:$0xff]  }
 0xaff   :  { %8559 = vmatprep.subr.bf16.mxu1 %v18954_v5 }
 0xb00   :  { %8664 = vmatpush1.bf16.msra.mxu0 %v18961_v27 }
 0xb01   :  { %8665 = vmatprep.subr.bf16.mxu0 %v18969_v56 }
 0xb02   :  { %8560 = vmatpush1.bf16.msra.mxu1 %v18952_v18  ;;  %v19003_v18 = vld [vmem:[#allocation14 + $0x9b8] ss:$20 sps:$4 sm:$0xff]  }
 0xb03   :  { %8561 = vmatprep.subr.bf16.mxu1 %v18960_v45  ;;  %v19014_v45 = vld [vmem:[#allocation14 + $0xa04] ss:$20 sps:$4 sm:$0xff]  }
 0xb04   :  { %8666 = vmatpush1.bf16.msra.mxu0 %v18967_v9 }
 0xb05   :  { %8667 = vmatprep.subr.bf16.mxu0 %v18975_v14 }
 0xb06   :  { %8562 = vmatpush1.bf16.msra.mxu1 %v18958_v38 }
 0xb07   :  { %8563 = vmatprep.subr.bf16.mxu1 %v18966_v39 }
 0xb0a   :  { %8564 = vmatpush1.bf16.msra.mxu1 %v18964_v3 }
 0xb0b   :  { %8565 = vmatprep.subr.bf16.mxu1 %v18972_v25 }
 0xb13   :  { %v6526_v1 = vpop.f32.mrb[144].mxu1  ;;  %v6628_v11 = vpop.f32.mrb[104].mxu0 }
 0xb14   :  { %v21732_v17 = vadd.f32 %v6526_v1, %v21723_v54  ;;  %v21735_v44 = vadd.f32 %v6628_v11, %v21725_v48  ;;  %v6528_v19 = vpop.f32.mrb[145].mxu1  ;;  %v6630_v23 = vpop.f32.mrb[105].mxu0  ;;  %v18970_v54 = vld [vmem:[#allocation14 + $0x8e8] ss:$20 sps:$4 sm:$0xff]   ;;  %v18973_v48 = vld [vmem:[#allocation14 + $0x8f0] ss:$20 sps:$4 sm:$0xff]  }
 0xb15   :  { %v21738_v8 = vadd.f32 %v6528_v19, %v21727_v62  ;;  %v21741_v10 = vadd.f32 %v6630_v23, %v21729_v7  ;;  %v6530_v31 = vpop.f32.mrb[146].mxu1  ;;  %v6632_v32 = vpop.f32.mrb[106].mxu0  ;;  %v18978_v62 = vld [vmem:[#allocation14 + $0x914] ss:$20 sps:$4 sm:$0xff]   ;;  %v18981_v7 = vld [vmem:[#allocation14 + $0x91c] ss:$20 sps:$4 sm:$0xff]   ;;  %8566 = vmatpush1.bf16.msra.mxu1 %v18970_v54  ;;  %8668 = vmatpush1.bf16.msra.mxu0 %v18973_v48 }
 0xb16   :  { %v6531_v2 = vpop.f32.mrb[147].mxu1  ;;  %v6633_v33 = vpop.f32.mrb[107].mxu0  ;;  %8567 = vmatprep.subr.bf16.mxu1 %v18978_v62  ;;  %8669 = vmatprep.subr.bf16.mxu0 %v18981_v7  ;;  %v19008_v23 = vld [vmem:[#allocation14 + $0x9dc] ss:$20 sps:$4 sm:$0xff]   ;;  %v19011_v31 = vld [vmem:[#allocation14 + $0x9e4] ss:$20 sps:$4 sm:$0xff]  }
 0xb17   :  { %v19006_v2 = vld [vmem:[#allocation14 + $0x9d8] ss:$20 sps:$4 sm:$0xff]   ;;  %v19009_v33 = vld [vmem:[#allocation14 + $0x9e0] ss:$20 sps:$4 sm:$0xff]  }
 0xb19   :  { %8568 = vmatpush1.bf16.msra.mxu1 %v18976_v52  ;;  %8670 = vmatpush1.bf16.msra.mxu0 %v18979_v49 }
 0xb1a   :  { %8569 = vmatprep.subr.bf16.mxu1 %v18984_v26  ;;  %8671 = vmatprep.subr.bf16.mxu0 %v18987_v34 }
 0xb1d   :  { %8570 = vmatpush1.bf16.msra.mxu1 %v18982_v60  ;;  %8672 = vmatpush1.bf16.msra.mxu0 %v18985_v41 }
 0xb1e   :  { %8571 = vmatprep.subr.bf16.mxu1 %v18990_v42  ;;  %8673 = vmatprep.subr.bf16.mxu0 %v18993_v43 }
 0xb21   :  { %8572 = vmatpush1.bf16.msra.mxu1 %v18988_v40  ;;  %8674 = vmatpush1.bf16.msra.mxu0 %v18991_v6 }
 0xb22   :  { %8573 = vmatprep.subr.bf16.mxu1 %v18996_v12  ;;  %8675 = vmatprep.subr.bf16.mxu0 %v18999_v50 }
 0xb25   :  { %8574 = vmatpush1.bf16.msra.mxu1 %v18994_v58  ;;  %8676 = vmatpush1.bf16.msra.mxu0 %v18997_v35 }
 0xb26   :  { %8575 = vmatprep.subr.bf16.mxu1 %v19002_v46  ;;  %8677 = vmatprep.subr.bf16.mxu0 %v19005_v63 }
 0xb29   :  { %8576 = vmatpush1.bf16.msra.mxu1 %v19000_v55  ;;  %8678 = vmatpush1.bf16.msra.mxu0 %v19003_v18 }
 0xb2a   :  { %8577 = vmatprep.subr.bf16.mxu1 %v19008_v23  ;;  %8679 = vmatprep.subr.bf16.mxu0 %v19011_v31  ;;  %v19012_v23 = vld [vmem:[#allocation14 + $0xa00] ss:$20 sps:$4 sm:$0xff]   ;;  %v19015_v31 = vld [vmem:[#allocation14 + $0xa08] ss:$20 sps:$4 sm:$0xff]  }
 0xb2b   :  { %v17404_v13 = vpop.f32.mrb[148].mxu1 }
 0xb2c   :  { %v17671_v15 = vpop.f32.mrb[108].mxu0  ;;  %v17405_v28 = vpop.f32.mrb[149].mxu1 }
 0xb2d   :  { %v17406_v47 = vadd.f32 %v17405_v28, %v17404_v13  ;;  %v6717_v30 = vpop.f32.mrb[109].mxu0  ;;  %v17407_v20 = vpop.f32.mrb[150].mxu1  ;;  %8578 = vmatpush1.bf16.msra.mxu1 %v19006_v2  ;;  %8680 = vmatpush1.bf16.msra.mxu0 %v19009_v33  ;;  %v19023_v33 = vld [vmem:[#allocation14 + $0xa34] ss:$20 sps:$4 sm:$0xff]  }
 0xb2e   :  { %v17672_v61 = vpop.f32.mrb[110].mxu0  ;;  %v17408_v36 = vpop.f32.mrb[151].mxu1  ;;  %8598 = vmatprep.subr.bf16.mxu1 %v19014_v45  ;;  %8700 = vmatprep.subr.bf16.mxu0 %v19017_v37  ;;  %v19018_v45 = vld [vmem:[#allocation14 + $0xa28] ss:$20 sps:$4 sm:$0xff]   ;;  %v19021_v37 = vld [vmem:[#allocation14 + $0xa30] ss:$20 sps:$4 sm:$0xff]  }
 0xb2f   :  { %v21743_v51 = vadd.f32 %v17406_v47, %v6717_v30  ;;  %v17409_v53 = vadd.f32 %v17408_v36, %v17407_v20  ;;  %v6720_v57 = vpop.f32.mrb[111].mxu0 }
 0xb31   :  { %v21745_v59 = vadd.f32 %v17409_v53, %v6720_v57 }
 0xb33   :  { %v17410_v5 = vpop.f32.mrb[152].mxu1 }
 0xb34   :  { %v17411_v16 = vpop.f32.mrb[153].mxu1 }
 0xb35   :  { %v17412_v1 = vadd.f32 %v17411_v16, %v17410_v5  ;;  %v17413_v11 = vpop.f32.mrb[154].mxu1 }
 0xb36   :  { %v17414_v19 = vpop.f32.mrb[155].mxu1 }
 0xb37   :  { %v6726_v32 = vadd.f32 %v17671_v15, %v17412_v1 }
 0xb74   :  { %v7399_v38 = vpop.f32.mrb[156].mxu1  ;;  %v7501_v27 = vpop.f32.mrb[112].mxu0 }
 0xb75   :  { %v7400_v39 = vadd.f32 %v7399_v38, %v21732_v17  ;;  %v7502_v3 = vadd.f32 %v7501_v27, %v21735_v44  ;;  %v7401_v9 = vpop.f32.mrb[157].mxu1  ;;  %v7503_v56 = vpop.f32.mrb[113].mxu0 }
 0xb76   :  { %v7402_v25 = vadd.f32 %v7401_v9, %v21738_v8  ;;  %v7504_v14 = vadd.f32 %v7503_v56, %v21741_v10  ;;  %v7403_v54 = vpop.f32.mrb[158].mxu1  ;;  %v7505_v48 = vpop.f32.mrb[114].mxu0 }
 0xb77   :  { %v7404_v62 = vpop.f32.mrb[159].mxu1  ;;  %v7506_v7 = vpop.f32.mrb[115].mxu0 }
 0xb94   :  { %v7450_v52 = vpop.f32.mrb[160].mxu1 }
 0xb95   :  { %v21751_v49 = vadd.f32 %v7450_v52, %v7400_v39  ;;  %v7552_v26 = vpop.f32.mrb[116].mxu0  ;;  %v7452_v34 = vpop.f32.mrb[161].mxu1  ;;  %v19026_v39 = vld [vmem:[#allocation14 + $0xa54] ss:$20 sps:$4 sm:$0xff]   ;;  %v19024_v52 = vld [vmem:[#allocation14 + $0xa50] ss:$20 sps:$4 sm:$0xff]  }
 0xb96   :  { %v21753_v60 = vadd.f32 %v7552_v26, %v7502_v3  ;;  %v21755_v17 = vadd.f32 %v7452_v34, %v7402_v25  ;;  %v7554_v44 = vpop.f32.mrb[117].mxu0  ;;  %v7454_v41 = vpop.f32.mrb[162].mxu1  ;;  %v19029_v3 = vld [vmem:[#allocation14 + $0xa5c] ss:$20 sps:$4 sm:$0xff]   ;;  %v19027_v26 = vld [vmem:[#allocation14 + $0xa58] ss:$20 sps:$4 sm:$0xff]  }
 0xb97   :  { %v21757_v42 = vadd.f32 %v7554_v44, %v7504_v14  ;;  %v7556_v8 = vpop.f32.mrb[118].mxu0  ;;  %v7455_v43 = vpop.f32.mrb[163].mxu1  ;;  %v19032_v34 = vld [vmem:[#allocation14 + $0xa7c] ss:$20 sps:$4 sm:$0xff]   ;;  %v19035_v44 = vld [vmem:[#allocation14 + $0xa84] ss:$20 sps:$4 sm:$0xff]  }
 0xb98   :  { %v7557_v10 = vpop.f32.mrb[119].mxu0  ;;  %v19030_v41 = vld [vmem:[#allocation14 + $0xa78] ss:$20 sps:$4 sm:$0xff]   ;;  %v19033_v8 = vld [vmem:[#allocation14 + $0xa80] ss:$20 sps:$4 sm:$0xff]  }
 0xb99   :  { %v19038_v43 = vld [vmem:[#allocation14 + $0xaa4] ss:$20 sps:$4 sm:$0xff]   ;;  %v19041_v10 = vld [vmem:[#allocation14 + $0xaac] ss:$20 sps:$4 sm:$0xff]  }
 0xbac   :  { %v17442_v40 = vpop.f32.mrb[164].mxu1 }
 0xbad   :  { %v17691_v6 = vpop.f32.mrb[120].mxu0  ;;  %v17443_v13 = vpop.f32.mrb[165].mxu1 }
 0xbae   :  { %v17444_v15 = vadd.f32 %v17443_v13, %v17442_v40  ;;  %v7641_v28 = vpop.f32.mrb[121].mxu0  ;;  %v17445_v47 = vpop.f32.mrb[166].mxu1  ;;  %v19036_v40 = vld [vmem:[#allocation14 + $0xaa0] ss:$20 sps:$4 sm:$0xff]  }
 0xbaf   :  { %v17692_v30 = vpop.f32.mrb[122].mxu0  ;;  %v17446_v20 = vpop.f32.mrb[167].mxu1  ;;  %v19044_v13 = vld [vmem:[#allocation14 + $0xacc] ss:$20 sps:$4 sm:$0xff]  }
 0xbb0   :  { %v7594_v61 = vadd.f32 %v17444_v15, %v21743_v51  ;;  %v17447_v36 = vadd.f32 %v17446_v20, %v17445_v47  ;;  %v7644_v12 = vpop.f32.mrb[123].mxu0  ;;  %v19047_v15 = vld [vmem:[#allocation14 + $0xad4] ss:$20 sps:$4 sm:$0xff]   ;;  %v19045_v47 = vld [vmem:[#allocation14 + $0xad0] ss:$20 sps:$4 sm:$0xff]  }
 0xbb1   :  { %v19050_v30 = vld [vmem:[#allocation14 + $0xaf4] ss:$20 sps:$4 sm:$0xff]   ;;  %v19053_v20 = vld [vmem:[#allocation14 + $0xafc] ss:$20 sps:$4 sm:$0xff]  }
 0xbb2   :  { %v21760_v50 = vadd.f32 %v7641_v28, %v7594_v61  ;;  %v7597_v53 = vadd.f32 %v17447_v36, %v21745_v59  ;;  %v19020_v59 = vld [vmem:[#allocation14 + $0xa2c] ss:$20 sps:$4 sm:$0xff]   ;;  %v19042_v28 = vld [vmem:[#allocation14 + $0xac8] ss:$20 sps:$4 sm:$0xff]   ;;  %v19048_v61 = vld [vmem:[#allocation14 + $0xaf0] ss:$20 sps:$4 sm:$0xff]  }
 0xbb3   :  { %v19051_v36 = vld [vmem:[#allocation14 + $0xaf8] ss:$20 sps:$4 sm:$0xff]  }
 0xbb4   :  { %v21763_v57 = vadd.f32 %v7644_v12, %v7597_v53  ;;  %v17448_v58 = vpop.f32.mrb[168].mxu1  ;;  %v19056_v12 = vld [vmem:[#allocation14 + $0xb1c] ss:$20 sps:$4 sm:$0xff]   ;;  %v19059_v53 = vld [vmem:[#allocation14 + $0xb24] ss:$20 sps:$4 sm:$0xff]  }
 0xbb5   :  { %v7707_v35 = vpop.f32.mrb[124].mxu0  ;;  %v17449_v46 = vpop.f32.mrb[169].mxu1 }
 0xbb6   :  { %v17450_v63 = vadd.f32 %v17449_v46, %v17448_v58  ;;  %v7709_v5 = vpop.f32.mrb[125].mxu0  ;;  %v17451_v55 = vpop.f32.mrb[170].mxu1  ;;  %v19054_v58 = vld [vmem:[#allocation14 + $0xb18] ss:$20 sps:$4 sm:$0xff]   ;;  %v19060_v46 = vld [vmem:[#allocation14 + $0x8d0] ss:$20 sps:$4 sm:$0xff]  }
 0xbb7   :  { %v7711_v18 = vpop.f32.mrb[126].mxu0  ;;  %v17452_v16 = vpop.f32.mrb[171].mxu1  ;;  %v19063_v55 = vld [vmem:[#allocation14 + $0x8f8] ss:$20 sps:$4 sm:$0xff]  }
 0xbb8   :  { %v7602_v1 = vadd.f32 %v17450_v63, %v6726_v32  ;;  %v21765_v11 = vpack.c.bf16 %v7711_v18, %v7707_v35  ;;  %v7713_v51 = vpop.f32.mrb[127].mxu0  ;;  %v19057_v35 = vld [vmem:[#allocation14 + $0xb20] ss:$20 sps:$4 sm:$0xff]   ;;  %v19061_v63 = vld [vmem:[#allocation14 + $0xa10] ss:$20 sps:$4 sm:$0xff]  }
 0xbb9   :  { %v21767_v19 = vpack.c.bf16 %v7713_v51, %v7709_v5  ;;  %v19062_v5 = vld [vmem:[#allocation14 + $0x790] ss:$20 sps:$4 sm:$0xff]   ;;  %v19064_v18 = vld [vmem:[#allocation14 + $0xa38] ss:$20 sps:$4 sm:$0xff]   ;;  %v19067_v51 = vld [vmem:[#allocation14 + $0xa60] ss:$20 sps:$4 sm:$0xff]  }
 0xbba   :  { %v21769_v2 = vadd.f32 %v17691_v6, %v7602_v1  ;;  %v19039_v6 = vld [vmem:[#allocation14 + $0xaa8] ss:$20 sps:$4 sm:$0xff]   ;;  %v19065_v16 = vld [vmem:[#allocation14 + $0x7b8] ss:$20 sps:$4 sm:$0xff]   ;;  %v19066_v1 = vld [vmem:[#allocation14 + $0x920] ss:$20 sps:$4 sm:$0xff]  }
 0xbbb   :  { %8579 = vmatprep.mubr.bf16.mxu1 %v21767_v19  ;;  %8681 = vmatprep.mubr.bf16.mxu0 %v21767_v19 }
 0xbbc   :  { %8580 = vmatmul.mubr.bf16.vlgmr.msra.gmra.mrb[136].mxu1 %v21765_v11  ;;  %8682 = vmatmul.mubr.bf16.vlgmr.msra.gmra.mrb[96].mxu0 %v21765_v11  ;;  %v21775_v32 = vpop.f32.mrb[172].mxu1 }
 0xbbd   :  { %8599 = vmatpush1.bf16.msra.mxu1 %v19012_v23  ;;  %8701 = vmatpush1.bf16.msra.mxu0 %v19015_v31  ;;  %v7717_v38 = vpop.f32.mrb[128].mxu0  ;;  %v7758_v27 = vpop.f32.mrb[173].mxu1  ;;  %v19068_v23 = vld [vmem:[#allocation14 + $0x7e0] ss:$20 sps:$4 sm:$0xff]   ;;  %v7777_v31 = vpack.c.bf16 %v21775_v32, %v21775_v32  ;;  %v19075_v32 = vld [vmem:[#allocation14 + $0x998] ss:$20 sps:$4 sm:$0xff]  }
 0xbbe   :  { %8600 = vmatprep.subr.bf16.mxu1 %v19020_v59  ;;  %8702 = vmatprep.subr.bf16.mxu0 %v19023_v33  ;;  %v7719_v9 = vpop.f32.mrb[129].mxu0  ;;  %v17700_v56 = vpop.f32.mrb[174].mxu1  ;;  %v21779_v48 = vpack.c.bf16 %v7717_v38, %v7717_v38  ;;  %v19069_v59 = vld [vmem:[#allocation14 + $0x948] ss:$20 sps:$4 sm:$0xff]   ;;  %v19073_v38 = vld [vmem:[#allocation14 + $0xab0] ss:$20 sps:$4 sm:$0xff]  }
 0xbbf   :  { %v21777_v25 = vpack.c.bf16 %v7719_v9, %v7719_v9  ;;  %v7721_v14 = vpop.f32.mrb[130].mxu0  ;;  %v7761_v54 = vpop.f32.mrb[175].mxu1  ;;  %v19070_v33 = vld [vmem:[#allocation14 + $0xa88] ss:$20 sps:$4 sm:$0xff]   ;;  %v19079_v9 = vld [vmem:[#allocation14 + $0xb00] ss:$20 sps:$4 sm:$0xff]  }
 0xbc0   :  { %v7722_v62 = vpop.f32.mrb[131].mxu0  ;;  %v21781_v7 = vpack.c.bf16 %v7761_v54, %v7758_v27  ;;  %v19074_v27 = vld [vmem:[#allocation14 + $0x830] ss:$20 sps:$4 sm:$0xff]   ;;  %v19080_v56 = vld [vmem:[#allocation14 + $0x880] ss:$20 sps:$4 sm:$0xff]  }
 0xbc1   :  { %8601 = vmatpush1.bf16.msra.mxu1 %v19018_v45  ;;  %8703 = vmatpush1.bf16.msra.mxu0 %v19021_v37  ;;  %v19071_v45 = vld [vmem:[#allocation14 + $0x808] ss:$20 sps:$4 sm:$0xff]   ;;  %v19072_v37 = vld [vmem:[#allocation14 + $0x970] ss:$20 sps:$4 sm:$0xff]  }
 0xbc2   :  { %8602 = vmatprep.subr.bf16.mxu1 %v19026_v39  ;;  %8704 = vmatprep.subr.bf16.mxu0 %v19029_v3  ;;  %v19076_v39 = vld [vmem:[#allocation14 + $0xad8] ss:$20 sps:$4 sm:$0xff]   ;;  %v19081_v14 = vld [vmem:[#allocation14 + $0x9e8] ss:$20 sps:$4 sm:$0xff]  }
 0xbc3   :  { %8589 = vmatprep.mubr.bf16.mxu1 %v21777_v25  ;;  %8691 = vmatprep.mubr.bf16.mxu0 %v21777_v25  ;;  %v19077_v3 = vld [vmem:[#allocation14 + $0x858] ss:$20 sps:$4 sm:$0xff]   ;;  %v19082_v54 = vld [vmem:[#allocation14 + $0xb28] ss:$20 sps:$4 sm:$0xff]  }
 0xbc4   :  { %8590 = vmatmul.mubr.bf16.gmra.mrb[176].mxu1 %v21779_v48  ;;  %8692 = vmatmul.mubr.bf16.gmra.mrb[132].mxu0 %v21779_v48  ;;  %v19083_v62 = vld [vmem:[#allocation14 + $0x8a8] ss:$20 sps:$4 sm:$0xff]  }
 0xbc5   :  { %8603 = vmatpush1.bf16.msra.mxu1 %v19024_v52  ;;  %8705 = vmatpush1.bf16.msra.mxu0 %v19027_v26 }
 0xbc6   :  { %8604 = vmatprep.subr.bf16.mxu1 %v19032_v34  ;;  %8706 = vmatprep.subr.bf16.mxu0 %v19035_v44 }
 0xbc7   :  { %8630 = vmatprep.mubr.bf16.mxu1 %v20727_v29  ;;  %8732 = vmatprep.mubr.bf16.mxu0 %v20727_v29 }
 0xbc9   :  { %8605 = vmatpush1.bf16.msra.mxu1 %v19030_v41  ;;  %8707 = vmatpush1.bf16.msra.mxu0 %v19033_v8 }
 0xbca   :  { %8606 = vmatprep.subr.bf16.mxu1 %v19038_v43  ;;  %8708 = vmatprep.subr.bf16.mxu0 %v19041_v10  ;;  %v21802_v10 = vld [vmem:[#allocation16] sm:$0x1f] }
 0xbcd   :  { %8607 = vmatpush1.bf16.msra.mxu1 %v19036_v40  ;;  %8709 = vmatpush1.bf16.msra.mxu0 %v19039_v6  ;;  %v8871_v40 = vrot.slane %v21802_v10, %v21591_v4 }
 0xbce   :  { %8608 = vmatprep.subr.bf16.mxu1 %v19044_v13  ;;  %8710 = vmatprep.subr.bf16.mxu0 %v19047_v15 }
 0xbd1   :  { %8609 = vmatpush1.bf16.msra.mxu1 %v19042_v28  ;;  %8711 = vmatpush1.bf16.msra.mxu0 %v19045_v47 }
 0xbd2   :  { %8610 = vmatprep.subr.bf16.mxu1 %v19050_v30  ;;  %8712 = vmatprep.subr.bf16.mxu0 %v19053_v20 }
 0xbd5   :  { %8611 = vmatpush1.bf16.msra.mxu1 %v19048_v61  ;;  %8713 = vmatpush1.bf16.msra.mxu0 %v19051_v36 }
 0xbd6   :  { %8612 = vmatprep.subr.bf16.mxu1 %v19056_v12  ;;  %8714 = vmatprep.subr.bf16.mxu0 %v19059_v53 }
 0xbd9   :  { %8613 = vmatpush1.bf16.msra.mxu1 %v19054_v58  ;;  %8715 = vmatpush1.bf16.msra.mxu0 %v19057_v35 }
 0xbda   :  { %17468 = vmatprep.subr.bf16.mxu0 %v19060_v46  ;;  %17701 = vmatprep.subr.bf16.mxu1 %v19061_v63 }
 0xbdc   :  { %8631 = vmatmul.mubr.bf16.vlgmr.msra.gmra.mrb[136].mxu1 %v21781_v7  ;;  %8733 = vmatmul.mubr.bf16.vlgmr.msra.gmra.mrb[96].mxu0 %v21781_v7 }
 0xbdd   :  { %17469 = vmatpush3.bf16.msra.mxu0 %v19062_v5  ;;  %17702 = vmatpush3.bf16.msra.mxu1 %v19061_v63 }
 0xbde   :  { %17470 = vmatprep.subr.bf16.mxu0 %v19063_v55  ;;  %17703 = vmatprep.subr.bf16.mxu1 %v19064_v18 }
 0xbdf   :  { %8640 = vmatprep.mubr.bf16.mxu1 %v20727_v29  ;;  %8742 = vmatprep.mubr.bf16.mxu0 %v20727_v29 }
 0xbe1   :  { %17471 = vmatpush3.bf16.msra.mxu0 %v19065_v16  ;;  %17704 = vmatpush3.bf16.msra.mxu1 %v19064_v18 }
 0xbe2   :  { %17472 = vmatprep.subr.bf16.mxu0 %v19066_v1  ;;  %17705 = vmatprep.subr.bf16.mxu1 %v19067_v51 }
 0xbe4   :  { %8641 = vmatmul.mubr.bf16.gmra.mrb[180].mxu1 %v7777_v31  ;;  %8743 = vmatmul.mubr.bf16.gmra.mrb[136].mxu0 %v7777_v31 }
 0xbe5   :  { %17473 = vmatpush3.bf16.msra.mxu0 %v19068_v23  ;;  %8783 = vmatprep.mubr.bf16.mxu0 %v21767_v19  ;;  %v19078_v19 = vld [vmem:[#allocation14 + $0x9c0] ss:$20 sps:$4 sm:$0xff]  }
 0xbe6   :  { %17706 = vmatpush3.bf16.msra.mxu1 %v19067_v51  ;;  %17717 = vmatprep.mubr.bf16.mxu1 %v21781_v7 }
 0xbe7   :  { %17474 = vmatprep.subr.bf16.mxu0 %v19069_v59  ;;  %17707 = vmatprep.subr.bf16.mxu1 %v19070_v33 }
 0xbe9   :  { %17475 = vmatpush3.bf16.msra.mxu0 %v19071_v45 }
 0xbea   :  { %17708 = vmatpush3.bf16.msra.mxu1 %v19070_v33  ;;  %17476 = vmatprep.subr.bf16.mxu0 %v19072_v37 }
 0xbeb   :  { %17709 = vmatprep.subr.bf16.mxu1 %v19073_v38 }
 0xbed   :  { %17477 = vmatpush3.bf16.msra.mxu0 %v19074_v27 }
 0xbee   :  { %17710 = vmatpush3.bf16.msra.mxu1 %v19073_v38  ;;  %17478 = vmatprep.subr.bf16.mxu0 %v19075_v32 }
 0xbef   :  { %17711 = vmatprep.subr.bf16.mxu1 %v19076_v39 }
 0xbf1   :  { %17479 = vmatpush3.bf16.msra.mxu0 %v19077_v3 }
 0xbf2   :  { %17712 = vmatpush3.bf16.msra.mxu1 %v19076_v39  ;;  %17480 = vmatprep.subr.bf16.mxu0 %v19078_v19 }
 0xbf3   :  { %17713 = vmatprep.subr.bf16.mxu1 %v19079_v9 }
 0xbf5   :  { %17481 = vmatpush3.bf16.msra.mxu0 %v19080_v56 }
 0xbf6   :  { %17714 = vmatpush3.bf16.msra.mxu1 %v19079_v9  ;;  %17482 = vmatprep.subr.bf16.mxu0 %v19081_v14 }
 0xbf7   :  { %17715 = vmatprep.subr.bf16.mxu1 %v19082_v54 }
 0xbf9   :  { %17483 = vmatpush3.bf16.msra.mxu0 %v19083_v62 }
 0xbfa   :  { %17716 = vmatpush3.bf16.msra.mxu1 %v19082_v54 }
 0xbfc   :  { %8784 = vmatmul.mubr.bf16.vlgmr.msra.gmra.mrb[140].mxu0 %v21765_v11  ;;  %v8878_v11 = vsub.s32 3, %v21548_v22 }
 0xbfd   :  { %17718 = vmatmul.mubr.bf16.vlgmr.msra.gmra.mrb[184].mxu1 %v7777_v31  ;;  %8791 = vmatprep.mubr.bf16.mxu0 %v21777_v25  ;;  %v8867_v25 = vrot.slane %v21802_v10, %v21588_v21 }
 0xbfe   :  { %8988 = vmatprep.mubr.bf16.mxu1 %v20727_v29  ;;  %v8879_v6 = vrot.slane %v21802_v10, %v8878_v11 }
 0xc04   :  { %8792 = vmatmul.mubr.bf16.gmra.mrb[144].mxu0 %v21779_v48  ;;  %v8875_v48 = vrot.slane %v21802_v10, %v5234_v24 }
 0xc05   :  { %9031 = vmatprep.mubr.bf16.mxu0 %v20727_v29 }
 0xc97   :  { %v8591_v7 = vpop.f32.mrb[176].mxu1  ;;  %v8693_v52 = vpop.f32.mrb[132].mxu0 }
 0xc98   :  { %v8593_v26 = vpop.f32.mrb[177].mxu1  ;;  %v8695_v34 = vpop.f32.mrb[133].mxu0 }
 0xc99   :  { %v8595_v44 = vpop.f32.mrb[178].mxu1  ;;  %v8697_v41 = vpop.f32.mrb[134].mxu0 }
 0xc9a   :  { %v8596_v8 = vpop.f32.mrb[179].mxu1  ;;  %v8698_v43 = vpop.f32.mrb[135].mxu0 }
 0xcaf   :  { %v8632_v13 = vpop.f32.mrb[136].mxu1  ;;  %v8734_v15 = vpop.f32.mrb[96].mxu0 }
 0xcb0   :  { %v8889_v28 = vadd.f32 %v8867_v25, %v8632_v13  ;;  %v8891_v47 = vadd.f32 %v8875_v48, %v8734_v15  ;;  %v8634_v30 = vpop.f32.mrb[137].mxu1  ;;  %v8736_v20 = vpop.f32.mrb[97].mxu0 }
 0xcb1   :  { %v8890_v61 = vadd.f32 %v8871_v40, %v8634_v30  ;;  %v8892_v36 = vadd.f32 %v8879_v6, %v8736_v20  ;;  %v8636_v12 = vpop.f32.mrb[138].mxu1  ;;  %v8738_v53 = vpop.f32.mrb[98].mxu0 }
 0xcb2   :  { %v8894_v58 = vadd.f32 %v8867_v25, %v8636_v12  ;;  %v8896_v35 = vadd.f32 %v8875_v48, %v8738_v53  ;;  %v8638_v46 = vpop.f32.mrb[139].mxu1  ;;  %v8740_v63 = vpop.f32.mrb[99].mxu0  ;;  %v8904_v55 = vmax.f32 %v8889_v28, 0.0  ;;  %v8906_v18 = vmax.f32 %v8891_v47, 0.0 }
 0xcb3   :  { %v8895_v24 = vadd.f32 %v8871_v40, %v8638_v46  ;;  %v8897_v5 = vadd.f32 %v8879_v6, %v8740_v63  ;;  %v8905_v51 = vmax.f32 %v8890_v61, 0.0  ;;  %v8907_v23 = vmax.f32 %v8892_v36, 0.0 }
 0xcb4   :  { %v8909_v16 = vmax.f32 %v8894_v58, 0.0  ;;  %v8911_v1 = vmax.f32 %v8896_v35, 0.0 }
 0xcb5   :  { %v8910_v31 = vmax.f32 %v8895_v24, 0.0  ;;  %v8912_v59 = vmax.f32 %v8897_v5, 0.0 }
 0xcb6   :  { %v21813_v33 = vpack.c.bf16 %v8909_v16, %v8904_v55  ;;  %v21815_v45 = vpack.c.bf16 %v8911_v1, %v8906_v18 }
 0xcb7   :  { %v21817_v37 = vpack.c.bf16 %v8910_v31, %v8905_v51  ;;  %v21819_v38 = vpack.c.bf16 %v8912_v59, %v8907_v23  ;;  %v8642_v27 = vpop.f32.mrb[180].mxu1  ;;  %v8744_v32 = vpop.f32.mrb[136].mxu0 }
 0xcb8   :  { %v8643_v39 = vadd.f32 %v8642_v27, %v8591_v7  ;;  %v8745_v3 = vadd.f32 %v8744_v32, %v8693_v52  ;;  %v8644_v19 = vpop.f32.mrb[181].mxu1  ;;  %v8746_v9 = vpop.f32.mrb[137].mxu0 }
 0xcb9   :  { %v8645_v56 = vadd.f32 %v8644_v19, %v8593_v26  ;;  %v8747_v14 = vadd.f32 %v8746_v9, %v8695_v34  ;;  %v8646_v54 = vpop.f32.mrb[182].mxu1  ;;  %v8748_v62 = vpop.f32.mrb[138].mxu0  ;;  %8956 = vmatprep.subr.bf16.mxu1 %v21817_v37  ;;  %8999 = vmatprep.subr.bf16.mxu0 %v21819_v38 }
 0xcba   :  { %v8857_v44 = vadd.f32 %v8643_v39, %v21751_v49  ;;  %v8859_v41 = vadd.f32 %v8745_v3, %v21753_v60  ;;  %v8647_v8 = vpop.f32.mrb[183].mxu1  ;;  %v8749_v43 = vpop.f32.mrb[139].mxu0  ;;  %8957 = vmatpush1.bf16.msra.mxu1 %v21813_v33  ;;  %9000 = vmatpush1.bf16.msra.mxu0 %v21815_v45  ;;  %v19091_v54 = vld [vmem:[#allocation19 + $0x50c] ss:$16 sps:$4 sm:$0xff]  }
 0xcbb   :  { %v8858_v7 = vadd.f32 %v8645_v56, %v21755_v17  ;;  %v8860_v52 = vadd.f32 %v8747_v14, %v21757_v42  ;;  %v19084_v42 = vld [vmem:[#allocation17] sm:$0xff]  }
 0xcbc   :  { %v8899_v26 = vadd.f32 %v8867_v25, %v8857_v44  ;;  %v8901_v34 = vadd.f32 %v8875_v48, %v8859_v41  ;;  %v21855_v25 = vld [vmem:[#allocation17 + $0x8] sm:$0xff]   ;;  %v19097_v44 = vld [vmem:[#allocation19 + $0x52c] ss:$16 sps:$4 sm:$0xff]   ;;  %v19095_v8 = vld [vmem:[#allocation19 + $0x528] ss:$16 sps:$4 sm:$0xff]  }
 0xcbd   :  { %v8900_v11 = vadd.f32 %v8871_v40, %v8858_v7  ;;  %v8902_v13 = vadd.f32 %v8879_v6, %v8860_v52  ;;  %v8882_v40 = vsub.s32 4, %v21548_v22  ;;  %v19088_v41 = vld [vmem:[#allocation19 + $0x504] ss:$16 sps:$4 sm:$0xff]   ;;  %v19103_v43 = vld [vmem:[#allocation19 + $0x54c] ss:$16 sps:$4 sm:$0xff]  }
 0xcbe   :  { %v8914_v15 = vmax.f32 %v8899_v26, 0.0  ;;  %v8916_v28 = vmax.f32 %v8901_v34, 0.0  ;;  %v19086_v7 = vld [vmem:[#allocation19 + $0x500] ss:$16 sps:$4 sm:$0xff]   ;;  %v19094_v52 = vld [vmem:[#allocation19 + $0x524] ss:$16 sps:$4 sm:$0xff]  }
 0xcbf   :  { %v8915_v47 = vmax.f32 %v8900_v11, 0.0  ;;  %v8917_v49 = vmax.f32 %v8902_v13, 0.0  ;;  %v8883_v5 = vrot.slane %v21802_v10, %v8882_v40  ;;  %v19101_v26 = vld [vmem:[#allocation19 + $0x548] ss:$16 sps:$4 sm:$0xff]   ;;  %v19109_v34 = vld [vmem:[#allocation19 + $0x56c] ss:$16 sps:$4 sm:$0xff]  }
 0xcc0   :  { %v8924_v60 = vpack.c.bf16 %v8914_v15, %v8914_v15  ;;  %v8926_v30 = vpack.c.bf16 %v8916_v28, %v8916_v28  ;;  %v19092_v11 = vld [vmem:[#allocation19 + $0x520] ss:$16 sps:$4 sm:$0xff]   ;;  %v19100_v13 = vld [vmem:[#allocation19 + $0x544] ss:$16 sps:$4 sm:$0xff]   ;;  %v19107_v15 = vld [vmem:[#allocation19 + $0x568] ss:$16 sps:$4 sm:$0xff]  }
 0xcc1   :  { %v21829_v20 = vpack.c.bf16 %v8915_v47, %v8915_v47  ;;  %v21831_v61 = vpack.c.bf16 %v8917_v49, %v8917_v49  ;;  %v19115_v28 = vld [vmem:[#allocation19 + $0x58c] ss:$16 sps:$4 sm:$0xff]   ;;  %v19098_v47 = vld [vmem:[#allocation19 + $0x540] ss:$16 sps:$4 sm:$0xff]   ;;  %v19106_v49 = vld [vmem:[#allocation19 + $0x564] ss:$16 sps:$4 sm:$0xff]  }
 0xcc2   :  { %v21834_v36 = vsel %vm8940_vm7, %v8924_v60, 0  ;;  %v21837_v17 = vsel %vm8940_vm7, %v8926_v30, 0  ;;  %v19113_v60 = vld [vmem:[#allocation19 + $0x588] ss:$16 sps:$4 sm:$0xff]   ;;  %v19121_v30 = vld [vmem:[#allocation19 + $0x5ac] ss:$16 sps:$4 sm:$0xff]  }
 0xcc3   :  { %16394 = vmatprep.subr.msk.bf16.mxu1 %vm8940_vm7, %v21829_v20  ;;  %16396 = vmatprep.subr.msk.bf16.mxu0 %vm8940_vm7, %v21831_v61  ;;  %v19127_v40 = vld [vmem:[#allocation19 + $0x5cc] ss:$16 sps:$4 sm:$0xff]  }
 0xcc4   :  { %8959 = vmatpush1.bf16.msra.mxu1 %v21834_v36  ;;  %9002 = vmatpush1.bf16.msra.mxu0 %v21837_v17 }
 0xcc5   :  { %9259 = vmatprep.subr.bf16.mxu0 %v21817_v37  ;;  %17721 = vmatprep.subr.bf16.mxu1 %v20725_v0 }
 0xcc7   :  { %16397 = vmatmul.mubr.msk.bf16.vlgmr.msra.gmra.mrb[148].mxu0 %vm8936_vm8, %v19084_v42  ;;  %16395 = vmatmul.mubr.msk.bf16.vlgmr.msra.gmra.mrb[188].mxu1 %vm8936_vm8, %v19084_v42 }
 0xcc8   :  { %9260 = vmatpush1.bf16.msra.mxu0 %v21813_v33  ;;  %9291 = vmatprep.mubr.bf16.mxu0 %v20727_v29 }
 0xcc9   :  { %16400 = vmatprep.subr.msk.bf16.mxu0 %vm8940_vm7, %v21829_v20  ;;  %17725 = vmatprep.mubr.msk.bf16.mxu1 %vm20726_vm0, %v20725_v0 }
 0xccc   :  { %9262 = vmatpush1.bf16.msra.mxu0 %v21834_v36 }
 0xccd   :  { %17729 = vmatprep.subr.bf16.mxu0 %v20725_v0 }
 0xccf   :  { %v17484_v48 = vpop.f32.mrb[140].mxu0  ;;  %16401 = vmatmul.mubr.msk.bf16.vlgmr.msra.gmra.mrb[152].mxu0 %vm8936_vm8, %v21855_v25 }
 0xcd0   :  { %v17719_v6 = vpop.f32.mrb[184].mxu1  ;;  %v17485_v12 = vpop.f32.mrb[141].mxu0  ;;  %17733 = vmatprep.mubr.msk.bf16.mxu0 %vm20726_vm0, %v20725_v0 }
 0xcd1   :  { %v17486_v53 = vadd.f32 %v17485_v12, %v17484_v48  ;;  %v8833_v58 = vpop.f32.mrb[185].mxu1  ;;  %v17487_v35 = vpop.f32.mrb[142].mxu0  ;;  %v19119_v48 = vld [vmem:[#allocation19 + $0x5a8] ss:$16 sps:$4 sm:$0xff]   ;;  %v19118_v12 = vld [vmem:[#allocation19 + $0x5a4] ss:$16 sps:$4 sm:$0xff]  }
 0xcd2   :  { %v17720_v46 = vpop.f32.mrb[186].mxu1  ;;  %v17488_v63 = vpop.f32.mrb[143].mxu0 }
 0xcd3   :  { %v8834_v24 = vadd.f32 %v17486_v53, %v8833_v58  ;;  %v17489_v55 = vadd.f32 %v17488_v63, %v17487_v35  ;;  %v8836_v18 = vpop.f32.mrb[187].mxu1  ;;  %v19125_v53 = vld [vmem:[#allocation19 + $0x5c8] ss:$16 sps:$4 sm:$0xff]   ;;  %v19133_v58 = vld [vmem:[#allocation19 + $0x5ec] ss:$16 sps:$4 sm:$0xff]  }
 0xcd4   :  { %v19116_v35 = vld [vmem:[#allocation19 + $0x5a0] ss:$16 sps:$4 sm:$0xff]   ;;  %v19124_v46 = vld [vmem:[#allocation19 + $0x5c4] ss:$16 sps:$4 sm:$0xff]   ;;  %v19131_v63 = vld [vmem:[#allocation19 + $0x5e8] ss:$16 sps:$4 sm:$0xff]  }
 0xcd5   :  { %v8851_v16 = vadd.f32 %v8834_v24, %v21760_v50  ;;  %v8837_v1 = vadd.f32 %v17489_v55, %v8836_v18  ;;  %v19139_v24 = vld [vmem:[#allocation19 + $0x60c] ss:$16 sps:$4 sm:$0xff]   ;;  %v19130_v55 = vld [vmem:[#allocation19 + $0x5e4] ss:$16 sps:$4 sm:$0xff]   ;;  %v19137_v18 = vld [vmem:[#allocation19 + $0x608] ss:$16 sps:$4 sm:$0xff]  }
 0xcd7   :  { %v8893_v51 = vadd.f32 %v8883_v5, %v8851_v16  ;;  %v8856_v22 = vadd.f32 %v8837_v1, %v21763_v57  ;;  %v17490_v23 = vpop.f32.mrb[144].mxu0  ;;  %v19145_v16 = vld [vmem:[#allocation19 + $0x62c] ss:$16 sps:$4 sm:$0xff]   ;;  %v19128_v1 = vld [vmem:[#allocation19 + $0x5e0] ss:$16 sps:$4 sm:$0xff]  }
 0xcd8   :  { %v17491_v31 = vpop.f32.mrb[145].mxu0 }
 0xcd9   :  { %v8898_v59 = vadd.f32 %v8883_v5, %v8856_v22  ;;  %v17492_v27 = vadd.f32 %v17491_v31, %v17490_v23  ;;  %v17493_v32 = vpop.f32.mrb[146].mxu0  ;;  %v8908_v3 = vmax.f32 %v8893_v51, 0.0  ;;  %v19136_v51 = vld [vmem:[#allocation19 + $0x604] ss:$16 sps:$4 sm:$0xff]   ;;  %v19143_v22 = vld [vmem:[#allocation19 + $0x628] ss:$16 sps:$4 sm:$0xff]  }
 0xcda   :  { %v17494_v39 = vpop.f32.mrb[147].mxu0  ;;  %v19151_v23 = vld [vmem:[#allocation19 + $0x64c] ss:$16 sps:$4 sm:$0xff]   ;;  %v19134_v31 = vld [vmem:[#allocation19 + $0x600] ss:$16 sps:$4 sm:$0xff]  }
 0xcdb   :  { %v8913_v19 = vmax.f32 %v8898_v59, 0.0  ;;  %v8842_v9 = vadd.f32 %v17719_v6, %v17492_v27  ;;  %v19110_v6 = vld [vmem:[#allocation19 + $0x580] ss:$16 sps:$4 sm:$0xff]   ;;  %v19142_v59 = vld [vmem:[#allocation19 + $0x624] ss:$16 sps:$4 sm:$0xff]  }
 0xcdc   :  { %v19149_v27 = vld [vmem:[#allocation19 + $0x648] ss:$16 sps:$4 sm:$0xff]   ;;  %v19157_v32 = vld [vmem:[#allocation19 + $0x66c] ss:$16 sps:$4 sm:$0xff]   ;;  %v19140_v39 = vld [vmem:[#allocation19 + $0x620] ss:$16 sps:$4 sm:$0xff]  }
 0xcdd   :  { %v21867_v56 = vpack.c.bf16 %v8913_v19, %v8908_v3  ;;  %v8861_v10 = vadd.f32 %v8842_v9, %v21769_v2  ;;  %v19089_v2 = vld [vmem:[#allocation19 + $0x508] ss:$16 sps:$4 sm:$0xff]   ;;  %v19148_v3 = vld [vmem:[#allocation19 + $0x644] ss:$16 sps:$4 sm:$0xff]   ;;  %v19163_v9 = vld [vmem:[#allocation19 + $0x68c] ss:$16 sps:$4 sm:$0xff]  }
 0xcde   :  { %v19155_v19 = vld [vmem:[#allocation19 + $0x668] ss:$16 sps:$4 sm:$0xff]  }
 0xcdf   :  { %17722 = vmatpush3.bf16.msra.mxu1 %v21867_v56  ;;  %17730 = vmatpush3.bf16.msra.mxu0 %v21867_v56  ;;  %v8903_v50 = vadd.f32 %v8883_v5, %v8861_v10  ;;  %v19122_v5 = vld [vmem:[#allocation19 + $0x5c0] ss:$16 sps:$4 sm:$0xff]  }
 0xce0   :  { %17723 = vmatprep.subr.bf16.mxu1 %v20725_v0  ;;  %17731 = vmatprep.subr.bf16.mxu0 %v20725_v0  ;;  %v19146_v10 = vld [vmem:[#allocation19 + $0x640] ss:$16 sps:$4 sm:$0xff]  }
 0xce1   :  { %v8918_v57 = vmax.f32 %v8903_v50, 0.0  ;;  %v19154_v50 = vld [vmem:[#allocation19 + $0x664] ss:$16 sps:$4 sm:$0xff]  }
 0xce3   :  { %v8928_v14 = vpack.c.bf16 %v8918_v57, %v8918_v57  ;;  %v19161_v57 = vld [vmem:[#allocation19 + $0x688] ss:$16 sps:$4 sm:$0xff]  }
 0xce5   :  { %v21875_v62 = vsel %vm8940_vm7, %v8928_v14, 0  ;;  %v19152_v14 = vld [vmem:[#allocation19 + $0x660] ss:$16 sps:$4 sm:$0xff]  }
 0xce6   :  { %17724 = vmatpush3.bf16.msra.mxu1 %v21875_v62  ;;  %17732 = vmatpush3.bf16.msra.mxu0 %v21875_v62 }
 0xce7   :  { %9302 = vmatprep.subr.bf16.mxu1 %v21819_v38  ;;  %10481 = vmatprep.subr.bf16.mxu0 %v19091_v54  ;;  %v19160_v54 = vld [vmem:[#allocation19 + $0x684] ss:$16 sps:$4 sm:$0xff]  }
 0xce9   :  { %17726 = vmatmul.mubr.msk.bf16.vlgmr.msra.gmra.mrb[192].mxu1 %vm8936_vm8, %v19084_v42  ;;  %17734 = vmatmul.mubr.msk.bf16.vlgmr.msra.gmra.mrb[156].mxu0 %vm8936_vm8, %v21855_v25  ;;  %v19104_v42 = vld [vmem:[#allocation19 + $0x560] ss:$16 sps:$4 sm:$0xff]  }
 0xcea   :  { %9303 = vmatpush1.bf16.msra.mxu1 %v21815_v45  ;;  %9334 = vmatprep.mubr.bf16.mxu1 %v20727_v29 }
 0xceb   :  { %16402 = vmatprep.subr.msk.bf16.mxu1 %vm8940_vm7, %v21831_v61  ;;  %10482 = vmatpush1.bf16.msra.mxu0 %v19089_v2  ;;  %v19169_v2 = vld [vmem:[#allocation19 + $0x6ac] ss:$16 sps:$4 sm:$0xff]  }
 0xcec   :  { %10483 = vmatprep.subr.bf16.mxu0 %v19097_v44  ;;  %v19167_v44 = vld [vmem:[#allocation19 + $0x6a8] ss:$16 sps:$4 sm:$0xff]  }
 0xcee   :  { %9305 = vmatpush1.bf16.msra.mxu1 %v21837_v17 }
 0xcef   :  { %10352 = vmatprep.subr.bf16.mxu1 %v19088_v41  ;;  %10484 = vmatpush1.bf16.msra.mxu0 %v19095_v8  ;;  %v19158_v41 = vld [vmem:[#allocation19 + $0x680] ss:$16 sps:$4 sm:$0xff]   ;;  %v19166_v8 = vld [vmem:[#allocation19 + $0x6a4] ss:$16 sps:$4 sm:$0xff]  }
 0xcf0   :  { %10485 = vmatprep.subr.bf16.mxu0 %v19103_v43  ;;  %v19173_v43 = vld [vmem:[#allocation19 + $0x6c8] ss:$16 sps:$4 sm:$0xff]  }
 0xcf1   :  { %16403 = vmatmul.mubr.msk.bf16.vlgmr.msra.gmra.mrb[196].mxu1 %vm8936_vm8, %v21855_v25  ;;  %v19112_v25 = vld [vmem:[#allocation19 + $0x584] ss:$16 sps:$4 sm:$0xff]  }
 0xcf2   :  { %10353 = vmatpush1.bf16.msra.mxu1 %v19086_v7  ;;  %v19175_v7 = vld [vmem:[#allocation19 + $0x6cc] ss:$16 sps:$4 sm:$0xff]  }
 0xcf3   :  { %10354 = vmatprep.subr.bf16.mxu1 %v19094_v52  ;;  %10486 = vmatpush1.bf16.msra.mxu0 %v19101_v26  ;;  %v19164_v52 = vld [vmem:[#allocation19 + $0x6a0] ss:$16 sps:$4 sm:$0xff]   ;;  %v19172_v26 = vld [vmem:[#allocation19 + $0x6c4] ss:$16 sps:$4 sm:$0xff]  }
 0xcf4   :  { %10487 = vmatprep.subr.bf16.mxu0 %v19109_v34  ;;  %v19181_v34 = vld [vmem:[#allocation19 + $0x6ec] ss:$16 sps:$4 sm:$0xff]  }
 0xcf6   :  { %10355 = vmatpush1.bf16.msra.mxu1 %v19092_v11  ;;  %v19179_v11 = vld [vmem:[#allocation19 + $0x6e8] ss:$16 sps:$4 sm:$0xff]  }
 0xcf7   :  { %10356 = vmatprep.subr.bf16.mxu1 %v19100_v13  ;;  %10488 = vmatpush1.bf16.msra.mxu0 %v19107_v15  ;;  %v19170_v13 = vld [vmem:[#allocation19 + $0x6c0] ss:$16 sps:$4 sm:$0xff]   ;;  %v19178_v15 = vld [vmem:[#allocation19 + $0x6e4] ss:$16 sps:$4 sm:$0xff]  }
 0xcf8   :  { %10489 = vmatprep.subr.bf16.mxu0 %v19115_v28  ;;  %v19187_v28 = vld [vmem:[#allocation19 + $0x70c] ss:$16 sps:$4 sm:$0xff]  }
 0xcfa   :  { %10357 = vmatpush1.bf16.msra.mxu1 %v19098_v47  ;;  %v19176_v47 = vld [vmem:[#allocation19 + $0x6e0] ss:$16 sps:$4 sm:$0xff]  }
 0xcfb   :  { %10358 = vmatprep.subr.bf16.mxu1 %v19106_v49  ;;  %10490 = vmatpush1.bf16.msra.mxu0 %v19113_v60  ;;  %v19184_v49 = vld [vmem:[#allocation19 + $0x704] ss:$16 sps:$4 sm:$0xff]  }
 0xcfc   :  { %10491 = vmatprep.subr.bf16.mxu0 %v19121_v30 }
 0xcfe   :  { %10359 = vmatpush1.bf16.msra.mxu1 %v19104_v42 }
 0xcff   :  { %10360 = vmatprep.subr.bf16.mxu1 %v19112_v25  ;;  %10492 = vmatpush1.bf16.msra.mxu0 %v19119_v48 }
 0xd00   :  { %10493 = vmatprep.subr.bf16.mxu0 %v19127_v40 }
 0xd02   :  { %10361 = vmatpush1.bf16.msra.mxu1 %v19110_v6 }
 0xd03   :  { %10362 = vmatprep.subr.bf16.mxu1 %v19118_v12  ;;  %10494 = vmatpush1.bf16.msra.mxu0 %v19125_v53 }
 0xd04   :  { %10495 = vmatprep.subr.bf16.mxu0 %v19133_v58 }
 0xd06   :  { %10363 = vmatpush1.bf16.msra.mxu1 %v19116_v35 }
 0xd07   :  { %10364 = vmatprep.subr.bf16.mxu1 %v19124_v46  ;;  %10496 = vmatpush1.bf16.msra.mxu0 %v19131_v63 }
 0xd08   :  { %10497 = vmatprep.subr.bf16.mxu0 %v19139_v24 }
 0xd0a   :  { %10365 = vmatpush1.bf16.msra.mxu1 %v19122_v5 }
 0xd0b   :  { %10366 = vmatprep.subr.bf16.mxu1 %v19130_v55  ;;  %10498 = vmatpush1.bf16.msra.mxu0 %v19137_v18 }
 0xd0c   :  { %10499 = vmatprep.subr.bf16.mxu0 %v19145_v16 }
 0xd0e   :  { %10367 = vmatpush1.bf16.msra.mxu1 %v19128_v1  ;;  %v19182_v1 = vld [vmem:[#allocation19 + $0x700] ss:$16 sps:$4 sm:$0xff]  }
 0xd0f   :  { %10368 = vmatprep.subr.bf16.mxu1 %v19136_v51  ;;  %10500 = vmatpush1.bf16.msra.mxu0 %v19143_v22  ;;  %v19185_v51 = vld [vmem:[#allocation19 + $0x708] ss:$16 sps:$4 sm:$0xff]   ;;  %v19190_v22 = vld [vmem:[#allocation19 + $0x724] ss:$16 sps:$4 sm:$0xff]  }
 0xd10   :  { %10501 = vmatprep.subr.bf16.mxu0 %v19151_v23  ;;  %v19193_v23 = vld [vmem:[#allocation19 + $0x72c] ss:$16 sps:$4 sm:$0xff]  }
 0xd12   :  { %10369 = vmatpush1.bf16.msra.mxu1 %v19134_v31  ;;  %v19188_v31 = vld [vmem:[#allocation19 + $0x720] ss:$16 sps:$4 sm:$0xff]  }
 0xd13   :  { %10370 = vmatprep.subr.bf16.mxu1 %v19142_v59  ;;  %10502 = vmatpush1.bf16.msra.mxu0 %v19149_v27  ;;  %v19191_v59 = vld [vmem:[#allocation19 + $0x728] ss:$16 sps:$4 sm:$0xff]   ;;  %v19196_v27 = vld [vmem:[#allocation19 + $0x744] ss:$16 sps:$4 sm:$0xff]  }
 0xd14   :  { %10503 = vmatprep.subr.bf16.mxu0 %v19157_v32  ;;  %v19199_v32 = vld [vmem:[#allocation19 + $0x74c] ss:$16 sps:$4 sm:$0xff]  }
 0xd16   :  { %10371 = vmatpush1.bf16.msra.mxu1 %v19140_v39  ;;  %v19194_v39 = vld [vmem:[#allocation19 + $0x740] ss:$16 sps:$4 sm:$0xff]  }
 0xd17   :  { %10372 = vmatprep.subr.bf16.mxu1 %v19148_v3  ;;  %10504 = vmatpush1.bf16.msra.mxu0 %v19155_v19  ;;  %v19197_v3 = vld [vmem:[#allocation19 + $0x748] ss:$16 sps:$4 sm:$0xff]   ;;  %v19202_v19 = vld [vmem:[#allocation19 + $0x764] ss:$16 sps:$4 sm:$0xff]  }
 0xd18   :  { %10505 = vmatprep.subr.bf16.mxu0 %v19163_v9  ;;  %v19205_v9 = vld [vmem:[#allocation19 + $0x76c] ss:$16 sps:$4 sm:$0xff]  }
 0xd1a   :  { %10373 = vmatpush1.bf16.msra.mxu1 %v19146_v10  ;;  %v19200_v10 = vld [vmem:[#allocation19 + $0x760] ss:$16 sps:$4 sm:$0xff]  }
 0xd1b   :  { %10374 = vmatprep.subr.bf16.mxu1 %v19154_v50  ;;  %10506 = vmatpush1.bf16.msra.mxu0 %v19161_v57  ;;  %v19203_v50 = vld [vmem:[#allocation19 + $0x768] ss:$16 sps:$4 sm:$0xff]   ;;  %v19208_v57 = vld [vmem:[#allocation19 + $0x784] ss:$16 sps:$4 sm:$0xff]  }
 0xd1c   :  { %10507 = vmatprep.subr.bf16.mxu0 %v19169_v2  ;;  %v19209_v2 = vld [vmem:[#allocation19 + $0x788] ss:$16 sps:$4 sm:$0xff]  }
 0xd1e   :  { %10375 = vmatpush1.bf16.msra.mxu1 %v19152_v14  ;;  %v19211_v14 = vld [vmem:[#allocation19 + $0x78c] ss:$16 sps:$4 sm:$0xff]  }
 0xd1f   :  { %10376 = vmatprep.subr.bf16.mxu1 %v19160_v54  ;;  %10508 = vmatpush1.bf16.msra.mxu0 %v19167_v44  ;;  %v19206_v54 = vld [vmem:[#allocation19 + $0x780] ss:$16 sps:$4 sm:$0xff]   ;;  %v19214_v44 = vld [vmem:[#allocation19 + $0x7a4] ss:$16 sps:$4 sm:$0xff]  }
 0xd20   :  { %10509 = vmatprep.subr.bf16.mxu0 %v19175_v7  ;;  %v19220_v7 = vld [vmem:[#allocation19 + $0x7c4] ss:$16 sps:$4 sm:$0xff]  }
 0xd22   :  { %10377 = vmatpush1.bf16.msra.mxu1 %v19158_v41  ;;  %v19217_v41 = vld [vmem:[#allocation19 + $0x7ac] ss:$16 sps:$4 sm:$0xff]  }
 0xd23   :  { %10378 = vmatprep.subr.bf16.mxu1 %v19166_v8  ;;  %10510 = vmatpush1.bf16.msra.mxu0 %v19173_v43  ;;  %v19212_v8 = vld [vmem:[#allocation19 + $0x7a0] ss:$16 sps:$4 sm:$0xff]   ;;  %v19215_v43 = vld [vmem:[#allocation19 + $0x7a8] ss:$16 sps:$4 sm:$0xff]  }
 0xd24   :  { %10511 = vmatprep.subr.bf16.mxu0 %v19181_v34 }
 0xd26   :  { %10379 = vmatpush1.bf16.msra.mxu1 %v19164_v52  ;;  %v19223_v52 = vld [vmem:[#allocation19 + $0x7cc] ss:$16 sps:$4 sm:$0xff]  }
 0xd27   :  { %10380 = vmatprep.subr.bf16.mxu1 %v19172_v26  ;;  %10512 = vmatpush1.bf16.msra.mxu0 %v19179_v11 }
 0xd28   :  { %10524 = vmatprep.subr.bf16.mxu0 %v19187_v28  ;;  %v19221_v28 = vld [vmem:[#allocation19 + $0x7c8] ss:$16 sps:$4 sm:$0xff]  }
 0xd2a   :  { %10381 = vmatpush1.bf16.msra.mxu1 %v19170_v13 }
 0xd2b   :  { %10382 = vmatprep.subr.bf16.mxu1 %v19178_v15  ;;  %v19218_v15 = vld [vmem:[#allocation19 + $0x7c0] ss:$16 sps:$4 sm:$0xff]  }
 0xd2e   :  { %10383 = vmatpush1.bf16.msra.mxu1 %v19176_v47 }
 0xd2f   :  { %10395 = vmatprep.subr.bf16.mxu1 %v19184_v49 }
 0xd9a   :  { %v9033_v60 = vpop.f32.mrb[148].mxu0  ;;  %v8990_v30 = vpop.f32.mrb[188].mxu1 }
 0xd9b   :  { %v9035_v42 = vpop.f32.mrb[149].mxu0  ;;  %v8992_v25 = vpop.f32.mrb[189].mxu1 }
 0xd9c   :  { %v9037_v48 = vpop.f32.mrb[150].mxu0  ;;  %v8994_v40 = vpop.f32.mrb[190].mxu1 }
 0xd9d   :  { %v21890_v6 = vpack.c.bf16 %v9037_v48, %v9033_v60  ;;  %v9039_v12 = vpop.f32.mrb[151].mxu0  ;;  %v21892_v53 = vpack.c.bf16 %v8994_v40, %v8990_v30  ;;  %v8996_v58 = vpop.f32.mrb[191].mxu1  ;;  %v19226_v60 = vld [vmem:[#allocation19 + $0x7e4] ss:$16 sps:$4 sm:$0xff]   ;;  %v19229_v30 = vld [vmem:[#allocation19 + $0x7ec] ss:$16 sps:$4 sm:$0xff]  }
 0xd9e   :  { %v21894_v35 = vpack.c.bf16 %v9039_v12, %v9035_v42  ;;  %v21896_v46 = vpack.c.bf16 %v8996_v58, %v8992_v25  ;;  %v19224_v12 = vld [vmem:[#allocation19 + $0x7e0] ss:$16 sps:$4 sm:$0xff]   ;;  %v19227_v58 = vld [vmem:[#allocation19 + $0x7e8] ss:$16 sps:$4 sm:$0xff]  }
 0xda2   :  { %v9293_v63 = vpop.f32.mrb[152].mxu0 }
 0xda3   :  { %v9295_v24 = vpop.f32.mrb[153].mxu0 }
 0xda4   :  { %v9297_v5 = vpop.f32.mrb[154].mxu0 }
 0xda5   :  { %v9386_v55 = vpack.c.bf16 %v9297_v5, %v9293_v63  ;;  %v9299_v18 = vpop.f32.mrb[155].mxu0  ;;  %v19232_v63 = vld [vmem:[#allocation19 + $0x804] ss:$16 sps:$4 sm:$0xff]  }
 0xda6   :  { %v9387_v16 = vpack.c.bf16 %v9299_v18, %v9295_v24  ;;  %v19235_v24 = vld [vmem:[#allocation19 + $0x80c] ss:$16 sps:$4 sm:$0xff]   ;;  %v19230_v18 = vld [vmem:[#allocation19 + $0x800] ss:$16 sps:$4 sm:$0xff]  }
 0xda8   :  { %10384 = vmatprep.mubr.bf16.mxu1 %v9387_v16  ;;  %10513 = vmatprep.mubr.bf16.mxu0 %v9387_v16  ;;  %v19233_v16 = vld [vmem:[#allocation19 + $0x808] ss:$16 sps:$4 sm:$0xff]  }
 0xda9   :  { %10385 = vmatmul.mubr.bf16.vlgmr.msra.gmra.mrb[200].mxu1 %v9386_v55  ;;  %10514 = vmatmul.mubr.bf16.vlgmr.msra.gmra.mrb[160].mxu0 %v9386_v55 }
 0xdaa   :  { %10396 = vmatpush1.bf16.msra.mxu1 %v19182_v1  ;;  %10525 = vmatpush1.bf16.msra.mxu0 %v19185_v51  ;;  %v19238_v51 = vld [vmem:[#allocation19 + $0x824] ss:$16 sps:$4 sm:$0xff]  }
 0xdab   :  { %10397 = vmatprep.subr.bf16.mxu1 %v19190_v22  ;;  %10526 = vmatprep.subr.bf16.mxu0 %v19193_v23  ;;  %v19241_v22 = vld [vmem:[#allocation19 + $0x82c] ss:$16 sps:$4 sm:$0xff]  }
 0xdae   :  { %10398 = vmatpush1.bf16.msra.mxu1 %v19188_v31  ;;  %10527 = vmatpush1.bf16.msra.mxu0 %v19191_v59 }
 0xdaf   :  { %10399 = vmatprep.subr.bf16.mxu1 %v19196_v27  ;;  %10528 = vmatprep.subr.bf16.mxu0 %v19199_v32  ;;  %v19236_v27 = vld [vmem:[#allocation19 + $0x820] ss:$16 sps:$4 sm:$0xff]   ;;  %v19239_v32 = vld [vmem:[#allocation19 + $0x828] ss:$16 sps:$4 sm:$0xff]  }
 0xdb2   :  { %10400 = vmatpush1.bf16.msra.mxu1 %v19194_v39  ;;  %10529 = vmatpush1.bf16.msra.mxu0 %v19197_v3  ;;  %v19244_v39 = vld [vmem:[#allocation19 + $0x844] ss:$16 sps:$4 sm:$0xff]   ;;  %v19247_v3 = vld [vmem:[#allocation19 + $0x84c] ss:$16 sps:$4 sm:$0xff]  }
 0xdb3   :  { %10401 = vmatprep.subr.bf16.mxu1 %v19202_v19  ;;  %10530 = vmatprep.subr.bf16.mxu0 %v19205_v9  ;;  %v19242_v19 = vld [vmem:[#allocation19 + $0x840] ss:$16 sps:$4 sm:$0xff]   ;;  %v19245_v9 = vld [vmem:[#allocation19 + $0x848] ss:$16 sps:$4 sm:$0xff]  }
 0xdb6   :  { %10402 = vmatpush1.bf16.msra.mxu1 %v19200_v10  ;;  %10531 = vmatpush1.bf16.msra.mxu0 %v19203_v50  ;;  %v19250_v10 = vld [vmem:[#allocation19 + $0x864] ss:$16 sps:$4 sm:$0xff]   ;;  %v19253_v50 = vld [vmem:[#allocation19 + $0x86c] ss:$16 sps:$4 sm:$0xff]  }
 0xdb7   :  { %10403 = vmatprep.subr.bf16.mxu1 %v19208_v57  ;;  %10532 = vmatprep.subr.bf16.mxu0 %v19211_v14  ;;  %v19248_v57 = vld [vmem:[#allocation19 + $0x860] ss:$16 sps:$4 sm:$0xff]   ;;  %v19251_v14 = vld [vmem:[#allocation19 + $0x868] ss:$16 sps:$4 sm:$0xff]  }
 0xdba   :  { %10404 = vmatpush1.bf16.msra.mxu1 %v19206_v54  ;;  %10533 = vmatpush1.bf16.msra.mxu0 %v19209_v2  ;;  %v19256_v54 = vld [vmem:[#allocation19 + $0x884] ss:$16 sps:$4 sm:$0xff]   ;;  %v19259_v2 = vld [vmem:[#allocation19 + $0x88c] ss:$16 sps:$4 sm:$0xff]  }
 0xdbb   :  { %10405 = vmatprep.subr.bf16.mxu1 %v19214_v44  ;;  %10534 = vmatprep.subr.bf16.mxu0 %v19217_v41  ;;  %v19254_v44 = vld [vmem:[#allocation19 + $0x880] ss:$16 sps:$4 sm:$0xff]   ;;  %v19257_v41 = vld [vmem:[#allocation19 + $0x888] ss:$16 sps:$4 sm:$0xff]  }
 0xdbc   :  { %v9076_v26 = vpop.f32.mrb[192].mxu1  ;;  %v9379_v34 = vpop.f32.mrb[156].mxu0 }
 0xdbd   :  { %v17727_v11 = vpop.f32.mrb[193].mxu1  ;;  %v17735_v13 = vpop.f32.mrb[157].mxu0 }
 0xdbe   :  { %10406 = vmatpush1.bf16.msra.mxu1 %v19212_v8  ;;  %10535 = vmatpush1.bf16.msra.mxu0 %v19215_v43  ;;  %v9079_v47 = vpop.f32.mrb[194].mxu1  ;;  %v9382_v49 = vpop.f32.mrb[158].mxu0  ;;  %v19262_v8 = vld [vmem:[#allocation19 + $0x8a4] ss:$16 sps:$4 sm:$0xff]   ;;  %v19265_v43 = vld [vmem:[#allocation19 + $0x8ac] ss:$16 sps:$4 sm:$0xff]  }
 0xdbf   :  { %10407 = vmatprep.subr.bf16.mxu1 %v19220_v7  ;;  %10536 = vmatprep.subr.bf16.mxu0 %v19223_v52  ;;  %v21898_v42 = vpack.c.bf16 %v9079_v47, %v9076_v26  ;;  %v17728_v25 = vpop.f32.mrb[195].mxu1  ;;  %v21900_v48 = vpack.c.bf16 %v9382_v49, %v9379_v34  ;;  %v17736_v40 = vpop.f32.mrb[159].mxu0  ;;  %v19260_v7 = vld [vmem:[#allocation19 + $0x8a0] ss:$16 sps:$4 sm:$0xff]   ;;  %v19263_v52 = vld [vmem:[#allocation19 + $0x8a8] ss:$16 sps:$4 sm:$0xff]  }
 0xdc0   :  { %v19268_v26 = vld [vmem:[#allocation19 + $0x8c4] ss:$16 sps:$4 sm:$0xff]   ;;  %v19271_v34 = vld [vmem:[#allocation19 + $0x8cc] ss:$16 sps:$4 sm:$0xff]   ;;  %v19266_v11 = vld [vmem:[#allocation19 + $0x8c0] ss:$16 sps:$4 sm:$0xff]  }
 0xdc1   :  { %v19269_v13 = vld [vmem:[#allocation19 + $0x8c8] ss:$16 sps:$4 sm:$0xff]   ;;  %v19272_v47 = vld [vmem:[#allocation19 + $0x8e0] ss:$16 sps:$4 sm:$0xff]  }
 0xdc2   :  { %10408 = vmatpush1.bf16.msra.mxu1 %v19218_v15  ;;  %10537 = vmatpush1.bf16.msra.mxu0 %v19221_v28  ;;  %v19274_v15 = vld [vmem:[#allocation19 + $0x8e4] ss:$16 sps:$4 sm:$0xff]   ;;  %v19277_v28 = vld [vmem:[#allocation19 + $0x8ec] ss:$16 sps:$4 sm:$0xff]   ;;  %v19275_v49 = vld [vmem:[#allocation19 + $0x8e8] ss:$16 sps:$4 sm:$0xff]  }
 0xdc3   :  { %10409 = vmatprep.subr.bf16.mxu1 %v19226_v60  ;;  %10538 = vmatprep.subr.bf16.mxu0 %v19229_v30  ;;  %v19280_v60 = vld [vmem:[#allocation19 + $0x904] ss:$16 sps:$4 sm:$0xff]   ;;  %v19283_v30 = vld [vmem:[#allocation19 + $0x90c] ss:$16 sps:$4 sm:$0xff]   ;;  %v19278_v25 = vld [vmem:[#allocation19 + $0x900] ss:$16 sps:$4 sm:$0xff]  }
 0xdc4   :  { %v9336_v5 = vpop.f32.mrb[196].mxu1  ;;  %v19281_v40 = vld [vmem:[#allocation19 + $0x908] ss:$16 sps:$4 sm:$0xff]  }
 0xdc5   :  { %v9338_v55 = vpop.f32.mrb[197].mxu1 }
 0xdc6   :  { %10410 = vmatpush1.bf16.msra.mxu1 %v19224_v12  ;;  %10539 = vmatpush1.bf16.msra.mxu0 %v19227_v58  ;;  %v9340_v1 = vpop.f32.mrb[198].mxu1  ;;  %v19286_v12 = vld [vmem:[#allocation19 + $0x924] ss:$16 sps:$4 sm:$0xff]   ;;  %v19289_v58 = vld [vmem:[#allocation19 + $0x92c] ss:$16 sps:$4 sm:$0xff]  }
 0xdc7   :  { %10411 = vmatprep.subr.bf16.mxu1 %v19232_v63  ;;  %10540 = vmatprep.subr.bf16.mxu0 %v19235_v24  ;;  %v21902_v23 = vpack.c.bf16 %v9340_v1, %v9336_v5  ;;  %v9342_v31 = vpop.f32.mrb[199].mxu1  ;;  %v19284_v63 = vld [vmem:[#allocation19 + $0x920] ss:$16 sps:$4 sm:$0xff]   ;;  %v19287_v24 = vld [vmem:[#allocation19 + $0x928] ss:$16 sps:$4 sm:$0xff]  }
 0xdc8   :  { %v9389_v59 = vpack.c.bf16 %v9342_v31, %v9338_v55  ;;  %v19292_v5 = vld [vmem:[#allocation19 + $0x944] ss:$16 sps:$4 sm:$0xff]   ;;  %v19295_v55 = vld [vmem:[#allocation19 + $0x94c] ss:$16 sps:$4 sm:$0xff]  }
 0xdc9   :  { %v19298_v1 = vld [vmem:[#allocation19 + $0x964] ss:$16 sps:$4 sm:$0xff]  }
 0xdca   :  { %10412 = vmatpush1.bf16.msra.mxu1 %v19230_v18  ;;  %10541 = vmatpush1.bf16.msra.mxu0 %v19233_v16  ;;  %v19290_v18 = vld [vmem:[#allocation19 + $0x940] ss:$16 sps:$4 sm:$0xff]   ;;  %v19293_v16 = vld [vmem:[#allocation19 + $0x948] ss:$16 sps:$4 sm:$0xff]   ;;  %v19304_v31 = vld [vmem:[#allocation19 + $0x984] ss:$16 sps:$4 sm:$0xff]  }
 0xdcb   :  { %10413 = vmatprep.subr.bf16.mxu1 %v19238_v51  ;;  %10542 = vmatprep.subr.bf16.mxu0 %v19241_v22  ;;  %v19301_v51 = vld [vmem:[#allocation19 + $0x96c] ss:$16 sps:$4 sm:$0xff]   ;;  %v19296_v22 = vld [vmem:[#allocation19 + $0x960] ss:$16 sps:$4 sm:$0xff]  }
 0xdcc   :  { %10427 = vmatprep.mubr.bf16.mxu1 %v9389_v59  ;;  %10556 = vmatprep.mubr.bf16.mxu0 %v9389_v59  ;;  %v19307_v59 = vld [vmem:[#allocation19 + $0x98c] ss:$16 sps:$4 sm:$0xff]  }
 0xdce   :  { %10414 = vmatpush1.bf16.msra.mxu1 %v19236_v27  ;;  %10543 = vmatpush1.bf16.msra.mxu0 %v19239_v32  ;;  %v19302_v27 = vld [vmem:[#allocation19 + $0x980] ss:$16 sps:$4 sm:$0xff]   ;;  %v19305_v32 = vld [vmem:[#allocation19 + $0x988] ss:$16 sps:$4 sm:$0xff]  }
 0xdcf   :  { %10415 = vmatprep.subr.bf16.mxu1 %v19244_v39  ;;  %10544 = vmatprep.subr.bf16.mxu0 %v19247_v3  ;;  %v19310_v39 = vld [vmem:[#allocation19 + $0x9a4] ss:$16 sps:$4 sm:$0xff]   ;;  %v19313_v3 = vld [vmem:[#allocation19 + $0x9ac] ss:$16 sps:$4 sm:$0xff]  }
 0xdd2   :  { %10416 = vmatpush1.bf16.msra.mxu1 %v19242_v19  ;;  %10545 = vmatpush1.bf16.msra.mxu0 %v19245_v9  ;;  %v19308_v19 = vld [vmem:[#allocation19 + $0x9a0] ss:$16 sps:$4 sm:$0xff]   ;;  %v19311_v9 = vld [vmem:[#allocation19 + $0x9a8] ss:$16 sps:$4 sm:$0xff]  }
 0xdd3   :  { %10417 = vmatprep.subr.bf16.mxu1 %v19250_v10  ;;  %10546 = vmatprep.subr.bf16.mxu0 %v19253_v50  ;;  %v19316_v10 = vld [vmem:[#allocation19 + $0x9c4] ss:$16 sps:$4 sm:$0xff]   ;;  %v19319_v50 = vld [vmem:[#allocation19 + $0x9cc] ss:$16 sps:$4 sm:$0xff]  }
 0xdd6   :  { %10418 = vmatpush1.bf16.msra.mxu1 %v19248_v57  ;;  %10547 = vmatpush1.bf16.msra.mxu0 %v19251_v14  ;;  %v19314_v57 = vld [vmem:[#allocation19 + $0x9c0] ss:$16 sps:$4 sm:$0xff]   ;;  %v19317_v14 = vld [vmem:[#allocation19 + $0x9c8] ss:$16 sps:$4 sm:$0xff]  }
 0xdd7   :  { %10419 = vmatprep.subr.bf16.mxu1 %v19256_v54  ;;  %10548 = vmatprep.subr.bf16.mxu0 %v19259_v2  ;;  %v19322_v54 = vld [vmem:[#allocation19 + $0x9e4] ss:$16 sps:$4 sm:$0xff]   ;;  %v19325_v2 = vld [vmem:[#allocation19 + $0x9ec] ss:$16 sps:$4 sm:$0xff]  }
 0xdda   :  { %10420 = vmatpush1.bf16.msra.mxu1 %v19254_v44  ;;  %10549 = vmatpush1.bf16.msra.mxu0 %v19257_v41  ;;  %v19320_v44 = vld [vmem:[#allocation19 + $0x9e0] ss:$16 sps:$4 sm:$0xff]   ;;  %v19323_v41 = vld [vmem:[#allocation19 + $0x9e8] ss:$16 sps:$4 sm:$0xff]  }
 0xddb   :  { %10421 = vmatprep.subr.bf16.mxu1 %v19262_v8  ;;  %10550 = vmatprep.subr.bf16.mxu0 %v19265_v43  ;;  %v19328_v8 = vld [vmem:[#allocation19 + $0x4] ss:$16 sps:$4 sm:$0xff]   ;;  %v19331_v43 = vld [vmem:[#allocation19 + $0xc] ss:$16 sps:$4 sm:$0xff]  }
 0xdde   :  { %10422 = vmatpush1.bf16.msra.mxu1 %v19260_v7  ;;  %10551 = vmatpush1.bf16.msra.mxu0 %v19263_v52  ;;  %v19326_v7 = vld [vmem:[#allocation19] ss:$16 sps:$4 sm:$0xff]   ;;  %v19329_v52 = vld [vmem:[#allocation19 + $0x8] ss:$16 sps:$4 sm:$0xff]  }
 0xddf   :  { %10423 = vmatprep.subr.bf16.mxu1 %v19268_v26  ;;  %10552 = vmatprep.subr.bf16.mxu0 %v19271_v34  ;;  %v19334_v26 = vld [vmem:[#allocation19 + $0x24] ss:$16 sps:$4 sm:$0xff]   ;;  %v19337_v34 = vld [vmem:[#allocation19 + $0x2c] ss:$16 sps:$4 sm:$0xff]  }
 0xde2   :  { %10424 = vmatpush1.bf16.msra.mxu1 %v19266_v11  ;;  %10553 = vmatpush1.bf16.msra.mxu0 %v19269_v13  ;;  %v19332_v11 = vld [vmem:[#allocation19 + $0x20] ss:$16 sps:$4 sm:$0xff]   ;;  %v19335_v13 = vld [vmem:[#allocation19 + $0x28] ss:$16 sps:$4 sm:$0xff]  }
 0xde3   :  { %10425 = vmatprep.subr.bf16.mxu1 %v19274_v15  ;;  %10554 = vmatprep.subr.bf16.mxu0 %v19277_v28  ;;  %v19340_v15 = vld [vmem:[#allocation19 + $0x44] ss:$16 sps:$4 sm:$0xff]   ;;  %v19343_v28 = vld [vmem:[#allocation19 + $0x4c] ss:$16 sps:$4 sm:$0xff]  }
 0xde6   :  { %10426 = vmatpush1.bf16.msra.mxu1 %v19272_v47  ;;  %10555 = vmatpush1.bf16.msra.mxu0 %v19275_v49  ;;  %v19338_v47 = vld [vmem:[#allocation19 + $0x40] ss:$16 sps:$4 sm:$0xff]   ;;  %v19341_v49 = vld [vmem:[#allocation19 + $0x48] ss:$16 sps:$4 sm:$0xff]  }
 0xde7   :  { %10438 = vmatprep.subr.bf16.mxu1 %v19280_v60  ;;  %10567 = vmatprep.subr.bf16.mxu0 %v19283_v30  ;;  %v19346_v60 = vld [vmem:[#allocation19 + $0x64] ss:$16 sps:$4 sm:$0xff]   ;;  %v19344_v30 = vld [vmem:[#allocation19 + $0x60] ss:$16 sps:$4 sm:$0xff]  }
 0xde9   :  { %10428 = vmatmul.mubr.bf16.vlgmr.msra.gmra.mrb[200].mxu1 %v21902_v23  ;;  %10557 = vmatmul.mubr.bf16.vlgmr.msra.gmra.mrb[160].mxu0 %v21902_v23  ;;  %v19299_v23 = vld [vmem:[#allocation19 + $0x968] ss:$16 sps:$4 sm:$0xff]  }
 0xdea   :  { %10439 = vmatpush1.bf16.msra.mxu1 %v19278_v25  ;;  %10568 = vmatpush1.bf16.msra.mxu0 %v19281_v40  ;;  %v19347_v25 = vld [vmem:[#allocation19 + $0x68] ss:$16 sps:$4 sm:$0xff]   ;;  %v19352_v40 = vld [vmem:[#allocation19 + $0x84] ss:$16 sps:$4 sm:$0xff]  }
 0xdeb   :  { %10440 = vmatprep.subr.bf16.mxu1 %v19286_v12  ;;  %10569 = vmatprep.subr.bf16.mxu0 %v19289_v58  ;;  %v19350_v12 = vld [vmem:[#allocation19 + $0x80] ss:$16 sps:$4 sm:$0xff]   ;;  %v19353_v58 = vld [vmem:[#allocation19 + $0x88] ss:$16 sps:$4 sm:$0xff]  }
 0xdec   :  { %10470 = vmatprep.mubr.bf16.mxu1 %v20727_v29  ;;  %10599 = vmatprep.mubr.bf16.mxu0 %v20727_v29 }
 0xdee   :  { %10441 = vmatpush1.bf16.msra.mxu1 %v19284_v63  ;;  %10570 = vmatpush1.bf16.msra.mxu0 %v19287_v24  ;;  %v19358_v63 = vld [vmem:[#allocation19 + $0xa4] ss:$16 sps:$4 sm:$0xff]   ;;  %v19361_v24 = vld [vmem:[#allocation19 + $0xac] ss:$16 sps:$4 sm:$0xff]  }
 0xdef   :  { %10442 = vmatprep.subr.bf16.mxu1 %v19292_v5  ;;  %10571 = vmatprep.subr.bf16.mxu0 %v19295_v55  ;;  %v19356_v5 = vld [vmem:[#allocation19 + $0xa0] ss:$16 sps:$4 sm:$0xff]   ;;  %v19359_v55 = vld [vmem:[#allocation19 + $0xa8] ss:$16 sps:$4 sm:$0xff]  }
 0xdf2   :  { %10443 = vmatpush1.bf16.msra.mxu1 %v19290_v18  ;;  %10572 = vmatpush1.bf16.msra.mxu0 %v19293_v16  ;;  %v19364_v18 = vld [vmem:[#allocation19 + $0xc4] ss:$16 sps:$4 sm:$0xff]   ;;  %v19367_v16 = vld [vmem:[#allocation19 + $0xcc] ss:$16 sps:$4 sm:$0xff]  }
 0xdf3   :  { %10444 = vmatprep.subr.bf16.mxu1 %v19298_v1  ;;  %10573 = vmatprep.subr.bf16.mxu0 %v19301_v51  ;;  %v19362_v1 = vld [vmem:[#allocation19 + $0xc0] ss:$16 sps:$4 sm:$0xff]   ;;  %v19365_v51 = vld [vmem:[#allocation19 + $0xc8] ss:$16 sps:$4 sm:$0xff]  }
 0xdf6   :  { %10445 = vmatpush1.bf16.msra.mxu1 %v19296_v22  ;;  %10574 = vmatpush1.bf16.msra.mxu0 %v19299_v23  ;;  %v19370_v22 = vld [vmem:[#allocation19 + $0xe4] ss:$16 sps:$4 sm:$0xff]   ;;  %v19373_v23 = vld [vmem:[#allocation19 + $0xec] ss:$16 sps:$4 sm:$0xff]  }
 0xdf7   :  { %10446 = vmatprep.subr.bf16.mxu1 %v19304_v31  ;;  %10575 = vmatprep.subr.bf16.mxu0 %v19307_v59  ;;  %v19368_v31 = vld [vmem:[#allocation19 + $0xe0] ss:$16 sps:$4 sm:$0xff]   ;;  %v19371_v59 = vld [vmem:[#allocation19 + $0xe8] ss:$16 sps:$4 sm:$0xff]  }
 0xdfa   :  { %10447 = vmatpush1.bf16.msra.mxu1 %v19302_v27  ;;  %10576 = vmatpush1.bf16.msra.mxu0 %v19305_v32  ;;  %v19376_v27 = vld [vmem:[#allocation19 + $0x104] ss:$16 sps:$4 sm:$0xff]   ;;  %v19379_v32 = vld [vmem:[#allocation19 + $0x10c] ss:$16 sps:$4 sm:$0xff]  }
 0xdfb   :  { %10448 = vmatprep.subr.bf16.mxu1 %v19310_v39  ;;  %10577 = vmatprep.subr.bf16.mxu0 %v19313_v3  ;;  %v19374_v39 = vld [vmem:[#allocation19 + $0x100] ss:$16 sps:$4 sm:$0xff]   ;;  %v19377_v3 = vld [vmem:[#allocation19 + $0x108] ss:$16 sps:$4 sm:$0xff]  }
 0xdfe   :  { %10449 = vmatpush1.bf16.msra.mxu1 %v19308_v19  ;;  %10578 = vmatpush1.bf16.msra.mxu0 %v19311_v9  ;;  %v19382_v19 = vld [vmem:[#allocation19 + $0x124] ss:$16 sps:$4 sm:$0xff]   ;;  %v19385_v9 = vld [vmem:[#allocation19 + $0x12c] ss:$16 sps:$4 sm:$0xff]  }
 0xdff   :  { %10450 = vmatprep.subr.bf16.mxu1 %v19316_v10  ;;  %10579 = vmatprep.subr.bf16.mxu0 %v19319_v50  ;;  %v19380_v10 = vld [vmem:[#allocation19 + $0x120] ss:$16 sps:$4 sm:$0xff]   ;;  %v19383_v50 = vld [vmem:[#allocation19 + $0x128] ss:$16 sps:$4 sm:$0xff]  }
 0xe02   :  { %10451 = vmatpush1.bf16.msra.mxu1 %v19314_v57  ;;  %10580 = vmatpush1.bf16.msra.mxu0 %v19317_v14  ;;  %v19388_v57 = vld [vmem:[#allocation19 + $0x144] ss:$16 sps:$4 sm:$0xff]   ;;  %v19391_v14 = vld [vmem:[#allocation19 + $0x14c] ss:$16 sps:$4 sm:$0xff]  }
 0xe03   :  { %10452 = vmatprep.subr.bf16.mxu1 %v19322_v54  ;;  %10581 = vmatprep.subr.bf16.mxu0 %v19325_v2  ;;  %v19386_v54 = vld [vmem:[#allocation19 + $0x140] ss:$16 sps:$4 sm:$0xff]   ;;  %v19389_v2 = vld [vmem:[#allocation19 + $0x148] ss:$16 sps:$4 sm:$0xff]  }
 0xe06   :  { %10453 = vmatpush1.bf16.msra.mxu1 %v19320_v44  ;;  %10582 = vmatpush1.bf16.msra.mxu0 %v19323_v41  ;;  %v19394_v44 = vld [vmem:[#allocation19 + $0x164] ss:$16 sps:$4 sm:$0xff]   ;;  %v19397_v41 = vld [vmem:[#allocation19 + $0x16c] ss:$16 sps:$4 sm:$0xff]  }
 0xe07   :  { %11410 = vmatprep.subr.bf16.mxu1 %v19328_v8  ;;  %11539 = vmatprep.subr.bf16.mxu0 %v19331_v43  ;;  %v19392_v8 = vld [vmem:[#allocation19 + $0x160] ss:$16 sps:$4 sm:$0xff]   ;;  %v19395_v43 = vld [vmem:[#allocation19 + $0x168] ss:$16 sps:$4 sm:$0xff]  }
 0xe09   :  { %10471 = vmatmul.mubr.bf16.vlgmr.msra.gmra.mrb[200].mxu1 %v21900_v48  ;;  %10600 = vmatmul.mubr.bf16.vlgmr.msra.gmra.mrb[160].mxu0 %v21900_v48  ;;  %v19349_v48 = vld [vmem:[#allocation19 + $0x6c] ss:$16 sps:$4 sm:$0xff]  }
 0xe0a   :  { %11411 = vmatpush1.bf16.msra.mxu1 %v19326_v7  ;;  %11442 = vmatprep.mubr.bf16.mxu1 %v21896_v46  ;;  %v19400_v7 = vld [vmem:[#allocation19 + $0x184] ss:$16 sps:$4 sm:$0xff]  }
 0xe0b   :  { %11540 = vmatpush1.bf16.msra.mxu0 %v19329_v52  ;;  %11571 = vmatprep.mubr.bf16.mxu0 %v21896_v46  ;;  %v19355_v46 = vld [vmem:[#allocation19 + $0x8c] ss:$16 sps:$4 sm:$0xff]  }
 0xe0c   :  { %11412 = vmatprep.subr.bf16.mxu1 %v19334_v26  ;;  %11541 = vmatprep.subr.bf16.mxu0 %v19337_v34  ;;  %v19403_v52 = vld [vmem:[#allocation19 + $0x18c] ss:$16 sps:$4 sm:$0xff]   ;;  %v19398_v26 = vld [vmem:[#allocation19 + $0x180] ss:$16 sps:$4 sm:$0xff]   ;;  %v19401_v34 = vld [vmem:[#allocation19 + $0x188] ss:$16 sps:$4 sm:$0xff]  }
 0xe0e   :  { %11413 = vmatpush1.bf16.msra.mxu1 %v19332_v11  ;;  %v19406_v11 = vld [vmem:[#allocation19 + $0x1a4] ss:$16 sps:$4 sm:$0xff]  }
 0xe0f   :  { %11542 = vmatpush1.bf16.msra.mxu0 %v19335_v13  ;;  %11414 = vmatprep.subr.bf16.mxu1 %v19340_v15  ;;  %v19409_v13 = vld [vmem:[#allocation19 + $0x1ac] ss:$16 sps:$4 sm:$0xff]   ;;  %v19404_v15 = vld [vmem:[#allocation19 + $0x1a0] ss:$16 sps:$4 sm:$0xff]  }
 0xe10   :  { %11543 = vmatprep.subr.bf16.mxu0 %v19343_v28  ;;  %v19407_v28 = vld [vmem:[#allocation19 + $0x1a8] ss:$16 sps:$4 sm:$0xff]  }
 0xe12   :  { %11415 = vmatpush1.bf16.msra.mxu1 %v19338_v47  ;;  %v19412_v47 = vld [vmem:[#allocation19 + $0x1c4] ss:$16 sps:$4 sm:$0xff]  }
 0xe13   :  { %11544 = vmatpush1.bf16.msra.mxu0 %v19341_v49  ;;  %11416 = vmatprep.subr.bf16.mxu1 %v19346_v60  ;;  %v19415_v49 = vld [vmem:[#allocation19 + $0x1cc] ss:$16 sps:$4 sm:$0xff]   ;;  %v19410_v60 = vld [vmem:[#allocation19 + $0x1c0] ss:$16 sps:$4 sm:$0xff]  }
 0xe14   :  { %11545 = vmatprep.subr.bf16.mxu0 %v19349_v48  ;;  %v19413_v48 = vld [vmem:[#allocation19 + $0x1c8] ss:$16 sps:$4 sm:$0xff]  }
 0xe16   :  { %11417 = vmatpush1.bf16.msra.mxu1 %v19344_v30  ;;  %v19418_v30 = vld [vmem:[#allocation19 + $0x1e4] ss:$16 sps:$4 sm:$0xff]  }
 0xe17   :  { %11546 = vmatpush1.bf16.msra.mxu0 %v19347_v25  ;;  %11418 = vmatprep.subr.bf16.mxu1 %v19352_v40  ;;  %v19421_v25 = vld [vmem:[#allocation19 + $0x1ec] ss:$16 sps:$4 sm:$0xff]   ;;  %v19416_v40 = vld [vmem:[#allocation19 + $0x1e0] ss:$16 sps:$4 sm:$0xff]  }
 0xe18   :  { %11547 = vmatprep.subr.bf16.mxu0 %v19355_v46  ;;  %v19419_v46 = vld [vmem:[#allocation19 + $0x1e8] ss:$16 sps:$4 sm:$0xff]  }
 0xe1a   :  { %11419 = vmatpush1.bf16.msra.mxu1 %v19350_v12  ;;  %v19424_v12 = vld [vmem:[#allocation19 + $0x204] ss:$16 sps:$4 sm:$0xff]  }
 0xe1b   :  { %11548 = vmatpush1.bf16.msra.mxu0 %v19353_v58  ;;  %11420 = vmatprep.subr.bf16.mxu1 %v19358_v63  ;;  %v19427_v58 = vld [vmem:[#allocation19 + $0x20c] ss:$16 sps:$4 sm:$0xff]   ;;  %v19422_v63 = vld [vmem:[#allocation19 + $0x200] ss:$16 sps:$4 sm:$0xff]  }
 0xe1c   :  { %11549 = vmatprep.subr.bf16.mxu0 %v19361_v24  ;;  %v19425_v24 = vld [vmem:[#allocation19 + $0x208] ss:$16 sps:$4 sm:$0xff]  }
 0xe1e   :  { %11421 = vmatpush1.bf16.msra.mxu1 %v19356_v5  ;;  %v19430_v5 = vld [vmem:[#allocation19 + $0x224] ss:$16 sps:$4 sm:$0xff]  }
 0xe1f   :  { %11550 = vmatpush1.bf16.msra.mxu0 %v19359_v55  ;;  %11422 = vmatprep.subr.bf16.mxu1 %v19364_v18  ;;  %v19433_v55 = vld [vmem:[#allocation19 + $0x22c] ss:$16 sps:$4 sm:$0xff]   ;;  %v19428_v18 = vld [vmem:[#allocation19 + $0x220] ss:$16 sps:$4 sm:$0xff]  }
 0xe20   :  { %11551 = vmatprep.subr.bf16.mxu0 %v19367_v16  ;;  %v19431_v16 = vld [vmem:[#allocation19 + $0x228] ss:$16 sps:$4 sm:$0xff]  }
 0xe22   :  { %11423 = vmatpush1.bf16.msra.mxu1 %v19362_v1  ;;  %v19436_v1 = vld [vmem:[#allocation19 + $0x244] ss:$16 sps:$4 sm:$0xff]  }
 0xe23   :  { %11552 = vmatpush1.bf16.msra.mxu0 %v19365_v51  ;;  %11424 = vmatprep.subr.bf16.mxu1 %v19370_v22  ;;  %v19439_v51 = vld [vmem:[#allocation19 + $0x24c] ss:$16 sps:$4 sm:$0xff]   ;;  %v19434_v22 = vld [vmem:[#allocation19 + $0x240] ss:$16 sps:$4 sm:$0xff]  }
 0xe24   :  { %11553 = vmatprep.subr.bf16.mxu0 %v19373_v23  ;;  %v19437_v23 = vld [vmem:[#allocation19 + $0x248] ss:$16 sps:$4 sm:$0xff]  }
 0xe26   :  { %11425 = vmatpush1.bf16.msra.mxu1 %v19368_v31  ;;  %v19442_v31 = vld [vmem:[#allocation19 + $0x264] ss:$16 sps:$4 sm:$0xff]  }
 0xe27   :  { %11554 = vmatpush1.bf16.msra.mxu0 %v19371_v59  ;;  %11426 = vmatprep.subr.bf16.mxu1 %v19376_v27  ;;  %v19440_v59 = vld [vmem:[#allocation19 + $0x260] ss:$16 sps:$4 sm:$0xff]   ;;  %v19443_v27 = vld [vmem:[#allocation19 + $0x268] ss:$16 sps:$4 sm:$0xff]  }
 0xe28   :  { %11555 = vmatprep.subr.bf16.mxu0 %v19379_v32  ;;  %v19448_v32 = vld [vmem:[#allocation19 + $0x284] ss:$16 sps:$4 sm:$0xff]  }
 0xe2a   :  { %11427 = vmatpush1.bf16.msra.mxu1 %v19374_v39  ;;  %v19451_v39 = vld [vmem:[#allocation19 + $0x28c] ss:$16 sps:$4 sm:$0xff]  }
 0xe2b   :  { %11556 = vmatpush1.bf16.msra.mxu0 %v19377_v3  ;;  %11428 = vmatprep.subr.bf16.mxu1 %v19382_v19  ;;  %v19449_v3 = vld [vmem:[#allocation19 + $0x288] ss:$16 sps:$4 sm:$0xff]   ;;  %v19454_v19 = vld [vmem:[#allocation19 + $0x2a4] ss:$16 sps:$4 sm:$0xff]  }
 0xe2c   :  { %11557 = vmatprep.subr.bf16.mxu0 %v19385_v9  ;;  %v19457_v9 = vld [vmem:[#allocation19 + $0x2ac] ss:$16 sps:$4 sm:$0xff]  }
 0xe2e   :  { %11429 = vmatpush1.bf16.msra.mxu1 %v19380_v10  ;;  %v19452_v10 = vld [vmem:[#allocation19 + $0x2a0] ss:$16 sps:$4 sm:$0xff]  }
 0xe2f   :  { %11558 = vmatpush1.bf16.msra.mxu0 %v19383_v50  ;;  %11430 = vmatprep.subr.bf16.mxu1 %v19388_v57  ;;  %v19455_v50 = vld [vmem:[#allocation19 + $0x2a8] ss:$16 sps:$4 sm:$0xff]   ;;  %v19460_v57 = vld [vmem:[#allocation19 + $0x2c4] ss:$16 sps:$4 sm:$0xff]  }
 0xe30   :  { %11559 = vmatprep.subr.bf16.mxu0 %v19391_v14  ;;  %v19463_v14 = vld [vmem:[#allocation19 + $0x2cc] ss:$16 sps:$4 sm:$0xff]  }
 0xe32   :  { %11431 = vmatpush1.bf16.msra.mxu1 %v19386_v54  ;;  %v19458_v54 = vld [vmem:[#allocation19 + $0x2c0] ss:$16 sps:$4 sm:$0xff]  }
 0xe33   :  { %11560 = vmatpush1.bf16.msra.mxu0 %v19389_v2  ;;  %11432 = vmatprep.subr.bf16.mxu1 %v19394_v44  ;;  %v19461_v2 = vld [vmem:[#allocation19 + $0x2c8] ss:$16 sps:$4 sm:$0xff]   ;;  %v19466_v44 = vld [vmem:[#allocation19 + $0x2e4] ss:$16 sps:$4 sm:$0xff]  }
 0xe34   :  { %11561 = vmatprep.subr.bf16.mxu0 %v19397_v41  ;;  %v19469_v41 = vld [vmem:[#allocation19 + $0x2ec] ss:$16 sps:$4 sm:$0xff]  }
 0xe36   :  { %11433 = vmatpush1.bf16.msra.mxu1 %v19392_v8  ;;  %v19464_v8 = vld [vmem:[#allocation19 + $0x2e0] ss:$16 sps:$4 sm:$0xff]  }
 0xe37   :  { %11562 = vmatpush1.bf16.msra.mxu0 %v19395_v43  ;;  %11434 = vmatprep.subr.bf16.mxu1 %v19400_v7  ;;  %v19467_v43 = vld [vmem:[#allocation19 + $0x2e8] ss:$16 sps:$4 sm:$0xff]   ;;  %v19472_v7 = vld [vmem:[#allocation19 + $0x304] ss:$16 sps:$4 sm:$0xff]  }
 0xe38   :  { %11563 = vmatprep.subr.bf16.mxu0 %v19403_v52  ;;  %v19475_v52 = vld [vmem:[#allocation19 + $0x30c] ss:$16 sps:$4 sm:$0xff]  }
 0xe3a   :  { %11435 = vmatpush1.bf16.msra.mxu1 %v19398_v26  ;;  %v19470_v26 = vld [vmem:[#allocation19 + $0x300] ss:$16 sps:$4 sm:$0xff]  }
 0xe3b   :  { %11564 = vmatpush1.bf16.msra.mxu0 %v19401_v34  ;;  %11436 = vmatprep.subr.bf16.mxu1 %v19406_v11  ;;  %v19473_v34 = vld [vmem:[#allocation19 + $0x308] ss:$16 sps:$4 sm:$0xff]   ;;  %v19478_v11 = vld [vmem:[#allocation19 + $0x324] ss:$16 sps:$4 sm:$0xff]  }
 0xe3c   :  { %11565 = vmatprep.subr.bf16.mxu0 %v19409_v13  ;;  %v19481_v13 = vld [vmem:[#allocation19 + $0x32c] ss:$16 sps:$4 sm:$0xff]  }
 0xe3e   :  { %11437 = vmatpush1.bf16.msra.mxu1 %v19404_v15  ;;  %v19476_v15 = vld [vmem:[#allocation19 + $0x320] ss:$16 sps:$4 sm:$0xff]  }
 0xe3f   :  { %11566 = vmatpush1.bf16.msra.mxu0 %v19407_v28  ;;  %11438 = vmatprep.subr.bf16.mxu1 %v19412_v47  ;;  %v19479_v28 = vld [vmem:[#allocation19 + $0x328] ss:$16 sps:$4 sm:$0xff]   ;;  %v19484_v47 = vld [vmem:[#allocation19 + $0x344] ss:$16 sps:$4 sm:$0xff]  }
 0xe40   :  { %11567 = vmatprep.subr.bf16.mxu0 %v19415_v49  ;;  %v19487_v49 = vld [vmem:[#allocation19 + $0x34c] ss:$16 sps:$4 sm:$0xff]  }
 0xe42   :  { %11439 = vmatpush1.bf16.msra.mxu1 %v19410_v60  ;;  %v19482_v60 = vld [vmem:[#allocation19 + $0x340] ss:$16 sps:$4 sm:$0xff]  }
 0xe43   :  { %11568 = vmatpush1.bf16.msra.mxu0 %v19413_v48  ;;  %11440 = vmatprep.subr.bf16.mxu1 %v19418_v30  ;;  %v19485_v48 = vld [vmem:[#allocation19 + $0x348] ss:$16 sps:$4 sm:$0xff]   ;;  %v19490_v30 = vld [vmem:[#allocation19 + $0x364] ss:$16 sps:$4 sm:$0xff]  }
 0xe44   :  { %11569 = vmatprep.subr.bf16.mxu0 %v19421_v25  ;;  %v19493_v25 = vld [vmem:[#allocation19 + $0x36c] ss:$16 sps:$4 sm:$0xff]  }
 0xe46   :  { %11441 = vmatpush1.bf16.msra.mxu1 %v19416_v40  ;;  %v19488_v40 = vld [vmem:[#allocation19 + $0x360] ss:$16 sps:$4 sm:$0xff]  }
 0xe47   :  { %11570 = vmatpush1.bf16.msra.mxu0 %v19419_v46  ;;  %11453 = vmatprep.subr.bf16.mxu1 %v19424_v12  ;;  %v19491_v46 = vld [vmem:[#allocation19 + $0x368] ss:$16 sps:$4 sm:$0xff]   ;;  %v19496_v12 = vld [vmem:[#allocation19 + $0x384] ss:$16 sps:$4 sm:$0xff]  }
 0xe48   :  { %11582 = vmatprep.subr.bf16.mxu0 %v19427_v58  ;;  %v19499_v58 = vld [vmem:[#allocation19 + $0x38c] ss:$16 sps:$4 sm:$0xff]  }
 0xe49   :  { %11443 = vmatmul.mubr.bf16.vlgmr.msra.gmra.mrb[200].mxu1 %v21892_v53 }
 0xe4a   :  { %11572 = vmatmul.mubr.bf16.vlgmr.msra.gmra.mrb[160].mxu0 %v21892_v53  ;;  %11454 = vmatpush1.bf16.msra.mxu1 %v19422_v63  ;;  %v19445_v53 = vld [vmem:[#allocation19 + $0x26c] ss:$16 sps:$4 sm:$0xff]   ;;  %v19494_v63 = vld [vmem:[#allocation19 + $0x380] ss:$16 sps:$4 sm:$0xff]  }
 0xe4b   :  { %11485 = vmatprep.mubr.bf16.mxu1 %v21894_v35  ;;  %11583 = vmatpush1.bf16.msra.mxu0 %v19425_v24  ;;  %v19497_v24 = vld [vmem:[#allocation19 + $0x388] ss:$16 sps:$4 sm:$0xff]  }
 0xe4c   :  { %11614 = vmatprep.mubr.bf16.mxu0 %v21894_v35  ;;  %11455 = vmatprep.subr.bf16.mxu1 %v19430_v5  ;;  %v19446_v35 = vld [vmem:[#allocation19 + $0x280] ss:$16 sps:$4 sm:$0xff]   ;;  %v19502_v5 = vld [vmem:[#allocation19 + $0x3a4] ss:$16 sps:$4 sm:$0xff]  }
 0xe4d   :  { %11584 = vmatprep.subr.bf16.mxu0 %v19433_v55  ;;  %v19505_v55 = vld [vmem:[#allocation19 + $0x3ac] ss:$16 sps:$4 sm:$0xff]  }
 0xe4e   :  { %11456 = vmatpush1.bf16.msra.mxu1 %v19428_v18  ;;  %v19500_v18 = vld [vmem:[#allocation19 + $0x3a0] ss:$16 sps:$4 sm:$0xff]  }
 0xe4f   :  { %11585 = vmatpush1.bf16.msra.mxu0 %v19431_v16  ;;  %11457 = vmatprep.subr.bf16.mxu1 %v19436_v1  ;;  %v19503_v16 = vld [vmem:[#allocation19 + $0x3a8] ss:$16 sps:$4 sm:$0xff]   ;;  %v19508_v1 = vld [vmem:[#allocation19 + $0x3c4] ss:$16 sps:$4 sm:$0xff]  }
 0xe50   :  { %11586 = vmatprep.subr.bf16.mxu0 %v19439_v51  ;;  %v19511_v51 = vld [vmem:[#allocation19 + $0x3cc] ss:$16 sps:$4 sm:$0xff]  }
 0xe52   :  { %11458 = vmatpush1.bf16.msra.mxu1 %v19434_v22  ;;  %v19506_v22 = vld [vmem:[#allocation19 + $0x3c0] ss:$16 sps:$4 sm:$0xff]  }
 0xe53   :  { %11587 = vmatpush1.bf16.msra.mxu0 %v19437_v23  ;;  %11459 = vmatprep.subr.bf16.mxu1 %v19442_v31  ;;  %v19509_v23 = vld [vmem:[#allocation19 + $0x3c8] ss:$16 sps:$4 sm:$0xff]   ;;  %v19514_v31 = vld [vmem:[#allocation19 + $0x3e4] ss:$16 sps:$4 sm:$0xff]  }
 0xe54   :  { %11588 = vmatprep.subr.bf16.mxu0 %v19445_v53  ;;  %v19517_v53 = vld [vmem:[#allocation19 + $0x3ec] ss:$16 sps:$4 sm:$0xff]  }
 0xe56   :  { %11460 = vmatpush1.bf16.msra.mxu1 %v19440_v59  ;;  %v19512_v59 = vld [vmem:[#allocation19 + $0x3e0] ss:$16 sps:$4 sm:$0xff]  }
 0xe57   :  { %11589 = vmatpush1.bf16.msra.mxu0 %v19443_v27  ;;  %11461 = vmatprep.subr.bf16.mxu1 %v19448_v32  ;;  %v19515_v27 = vld [vmem:[#allocation19 + $0x3e8] ss:$16 sps:$4 sm:$0xff]   ;;  %v19520_v32 = vld [vmem:[#allocation19 + $0x404] ss:$16 sps:$4 sm:$0xff]  }
 0xe58   :  { %11590 = vmatprep.subr.bf16.mxu0 %v19451_v39  ;;  %v19523_v39 = vld [vmem:[#allocation19 + $0x40c] ss:$16 sps:$4 sm:$0xff]  }
 0xe5a   :  { %11462 = vmatpush1.bf16.msra.mxu1 %v19446_v35  ;;  %v19518_v35 = vld [vmem:[#allocation19 + $0x400] ss:$16 sps:$4 sm:$0xff]  }
 0xe5b   :  { %11591 = vmatpush1.bf16.msra.mxu0 %v19449_v3  ;;  %11463 = vmatprep.subr.bf16.mxu1 %v19454_v19  ;;  %v19521_v3 = vld [vmem:[#allocation19 + $0x408] ss:$16 sps:$4 sm:$0xff]   ;;  %v19526_v19 = vld [vmem:[#allocation19 + $0x424] ss:$16 sps:$4 sm:$0xff]  }
 0xe5c   :  { %11592 = vmatprep.subr.bf16.mxu0 %v19457_v9  ;;  %v19529_v9 = vld [vmem:[#allocation19 + $0x42c] ss:$16 sps:$4 sm:$0xff]  }
 0xe5e   :  { %11464 = vmatpush1.bf16.msra.mxu1 %v19452_v10  ;;  %v19524_v10 = vld [vmem:[#allocation19 + $0x420] ss:$16 sps:$4 sm:$0xff]  }
 0xe5f   :  { %11593 = vmatpush1.bf16.msra.mxu0 %v19455_v50  ;;  %11465 = vmatprep.subr.bf16.mxu1 %v19460_v57  ;;  %v19527_v50 = vld [vmem:[#allocation19 + $0x428] ss:$16 sps:$4 sm:$0xff]   ;;  %v19532_v57 = vld [vmem:[#allocation19 + $0x444] ss:$16 sps:$4 sm:$0xff]  }
 0xe60   :  { %11594 = vmatprep.subr.bf16.mxu0 %v19463_v14  ;;  %v19535_v14 = vld [vmem:[#allocation19 + $0x44c] ss:$16 sps:$4 sm:$0xff]  }
 0xe62   :  { %11466 = vmatpush1.bf16.msra.mxu1 %v19458_v54  ;;  %v19530_v54 = vld [vmem:[#allocation19 + $0x440] ss:$16 sps:$4 sm:$0xff]  }
 0xe63   :  { %11595 = vmatpush1.bf16.msra.mxu0 %v19461_v2  ;;  %11467 = vmatprep.subr.bf16.mxu1 %v19466_v44  ;;  %v19533_v2 = vld [vmem:[#allocation19 + $0x448] ss:$16 sps:$4 sm:$0xff]   ;;  %v19538_v44 = vld [vmem:[#allocation19 + $0x464] ss:$16 sps:$4 sm:$0xff]  }
 0xe64   :  { %11596 = vmatprep.subr.bf16.mxu0 %v19469_v41  ;;  %v19536_v41 = vld [vmem:[#allocation19 + $0x460] ss:$16 sps:$4 sm:$0xff]  }
 0xe66   :  { %11468 = vmatpush1.bf16.msra.mxu1 %v19464_v8  ;;  %v19539_v8 = vld [vmem:[#allocation19 + $0x468] ss:$16 sps:$4 sm:$0xff]  }
 0xe67   :  { %11597 = vmatpush1.bf16.msra.mxu0 %v19467_v43  ;;  %11469 = vmatprep.subr.bf16.mxu1 %v19472_v7  ;;  %v19544_v43 = vld [vmem:[#allocation19 + $0x484] ss:$16 sps:$4 sm:$0xff]   ;;  %v19547_v7 = vld [vmem:[#allocation19 + $0x48c] ss:$16 sps:$4 sm:$0xff]  }
 0xe68   :  { %11598 = vmatprep.subr.bf16.mxu0 %v19475_v52  ;;  %v19542_v52 = vld [vmem:[#allocation19 + $0x480] ss:$16 sps:$4 sm:$0xff]  }
 0xe6a   :  { %11470 = vmatpush1.bf16.msra.mxu1 %v19470_v26  ;;  %v19545_v26 = vld [vmem:[#allocation19 + $0x488] ss:$16 sps:$4 sm:$0xff]  }
 0xe6b   :  { %11599 = vmatpush1.bf16.msra.mxu0 %v19473_v34  ;;  %11471 = vmatprep.subr.bf16.mxu1 %v19478_v11  ;;  %v19550_v34 = vld [vmem:[#allocation19 + $0x4a4] ss:$16 sps:$4 sm:$0xff]   ;;  %v19553_v11 = vld [vmem:[#allocation19 + $0x4ac] ss:$16 sps:$4 sm:$0xff]  }
 0xe6c   :  { %11600 = vmatprep.subr.bf16.mxu0 %v19481_v13  ;;  %v19548_v13 = vld [vmem:[#allocation19 + $0x4a0] ss:$16 sps:$4 sm:$0xff]  }
 0xe6e   :  { %11472 = vmatpush1.bf16.msra.mxu1 %v19476_v15  ;;  %v19551_v15 = vld [vmem:[#allocation19 + $0x4a8] ss:$16 sps:$4 sm:$0xff]  }
 0xe6f   :  { %11601 = vmatpush1.bf16.msra.mxu0 %v19479_v28  ;;  %11473 = vmatprep.subr.bf16.mxu1 %v19484_v47  ;;  %v19556_v28 = vld [vmem:[#allocation19 + $0x4c4] ss:$16 sps:$4 sm:$0xff]   ;;  %v19559_v47 = vld [vmem:[#allocation19 + $0x4cc] ss:$16 sps:$4 sm:$0xff]  }
 0xe70   :  { %11602 = vmatprep.subr.bf16.mxu0 %v19487_v49  ;;  %v19554_v49 = vld [vmem:[#allocation19 + $0x4c0] ss:$16 sps:$4 sm:$0xff]  }
 0xe72   :  { %11474 = vmatpush1.bf16.msra.mxu1 %v19482_v60  ;;  %v19557_v60 = vld [vmem:[#allocation19 + $0x4c8] ss:$16 sps:$4 sm:$0xff]  }
 0xe73   :  { %11603 = vmatpush1.bf16.msra.mxu0 %v19485_v48  ;;  %11475 = vmatprep.subr.bf16.mxu1 %v19490_v30  ;;  %v19562_v48 = vld [vmem:[#allocation19 + $0x4e4] ss:$16 sps:$4 sm:$0xff]   ;;  %v19565_v30 = vld [vmem:[#allocation19 + $0x4ec] ss:$16 sps:$4 sm:$0xff]  }
 0xe74   :  { %11604 = vmatprep.subr.bf16.mxu0 %v19493_v25  ;;  %v19560_v25 = vld [vmem:[#allocation19 + $0x4e0] ss:$16 sps:$4 sm:$0xff]  }
 0xe76   :  { %11476 = vmatpush1.bf16.msra.mxu1 %v19488_v40  ;;  %v19563_v40 = vld [vmem:[#allocation19 + $0x4e8] ss:$16 sps:$4 sm:$0xff]  }
 0xe77   :  { %11605 = vmatpush1.bf16.msra.mxu0 %v19491_v46  ;;  %11477 = vmatprep.subr.bf16.mxu1 %v19496_v12  ;;  %v19572_v46 = vld [vmem:[#allocation19 + $0xa0c] ss:$16 sps:$4 sm:$0xff]   ;;  %v19573_v12 = vld [vmem:[#allocation19 + $0xa20] ss:$16 sps:$4 sm:$0xff]  }
 0xe78   :  { %11606 = vmatprep.subr.bf16.mxu0 %v19499_v58  ;;  %v19588_v58 = vld [vmem:[#allocation19 + $0xa68] ss:$16 sps:$4 sm:$0xff]  }
 0xe7a   :  { %11478 = vmatpush1.bf16.msra.mxu1 %v19494_v63  ;;  %v19596_v63 = vld [vmem:[#allocation19 + $0xa8c] ss:$16 sps:$4 sm:$0xff]  }
 0xe7b   :  { %11607 = vmatpush1.bf16.msra.mxu0 %v19497_v24  ;;  %11479 = vmatprep.subr.bf16.mxu1 %v19502_v5  ;;  %v19579_v24 = vld [vmem:[#allocation19 + $0xa40] ss:$16 sps:$4 sm:$0xff]   ;;  %v19594_v5 = vld [vmem:[#allocation19 + $0xa88] ss:$16 sps:$4 sm:$0xff]  }
 0xe7c   :  { %11608 = vmatprep.subr.bf16.mxu0 %v19505_v55  ;;  %v19602_v55 = vld [vmem:[#allocation19 + $0xaac] ss:$16 sps:$4 sm:$0xff]  }
 0xe7e   :  { %11480 = vmatpush1.bf16.msra.mxu1 %v19500_v18  ;;  %v19585_v18 = vld [vmem:[#allocation19 + $0xa60] ss:$16 sps:$4 sm:$0xff]  }
 0xe7f   :  { %11609 = vmatpush1.bf16.msra.mxu0 %v19503_v16  ;;  %11481 = vmatprep.subr.bf16.mxu1 %v19508_v1  ;;  %v19593_v16 = vld [vmem:[#allocation19 + $0xa84] ss:$16 sps:$4 sm:$0xff]   ;;  %v19600_v1 = vld [vmem:[#allocation19 + $0xaa8] ss:$16 sps:$4 sm:$0xff]  }
 0xe80   :  { %11610 = vmatprep.subr.bf16.mxu0 %v19511_v51  ;;  %v19608_v51 = vld [vmem:[#allocation19 + $0xacc] ss:$16 sps:$4 sm:$0xff]  }
 0xe82   :  { %11482 = vmatpush1.bf16.msra.mxu1 %v19506_v22  ;;  %v19591_v22 = vld [vmem:[#allocation19 + $0xa80] ss:$16 sps:$4 sm:$0xff]  }
 0xe83   :  { %11611 = vmatpush1.bf16.msra.mxu0 %v19509_v23  ;;  %11483 = vmatprep.subr.bf16.mxu1 %v19514_v31  ;;  %v19599_v23 = vld [vmem:[#allocation19 + $0xaa4] ss:$16 sps:$4 sm:$0xff]   ;;  %v19606_v31 = vld [vmem:[#allocation19 + $0xac8] ss:$16 sps:$4 sm:$0xff]  }
 0xe84   :  { %11612 = vmatprep.subr.bf16.mxu0 %v19517_v53  ;;  %v19614_v53 = vld [vmem:[#allocation19 + $0xaec] ss:$16 sps:$4 sm:$0xff]  }
 0xe86   :  { %11484 = vmatpush1.bf16.msra.mxu1 %v19512_v59  ;;  %v19597_v59 = vld [vmem:[#allocation19 + $0xaa0] ss:$16 sps:$4 sm:$0xff]  }
 0xe87   :  { %11613 = vmatpush1.bf16.msra.mxu0 %v19515_v27  ;;  %11496 = vmatprep.subr.bf16.mxu1 %v19520_v32  ;;  %v19605_v27 = vld [vmem:[#allocation19 + $0xac4] ss:$16 sps:$4 sm:$0xff]   ;;  %v19612_v32 = vld [vmem:[#allocation19 + $0xae8] ss:$16 sps:$4 sm:$0xff]  }
 0xe88   :  { %11625 = vmatprep.subr.bf16.mxu0 %v19523_v39  ;;  %v19620_v39 = vld [vmem:[#allocation19 + $0xb0c] ss:$16 sps:$4 sm:$0xff]  }
 0xe89   :  { %11486 = vmatmul.mubr.bf16.vlgmr.msra.gmra.mrb[200].mxu1 %v21890_v6 }
 0xe8a   :  { %11615 = vmatmul.mubr.bf16.vlgmr.msra.gmra.mrb[160].mxu0 %v21890_v6  ;;  %11497 = vmatpush1.bf16.msra.mxu1 %v19518_v35  ;;  %v19541_v6 = vld [vmem:[#allocation19 + $0x46c] ss:$16 sps:$4 sm:$0xff]   ;;  %v19603_v35 = vld [vmem:[#allocation19 + $0xac0] ss:$16 sps:$4 sm:$0xff]  }
 0xe8b   :  { %11626 = vmatpush1.bf16.msra.mxu0 %v19521_v3  ;;  %11498 = vmatprep.subr.bf16.mxu1 %v19526_v19  ;;  %v19611_v3 = vld [vmem:[#allocation19 + $0xae4] ss:$16 sps:$4 sm:$0xff]   ;;  %v19618_v19 = vld [vmem:[#allocation19 + $0xb08] ss:$16 sps:$4 sm:$0xff]  }
 0xe8c   :  { %11627 = vmatprep.subr.bf16.mxu0 %v19529_v9  ;;  %11528 = vmatprep.mubr.bf16.mxu1 %v20727_v29  ;;  %v19626_v9 = vld [vmem:[#allocation19 + $0xb2c] ss:$16 sps:$4 sm:$0xff]  }
 0xe8d   :  { %11657 = vmatprep.mubr.bf16.mxu0 %v20727_v29 }
 0xe8e   :  { %11499 = vmatpush1.bf16.msra.mxu1 %v19524_v10  ;;  %v19609_v10 = vld [vmem:[#allocation19 + $0xae0] ss:$16 sps:$4 sm:$0xff]  }
 0xe8f   :  { %11628 = vmatpush1.bf16.msra.mxu0 %v19527_v50  ;;  %11500 = vmatprep.subr.bf16.mxu1 %v19532_v57  ;;  %v19617_v50 = vld [vmem:[#allocation19 + $0xb04] ss:$16 sps:$4 sm:$0xff]   ;;  %v19624_v57 = vld [vmem:[#allocation19 + $0xb28] ss:$16 sps:$4 sm:$0xff]  }
 0xe90   :  { %11629 = vmatprep.subr.bf16.mxu0 %v19535_v14  ;;  %v19632_v14 = vld [vmem:[#allocation19 + $0xb4c] ss:$16 sps:$4 sm:$0xff]  }
 0xe92   :  { %11501 = vmatpush1.bf16.msra.mxu1 %v19530_v54  ;;  %v19615_v54 = vld [vmem:[#allocation19 + $0xb00] ss:$16 sps:$4 sm:$0xff]  }
 0xe93   :  { %11630 = vmatpush1.bf16.msra.mxu0 %v19533_v2  ;;  %11502 = vmatprep.subr.bf16.mxu1 %v19538_v44  ;;  %v19623_v2 = vld [vmem:[#allocation19 + $0xb24] ss:$16 sps:$4 sm:$0xff]   ;;  %v19630_v44 = vld [vmem:[#allocation19 + $0xb48] ss:$16 sps:$4 sm:$0xff]  }
 0xe94   :  { %11631 = vmatprep.subr.bf16.mxu0 %v19541_v6  ;;  %v19638_v6 = vld [vmem:[#allocation19 + $0xb6c] ss:$16 sps:$4 sm:$0xff]  }
 0xe96   :  { %11503 = vmatpush1.bf16.msra.mxu1 %v19536_v41  ;;  %v19621_v41 = vld [vmem:[#allocation19 + $0xb20] ss:$16 sps:$4 sm:$0xff]  }
 0xe97   :  { %11632 = vmatpush1.bf16.msra.mxu0 %v19539_v8  ;;  %11504 = vmatprep.subr.bf16.mxu1 %v19544_v43  ;;  %v19629_v8 = vld [vmem:[#allocation19 + $0xb44] ss:$16 sps:$4 sm:$0xff]   ;;  %v19636_v43 = vld [vmem:[#allocation19 + $0xb68] ss:$16 sps:$4 sm:$0xff]  }
 0xe98   :  { %11633 = vmatprep.subr.bf16.mxu0 %v19547_v7  ;;  %v19644_v7 = vld [vmem:[#allocation19 + $0xb8c] ss:$16 sps:$4 sm:$0xff]  }
 0xe9a   :  { %11505 = vmatpush1.bf16.msra.mxu1 %v19542_v52  ;;  %v19627_v52 = vld [vmem:[#allocation19 + $0xb40] ss:$16 sps:$4 sm:$0xff]  }
 0xe9b   :  { %11634 = vmatpush1.bf16.msra.mxu0 %v19545_v26  ;;  %11506 = vmatprep.subr.bf16.mxu1 %v19550_v34  ;;  %v19635_v26 = vld [vmem:[#allocation19 + $0xb64] ss:$16 sps:$4 sm:$0xff]   ;;  %v19642_v34 = vld [vmem:[#allocation19 + $0xb88] ss:$16 sps:$4 sm:$0xff]  }
 0xe9c   :  { %11635 = vmatprep.subr.bf16.mxu0 %v19553_v11  ;;  %v19650_v11 = vld [vmem:[#allocation19 + $0xbac] ss:$16 sps:$4 sm:$0xff]  }
 0xe9e   :  { %11507 = vmatpush1.bf16.msra.mxu1 %v19548_v13  ;;  %v19633_v13 = vld [vmem:[#allocation19 + $0xb60] ss:$16 sps:$4 sm:$0xff]  }
 0xe9f   :  { %11636 = vmatpush1.bf16.msra.mxu0 %v19551_v15  ;;  %11508 = vmatprep.subr.bf16.mxu1 %v19556_v28  ;;  %v19641_v15 = vld [vmem:[#allocation19 + $0xb84] ss:$16 sps:$4 sm:$0xff]   ;;  %v19648_v28 = vld [vmem:[#allocation19 + $0xba8] ss:$16 sps:$4 sm:$0xff]  }
 0xea0   :  { %11637 = vmatprep.subr.bf16.mxu0 %v19559_v47  ;;  %v19656_v47 = vld [vmem:[#allocation19 + $0xbcc] ss:$16 sps:$4 sm:$0xff]  }
 0xea2   :  { %11509 = vmatpush1.bf16.msra.mxu1 %v19554_v49  ;;  %v19639_v49 = vld [vmem:[#allocation19 + $0xb80] ss:$16 sps:$4 sm:$0xff]  }
 0xea3   :  { %11638 = vmatpush1.bf16.msra.mxu0 %v19557_v60  ;;  %11510 = vmatprep.subr.bf16.mxu1 %v19562_v48  ;;  %v19647_v60 = vld [vmem:[#allocation19 + $0xba4] ss:$16 sps:$4 sm:$0xff]   ;;  %v19654_v48 = vld [vmem:[#allocation19 + $0xbc8] ss:$16 sps:$4 sm:$0xff]  }
 0xea4   :  { %11639 = vmatprep.subr.bf16.mxu0 %v19565_v30  ;;  %v19645_v30 = vld [vmem:[#allocation19 + $0xba0] ss:$16 sps:$4 sm:$0xff]  }
 0xea6   :  { %11511 = vmatpush1.bf16.msra.mxu1 %v19560_v25  ;;  %v19653_v25 = vld [vmem:[#allocation19 + $0xbc4] ss:$16 sps:$4 sm:$0xff]  }
 0xea7   :  { %11640 = vmatpush1.bf16.msra.mxu0 %v19563_v40  ;;  %11679 = vmatprep.subr.bf16.mxu1 %v21817_v37  ;;  %v19566_v37 = vld [vmem:[#allocation17 + $0x10] sm:$0xff]   ;;  %v19651_v40 = vld [vmem:[#allocation19 + $0xbc0] ss:$16 sps:$4 sm:$0xff]  }
 0xea8   :  { %11722 = vmatprep.subr.bf16.mxu0 %v21819_v38  ;;  %v19569_v38 = vld [vmem:[#allocation19 + $0xa04] ss:$16 sps:$4 sm:$0xff]  }
 0xea9   :  { %11529 = vmatmul.mubr.bf16.vlgmr.msra.gmra.mrb[200].mxu1 %v21898_v42 }
 0xeaa   :  { %11658 = vmatmul.mubr.bf16.vlgmr.msra.gmra.mrb[160].mxu0 %v21898_v42  ;;  %11680 = vmatpush1.bf16.msra.mxu1 %v21813_v33  ;;  %v19570_v33 = vld [vmem:[#allocation19 + $0xa08] ss:$16 sps:$4 sm:$0xff]  }
 0xeab   :  { %11723 = vmatpush1.bf16.msra.mxu0 %v21815_v45  ;;  %16726 = vmatprep.subr.msk.bf16.mxu1 %vm8940_vm7, %v21829_v20  ;;  %v19578_v45 = vld [vmem:[#allocation19 + $0xa2c] ss:$16 sps:$4 sm:$0xff]   ;;  %v19576_v20 = vld [vmem:[#allocation19 + $0xa28] ss:$16 sps:$4 sm:$0xff]  }
 0xeac   :  { %16728 = vmatprep.subr.msk.bf16.mxu0 %vm8940_vm7, %v21831_v61  ;;  %11711 = vmatprep.mubr.bf16.mxu1 %v20727_v29  ;;  %v19584_v61 = vld [vmem:[#allocation19 + $0xa4c] ss:$16 sps:$4 sm:$0xff]   ;;  %v19582_v42 = vld [vmem:[#allocation19 + $0xa48] ss:$16 sps:$4 sm:$0xff]  }
 0xead   :  { %11754 = vmatprep.mubr.bf16.mxu0 %v20727_v29 }
 0xeae   :  { %11682 = vmatpush1.bf16.msra.mxu1 %v21834_v36  ;;  %v19567_v36 = vld [vmem:[#allocation19 + $0xa00] ss:$16 sps:$4 sm:$0xff]  }
 0xeaf   :  { %11725 = vmatpush1.bf16.msra.mxu0 %v21837_v17  ;;  %17737 = vmatprep.subr.bf16.mxu1 %v20725_v0  ;;  %v19575_v17 = vld [vmem:[#allocation19 + $0xa24] ss:$16 sps:$4 sm:$0xff]  }
 0xeb0   :  { %12901 = vmatprep.subr.bf16.mxu0 %v19572_v46  ;;  %v19659_v46 = vld [vmem:[#allocation19 + $0xbe4] ss:$16 sps:$4 sm:$0xff]  }
 0xeb1   :  { %16727 = vmatmul.mubr.msk.bf16.vlgmr.msra.gmra.mrb[204].mxu1 %vm8936_vm8, %v19566_v37 }
 0xeb2   :  { %17738 = vmatpush3.bf16.msra.mxu1 %v21867_v56  ;;  %16729 = vmatmul.mubr.msk.bf16.vlgmr.msra.gmra.mrb[164].mxu0 %vm8936_vm8, %v19566_v37  ;;  %v19590_v56 = vld [vmem:[#allocation19 + $0xa6c] ss:$16 sps:$4 sm:$0xff]  }
 0xeb3   :  { %17739 = vmatprep.subr.bf16.mxu1 %v20725_v0  ;;  %17741 = vmatprep.mubr.msk.bf16.mxu1 %vm20726_vm0, %v20725_v0  ;;  %v19581_v0 = vld [vmem:[#allocation19 + $0xa44] ss:$16 sps:$4 sm:$0xff]  }
 0xeb4   :  { %12902 = vmatpush1.bf16.msra.mxu0 %v19570_v33  ;;  %v19657_v33 = vld [vmem:[#allocation19 + $0xbe0] ss:$16 sps:$4 sm:$0xff]  }
 0xeb5   :  { %12903 = vmatprep.subr.bf16.mxu0 %v19578_v45  ;;  %v19660_v45 = vld [vmem:[#allocation19 + $0xbe8] ss:$16 sps:$4 sm:$0xff]  }
 0xeb6   :  { %17740 = vmatpush3.bf16.msra.mxu1 %v21875_v62  ;;  %v19587_v62 = vld [vmem:[#allocation19 + $0xa64] ss:$16 sps:$4 sm:$0xff]  }
 0xeb7   :  { %12772 = vmatprep.subr.bf16.mxu1 %v19569_v38  ;;  %v19665_v38 = vld [vmem:[#allocation19 + $0xc04] ss:$16 sps:$4 sm:$0xff]  }
 0xeb8   :  { %12904 = vmatpush1.bf16.msra.mxu0 %v19576_v20  ;;  %v19668_v20 = vld [vmem:[#allocation19 + $0xc0c] ss:$16 sps:$4 sm:$0xff]  }
 0xeb9   :  { %17742 = vmatmul.mubr.msk.bf16.vlgmr.msra.gmra.mrb[208].mxu1 %vm8936_vm8, %v19566_v37  ;;  %12905 = vmatprep.subr.bf16.mxu0 %v19584_v61  ;;  %v19662_v37 = vld [vmem:[#allocation19 + $0xbec] ss:$16 sps:$4 sm:$0xff]  }
 0xeba   :  { %12773 = vmatpush1.bf16.msra.mxu1 %v19567_v36 }
 0xebb   :  { %12774 = vmatprep.subr.bf16.mxu1 %v19575_v17 }
 0xebc   :  { %12906 = vmatpush1.bf16.msra.mxu0 %v19582_v42 }
 0xebd   :  { %12907 = vmatprep.subr.bf16.mxu0 %v19590_v56 }
 0xebe   :  { %12775 = vmatpush1.bf16.msra.mxu1 %v19573_v12 }
 0xebf   :  { %12776 = vmatprep.subr.bf16.mxu1 %v19581_v0 }
 0xec0   :  { %12908 = vmatpush1.bf16.msra.mxu0 %v19588_v58 }
 0xec1   :  { %12909 = vmatprep.subr.bf16.mxu0 %v19596_v63 }
 0xec2   :  { %12777 = vmatpush1.bf16.msra.mxu1 %v19579_v24  ;;  %v19663_v24 = vld [vmem:[#allocation19 + $0xc00] ss:$16 sps:$4 sm:$0xff]  }
 0xec3   :  { %12778 = vmatprep.subr.bf16.mxu1 %v19587_v62  ;;  %v19666_v62 = vld [vmem:[#allocation19 + $0xc08] ss:$16 sps:$4 sm:$0xff]  }
 0xec4   :  { %12910 = vmatpush1.bf16.msra.mxu0 %v19594_v5 }
 0xec5   :  { %12911 = vmatprep.subr.bf16.mxu0 %v19602_v55 }
 0xec6   :  { %12779 = vmatpush1.bf16.msra.mxu1 %v19585_v18  ;;  %v19671_v18 = vld [vmem:[#allocation19 + $0xc24] ss:$16 sps:$4 sm:$0xff]  }
 0xec7   :  { %12780 = vmatprep.subr.bf16.mxu1 %v19593_v16  ;;  %v19674_v16 = vld [vmem:[#allocation19 + $0xc2c] ss:$16 sps:$4 sm:$0xff]  }
 0xec8   :  { %12912 = vmatpush1.bf16.msra.mxu0 %v19600_v1 }
 0xec9   :  { %12913 = vmatprep.subr.bf16.mxu0 %v19608_v51  ;;  %v19669_v51 = vld [vmem:[#allocation19 + $0xc20] ss:$16 sps:$4 sm:$0xff]  }
 0xeca   :  { %12781 = vmatpush1.bf16.msra.mxu1 %v19591_v22  ;;  %v19672_v22 = vld [vmem:[#allocation19 + $0xc28] ss:$16 sps:$4 sm:$0xff]  }
 0xecb   :  { %12782 = vmatprep.subr.bf16.mxu1 %v19599_v23 }
 0xecc   :  { %12914 = vmatpush1.bf16.msra.mxu0 %v19606_v31  ;;  %v19677_v31 = vld [vmem:[#allocation19 + $0xc44] ss:$16 sps:$4 sm:$0xff]  }
 0xecd   :  { %12915 = vmatprep.subr.bf16.mxu0 %v19614_v53  ;;  %v19680_v53 = vld [vmem:[#allocation19 + $0xc4c] ss:$16 sps:$4 sm:$0xff]  }
 0xece   :  { %12783 = vmatpush1.bf16.msra.mxu1 %v19597_v59 }
 0xecf   :  { %12784 = vmatprep.subr.bf16.mxu1 %v19605_v27 }
 0xed0   :  { %12916 = vmatpush1.bf16.msra.mxu0 %v19612_v32 }
 0xed1   :  { %12917 = vmatprep.subr.bf16.mxu0 %v19620_v39 }
 0xed2   :  { %12785 = vmatpush1.bf16.msra.mxu1 %v19603_v35  ;;  %v19675_v35 = vld [vmem:[#allocation19 + $0xc40] ss:$16 sps:$4 sm:$0xff]  }
 0xed3   :  { %12786 = vmatprep.subr.bf16.mxu1 %v19611_v3  ;;  %v19678_v3 = vld [vmem:[#allocation19 + $0xc48] ss:$16 sps:$4 sm:$0xff]  }
 0xed4   :  { %12918 = vmatpush1.bf16.msra.mxu0 %v19618_v19  ;;  %v19683_v19 = vld [vmem:[#allocation19 + $0xc64] ss:$16 sps:$4 sm:$0xff]  }
 0xed5   :  { %12919 = vmatprep.subr.bf16.mxu0 %v19626_v9  ;;  %v19686_v9 = vld [vmem:[#allocation19 + $0xc6c] ss:$16 sps:$4 sm:$0xff]  }
 0xed6   :  { %12787 = vmatpush1.bf16.msra.mxu1 %v19609_v10  ;;  %v19681_v10 = vld [vmem:[#allocation19 + $0xc60] ss:$16 sps:$4 sm:$0xff]  }
 0xed7   :  { %12788 = vmatprep.subr.bf16.mxu1 %v19617_v50  ;;  %v19684_v50 = vld [vmem:[#allocation19 + $0xc68] ss:$16 sps:$4 sm:$0xff]  }
 0xed8   :  { %12920 = vmatpush1.bf16.msra.mxu0 %v19624_v57  ;;  %v19689_v57 = vld [vmem:[#allocation19 + $0xc84] ss:$16 sps:$4 sm:$0xff]  }
 0xed9   :  { %12921 = vmatprep.subr.bf16.mxu0 %v19632_v14  ;;  %v19692_v14 = vld [vmem:[#allocation19 + $0xc8c] ss:$16 sps:$4 sm:$0xff]  }
 0xeda   :  { %12789 = vmatpush1.bf16.msra.mxu1 %v19615_v54  ;;  %v19687_v54 = vld [vmem:[#allocation19 + $0xc80] ss:$16 sps:$4 sm:$0xff]  }
 0xedb   :  { %12790 = vmatprep.subr.bf16.mxu1 %v19623_v2  ;;  %v19690_v2 = vld [vmem:[#allocation19 + $0xc88] ss:$16 sps:$4 sm:$0xff]  }
 0xedc   :  { %12922 = vmatpush1.bf16.msra.mxu0 %v19630_v44  ;;  %v19695_v44 = vld [vmem:[#allocation19 + $0xca4] ss:$16 sps:$4 sm:$0xff]  }
 0xedd   :  { %12923 = vmatprep.subr.bf16.mxu0 %v19638_v6  ;;  %v19698_v6 = vld [vmem:[#allocation19 + $0xcac] ss:$16 sps:$4 sm:$0xff]  }
 0xede   :  { %12791 = vmatpush1.bf16.msra.mxu1 %v19621_v41  ;;  %v19693_v41 = vld [vmem:[#allocation19 + $0xca0] ss:$16 sps:$4 sm:$0xff]  }
 0xedf   :  { %12792 = vmatprep.subr.bf16.mxu1 %v19629_v8  ;;  %v19696_v8 = vld [vmem:[#allocation19 + $0xca8] ss:$16 sps:$4 sm:$0xff]  }
 0xee0   :  { %12924 = vmatpush1.bf16.msra.mxu0 %v19636_v43  ;;  %v19701_v43 = vld [vmem:[#allocation19 + $0xcc4] ss:$16 sps:$4 sm:$0xff]  }
 0xee1   :  { %12925 = vmatprep.subr.bf16.mxu0 %v19644_v7  ;;  %v19704_v7 = vld [vmem:[#allocation19 + $0xccc] ss:$16 sps:$4 sm:$0xff]  }
 0xee2   :  { %12793 = vmatpush1.bf16.msra.mxu1 %v19627_v52  ;;  %v19699_v52 = vld [vmem:[#allocation19 + $0xcc0] ss:$16 sps:$4 sm:$0xff]  }
 0xee3   :  { %12794 = vmatprep.subr.bf16.mxu1 %v19635_v26  ;;  %v19702_v26 = vld [vmem:[#allocation19 + $0xcc8] ss:$16 sps:$4 sm:$0xff]  }
 0xee4   :  { %12926 = vmatpush1.bf16.msra.mxu0 %v19642_v34  ;;  %v19707_v34 = vld [vmem:[#allocation19 + $0xce4] ss:$16 sps:$4 sm:$0xff]  }
 0xee5   :  { %12927 = vmatprep.subr.bf16.mxu0 %v19650_v11  ;;  %v19710_v11 = vld [vmem:[#allocation19 + $0xcec] ss:$16 sps:$4 sm:$0xff]  }
 0xee6   :  { %12795 = vmatpush1.bf16.msra.mxu1 %v19633_v13  ;;  %v19705_v13 = vld [vmem:[#allocation19 + $0xce0] ss:$16 sps:$4 sm:$0xff]  }
 0xee7   :  { %12796 = vmatprep.subr.bf16.mxu1 %v19641_v15  ;;  %v19708_v15 = vld [vmem:[#allocation19 + $0xce8] ss:$16 sps:$4 sm:$0xff]  }
 0xee8   :  { %12928 = vmatpush1.bf16.msra.mxu0 %v19648_v28  ;;  %v19713_v28 = vld [vmem:[#allocation19 + $0xd04] ss:$16 sps:$4 sm:$0xff]  }
 0xee9   :  { %12929 = vmatprep.subr.bf16.mxu0 %v19656_v47  ;;  %v19716_v47 = vld [vmem:[#allocation19 + $0xd0c] ss:$16 sps:$4 sm:$0xff]  }
 0xeea   :  { %12797 = vmatpush1.bf16.msra.mxu1 %v19639_v49  ;;  %v19711_v49 = vld [vmem:[#allocation19 + $0xd00] ss:$16 sps:$4 sm:$0xff]  }
 0xeeb   :  { %12798 = vmatprep.subr.bf16.mxu1 %v19647_v60  ;;  %v19714_v60 = vld [vmem:[#allocation19 + $0xd08] ss:$16 sps:$4 sm:$0xff]  }
 0xeec   :  { %12930 = vmatpush1.bf16.msra.mxu0 %v19654_v48  ;;  %v19719_v48 = vld [vmem:[#allocation19 + $0xd24] ss:$16 sps:$4 sm:$0xff]  }
 0xeed   :  { %12931 = vmatprep.subr.bf16.mxu0 %v19662_v37  ;;  %v19728_v37 = vld [vmem:[#allocation19 + $0xd4c] ss:$16 sps:$4 sm:$0xff]  }
 0xeee   :  { %12799 = vmatpush1.bf16.msra.mxu1 %v19645_v30  ;;  %v19722_v30 = vld [vmem:[#allocation19 + $0xd2c] ss:$16 sps:$4 sm:$0xff]  }
 0xeef   :  { %12800 = vmatprep.subr.bf16.mxu1 %v19653_v25  ;;  %v19717_v25 = vld [vmem:[#allocation19 + $0xd20] ss:$16 sps:$4 sm:$0xff]  }
 0xef0   :  { %12932 = vmatpush1.bf16.msra.mxu0 %v19660_v45  ;;  %v19726_v45 = vld [vmem:[#allocation19 + $0xd48] ss:$16 sps:$4 sm:$0xff]  }
 0xef1   :  { %12944 = vmatprep.subr.bf16.mxu0 %v19668_v20  ;;  %v19734_v20 = vld [vmem:[#allocation19 + $0xd6c] ss:$16 sps:$4 sm:$0xff]  }
 0xef2   :  { %12801 = vmatpush1.bf16.msra.mxu1 %v19651_v40  ;;  %v19720_v40 = vld [vmem:[#allocation19 + $0xd28] ss:$16 sps:$4 sm:$0xff]  }
 0xef3   :  { %12802 = vmatprep.subr.bf16.mxu1 %v19659_v46  ;;  %v19725_v46 = vld [vmem:[#allocation19 + $0xd44] ss:$16 sps:$4 sm:$0xff]  }
 0xef6   :  { %12803 = vmatpush1.bf16.msra.mxu1 %v19657_v33  ;;  %v19723_v33 = vld [vmem:[#allocation19 + $0xd40] ss:$16 sps:$4 sm:$0xff]  }
 0xef7   :  { %12815 = vmatprep.subr.bf16.mxu1 %v19665_v38  ;;  %v19731_v38 = vld [vmem:[#allocation19 + $0xd64] ss:$16 sps:$4 sm:$0xff]  }
 0xf84   :  { %v11713_v61 = vpop.f32.mrb[204].mxu1 }
 0xf85   :  { %v11715_v36 = vpop.f32.mrb[205].mxu1  ;;  %v11756_v17 = vpop.f32.mrb[164].mxu0 }
 0xf86   :  { %v11717_v42 = vpop.f32.mrb[206].mxu1  ;;  %v11758_v56 = vpop.f32.mrb[165].mxu0 }
 0xf87   :  { %v11806_v12 = vpack.c.bf16 %v11717_v42, %v11713_v61  ;;  %v11719_v0 = vpop.f32.mrb[207].mxu1  ;;  %v11760_v58 = vpop.f32.mrb[166].mxu0  ;;  %v19729_v61 = vld [vmem:[#allocation19 + $0xd60] ss:$16 sps:$4 sm:$0xff]   ;;  %v19740_v42 = vld [vmem:[#allocation19 + $0xd8c] ss:$16 sps:$4 sm:$0xff]  }
 0xf88   :  { %v11807_v63 = vpack.c.bf16 %v11719_v0, %v11715_v36  ;;  %v21943_v5 = vpack.c.bf16 %v11760_v58, %v11756_v17  ;;  %v11762_v55 = vpop.f32.mrb[167].mxu0  ;;  %v19732_v36 = vld [vmem:[#allocation19 + $0xd68] ss:$16 sps:$4 sm:$0xff]   ;;  %v19737_v17 = vld [vmem:[#allocation19 + $0xd84] ss:$16 sps:$4 sm:$0xff]  }
 0xf89   :  { %v11809_v1 = vpack.c.bf16 %v11762_v55, %v11758_v56  ;;  %v19735_v56 = vld [vmem:[#allocation19 + $0xd80] ss:$16 sps:$4 sm:$0xff]   ;;  %v19743_v0 = vld [vmem:[#allocation19 + $0xda4] ss:$16 sps:$4 sm:$0xff]   ;;  %v19746_v58 = vld [vmem:[#allocation19 + $0xdac] ss:$16 sps:$4 sm:$0xff]  }
 0xf8a   :  { %12804 = vmatprep.mubr.bf16.mxu1 %v11807_v63  ;;  %12933 = vmatprep.mubr.bf16.mxu0 %v11807_v63  ;;  %v19741_v63 = vld [vmem:[#allocation19 + $0xda0] ss:$16 sps:$4 sm:$0xff]   ;;  %v19752_v55 = vld [vmem:[#allocation19 + $0xdcc] ss:$16 sps:$4 sm:$0xff]  }
 0xf8b   :  { %12805 = vmatmul.mubr.bf16.vlgmr.msra.gmra.mrb[200].mxu1 %v11806_v12  ;;  %12934 = vmatmul.mubr.bf16.vlgmr.msra.gmra.mrb[160].mxu0 %v11806_v12  ;;  %v19738_v12 = vld [vmem:[#allocation19 + $0xd88] ss:$16 sps:$4 sm:$0xff]  }
 0xf8c   :  { %12816 = vmatpush1.bf16.msra.mxu1 %v19663_v24  ;;  %12945 = vmatpush1.bf16.msra.mxu0 %v19666_v62  ;;  %v11799_v23 = vpop.f32.mrb[208].mxu1  ;;  %v19744_v24 = vld [vmem:[#allocation19 + $0xda8] ss:$16 sps:$4 sm:$0xff]   ;;  %v19749_v62 = vld [vmem:[#allocation19 + $0xdc4] ss:$16 sps:$4 sm:$0xff]  }
 0xf8d   :  { %12817 = vmatprep.subr.bf16.mxu1 %v19671_v18  ;;  %12946 = vmatprep.subr.bf16.mxu0 %v19674_v16  ;;  %v17743_v59 = vpop.f32.mrb[209].mxu1  ;;  %v19747_v18 = vld [vmem:[#allocation19 + $0xdc0] ss:$16 sps:$4 sm:$0xff]   ;;  %v19750_v16 = vld [vmem:[#allocation19 + $0xdc8] ss:$16 sps:$4 sm:$0xff]  }
 0xf8e   :  { %12847 = vmatprep.mubr.bf16.mxu1 %v11809_v1  ;;  %12976 = vmatprep.mubr.bf16.mxu0 %v11809_v1  ;;  %v11802_v27 = vpop.f32.mrb[210].mxu1  ;;  %v19755_v1 = vld [vmem:[#allocation19 + $0xde4] ss:$16 sps:$4 sm:$0xff]   ;;  %v19759_v59 = vld [vmem:[#allocation19 + $0xe00] ss:$16 sps:$4 sm:$0xff]  }
 0xf8f   :  { %v21945_v32 = vpack.c.bf16 %v11802_v27, %v11799_v23  ;;  %v17744_v39 = vpop.f32.mrb[211].mxu1  ;;  %v19756_v23 = vld [vmem:[#allocation19 + $0xde8] ss:$16 sps:$4 sm:$0xff]  }
 0xf90   :  { %12818 = vmatpush1.bf16.msra.mxu1 %v19669_v51  ;;  %12947 = vmatpush1.bf16.msra.mxu0 %v19672_v22  ;;  %v19758_v51 = vld [vmem:[#allocation19 + $0xdec] ss:$16 sps:$4 sm:$0xff]   ;;  %v19753_v22 = vld [vmem:[#allocation19 + $0xde0] ss:$16 sps:$4 sm:$0xff]   ;;  %v19762_v27 = vld [vmem:[#allocation19 + $0xe08] ss:$16 sps:$4 sm:$0xff]  }
 0xf91   :  { %12819 = vmatprep.subr.bf16.mxu1 %v19677_v31  ;;  %12948 = vmatprep.subr.bf16.mxu0 %v19680_v53  ;;  %v19761_v31 = vld [vmem:[#allocation19 + $0xe04] ss:$16 sps:$4 sm:$0xff]   ;;  %v19764_v53 = vld [vmem:[#allocation19 + $0xe0c] ss:$16 sps:$4 sm:$0xff]  }
 0xf92   :  { %v19767_v39 = vld [vmem:[#allocation19 + $0xe24] ss:$16 sps:$4 sm:$0xff]  }
 0xf94   :  { %12820 = vmatpush1.bf16.msra.mxu1 %v19675_v35  ;;  %12949 = vmatpush1.bf16.msra.mxu0 %v19678_v3  ;;  %v19770_v35 = vld [vmem:[#allocation19 + $0xe2c] ss:$16 sps:$4 sm:$0xff]   ;;  %v19765_v3 = vld [vmem:[#allocation19 + $0xe20] ss:$16 sps:$4 sm:$0xff]  }
 0xf95   :  { %12821 = vmatprep.subr.bf16.mxu1 %v19683_v19  ;;  %12950 = vmatprep.subr.bf16.mxu0 %v19686_v9  ;;  %v19768_v19 = vld [vmem:[#allocation19 + $0xe28] ss:$16 sps:$4 sm:$0xff]   ;;  %v19773_v9 = vld [vmem:[#allocation19 + $0xe44] ss:$16 sps:$4 sm:$0xff]  }
 0xf98   :  { %12822 = vmatpush1.bf16.msra.mxu1 %v19681_v10  ;;  %12951 = vmatpush1.bf16.msra.mxu0 %v19684_v50  ;;  %v19776_v10 = vld [vmem:[#allocation19 + $0xe4c] ss:$16 sps:$4 sm:$0xff]   ;;  %v19771_v50 = vld [vmem:[#allocation19 + $0xe40] ss:$16 sps:$4 sm:$0xff]  }
 0xf99   :  { %12823 = vmatprep.subr.bf16.mxu1 %v19689_v57  ;;  %12952 = vmatprep.subr.bf16.mxu0 %v19692_v14  ;;  %v19774_v57 = vld [vmem:[#allocation19 + $0xe48] ss:$16 sps:$4 sm:$0xff]   ;;  %v19779_v14 = vld [vmem:[#allocation19 + $0xe64] ss:$16 sps:$4 sm:$0xff]  }
 0xf9c   :  { %12824 = vmatpush1.bf16.msra.mxu1 %v19687_v54  ;;  %12953 = vmatpush1.bf16.msra.mxu0 %v19690_v2  ;;  %v19777_v54 = vld [vmem:[#allocation19 + $0xe60] ss:$16 sps:$4 sm:$0xff]   ;;  %v19780_v2 = vld [vmem:[#allocation19 + $0xe68] ss:$16 sps:$4 sm:$0xff]  }
 0xf9d   :  { %12825 = vmatprep.subr.bf16.mxu1 %v19695_v44  ;;  %12954 = vmatprep.subr.bf16.mxu0 %v19698_v6  ;;  %v19785_v44 = vld [vmem:[#allocation19 + $0xe84] ss:$16 sps:$4 sm:$0xff]   ;;  %v19788_v6 = vld [vmem:[#allocation19 + $0xe8c] ss:$16 sps:$4 sm:$0xff]  }
 0xfa0   :  { %12826 = vmatpush1.bf16.msra.mxu1 %v19693_v41  ;;  %12955 = vmatpush1.bf16.msra.mxu0 %v19696_v8  ;;  %v19783_v41 = vld [vmem:[#allocation19 + $0xe80] ss:$16 sps:$4 sm:$0xff]   ;;  %v19786_v8 = vld [vmem:[#allocation19 + $0xe88] ss:$16 sps:$4 sm:$0xff]  }
 0xfa1   :  { %12827 = vmatprep.subr.bf16.mxu1 %v19701_v43  ;;  %12956 = vmatprep.subr.bf16.mxu0 %v19704_v7  ;;  %v19791_v43 = vld [vmem:[#allocation19 + $0xea4] ss:$16 sps:$4 sm:$0xff]   ;;  %v19794_v7 = vld [vmem:[#allocation19 + $0xeac] ss:$16 sps:$4 sm:$0xff]  }
 0xfa4   :  { %12828 = vmatpush1.bf16.msra.mxu1 %v19699_v52  ;;  %12957 = vmatpush1.bf16.msra.mxu0 %v19702_v26  ;;  %v19789_v52 = vld [vmem:[#allocation19 + $0xea0] ss:$16 sps:$4 sm:$0xff]   ;;  %v19792_v26 = vld [vmem:[#allocation19 + $0xea8] ss:$16 sps:$4 sm:$0xff]  }
 0xfa5   :  { %12829 = vmatprep.subr.bf16.mxu1 %v19707_v34  ;;  %12958 = vmatprep.subr.bf16.mxu0 %v19710_v11  ;;  %v19797_v34 = vld [vmem:[#allocation19 + $0xec4] ss:$16 sps:$4 sm:$0xff]   ;;  %v19800_v11 = vld [vmem:[#allocation19 + $0xecc] ss:$16 sps:$4 sm:$0xff]  }
 0xfa8   :  { %12830 = vmatpush1.bf16.msra.mxu1 %v19705_v13  ;;  %12959 = vmatpush1.bf16.msra.mxu0 %v19708_v15  ;;  %v19795_v13 = vld [vmem:[#allocation19 + $0xec0] ss:$16 sps:$4 sm:$0xff]   ;;  %v19798_v15 = vld [vmem:[#allocation19 + $0xec8] ss:$16 sps:$4 sm:$0xff]  }
 0xfa9   :  { %12831 = vmatprep.subr.bf16.mxu1 %v19713_v28  ;;  %12960 = vmatprep.subr.bf16.mxu0 %v19716_v47  ;;  %v19803_v28 = vld [vmem:[#allocation19 + $0xee4] ss:$16 sps:$4 sm:$0xff]   ;;  %v19806_v47 = vld [vmem:[#allocation19 + $0xeec] ss:$16 sps:$4 sm:$0xff]  }
 0xfac   :  { %12832 = vmatpush1.bf16.msra.mxu1 %v19711_v49  ;;  %12961 = vmatpush1.bf16.msra.mxu0 %v19714_v60  ;;  %v19801_v49 = vld [vmem:[#allocation19 + $0xee0] ss:$16 sps:$4 sm:$0xff]   ;;  %v19804_v60 = vld [vmem:[#allocation19 + $0xee8] ss:$16 sps:$4 sm:$0xff]  }
 0xfad   :  { %12833 = vmatprep.subr.bf16.mxu1 %v19719_v48  ;;  %12962 = vmatprep.subr.bf16.mxu0 %v19722_v30 }
 0xfb0   :  { %12834 = vmatpush1.bf16.msra.mxu1 %v19717_v25  ;;  %12963 = vmatpush1.bf16.msra.mxu0 %v19720_v40 }
 0xfb1   :  { %12835 = vmatprep.subr.bf16.mxu1 %v19725_v46  ;;  %12964 = vmatprep.subr.bf16.mxu0 %v19728_v37 }
 0xfb4   :  { %12836 = vmatpush1.bf16.msra.mxu1 %v19723_v33  ;;  %12965 = vmatpush1.bf16.msra.mxu0 %v19726_v45 }
 0xfb5   :  { %12837 = vmatprep.subr.bf16.mxu1 %v19731_v38  ;;  %12966 = vmatprep.subr.bf16.mxu0 %v19734_v20 }
 0xfb8   :  { %12838 = vmatpush1.bf16.msra.mxu1 %v19729_v61  ;;  %12967 = vmatpush1.bf16.msra.mxu0 %v19732_v36 }
 0xfb9   :  { %12839 = vmatprep.subr.bf16.mxu1 %v19737_v17  ;;  %12968 = vmatprep.subr.bf16.mxu0 %v19740_v42  ;;  %v19809_v17 = vld [vmem:[#allocation23 + $0x4] ss:$8 sps:$4 sm:$0xff]  }
 0xfba   :  { %v19812_v42 = vld [vmem:[#allocation23 + $0x204] ss:$8 sps:$4 sm:$0xff]  }
 0xfbc   :  { %12840 = vmatpush1.bf16.msra.mxu1 %v19735_v56  ;;  %12969 = vmatpush1.bf16.msra.mxu0 %v19738_v12  ;;  %v13130_v56 = vld [vmem:[#allocation22 + $0x4] sm:$0xf]  ;;  %v19807_v12 = vld [vmem:[#allocation23] ss:$8 sps:$4 sm:$0xff]  }
 0xfbd   :  { %12841 = vmatprep.subr.bf16.mxu1 %v19743_v0  ;;  %12970 = vmatprep.subr.bf16.mxu0 %v19746_v58  ;;  %v19810_v0 = vld [vmem:[#allocation23 + $0x200] ss:$8 sps:$4 sm:$0xff]   ;;  %v19815_v58 = vld [vmem:[#allocation23 + $0x14] ss:$8 sps:$4 sm:$0xff]  }
 0xfc0   :  { %12842 = vmatpush1.bf16.msra.mxu1 %v19741_v63  ;;  %12971 = vmatpush1.bf16.msra.mxu0 %v19744_v24  ;;  %v19818_v63 = vld [vmem:[#allocation23 + $0x214] ss:$8 sps:$4 sm:$0xff]   ;;  %v19813_v24 = vld [vmem:[#allocation23 + $0x10] ss:$8 sps:$4 sm:$0xff]  }
 0xfc1   :  { %12843 = vmatprep.subr.bf16.mxu1 %v19749_v62  ;;  %12972 = vmatprep.subr.bf16.mxu0 %v19752_v55  ;;  %v19816_v62 = vld [vmem:[#allocation23 + $0x210] ss:$8 sps:$4 sm:$0xff]   ;;  %v19821_v55 = vld [vmem:[#allocation23 + $0x24] ss:$8 sps:$4 sm:$0xff]  }
 0xfc4   :  { %12844 = vmatpush1.bf16.msra.mxu1 %v19747_v18  ;;  %12973 = vmatpush1.bf16.msra.mxu0 %v19750_v16  ;;  %v19824_v18 = vld [vmem:[#allocation23 + $0x224] ss:$8 sps:$4 sm:$0xff]   ;;  %v19819_v16 = vld [vmem:[#allocation23 + $0x20] ss:$8 sps:$4 sm:$0xff]  }
 0xfc5   :  { %12845 = vmatprep.subr.bf16.mxu1 %v19755_v1  ;;  %12974 = vmatprep.subr.bf16.mxu0 %v19758_v51  ;;  %v19822_v1 = vld [vmem:[#allocation23 + $0x220] ss:$8 sps:$4 sm:$0xff]   ;;  %v19827_v51 = vld [vmem:[#allocation23 + $0x34] ss:$8 sps:$4 sm:$0xff]  }
 0xfc8   :  { %12846 = vmatpush1.bf16.msra.mxu1 %v19753_v22  ;;  %12975 = vmatpush1.bf16.msra.mxu0 %v19756_v23  ;;  %v19830_v22 = vld [vmem:[#allocation23 + $0x234] ss:$8 sps:$4 sm:$0xff]   ;;  %v19825_v23 = vld [vmem:[#allocation23 + $0x30] ss:$8 sps:$4 sm:$0xff]  }
 0xfc9   :  { %12858 = vmatprep.subr.bf16.mxu1 %v19761_v31  ;;  %12987 = vmatprep.subr.bf16.mxu0 %v19764_v53  ;;  %v19828_v31 = vld [vmem:[#allocation23 + $0x230] ss:$8 sps:$4 sm:$0xff]   ;;  %v19833_v53 = vld [vmem:[#allocation23 + $0x44] ss:$8 sps:$4 sm:$0xff]  }
 0xfcb   :  { %12848 = vmatmul.mubr.bf16.vlgmr.msra.gmra.mrb[200].mxu1 %v21943_v5  ;;  %12977 = vmatmul.mubr.bf16.vlgmr.msra.gmra.mrb[160].mxu0 %v21943_v5  ;;  %v19782_v5 = vld [vmem:[#allocation19 + $0xe6c] ss:$16 sps:$4 sm:$0xff]  }
 0xfcc   :  { %12859 = vmatpush1.bf16.msra.mxu1 %v19759_v59  ;;  %12988 = vmatpush1.bf16.msra.mxu0 %v19762_v27  ;;  %v19836_v59 = vld [vmem:[#allocation23 + $0x244] ss:$8 sps:$4 sm:$0xff]   ;;  %v19831_v27 = vld [vmem:[#allocation23 + $0x40] ss:$8 sps:$4 sm:$0xff]  }
 0xfcd   :  { %12860 = vmatprep.subr.bf16.mxu1 %v19767_v39  ;;  %12989 = vmatprep.subr.bf16.mxu0 %v19770_v35  ;;  %v19834_v39 = vld [vmem:[#allocation23 + $0x240] ss:$8 sps:$4 sm:$0xff]   ;;  %v19839_v35 = vld [vmem:[#allocation23 + $0x54] ss:$8 sps:$4 sm:$0xff]  }
 0xfce   :  { %12890 = vmatprep.mubr.bf16.mxu1 %v20727_v29  ;;  %13019 = vmatprep.mubr.bf16.mxu0 %v20727_v29 }
 0xfd0   :  { %12861 = vmatpush1.bf16.msra.mxu1 %v19765_v3  ;;  %12990 = vmatpush1.bf16.msra.mxu0 %v19768_v19  ;;  %v19842_v3 = vld [vmem:[#allocation23 + $0x254] ss:$8 sps:$4 sm:$0xff]   ;;  %v19837_v19 = vld [vmem:[#allocation23 + $0x50] ss:$8 sps:$4 sm:$0xff]  }
 0xfd1   :  { %12862 = vmatprep.subr.bf16.mxu1 %v19773_v9  ;;  %12991 = vmatprep.subr.bf16.mxu0 %v19776_v10  ;;  %v19840_v9 = vld [vmem:[#allocation23 + $0x250] ss:$8 sps:$4 sm:$0xff]   ;;  %v19845_v10 = vld [vmem:[#allocation23 + $0x64] ss:$8 sps:$4 sm:$0xff]  }
 0xfd4   :  { %12863 = vmatpush1.bf16.msra.mxu1 %v19771_v50  ;;  %12992 = vmatpush1.bf16.msra.mxu0 %v19774_v57  ;;  %v19848_v50 = vld [vmem:[#allocation23 + $0x264] ss:$8 sps:$4 sm:$0xff]   ;;  %v19843_v57 = vld [vmem:[#allocation23 + $0x60] ss:$8 sps:$4 sm:$0xff]  }
 0xfd5   :  { %12864 = vmatprep.subr.bf16.mxu1 %v19779_v14  ;;  %12993 = vmatprep.subr.bf16.mxu0 %v19782_v5  ;;  %v19846_v14 = vld [vmem:[#allocation23 + $0x260] ss:$8 sps:$4 sm:$0xff]   ;;  %v19851_v5 = vld [vmem:[#allocation23 + $0x74] ss:$8 sps:$4 sm:$0xff]  }
 0xfd8   :  { %12865 = vmatpush1.bf16.msra.mxu1 %v19777_v54  ;;  %12994 = vmatpush1.bf16.msra.mxu0 %v19780_v2  ;;  %v19854_v54 = vld [vmem:[#allocation23 + $0x274] ss:$8 sps:$4 sm:$0xff]   ;;  %v19849_v2 = vld [vmem:[#allocation23 + $0x70] ss:$8 sps:$4 sm:$0xff]  }
 0xfd9   :  { %12866 = vmatprep.subr.bf16.mxu1 %v19785_v44  ;;  %12995 = vmatprep.subr.bf16.mxu0 %v19788_v6  ;;  %v19852_v44 = vld [vmem:[#allocation23 + $0x270] ss:$8 sps:$4 sm:$0xff]   ;;  %v19857_v6 = vld [vmem:[#allocation23 + $0x84] ss:$8 sps:$4 sm:$0xff]  }
 0xfdc   :  { %12867 = vmatpush1.bf16.msra.mxu1 %v19783_v41  ;;  %12996 = vmatpush1.bf16.msra.mxu0 %v19786_v8  ;;  %v19860_v41 = vld [vmem:[#allocation23 + $0x284] ss:$8 sps:$4 sm:$0xff]   ;;  %v19855_v8 = vld [vmem:[#allocation23 + $0x80] ss:$8 sps:$4 sm:$0xff]  }
 0xfdd   :  { %12868 = vmatprep.subr.bf16.mxu1 %v19791_v43  ;;  %12997 = vmatprep.subr.bf16.mxu0 %v19794_v7  ;;  %v19858_v43 = vld [vmem:[#allocation23 + $0x280] ss:$8 sps:$4 sm:$0xff]   ;;  %v19863_v7 = vld [vmem:[#allocation23 + $0x94] ss:$8 sps:$4 sm:$0xff]  }
 0xfe0   :  { %12869 = vmatpush1.bf16.msra.mxu1 %v19789_v52  ;;  %12998 = vmatpush1.bf16.msra.mxu0 %v19792_v26  ;;  %v19866_v52 = vld [vmem:[#allocation23 + $0x294] ss:$8 sps:$4 sm:$0xff]   ;;  %v19861_v26 = vld [vmem:[#allocation23 + $0x90] ss:$8 sps:$4 sm:$0xff]  }
 0xfe1   :  { %12870 = vmatprep.subr.bf16.mxu1 %v19797_v34  ;;  %12999 = vmatprep.subr.bf16.mxu0 %v19800_v11  ;;  %v19864_v34 = vld [vmem:[#allocation23 + $0x290] ss:$8 sps:$4 sm:$0xff]   ;;  %v19869_v11 = vld [vmem:[#allocation23 + $0xa4] ss:$8 sps:$4 sm:$0xff]  }
 0xfe4   :  { %12871 = vmatpush1.bf16.msra.mxu1 %v19795_v13  ;;  %13000 = vmatpush1.bf16.msra.mxu0 %v19798_v15  ;;  %v19872_v13 = vld [vmem:[#allocation23 + $0x2a4] ss:$8 sps:$4 sm:$0xff]   ;;  %v19867_v15 = vld [vmem:[#allocation23 + $0xa0] ss:$8 sps:$4 sm:$0xff]  }
 0xfe5   :  { %12872 = vmatprep.subr.bf16.mxu1 %v19803_v28  ;;  %13001 = vmatprep.subr.bf16.mxu0 %v19806_v47  ;;  %v19870_v28 = vld [vmem:[#allocation23 + $0x2a0] ss:$8 sps:$4 sm:$0xff]   ;;  %v19875_v47 = vld [vmem:[#allocation23 + $0xb4] ss:$8 sps:$4 sm:$0xff]  }
 0xfe8   :  { %12873 = vmatpush1.bf16.msra.mxu1 %v19801_v49  ;;  %13002 = vmatpush1.bf16.msra.mxu0 %v19804_v60  ;;  %v19878_v49 = vld [vmem:[#allocation23 + $0x2b4] ss:$8 sps:$4 sm:$0xff]   ;;  %v19873_v60 = vld [vmem:[#allocation23 + $0xb0] ss:$8 sps:$4 sm:$0xff]  }
 0xfeb   :  { %12891 = vmatmul.mubr.bf16.vlgmr.msra.gmra.mrb[200].mxu1 %v21945_v32  ;;  %13020 = vmatmul.mubr.bf16.vlgmr.msra.gmra.mrb[160].mxu0 %v21945_v32  ;;  %v13042_v32 = vld [vmem:[#allocation22] sm:$0xf] }
 0xfec   :  { %13079 = vmatprep.mubr.bf16.mxu0 %v20727_v29  ;;  %13120 = vmatprep.mubr.bf16.mxu1 %v20727_v29 }
0x10be   :  { %v12892_v48 = vpop.f32.mrb[200].mxu1  ;;  %v13021_v30 = vpop.f32.mrb[160].mxu0 }
0x10bf   :  { %v12894_v25 = vpop.f32.mrb[201].mxu1  ;;  %v13023_v40 = vpop.f32.mrb[161].mxu0 }
0x10c0   :  { %v12896_v46 = vpop.f32.mrb[202].mxu1  ;;  %v13025_v37 = vpop.f32.mrb[162].mxu0 }
0x10c1   :  { %v13038_v33 = vpack.c.bf16 %v12896_v46, %v12892_v48  ;;  %v13040_v45 = vpack.c.bf16 %v13025_v37, %v13021_v30  ;;  %v12898_v38 = vpop.f32.mrb[203].mxu1  ;;  %v13027_v20 = vpop.f32.mrb[163].mxu0  ;;  %v19876_v48 = vld [vmem:[#allocation23 + $0x2b0] ss:$8 sps:$4 sm:$0xff]   ;;  %v19881_v30 = vld [vmem:[#allocation23 + $0xc4] ss:$8 sps:$4 sm:$0xff]  }
0x10c2   :  { %v13039_v61 = vpack.c.bf16 %v12898_v38, %v12894_v25  ;;  %v13041_v36 = vpack.c.bf16 %v13027_v20, %v13023_v40  ;;  %v19884_v25 = vld [vmem:[#allocation23 + $0x2c4] ss:$8 sps:$4 sm:$0xff]   ;;  %v19879_v40 = vld [vmem:[#allocation23 + $0xc0] ss:$8 sps:$4 sm:$0xff]   ;;  %v19887_v37 = vld [vmem:[#allocation23 + $0xd4] ss:$8 sps:$4 sm:$0xff]  }
0x10c3   :  { %v19882_v46 = vld [vmem:[#allocation23 + $0x2c0] ss:$8 sps:$4 sm:$0xff]   ;;  %v19888_v38 = vld [vmem:[#allocation23 + $0x2d0] ss:$8 sps:$4 sm:$0xff]   ;;  %v19893_v20 = vld [vmem:[#allocation23 + $0xe4] ss:$8 sps:$4 sm:$0xff]  }
0x10c4   :  { %13047 = vmatprep.subr.bf16.mxu0 %v13039_v61  ;;  %13088 = vmatprep.subr.bf16.mxu1 %v13041_v36 }
0x10c5   :  { %13048 = vmatpush1.bf16.msra.mxu0 %v13038_v33  ;;  %13089 = vmatpush1.bf16.msra.mxu1 %v13040_v45 }
0x10c6   :  { %13134 = vmatprep.subr.bf16.mxu0 %v13039_v61  ;;  %13175 = vmatprep.subr.bf16.mxu1 %v13041_v36  ;;  %v19891_v61 = vld [vmem:[#allocation23 + $0xe0] ss:$8 sps:$4 sm:$0xff]  }
0x10c7   :  { %v19894_v36 = vld [vmem:[#allocation23 + $0x2e0] ss:$8 sps:$4 sm:$0xff]  }
0x10c8   :  { %16891 = vmatmul.mubr.msk.bf16.vlgmr.msra.gmra.mrb[168].mxu0 %vm13043_vm9, %v13042_v32  ;;  %16892 = vmatmul.mubr.msk.bf16.vlgmr.msra.gmra.mrb[212].mxu1 %vm13043_vm9, %v13042_v32  ;;  %v19896_v32 = vld [vmem:[#allocation23 + $0x2e4] ss:$8 sps:$4 sm:$0xff]  }
0x10c9   :  { %13135 = vmatpush1.bf16.msra.mxu0 %v13038_v33  ;;  %13176 = vmatpush1.bf16.msra.mxu1 %v13040_v45  ;;  %v19890_v33 = vld [vmem:[#allocation23 + $0x2d4] ss:$8 sps:$4 sm:$0xff]   ;;  %v19885_v45 = vld [vmem:[#allocation23 + $0xd0] ss:$8 sps:$4 sm:$0xff]  }
0x10ca   :  { %13166 = vmatprep.mubr.bf16.mxu0 %v20727_v29  ;;  %13207 = vmatprep.mubr.bf16.mxu1 %v20727_v29 }
0x10cb   :  { %13608 = vmatprep.subr.bf16.mxu0 %v19809_v17  ;;  %14075 = vmatprep.subr.bf16.mxu1 %v19812_v42  ;;  %v19899_v17 = vld [vmem:[#allocation23 + $0xf4] ss:$8 sps:$4 sm:$0xff]  }
0x10cc   :  { %v19902_v42 = vld [vmem:[#allocation23 + $0x2f4] ss:$8 sps:$4 sm:$0xff]  }
0x10d0   :  { %16893 = vmatmul.mubr.msk.bf16.vlgmr.msra.gmra.mrb[172].mxu0 %vm13043_vm9, %v13130_v56  ;;  %16894 = vmatmul.mubr.msk.bf16.vlgmr.msra.gmra.mrb[216].mxu1 %vm13043_vm9, %v13130_v56  ;;  %v19897_v56 = vld [vmem:[#allocation23 + $0xf0] ss:$8 sps:$4 sm:$0xff]  }
0x10d1   :  { %13609 = vmatpush1.bf16.msra.mxu0 %v19807_v12  ;;  %14076 = vmatpush1.bf16.msra.mxu1 %v19810_v0  ;;  %v19900_v12 = vld [vmem:[#allocation23 + $0x2f0] ss:$8 sps:$4 sm:$0xff]   ;;  %v19905_v0 = vld [vmem:[#allocation23 + $0x104] ss:$8 sps:$4 sm:$0xff]  }
0x10d2   :  { %13610 = vmatprep.subr.bf16.mxu0 %v19815_v58  ;;  %14077 = vmatprep.subr.bf16.mxu1 %v19818_v63  ;;  %v19908_v58 = vld [vmem:[#allocation23 + $0x304] ss:$8 sps:$4 sm:$0xff]  }
0x10d5   :  { %13611 = vmatpush1.bf16.msra.mxu0 %v19813_v24  ;;  %14078 = vmatpush1.bf16.msra.mxu1 %v19816_v62 }
0x10d6   :  { %13612 = vmatprep.subr.bf16.mxu0 %v19821_v55  ;;  %14079 = vmatprep.subr.bf16.mxu1 %v19824_v18 }
0x10d9   :  { %13613 = vmatpush1.bf16.msra.mxu0 %v19819_v16  ;;  %14080 = vmatpush1.bf16.msra.mxu1 %v19822_v1 }
0x10da   :  { %13614 = vmatprep.subr.bf16.mxu0 %v19827_v51  ;;  %14081 = vmatprep.subr.bf16.mxu1 %v19830_v22 }
0x10dd   :  { %13615 = vmatpush1.bf16.msra.mxu0 %v19825_v23  ;;  %14082 = vmatpush1.bf16.msra.mxu1 %v19828_v31 }
0x10de   :  { %13616 = vmatprep.subr.bf16.mxu0 %v19833_v53  ;;  %14083 = vmatprep.subr.bf16.mxu1 %v19836_v59 }
0x10e1   :  { %13617 = vmatpush1.bf16.msra.mxu0 %v19831_v27  ;;  %14084 = vmatpush1.bf16.msra.mxu1 %v19834_v39 }
0x10e2   :  { %13618 = vmatprep.subr.bf16.mxu0 %v19839_v35  ;;  %14085 = vmatprep.subr.bf16.mxu1 %v19842_v3 }
0x10e5   :  { %13619 = vmatpush1.bf16.msra.mxu0 %v19837_v19  ;;  %14086 = vmatpush1.bf16.msra.mxu1 %v19840_v9 }
0x10e6   :  { %13620 = vmatprep.subr.bf16.mxu0 %v19845_v10  ;;  %14087 = vmatprep.subr.bf16.mxu1 %v19848_v50 }
0x10e9   :  { %13621 = vmatpush1.bf16.msra.mxu0 %v19843_v57  ;;  %14088 = vmatpush1.bf16.msra.mxu1 %v19846_v14  ;;  %v19903_v57 = vld [vmem:[#allocation23 + $0x100] ss:$8 sps:$4 sm:$0xff]  }
0x10ea   :  { %13622 = vmatprep.subr.bf16.mxu0 %v19851_v5  ;;  %14089 = vmatprep.subr.bf16.mxu1 %v19854_v54  ;;  %v19906_v14 = vld [vmem:[#allocation23 + $0x300] ss:$8 sps:$4 sm:$0xff]   ;;  %v19911_v54 = vld [vmem:[#allocation23 + $0x114] ss:$8 sps:$4 sm:$0xff]  }
0x10ed   :  { %13623 = vmatpush1.bf16.msra.mxu0 %v19849_v2  ;;  %14090 = vmatpush1.bf16.msra.mxu1 %v19852_v44  ;;  %v19914_v2 = vld [vmem:[#allocation23 + $0x314] ss:$8 sps:$4 sm:$0xff]  }
0x10ee   :  { %13624 = vmatprep.subr.bf16.mxu0 %v19857_v6  ;;  %14091 = vmatprep.subr.bf16.mxu1 %v19860_v41  ;;  %v19909_v6 = vld [vmem:[#allocation23 + $0x110] ss:$8 sps:$4 sm:$0xff]  }
0x10ef   :  { %v19912_v41 = vld [vmem:[#allocation23 + $0x310] ss:$8 sps:$4 sm:$0xff]  }
0x10f1   :  { %13625 = vmatpush1.bf16.msra.mxu0 %v19855_v8  ;;  %14092 = vmatpush1.bf16.msra.mxu1 %v19858_v43  ;;  %v19917_v8 = vld [vmem:[#allocation23 + $0x124] ss:$8 sps:$4 sm:$0xff]  }
0x10f2   :  { %13626 = vmatprep.subr.bf16.mxu0 %v19863_v7  ;;  %14093 = vmatprep.subr.bf16.mxu1 %v19866_v52  ;;  %v19920_v43 = vld [vmem:[#allocation23 + $0x324] ss:$8 sps:$4 sm:$0xff]   ;;  %v19915_v7 = vld [vmem:[#allocation23 + $0x120] ss:$8 sps:$4 sm:$0xff]  }
0x10f3   :  { %v19918_v52 = vld [vmem:[#allocation23 + $0x320] ss:$8 sps:$4 sm:$0xff]  }
0x10f5   :  { %13627 = vmatpush1.bf16.msra.mxu0 %v19861_v26  ;;  %14094 = vmatpush1.bf16.msra.mxu1 %v19864_v34  ;;  %v19923_v26 = vld [vmem:[#allocation23 + $0x134] ss:$8 sps:$4 sm:$0xff]  }
0x10f6   :  { %13628 = vmatprep.subr.bf16.mxu0 %v19869_v11  ;;  %14095 = vmatprep.subr.bf16.mxu1 %v19872_v13  ;;  %v19926_v34 = vld [vmem:[#allocation23 + $0x334] ss:$8 sps:$4 sm:$0xff]   ;;  %v19921_v11 = vld [vmem:[#allocation23 + $0x130] ss:$8 sps:$4 sm:$0xff]  }
0x10f7   :  { %v19924_v13 = vld [vmem:[#allocation23 + $0x330] ss:$8 sps:$4 sm:$0xff]  }
0x10f9   :  { %13629 = vmatpush1.bf16.msra.mxu0 %v19867_v15  ;;  %14096 = vmatpush1.bf16.msra.mxu1 %v19870_v28  ;;  %v19929_v15 = vld [vmem:[#allocation23 + $0x144] ss:$8 sps:$4 sm:$0xff]  }
0x10fa   :  { %13630 = vmatprep.subr.bf16.mxu0 %v19875_v47  ;;  %14097 = vmatprep.subr.bf16.mxu1 %v19878_v49  ;;  %v19932_v28 = vld [vmem:[#allocation23 + $0x344] ss:$8 sps:$4 sm:$0xff]   ;;  %v19927_v47 = vld [vmem:[#allocation23 + $0x140] ss:$8 sps:$4 sm:$0xff]  }
0x10fb   :  { %v19930_v49 = vld [vmem:[#allocation23 + $0x340] ss:$8 sps:$4 sm:$0xff]  }
0x10fd   :  { %13631 = vmatpush1.bf16.msra.mxu0 %v19873_v60  ;;  %14098 = vmatpush1.bf16.msra.mxu1 %v19876_v48  ;;  %v19935_v60 = vld [vmem:[#allocation23 + $0x154] ss:$8 sps:$4 sm:$0xff]  }
0x10fe   :  { %13632 = vmatprep.subr.bf16.mxu0 %v19881_v30  ;;  %14099 = vmatprep.subr.bf16.mxu1 %v19884_v25  ;;  %v19938_v48 = vld [vmem:[#allocation23 + $0x354] ss:$8 sps:$4 sm:$0xff]   ;;  %v19933_v30 = vld [vmem:[#allocation23 + $0x150] ss:$8 sps:$4 sm:$0xff]  }
0x10ff   :  { %v19936_v25 = vld [vmem:[#allocation23 + $0x350] ss:$8 sps:$4 sm:$0xff]  }
0x1101   :  { %13633 = vmatpush1.bf16.msra.mxu0 %v19879_v40  ;;  %14100 = vmatpush1.bf16.msra.mxu1 %v19882_v46  ;;  %v19941_v40 = vld [vmem:[#allocation23 + $0x164] ss:$8 sps:$4 sm:$0xff]  }
0x1102   :  { %13634 = vmatprep.subr.bf16.mxu0 %v19887_v37  ;;  %14101 = vmatprep.subr.bf16.mxu1 %v19890_v33  ;;  %v19944_v46 = vld [vmem:[#allocation23 + $0x364] ss:$8 sps:$4 sm:$0xff]   ;;  %v19939_v37 = vld [vmem:[#allocation23 + $0x160] ss:$8 sps:$4 sm:$0xff]  }
0x1103   :  { %v19942_v33 = vld [vmem:[#allocation23 + $0x360] ss:$8 sps:$4 sm:$0xff]  }
0x1105   :  { %13635 = vmatpush1.bf16.msra.mxu0 %v19885_v45  ;;  %14102 = vmatpush1.bf16.msra.mxu1 %v19888_v38  ;;  %v19947_v45 = vld [vmem:[#allocation23 + $0x174] ss:$8 sps:$4 sm:$0xff]  }
0x1106   :  { %13636 = vmatprep.subr.bf16.mxu0 %v19893_v20  ;;  %14103 = vmatprep.subr.bf16.mxu1 %v19896_v32  ;;  %v19950_v38 = vld [vmem:[#allocation23 + $0x374] ss:$8 sps:$4 sm:$0xff]   ;;  %v19945_v20 = vld [vmem:[#allocation23 + $0x170] ss:$8 sps:$4 sm:$0xff]   ;;  %v19956_v32 = vld [vmem:[#allocation23 + $0x384] ss:$8 sps:$4 sm:$0xff]  }
0x1109   :  { %13637 = vmatpush1.bf16.msra.mxu0 %v19891_v61  ;;  %14104 = vmatpush1.bf16.msra.mxu1 %v19894_v36  ;;  %v19948_v61 = vld [vmem:[#allocation23 + $0x370] ss:$8 sps:$4 sm:$0xff]   ;;  %v19953_v36 = vld [vmem:[#allocation23 + $0x184] ss:$8 sps:$4 sm:$0xff]  }
0x110a   :  { %13638 = vmatprep.subr.bf16.mxu0 %v19899_v17  ;;  %14105 = vmatprep.subr.bf16.mxu1 %v19902_v42  ;;  %v19951_v17 = vld [vmem:[#allocation23 + $0x180] ss:$8 sps:$4 sm:$0xff]  }
0x110b   :  { %v19954_v42 = vld [vmem:[#allocation23 + $0x380] ss:$8 sps:$4 sm:$0xff]  }
0x110d   :  { %13639 = vmatpush1.bf16.msra.mxu0 %v19897_v56  ;;  %14106 = vmatpush1.bf16.msra.mxu1 %v19900_v12  ;;  %v19959_v56 = vld [vmem:[#allocation23 + $0x194] ss:$8 sps:$4 sm:$0xff]  }
0x110e   :  { %13649 = vmatprep.subr.bf16.mxu0 %v19905_v0  ;;  %14116 = vmatprep.subr.bf16.mxu1 %v19908_v58  ;;  %v19962_v12 = vld [vmem:[#allocation23 + $0x394] ss:$8 sps:$4 sm:$0xff]   ;;  %v19957_v0 = vld [vmem:[#allocation23 + $0x190] ss:$8 sps:$4 sm:$0xff]  }
0x110f   :  { %v19960_v58 = vld [vmem:[#allocation23 + $0x390] ss:$8 sps:$4 sm:$0xff]  }
0x119b   :  { %v13081_v63 = vpop.f32.mrb[168].mxu0  ;;  %v13122_v24 = vpop.f32.mrb[212].mxu1 }
0x119c   :  { %v13083_v62 = vpop.f32.mrb[169].mxu0  ;;  %v13124_v55 = vpop.f32.mrb[213].mxu1 }
0x119d   :  { %v13085_v18 = vpop.f32.mrb[170].mxu0  ;;  %v13126_v16 = vpop.f32.mrb[214].mxu1 }
0x119e   :  { %v13086_v1 = vpop.f32.mrb[171].mxu0  ;;  %v13127_v51 = vpop.f32.mrb[215].mxu1  ;;  %v19971_v18 = vld [vmem:[#allocation23 + $0x1b4] ss:$8 sps:$4 sm:$0xff]  }
0x119f   :  { %v19974_v16 = vld [vmem:[#allocation23 + $0x3b4] ss:$8 sps:$4 sm:$0xff]   ;;  %v19969_v1 = vld [vmem:[#allocation23 + $0x1b0] ss:$8 sps:$4 sm:$0xff]  }
0x11a0   :  { %v19972_v51 = vld [vmem:[#allocation23 + $0x3b0] ss:$8 sps:$4 sm:$0xff]  }
0x11a3   :  { %v13168_v22 = vpop.f32.mrb[172].mxu0  ;;  %v13209_v23 = vpop.f32.mrb[216].mxu1 }
0x11a4   :  { %v13216_v31 = vmax.f32 %v13081_v63, %v13168_v22  ;;  %v13170_v53 = vpop.f32.mrb[173].mxu0  ;;  %v21961_v59 = vmax.f32 %v13122_v24, %v13209_v23  ;;  %v13211_v27 = vpop.f32.mrb[217].mxu1  ;;  %v19965_v63 = vld [vmem:[#allocation23 + $0x1a4] ss:$8 sps:$4 sm:$0xff]  }
0x11a5   :  { %v13217_v39 = vmax.f32 %v13083_v62, %v13170_v53  ;;  %v13172_v35 = vpop.f32.mrb[174].mxu0  ;;  %v13219_v3 = vmax.f32 %v13124_v55, %v13211_v27  ;;  %v13213_v19 = vpop.f32.mrb[218].mxu1  ;;  %v19968_v24 = vld [vmem:[#allocation23 + $0x3a4] ss:$8 sps:$4 sm:$0xff]   ;;  %v19963_v62 = vld [vmem:[#allocation23 + $0x1a0] ss:$8 sps:$4 sm:$0xff]  }
0x11a6   :  { %v13173_v9 = vpop.f32.mrb[175].mxu0  ;;  %v13214_v10 = vpop.f32.mrb[219].mxu1  ;;  %v13220_v5 = vpack.c.bf16 %v13216_v31, %v13216_v31  ;;  %v19966_v55 = vld [vmem:[#allocation23 + $0x3a0] ss:$8 sps:$4 sm:$0xff]   ;;  %v19977_v22 = vld [vmem:[#allocation23 + $0x1c4] ss:$8 sps:$4 sm:$0xff]  }
0x11a7   :  { %v13221_v50 = vpack.c.bf16 %v13217_v39, %v13217_v39  ;;  %v13223_v44 = vpack.c.bf16 %v13219_v3, %v13219_v3  ;;  %v19980_v23 = vld [vmem:[#allocation23 + $0x3c4] ss:$8 sps:$4 sm:$0xff]   ;;  %v19975_v31 = vld [vmem:[#allocation23 + $0x1c0] ss:$8 sps:$4 sm:$0xff]   ;;  %v19983_v27 = vld [vmem:[#allocation23 + $0x1d4] ss:$8 sps:$4 sm:$0xff]  }
0x11a8   :  { %v19978_v53 = vld [vmem:[#allocation23 + $0x3c0] ss:$8 sps:$4 sm:$0xff]   ;;  %v19986_v39 = vld [vmem:[#allocation23 + $0x3d4] ss:$8 sps:$4 sm:$0xff]   ;;  %v19981_v35 = vld [vmem:[#allocation23 + $0x1d0] ss:$8 sps:$4 sm:$0xff]  }
0x11a9   :  { %13640 = vmatprep.mubr.bf16.mxu0 %v13221_v50  ;;  %14107 = vmatprep.mubr.bf16.mxu1 %v13221_v50  ;;  %v19984_v3 = vld [vmem:[#allocation23 + $0x3d0] ss:$8 sps:$4 sm:$0xff]   ;;  %v19989_v19 = vld [vmem:[#allocation23 + $0x1e4] ss:$8 sps:$4 sm:$0xff]   ;;  %v19987_v10 = vld [vmem:[#allocation23 + $0x1e0] ss:$8 sps:$4 sm:$0xff]  }
0x11aa   :  { %13641 = vmatmul.mubr.bf16.vlgmr.msra.gmra.mrb[176].mxu0 %v13220_v5  ;;  %14108 = vmatmul.mubr.bf16.vlgmr.msra.gmra.mrb[220].mxu1 %v13220_v5  ;;  %v19992_v9 = vld [vmem:[#allocation23 + $0x3e4] ss:$8 sps:$4 sm:$0xff]   ;;  %v19990_v50 = vld [vmem:[#allocation23 + $0x3e0] ss:$8 sps:$4 sm:$0xff]   ;;  %v19993_v5 = vld [vmem:[#allocation23 + $0x1f0] ss:$8 sps:$4 sm:$0xff]  }
0x11ab   :  { %13650 = vmatpush1.bf16.msra.mxu0 %v19903_v57  ;;  %14117 = vmatpush1.bf16.msra.mxu1 %v19906_v14  ;;  %v19995_v57 = vld [vmem:[#allocation23 + $0x1f4] ss:$8 sps:$4 sm:$0xff]  }
0x11ac   :  { %13651 = vmatprep.subr.bf16.mxu0 %v19911_v54  ;;  %14118 = vmatprep.subr.bf16.mxu1 %v19914_v2  ;;  %v19998_v14 = vld [vmem:[#allocation23 + $0x3f4] ss:$8 sps:$4 sm:$0xff]   ;;  %v19996_v54 = vld [vmem:[#allocation23 + $0x3f0] ss:$8 sps:$4 sm:$0xff]   ;;  %v13222_v2 = vpack.c.bf16 %v21961_v59, %v21961_v59 }
0x11ad   :  { %13681 = vmatprep.mubr.bf16.mxu0 %v13223_v44  ;;  %14148 = vmatprep.mubr.bf16.mxu1 %v13223_v44  ;;  %v14159_v44 = vld [vmem:[#allocation20] sm:$0x3] }
0x11af   :  { %13652 = vmatpush1.bf16.msra.mxu0 %v19909_v6  ;;  %14119 = vmatpush1.bf16.msra.mxu1 %v19912_v41  ;;  %v14164_v6 = vrot.slane %v14159_v44, %v21588_v21 }
0x11b0   :  { %13653 = vmatprep.subr.bf16.mxu0 %v19917_v8  ;;  %14120 = vmatprep.subr.bf16.mxu1 %v19920_v43  ;;  %v14168_v43 = vrot.slane %v14159_v44, %v21591_v4  ;;  %v20074_v44 = vld [vmem:[#allocation26 + $0x90] ss:$8 sps:$4 sm:$0xff]  }
0x11b3   :  { %13654 = vmatpush1.bf16.msra.mxu0 %v19915_v7  ;;  %14121 = vmatpush1.bf16.msra.mxu1 %v19918_v52 }
0x11b4   :  { %13655 = vmatprep.subr.bf16.mxu0 %v19923_v26  ;;  %14122 = vmatprep.subr.bf16.mxu1 %v19926_v34 }
0x11b7   :  { %13656 = vmatpush1.bf16.msra.mxu0 %v19921_v11  ;;  %14123 = vmatpush1.bf16.msra.mxu1 %v19924_v13 }
0x11b8   :  { %13657 = vmatprep.subr.bf16.mxu0 %v19929_v15  ;;  %14124 = vmatprep.subr.bf16.mxu1 %v19932_v28 }
0x11bb   :  { %13658 = vmatpush1.bf16.msra.mxu0 %v19927_v47  ;;  %14125 = vmatpush1.bf16.msra.mxu1 %v19930_v49 }
0x11bc   :  { %13659 = vmatprep.subr.bf16.mxu0 %v19935_v60  ;;  %14126 = vmatprep.subr.bf16.mxu1 %v19938_v48 }
0x11bf   :  { %13660 = vmatpush1.bf16.msra.mxu0 %v19933_v30  ;;  %14127 = vmatpush1.bf16.msra.mxu1 %v19936_v25  ;;  %v20001_v25 = vld [vmem:[#allocation26 + $0x104] ss:$8 sps:$4 sm:$0xff]  }
0x11c0   :  { %13661 = vmatprep.subr.bf16.mxu0 %v19941_v40  ;;  %14128 = vmatprep.subr.bf16.mxu1 %v19944_v46  ;;  %v20049_v40 = vld [vmem:[#allocation26 + $0x4] ss:$8 sps:$4 sm:$0xff]  }
0x11c3   :  { %13662 = vmatpush1.bf16.msra.mxu0 %v19939_v37  ;;  %14129 = vmatpush1.bf16.msra.mxu1 %v19942_v33  ;;  %v14264_v37 = vld [vmem:[#allocation25 + $0x1] sm:$0x1]  ;;  %v19999_v33 = vld [vmem:[#allocation26 + $0x100] ss:$8 sps:$4 sm:$0xff]  }
0x11c4   :  { %13663 = vmatprep.subr.bf16.mxu0 %v19947_v45  ;;  %14130 = vmatprep.subr.bf16.mxu1 %v19950_v38  ;;  %v14177_v45 = vld [vmem:[#allocation25] sm:$0x1]  ;;  %v20047_v38 = vld [vmem:[#allocation26] ss:$8 sps:$4 sm:$0xff]  }
0x11c7   :  { %13664 = vmatpush1.bf16.msra.mxu0 %v19945_v20  ;;  %14131 = vmatpush1.bf16.msra.mxu1 %v19948_v61  ;;  %v20004_v20 = vld [vmem:[#allocation26 + $0x114] ss:$8 sps:$4 sm:$0xff]  }
0x11c8   :  { %13665 = vmatprep.subr.bf16.mxu0 %v19953_v36  ;;  %14132 = vmatprep.subr.bf16.mxu1 %v19956_v32  ;;  %v20052_v61 = vld [vmem:[#allocation26 + $0x14] ss:$8 sps:$4 sm:$0xff]   ;;  %v20002_v36 = vld [vmem:[#allocation26 + $0x110] ss:$8 sps:$4 sm:$0xff]  }
0x11c9   :  { %v20050_v32 = vld [vmem:[#allocation26 + $0x10] ss:$8 sps:$4 sm:$0xff]  }
0x11cb   :  { %13666 = vmatpush1.bf16.msra.mxu0 %v19951_v17  ;;  %14133 = vmatpush1.bf16.msra.mxu1 %v19954_v42  ;;  %v20007_v17 = vld [vmem:[#allocation26 + $0x124] ss:$8 sps:$4 sm:$0xff]  }
0x11cc   :  { %13667 = vmatprep.subr.bf16.mxu0 %v19959_v56  ;;  %14134 = vmatprep.subr.bf16.mxu1 %v19962_v12  ;;  %v20055_v42 = vld [vmem:[#allocation26 + $0x24] ss:$8 sps:$4 sm:$0xff]   ;;  %v20005_v56 = vld [vmem:[#allocation26 + $0x120] ss:$8 sps:$4 sm:$0xff]  }
0x11cd   :  { %v20053_v12 = vld [vmem:[#allocation26 + $0x20] ss:$8 sps:$4 sm:$0xff]  }
0x11cf   :  { %13668 = vmatpush1.bf16.msra.mxu0 %v19957_v0  ;;  %14135 = vmatpush1.bf16.msra.mxu1 %v19960_v58  ;;  %v20010_v0 = vld [vmem:[#allocation26 + $0x134] ss:$8 sps:$4 sm:$0xff]  }
0x11d0   :  { %13669 = vmatprep.subr.bf16.mxu0 %v19965_v63  ;;  %14136 = vmatprep.subr.bf16.mxu1 %v19968_v24  ;;  %v20058_v58 = vld [vmem:[#allocation26 + $0x34] ss:$8 sps:$4 sm:$0xff]   ;;  %v20008_v63 = vld [vmem:[#allocation26 + $0x130] ss:$8 sps:$4 sm:$0xff]  }
0x11d1   :  { %v20056_v24 = vld [vmem:[#allocation26 + $0x30] ss:$8 sps:$4 sm:$0xff]  }
0x11d3   :  { %13670 = vmatpush1.bf16.msra.mxu0 %v19963_v62  ;;  %14137 = vmatpush1.bf16.msra.mxu1 %v19966_v55  ;;  %v20013_v62 = vld [vmem:[#allocation26 + $0x144] ss:$8 sps:$4 sm:$0xff]  }
0x11d4   :  { %13671 = vmatprep.subr.bf16.mxu0 %v19971_v18  ;;  %14138 = vmatprep.subr.bf16.mxu1 %v19974_v16  ;;  %v20061_v55 = vld [vmem:[#allocation26 + $0x44] ss:$8 sps:$4 sm:$0xff]   ;;  %v20011_v18 = vld [vmem:[#allocation26 + $0x140] ss:$8 sps:$4 sm:$0xff]  }
0x11d5   :  { %v20059_v16 = vld [vmem:[#allocation26 + $0x40] ss:$8 sps:$4 sm:$0xff]  }
0x11d7   :  { %13672 = vmatpush1.bf16.msra.mxu0 %v19969_v1  ;;  %14139 = vmatpush1.bf16.msra.mxu1 %v19972_v51  ;;  %v20016_v1 = vld [vmem:[#allocation26 + $0x154] ss:$8 sps:$4 sm:$0xff]  }
0x11d8   :  { %13673 = vmatprep.subr.bf16.mxu0 %v19977_v22  ;;  %14140 = vmatprep.subr.bf16.mxu1 %v19980_v23  ;;  %v20064_v51 = vld [vmem:[#allocation26 + $0x54] ss:$8 sps:$4 sm:$0xff]   ;;  %v20014_v22 = vld [vmem:[#allocation26 + $0x150] ss:$8 sps:$4 sm:$0xff]  }
0x11d9   :  { %v20062_v23 = vld [vmem:[#allocation26 + $0x50] ss:$8 sps:$4 sm:$0xff]  }
0x11db   :  { %13674 = vmatpush1.bf16.msra.mxu0 %v19975_v31  ;;  %14141 = vmatpush1.bf16.msra.mxu1 %v19978_v53  ;;  %v20019_v31 = vld [vmem:[#allocation26 + $0x164] ss:$8 sps:$4 sm:$0xff]  }
0x11dc   :  { %13675 = vmatprep.subr.bf16.mxu0 %v19983_v27  ;;  %14142 = vmatprep.subr.bf16.mxu1 %v19986_v39  ;;  %v20067_v53 = vld [vmem:[#allocation26 + $0x64] ss:$8 sps:$4 sm:$0xff]   ;;  %v20017_v27 = vld [vmem:[#allocation26 + $0x160] ss:$8 sps:$4 sm:$0xff]  }
0x11dd   :  { %v20065_v39 = vld [vmem:[#allocation26 + $0x60] ss:$8 sps:$4 sm:$0xff]  }
0x11df   :  { %13676 = vmatpush1.bf16.msra.mxu0 %v19981_v35  ;;  %14143 = vmatpush1.bf16.msra.mxu1 %v19984_v3  ;;  %v20022_v35 = vld [vmem:[#allocation26 + $0x174] ss:$8 sps:$4 sm:$0xff]  }
0x11e0   :  { %13677 = vmatprep.subr.bf16.mxu0 %v19989_v19  ;;  %14144 = vmatprep.subr.bf16.mxu1 %v19992_v9  ;;  %v20070_v3 = vld [vmem:[#allocation26 + $0x74] ss:$8 sps:$4 sm:$0xff]   ;;  %v20020_v19 = vld [vmem:[#allocation26 + $0x170] ss:$8 sps:$4 sm:$0xff]  }
0x11e1   :  { %v20068_v9 = vld [vmem:[#allocation26 + $0x70] ss:$8 sps:$4 sm:$0xff]  }
0x11e3   :  { %13678 = vmatpush1.bf16.msra.mxu0 %v19987_v10  ;;  %14145 = vmatpush1.bf16.msra.mxu1 %v19990_v50  ;;  %v20025_v10 = vld [vmem:[#allocation26 + $0x184] ss:$8 sps:$4 sm:$0xff]  }
0x11e4   :  { %13679 = vmatprep.subr.bf16.mxu0 %v19995_v57  ;;  %14146 = vmatprep.subr.bf16.mxu1 %v19998_v14  ;;  %v20073_v50 = vld [vmem:[#allocation26 + $0x84] ss:$8 sps:$4 sm:$0xff]   ;;  %v20023_v57 = vld [vmem:[#allocation26 + $0x180] ss:$8 sps:$4 sm:$0xff]  }
0x11e5   :  { %v20071_v14 = vld [vmem:[#allocation26 + $0x80] ss:$8 sps:$4 sm:$0xff]  }
0x11e7   :  { %13680 = vmatpush1.bf16.msra.mxu0 %v19993_v5  ;;  %14147 = vmatpush1.bf16.msra.mxu1 %v19996_v54  ;;  %v20028_v5 = vld [vmem:[#allocation26 + $0x194] ss:$8 sps:$4 sm:$0xff]  }
0x11e8   :  { %v20076_v54 = vld [vmem:[#allocation26 + $0x94] ss:$8 sps:$4 sm:$0xff]  }
0x11ea   :  { %13682 = vmatmul.mubr.bf16.vlgmr.msra.gmra.mrb[176].mxu0 %v13222_v2  ;;  %14149 = vmatmul.mubr.bf16.vlgmr.msra.gmra.mrb[220].mxu1 %v13222_v2  ;;  %v20026_v2 = vld [vmem:[#allocation26 + $0x190] ss:$8 sps:$4 sm:$0xff]  }
0x11eb   :  { %14300 = vmatprep.mubr.bf16.mxu1 %v20727_v29  ;;  %14220 = vmatprep.mubr.bf16.mxu0 %v20727_v29 }
0x12bd   :  { %v13683_v41 = vpop.f32.mrb[176].mxu0  ;;  %v14150_v8 = vpop.f32.mrb[220].mxu1 }
0x12be   :  { %v14157_v7 = vmax.f32 %v13683_v41, %v14150_v8  ;;  %v13685_v52 = vpop.f32.mrb[177].mxu0  ;;  %v14152_v26 = vpop.f32.mrb[221].mxu1  ;;  %v20079_v41 = vld [vmem:[#allocation26 + $0xa4] ss:$8 sps:$4 sm:$0xff]   ;;  %v20029_v8 = vld [vmem:[#allocation26 + $0x1a0] ss:$8 sps:$4 sm:$0xff]  }
0x12bf   :  { %v14158_v34 = vmax.f32 %v13685_v52, %v14152_v26  ;;  %v13687_v11 = vpop.f32.mrb[178].mxu0  ;;  %v14154_v13 = vpop.f32.mrb[222].mxu1  ;;  %v20082_v52 = vld [vmem:[#allocation26 + $0xb4] ss:$8 sps:$4 sm:$0xff]   ;;  %v20032_v26 = vld [vmem:[#allocation26 + $0x1b0] ss:$8 sps:$4 sm:$0xff]  }
0x12c0   :  { %v14171_v59 = vadd.f32 %v14164_v6, %v14157_v7  ;;  %v13688_v15 = vpop.f32.mrb[179].mxu0  ;;  %v14155_v28 = vpop.f32.mrb[223].mxu1  ;;  %v20031_v6 = vld [vmem:[#allocation26 + $0x1a4] ss:$8 sps:$4 sm:$0xff]   ;;  %v20034_v7 = vld [vmem:[#allocation26 + $0x1b4] ss:$8 sps:$4 sm:$0xff]  }
0x12c1   :  { %v14172_v47 = vadd.f32 %v14168_v43, %v14158_v34  ;;  %v20077_v43 = vld [vmem:[#allocation26 + $0xa0] ss:$8 sps:$4 sm:$0xff]   ;;  %v20080_v34 = vld [vmem:[#allocation26 + $0xb0] ss:$8 sps:$4 sm:$0xff]   ;;  %v20037_v11 = vld [vmem:[#allocation26 + $0x1c4] ss:$8 sps:$4 sm:$0xff]  }
0x12c2   :  { %v14173_v49 = vmax.f32 %v14171_v59, 0.0  ;;  %v20085_v13 = vld [vmem:[#allocation26 + $0xc4] ss:$8 sps:$4 sm:$0xff]   ;;  %v20035_v59 = vld [vmem:[#allocation26 + $0x1c0] ss:$8 sps:$4 sm:$0xff]  }
0x12c3   :  { %v14174_v60 = vmax.f32 %v14172_v47, 0.0  ;;  %v20083_v15 = vld [vmem:[#allocation26 + $0xc0] ss:$8 sps:$4 sm:$0xff]   ;;  %v20040_v28 = vld [vmem:[#allocation26 + $0x1d4] ss:$8 sps:$4 sm:$0xff]  }
0x12c4   :  { %v14175_v48 = vpack.c.bf16 %v14173_v49, %v14173_v49  ;;  %v20088_v47 = vld [vmem:[#allocation26 + $0xd4] ss:$8 sps:$4 sm:$0xff]   ;;  %v20038_v49 = vld [vmem:[#allocation26 + $0x1d0] ss:$8 sps:$4 sm:$0xff]  }
0x12c5   :  { %v21969_v30 = vpack.c.bf16 %v14174_v60, %v14174_v60  ;;  %v20086_v60 = vld [vmem:[#allocation26 + $0xd0] ss:$8 sps:$4 sm:$0xff]  }
0x12c6   :  { %v21972_v46 = vsel %vm356_vm1, %v14175_v48, 0  ;;  %v20043_v48 = vld [vmem:[#allocation26 + $0x1e4] ss:$8 sps:$4 sm:$0xff]  }
0x12c7   :  { %17023 = vmatprep.subr.msk.bf16.mxu0 %vm356_vm1, %v21969_v30  ;;  %17025 = vmatprep.subr.msk.bf16.mxu1 %vm356_vm1, %v21969_v30 }
0x12c8   :  { %14189 = vmatpush1.bf16.msra.mxu0 %v21972_v46  ;;  %14269 = vmatpush1.bf16.msra.mxu1 %v21972_v46 }
0x12c9   :  { %14504 = vmatprep.subr.bf16.mxu0 %v20001_v25  ;;  %14705 = vmatprep.subr.bf16.mxu1 %v20049_v40  ;;  %v20041_v25 = vld [vmem:[#allocation26 + $0x1e0] ss:$8 sps:$4 sm:$0xff]   ;;  %v20046_v40 = vld [vmem:[#allocation26 + $0x1f4] ss:$8 sps:$4 sm:$0xff]  }
0x12cb   :  { %17026 = vmatmul.mubr.msk.bf16.vlgmr.msra.gmra.mrb[224].mxu1 %vm14178_vm10, %v14264_v37  ;;  %17024 = vmatmul.mubr.msk.bf16.vlgmr.msra.gmra.mrb[180].mxu0 %vm14178_vm10, %v14177_v45  ;;  %v20044_v37 = vld [vmem:[#allocation26 + $0x1f0] ss:$8 sps:$4 sm:$0xff]   ;;  %v20089_v45 = vld [vmem:[#allocation26 + $0xe0] ss:$8 sps:$4 sm:$0xff]  }
0x12cc   :  { %14505 = vmatpush1.bf16.msra.mxu0 %v19999_v33  ;;  %14706 = vmatpush1.bf16.msra.mxu1 %v20047_v38  ;;  %v20091_v33 = vld [vmem:[#allocation26 + $0xe4] ss:$8 sps:$4 sm:$0xff]   ;;  %v20094_v38 = vld [vmem:[#allocation26 + $0xf4] ss:$8 sps:$4 sm:$0xff]  }
0x12cd   :  { %14506 = vmatprep.subr.bf16.mxu0 %v20004_v20  ;;  %14707 = vmatprep.subr.bf16.mxu1 %v20052_v61  ;;  %v20092_v20 = vld [vmem:[#allocation26 + $0xf0] ss:$8 sps:$4 sm:$0xff]   ;;  %v20097_v61 = vld [vmem:[#allocation26 + $0x204] ss:$8 sps:$4 sm:$0xff]  }
0x12d0   :  { %14507 = vmatpush1.bf16.msra.mxu0 %v20002_v36  ;;  %14708 = vmatpush1.bf16.msra.mxu1 %v20050_v32 }
0x12d1   :  { %14508 = vmatprep.subr.bf16.mxu0 %v20007_v17  ;;  %14709 = vmatprep.subr.bf16.mxu1 %v20055_v42 }
0x12d4   :  { %14509 = vmatpush1.bf16.msra.mxu0 %v20005_v56  ;;  %14710 = vmatpush1.bf16.msra.mxu1 %v20053_v12 }
0x12d5   :  { %14510 = vmatprep.subr.bf16.mxu0 %v20010_v0  ;;  %14711 = vmatprep.subr.bf16.mxu1 %v20058_v58 }
0x12d8   :  { %14511 = vmatpush1.bf16.msra.mxu0 %v20008_v63  ;;  %14712 = vmatpush1.bf16.msra.mxu1 %v20056_v24 }
0x12d9   :  { %14512 = vmatprep.subr.bf16.mxu0 %v20013_v62  ;;  %14713 = vmatprep.subr.bf16.mxu1 %v20061_v55 }
0x12dc   :  { %14513 = vmatpush1.bf16.msra.mxu0 %v20011_v18  ;;  %14714 = vmatpush1.bf16.msra.mxu1 %v20059_v16  ;;  %v20095_v18 = vld [vmem:[#allocation26 + $0x200] ss:$8 sps:$4 sm:$0xff]   ;;  %v20100_v16 = vld [vmem:[#allocation26 + $0x214] ss:$8 sps:$4 sm:$0xff]  }
0x12dd   :  { %14514 = vmatprep.subr.bf16.mxu0 %v20016_v1  ;;  %14715 = vmatprep.subr.bf16.mxu1 %v20064_v51  ;;  %v20098_v1 = vld [vmem:[#allocation26 + $0x210] ss:$8 sps:$4 sm:$0xff]   ;;  %v20103_v51 = vld [vmem:[#allocation26 + $0x224] ss:$8 sps:$4 sm:$0xff]  }
0x12e0   :  { %14515 = vmatpush1.bf16.msra.mxu0 %v20014_v22  ;;  %14716 = vmatpush1.bf16.msra.mxu1 %v20062_v23  ;;  %v14747_v22 = vld [vmem:[#allocation25 + $0x2] sm:$0x1]  ;;  %v20101_v23 = vld [vmem:[#allocation26 + $0x220] ss:$8 sps:$4 sm:$0xff]  }
0x12e1   :  { %14516 = vmatprep.subr.bf16.mxu0 %v20019_v31  ;;  %14717 = vmatprep.subr.bf16.mxu1 %v20067_v53  ;;  %v20106_v31 = vld [vmem:[#allocation26 + $0x304] ss:$8 sps:$4 sm:$0xff]   ;;  %v20109_v53 = vld [vmem:[#allocation26 + $0x234] ss:$8 sps:$4 sm:$0xff]  }
0x12e4   :  { %14517 = vmatpush1.bf16.msra.mxu0 %v20017_v27  ;;  %14718 = vmatpush1.bf16.msra.mxu1 %v20065_v39  ;;  %v20107_v27 = vld [vmem:[#allocation26 + $0x230] ss:$8 sps:$4 sm:$0xff]   ;;  %v15031_v39 = vld [vmem:[#allocation25 + $0x3] sm:$0x1] }
0x12e5   :  { %14518 = vmatprep.subr.bf16.mxu0 %v20022_v35  ;;  %14719 = vmatprep.subr.bf16.mxu1 %v20070_v3  ;;  %v20104_v35 = vld [vmem:[#allocation26 + $0x300] ss:$8 sps:$4 sm:$0xff]   ;;  %v20112_v3 = vld [vmem:[#allocation26 + $0x314] ss:$8 sps:$4 sm:$0xff]  }
0x12e8   :  { %14519 = vmatpush1.bf16.msra.mxu0 %v20020_v19  ;;  %14720 = vmatpush1.bf16.msra.mxu1 %v20068_v9  ;;  %v20113_v19 = vld [vmem:[#allocation26 + $0x240] ss:$8 sps:$4 sm:$0xff]   ;;  %v20121_v9 = vld [vmem:[#allocation26 + $0x254] ss:$8 sps:$4 sm:$0xff]  }
0x12e9   :  { %14520 = vmatprep.subr.bf16.mxu0 %v20025_v10  ;;  %14721 = vmatprep.subr.bf16.mxu1 %v20073_v50  ;;  %v20110_v10 = vld [vmem:[#allocation26 + $0x310] ss:$8 sps:$4 sm:$0xff]   ;;  %v20127_v50 = vld [vmem:[#allocation26 + $0x264] ss:$8 sps:$4 sm:$0xff]  }
0x12ec   :  { %14521 = vmatpush1.bf16.msra.mxu0 %v20023_v57  ;;  %14722 = vmatpush1.bf16.msra.mxu1 %v20071_v14  ;;  %v20116_v57 = vld [vmem:[#allocation26 + $0x320] ss:$8 sps:$4 sm:$0xff]   ;;  %v20124_v14 = vld [vmem:[#allocation26 + $0x334] ss:$8 sps:$4 sm:$0xff]  }
0x12ed   :  { %14522 = vmatprep.subr.bf16.mxu0 %v20028_v5  ;;  %14723 = vmatprep.subr.bf16.mxu1 %v20076_v54  ;;  %v20125_v5 = vld [vmem:[#allocation26 + $0x260] ss:$8 sps:$4 sm:$0xff]   ;;  %v20133_v54 = vld [vmem:[#allocation26 + $0x274] ss:$8 sps:$4 sm:$0xff]  }
0x12f0   :  { %14523 = vmatpush1.bf16.msra.mxu0 %v20026_v2  ;;  %14724 = vmatpush1.bf16.msra.mxu1 %v20074_v44  ;;  %v20122_v2 = vld [vmem:[#allocation26 + $0x330] ss:$8 sps:$4 sm:$0xff]   ;;  %v20130_v44 = vld [vmem:[#allocation26 + $0x344] ss:$8 sps:$4 sm:$0xff]  }
0x12f1   :  { %14524 = vmatprep.subr.bf16.mxu0 %v20031_v6  ;;  %14725 = vmatprep.subr.bf16.mxu1 %v20079_v41  ;;  %v20131_v6 = vld [vmem:[#allocation26 + $0x270] ss:$8 sps:$4 sm:$0xff]   ;;  %v20139_v41 = vld [vmem:[#allocation26 + $0x284] ss:$8 sps:$4 sm:$0xff]  }
0x12f4   :  { %14525 = vmatpush1.bf16.msra.mxu0 %v20029_v8  ;;  %14726 = vmatpush1.bf16.msra.mxu1 %v20077_v43  ;;  %v20128_v8 = vld [vmem:[#allocation26 + $0x340] ss:$8 sps:$4 sm:$0xff]   ;;  %v20136_v43 = vld [vmem:[#allocation26 + $0x354] ss:$8 sps:$4 sm:$0xff]  }
0x12f5   :  { %14526 = vmatprep.subr.bf16.mxu0 %v20034_v7  ;;  %14727 = vmatprep.subr.bf16.mxu1 %v20082_v52  ;;  %v20137_v7 = vld [vmem:[#allocation26 + $0x280] ss:$8 sps:$4 sm:$0xff]   ;;  %v20145_v52 = vld [vmem:[#allocation26 + $0x294] ss:$8 sps:$4 sm:$0xff]  }
0x12f8   :  { %14527 = vmatpush1.bf16.msra.mxu0 %v20032_v26  ;;  %14728 = vmatpush1.bf16.msra.mxu1 %v20080_v34  ;;  %v20134_v26 = vld [vmem:[#allocation26 + $0x350] ss:$8 sps:$4 sm:$0xff]   ;;  %v20142_v34 = vld [vmem:[#allocation26 + $0x364] ss:$8 sps:$4 sm:$0xff]  }
0x12f9   :  { %14528 = vmatprep.subr.bf16.mxu0 %v20037_v11  ;;  %14729 = vmatprep.subr.bf16.mxu1 %v20085_v13  ;;  %v20143_v11 = vld [vmem:[#allocation26 + $0x290] ss:$8 sps:$4 sm:$0xff]   ;;  %v20151_v13 = vld [vmem:[#allocation26 + $0x2a4] ss:$8 sps:$4 sm:$0xff]  }
0x12fc   :  { %14529 = vmatpush1.bf16.msra.mxu0 %v20035_v59  ;;  %14730 = vmatpush1.bf16.msra.mxu1 %v20083_v15  ;;  %v20140_v59 = vld [vmem:[#allocation26 + $0x360] ss:$8 sps:$4 sm:$0xff]   ;;  %v20148_v15 = vld [vmem:[#allocation26 + $0x374] ss:$8 sps:$4 sm:$0xff]  }
0x12fd   :  { %14530 = vmatprep.subr.bf16.mxu0 %v20040_v28  ;;  %14731 = vmatprep.subr.bf16.mxu1 %v20088_v47  ;;  %v20149_v28 = vld [vmem:[#allocation26 + $0x2a0] ss:$8 sps:$4 sm:$0xff]   ;;  %v20157_v47 = vld [vmem:[#allocation26 + $0x2b4] ss:$8 sps:$4 sm:$0xff]  }
0x1300   :  { %14531 = vmatpush1.bf16.msra.mxu0 %v20038_v49  ;;  %14732 = vmatpush1.bf16.msra.mxu1 %v20086_v60  ;;  %v20146_v49 = vld [vmem:[#allocation26 + $0x370] ss:$8 sps:$4 sm:$0xff]   ;;  %v20154_v60 = vld [vmem:[#allocation26 + $0x384] ss:$8 sps:$4 sm:$0xff]  }
0x1301   :  { %14532 = vmatprep.subr.bf16.mxu0 %v20043_v48  ;;  %14733 = vmatprep.subr.bf16.mxu1 %v20091_v33  ;;  %v20155_v48 = vld [vmem:[#allocation26 + $0x2b0] ss:$8 sps:$4 sm:$0xff]   ;;  %v20161_v33 = vld [vmem:[#allocation26 + $0x2c0] ss:$8 sps:$4 sm:$0xff]  }
0x1304   :  { %14533 = vmatpush1.bf16.msra.mxu0 %v20041_v25  ;;  %14734 = vmatpush1.bf16.msra.mxu1 %v20089_v45  ;;  %v20163_v25 = vld [vmem:[#allocation26 + $0x2c4] ss:$8 sps:$4 sm:$0xff]   ;;  %v20169_v45 = vld [vmem:[#allocation26 + $0x2d4] ss:$8 sps:$4 sm:$0xff]  }
0x1305   :  { %14534 = vmatprep.subr.bf16.mxu0 %v20046_v40  ;;  %14735 = vmatprep.subr.bf16.mxu1 %v20094_v38  ;;  %v20152_v40 = vld [vmem:[#allocation26 + $0x380] ss:$8 sps:$4 sm:$0xff]   ;;  %v20158_v38 = vld [vmem:[#allocation26 + $0x390] ss:$8 sps:$4 sm:$0xff]  }
0x1308   :  { %14535 = vmatpush1.bf16.msra.mxu0 %v20044_v37  ;;  %14736 = vmatpush1.bf16.msra.mxu1 %v20092_v20  ;;  %v20160_v37 = vld [vmem:[#allocation26 + $0x394] ss:$8 sps:$4 sm:$0xff]   ;;  %v20166_v20 = vld [vmem:[#allocation26 + $0x3a4] ss:$8 sps:$4 sm:$0xff]  }
0x1309   :  { %17091 = vmatprep.subr.msk.bf16.mxu0 %vm356_vm1, %v21969_v30  ;;  %14987 = vmatprep.subr.bf16.mxu1 %v20097_v61  ;;  %v20167_v61 = vld [vmem:[#allocation26 + $0x2d0] ss:$8 sps:$4 sm:$0xff]  }
0x139e   :  { %v14302_v36 = vpop.f32.mrb[224].mxu1  ;;  %v14222_v32 = vpop.f32.mrb[180].mxu0 }
0x139f   :  { %v14304_v17 = vpop.f32.mrb[225].mxu1  ;;  %v14229_v42 = vpack.c.bf16 %v14222_v32, %v14222_v32  ;;  %v14224_v56 = vpop.f32.mrb[181].mxu0  ;;  %v14309_v24 = vpack.c.bf16 %v14302_v36, %v14302_v36  ;;  %v20164_v36 = vld [vmem:[#allocation26 + $0x3a0] ss:$8 sps:$4 sm:$0xff]   ;;  %v20172_v32 = vld [vmem:[#allocation26 + $0x3b4] ss:$8 sps:$4 sm:$0xff]  }
0x13a0   :  { %v14310_v12 = vpack.c.bf16 %v14304_v17, %v14304_v17  ;;  %v14230_v0 = vpack.c.bf16 %v14224_v56, %v14224_v56  ;;  %v14306_v58 = vpop.f32.mrb[226].mxu1  ;;  %v14226_v63 = vpop.f32.mrb[182].mxu0  ;;  %v20170_v17 = vld [vmem:[#allocation26 + $0x3b0] ss:$8 sps:$4 sm:$0xff]   ;;  %v20175_v56 = vld [vmem:[#allocation26 + $0x2e4] ss:$8 sps:$4 sm:$0xff]  }
0x13a1   :  { %v14307_v62 = vpop.f32.mrb[227].mxu1  ;;  %v14227_v55 = vpop.f32.mrb[183].mxu0  ;;  %v20181_v58 = vld [vmem:[#allocation26 + $0x2f4] ss:$8 sps:$4 sm:$0xff]  }
0x13a2   :  { %14536 = vmatprep.mubr.bf16.mxu0 %v14310_v12  ;;  %14737 = vmatprep.mubr.bf16.mxu1 %v14230_v0  ;;  %v20176_v12 = vld [vmem:[#allocation26 + $0x3c0] ss:$8 sps:$4 sm:$0xff]   ;;  %v20178_v0 = vld [vmem:[#allocation26 + $0x3c4] ss:$8 sps:$4 sm:$0xff]   ;;  %v20184_v63 = vld [vmem:[#allocation26 + $0x3d4] ss:$8 sps:$4 sm:$0xff]  }
0x13a3   :  { %14537 = vmatmul.mubr.bf16.vlgmr.msra.gmra.mrb[184].mxu0 %v14309_v24  ;;  %14738 = vmatmul.mubr.bf16.vlgmr.msra.gmra.mrb[228].mxu1 %v14229_v42  ;;  %v20173_v42 = vld [vmem:[#allocation26 + $0x2e0] ss:$8 sps:$4 sm:$0xff]   ;;  %v20179_v24 = vld [vmem:[#allocation26 + $0x2f0] ss:$8 sps:$4 sm:$0xff]   ;;  %v20187_v55 = vld [vmem:[#allocation26 + $0x3e4] ss:$8 sps:$4 sm:$0xff]  }
0x13a4   :  { %14752 = vmatpush1.bf16.msra.mxu0 %v21972_v46  ;;  %14783 = vmatprep.mubr.bf16.mxu0 %v20727_v29  ;;  %v20182_v62 = vld [vmem:[#allocation26 + $0x3d0] ss:$8 sps:$4 sm:$0xff]  }
0x13a5   :  { %17125 = vmatprep.subr.msk.bf16.mxu0 %vm356_vm1, %v21969_v30  ;;  %14988 = vmatpush1.bf16.msra.mxu1 %v20095_v18  ;;  %v20115_v30 = vld [vmem:[#allocation26 + $0x244] ss:$8 sps:$4 sm:$0xff]   ;;  %v20185_v18 = vld [vmem:[#allocation26 + $0x3e0] ss:$8 sps:$4 sm:$0xff]  }
0x13a6   :  { %14989 = vmatprep.subr.bf16.mxu1 %v20100_v16  ;;  %v20190_v16 = vld [vmem:[#allocation26 + $0x3f4] ss:$8 sps:$4 sm:$0xff]  }
0x13a9   :  { %14990 = vmatpush1.bf16.msra.mxu1 %v20098_v1  ;;  %v20188_v1 = vld [vmem:[#allocation26 + $0x3f0] ss:$8 sps:$4 sm:$0xff]  }
0x13aa   :  { %14991 = vmatprep.subr.bf16.mxu1 %v20103_v51  ;;  %v20191_v51 = vld [vmem:[#allocation29 + $0x40] sm:$0xff]  }
0x13ab   :  { %17092 = vmatmul.mubr.msk.bf16.vlgmr.msra.gmra.mrb[188].mxu0 %vm14178_vm10, %v14747_v22 }
0x13ac   :  { %15036 = vmatpush1.bf16.msra.mxu0 %v21972_v46  ;;  %15067 = vmatprep.mubr.bf16.mxu0 %v20727_v29  ;;  %v20118_v46 = vld [vmem:[#allocation26 + $0x324] ss:$8 sps:$4 sm:$0xff]   ;;  %v20119_v29 = vld [vmem:[#allocation26 + $0x250] ss:$8 sps:$4 sm:$0xff]  }
0x13ad   :  { %15271 = vmatprep.subr.bf16.mxu0 %v20106_v31  ;;  %14992 = vmatpush1.bf16.msra.mxu1 %v20101_v23 }
0x13ae   :  { %14993 = vmatprep.subr.bf16.mxu1 %v20109_v53 }
0x13b1   :  { %14994 = vmatpush1.bf16.msra.mxu1 %v20107_v27 }
0x13b2   :  { %14995 = vmatprep.subr.bf16.mxu1 %v20115_v30 }
0x13b3   :  { %17126 = vmatmul.mubr.msk.bf16.vlgmr.msra.gmra.mrb[192].mxu0 %vm14178_vm10, %v15031_v39 }
0x13b4   :  { %15272 = vmatpush1.bf16.msra.mxu0 %v20104_v35 }
0x13b5   :  { %15273 = vmatprep.subr.bf16.mxu0 %v20112_v3  ;;  %14996 = vmatpush1.bf16.msra.mxu1 %v20113_v19 }
0x13b6   :  { %14997 = vmatprep.subr.bf16.mxu1 %v20121_v9 }
0x13b8   :  { %15274 = vmatpush1.bf16.msra.mxu0 %v20110_v10 }
0x13b9   :  { %15275 = vmatprep.subr.bf16.mxu0 %v20118_v46  ;;  %14998 = vmatpush1.bf16.msra.mxu1 %v20119_v29 }
0x13ba   :  { %14999 = vmatprep.subr.bf16.mxu1 %v20127_v50  ;;  %v20192_v50 = vld [vmem:[#allocation29] sm:$0xff]  }
0x13bc   :  { %15276 = vmatpush1.bf16.msra.mxu0 %v20116_v57 }
0x13bd   :  { %15277 = vmatprep.subr.bf16.mxu0 %v20124_v14  ;;  %15000 = vmatpush1.bf16.msra.mxu1 %v20125_v5  ;;  %v20193_v5 = vld [vmem:[#allocation29 + $0x48] sm:$0xff]  }
0x13be   :  { %15001 = vmatprep.subr.bf16.mxu1 %v20133_v54  ;;  %v20194_v54 = vld [vmem:[#allocation29 + $0x8] sm:$0xff]  }
0x13c0   :  { %15278 = vmatpush1.bf16.msra.mxu0 %v20122_v2  ;;  %v20195_v2 = vld [vmem:[#allocation29 + $0x50] sm:$0xff]  }
0x13c1   :  { %15279 = vmatprep.subr.bf16.mxu0 %v20130_v44  ;;  %15002 = vmatpush1.bf16.msra.mxu1 %v20131_v6 }
0x13c2   :  { %15003 = vmatprep.subr.bf16.mxu1 %v20139_v41 }
0x13c4   :  { %15280 = vmatpush1.bf16.msra.mxu0 %v20128_v8 }
0x13c5   :  { %15281 = vmatprep.subr.bf16.mxu0 %v20136_v43  ;;  %15004 = vmatpush1.bf16.msra.mxu1 %v20137_v7  ;;  %v20196_v43 = vld [vmem:[#allocation29 + $0x10] sm:$0xff]  }
0x13c6   :  { %15005 = vmatprep.subr.bf16.mxu1 %v20145_v52 }
0x13c8   :  { %15282 = vmatpush1.bf16.msra.mxu0 %v20134_v26  ;;  %v20197_v26 = vld [vmem:[#allocation29 + $0x58] sm:$0xff]  }
0x13c9   :  { %15283 = vmatprep.subr.bf16.mxu0 %v20142_v34  ;;  %15006 = vmatpush1.bf16.msra.mxu1 %v20143_v11  ;;  %v20198_v34 = vld [vmem:[#allocation29 + $0x18] sm:$0xff]   ;;  %v20199_v11 = vld [vmem:[#allocation29 + $0x60] sm:$0xff]  }
0x13ca   :  { %15007 = vmatprep.subr.bf16.mxu1 %v20151_v13  ;;  %v20200_v13 = vld [vmem:[#allocation29 + $0x20] sm:$0xff]  }
0x13cc   :  { %15284 = vmatpush1.bf16.msra.mxu0 %v20140_v59  ;;  %v20201_v59 = vld [vmem:[#allocation29 + $0x68] sm:$0xff]  }
0x13cd   :  { %15285 = vmatprep.subr.bf16.mxu0 %v20148_v15  ;;  %15008 = vmatpush1.bf16.msra.mxu1 %v20149_v28  ;;  %v20202_v15 = vld [vmem:[#allocation29 + $0x28] sm:$0xff]   ;;  %v20203_v28 = vld [vmem:[#allocation29 + $0x70] sm:$0xff]  }
0x13ce   :  { %15009 = vmatprep.subr.bf16.mxu1 %v20157_v47  ;;  %v20204_v47 = vld [vmem:[#allocation29 + $0x30] sm:$0xff]  }
0x13d0   :  { %15286 = vmatpush1.bf16.msra.mxu0 %v20146_v49  ;;  %v20205_v49 = vld [vmem:[#allocation29 + $0x78] sm:$0xff]  }
0x13d1   :  { %15287 = vmatprep.subr.bf16.mxu0 %v20154_v60  ;;  %15010 = vmatpush1.bf16.msra.mxu1 %v20155_v48  ;;  %v20206_v60 = vld [vmem:[#allocation29 + $0x38] sm:$0xff]  }
0x13d2   :  { %15011 = vmatprep.subr.bf16.mxu1 %v20163_v25 }
0x13d4   :  { %15288 = vmatpush1.bf16.msra.mxu0 %v20152_v40 }
0x13d5   :  { %15289 = vmatprep.subr.bf16.mxu0 %v20160_v37  ;;  %15012 = vmatpush1.bf16.msra.mxu1 %v20161_v33 }
0x13d6   :  { %15013 = vmatprep.subr.bf16.mxu1 %v20169_v45 }
0x13d8   :  { %15290 = vmatpush1.bf16.msra.mxu0 %v20158_v38  ;;  %v15314_v38 = vld [vmem:[#allocation28] sm:$0x3] }
0x13d9   :  { %15291 = vmatprep.subr.bf16.mxu0 %v20166_v20  ;;  %15014 = vmatpush1.bf16.msra.mxu1 %v20167_v61  ;;  %v15319_v20 = vrot.slane %v15314_v38, %v21588_v21 }
0x13da   :  { %15015 = vmatprep.subr.bf16.mxu1 %v20175_v56 }
0x13dc   :  { %15292 = vmatpush1.bf16.msra.mxu0 %v20164_v36  ;;  %v15323_v36 = vrot.slane %v15314_v38, %v21591_v4 }
0x13dd   :  { %15293 = vmatprep.subr.bf16.mxu0 %v20172_v32  ;;  %15016 = vmatpush1.bf16.msra.mxu1 %v20173_v42 }
0x13de   :  { %15017 = vmatprep.subr.bf16.mxu1 %v20181_v58 }
0x13e0   :  { %15294 = vmatpush1.bf16.msra.mxu0 %v20170_v17 }
0x13e1   :  { %15295 = vmatprep.subr.bf16.mxu0 %v20178_v0  ;;  %15018 = vmatpush1.bf16.msra.mxu1 %v20179_v24 }
0x13e2   :  { %17515 = vmatprep.subr.bf16.mxu1 %v20191_v51 }
0x13e4   :  { %15296 = vmatpush1.bf16.msra.mxu0 %v20176_v12 }
0x13e5   :  { %15297 = vmatprep.subr.bf16.mxu0 %v20184_v63 }
0x13e8   :  { %15298 = vmatpush1.bf16.msra.mxu0 %v20182_v62 }
0x13e9   :  { %15299 = vmatprep.subr.bf16.mxu0 %v20187_v55 }
0x13ec   :  { %15300 = vmatpush1.bf16.msra.mxu0 %v20185_v18 }
0x13ed   :  { %15301 = vmatprep.subr.bf16.mxu0 %v20190_v16 }
0x13f0   :  { %15302 = vmatpush1.bf16.msra.mxu0 %v20188_v1 }
0x1476   :  { %v14538_v22 = vpop.f32.mrb[184].mxu0  ;;  %v14739_v23 = vpop.f32.mrb[228].mxu1 }
0x1477   :  { %v14540_v31 = vpop.f32.mrb[185].mxu0  ;;  %v14740_v53 = vadd.f32 %v14739_v23, %v14538_v22  ;;  %v14741_v27 = vpop.f32.mrb[229].mxu1 }
0x1478   :  { %v14542_v30 = vpop.f32.mrb[186].mxu0  ;;  %v14742_v39 = vadd.f32 %v14741_v27, %v14540_v31  ;;  %v14743_v35 = vpop.f32.mrb[230].mxu1 }
0x1479   :  { %v14543_v3 = vpop.f32.mrb[187].mxu0  ;;  %v14744_v19 = vpop.f32.mrb[231].mxu1 }
0x147e   :  { %v14785_v9 = vpop.f32.mrb[188].mxu0 }
0x147f   :  { %v14787_v10 = vpop.f32.mrb[189].mxu0  ;;  %v14792_v57 = vpack.c.bf16 %v14785_v9, %v14785_v9 }
0x1480   :  { %v14793_v46 = vpack.c.bf16 %v14787_v10, %v14787_v10  ;;  %v14789_v29 = vpop.f32.mrb[190].mxu0 }
0x1481   :  { %v14790_v14 = vpop.f32.mrb[191].mxu0 }
0x1482   :  { %15019 = vmatprep.mubr.bf16.mxu1 %v14793_v46 }
0x1483   :  { %15020 = vmatmul.mubr.bf16.vlgmr.msra.gmra.mrb[232].mxu1 %v14792_v57 }
0x1484   :  { %17516 = vmatpush3.bf16.msra.mxu1 %v20192_v50 }
0x1485   :  { %17517 = vmatprep.subr.bf16.mxu1 %v20193_v5 }
0x1486   :  { %v15069_v44 = vpop.f32.mrb[192].mxu0 }
0x1487   :  { %v15071_v6 = vpop.f32.mrb[193].mxu0  ;;  %v15076_v7 = vpack.c.bf16 %v15069_v44, %v15069_v44 }
0x1488   :  { %v15077_v41 = vpack.c.bf16 %v15071_v6, %v15071_v6  ;;  %v15073_v8 = vpop.f32.mrb[194].mxu0  ;;  %17518 = vmatpush3.bf16.msra.mxu1 %v20194_v54 }
0x1489   :  { %v15074_v52 = vpop.f32.mrb[195].mxu0  ;;  %17519 = vmatprep.subr.bf16.mxu1 %v20195_v2 }
0x148a   :  { %15303 = vmatprep.mubr.bf16.mxu0 %v15077_v41 }
0x148b   :  { %15304 = vmatmul.mubr.bf16.vlgmr.msra.gmra.mrb[196].mxu0 %v15076_v7 }
0x148c   :  { %17520 = vmatpush3.bf16.msra.mxu1 %v20196_v43 }
0x148d   :  { %17521 = vmatprep.subr.bf16.mxu1 %v20197_v26 }
0x1490   :  { %17522 = vmatpush3.bf16.msra.mxu1 %v20198_v34 }
0x1491   :  { %17523 = vmatprep.subr.bf16.mxu1 %v20199_v11 }
0x1494   :  { %17524 = vmatpush3.bf16.msra.mxu1 %v20200_v13 }
0x1495   :  { %17525 = vmatprep.subr.bf16.mxu1 %v20201_v59 }
0x1498   :  { %17526 = vmatpush3.bf16.msra.mxu1 %v20202_v15 }
0x1499   :  { %17527 = vmatprep.subr.bf16.mxu1 %v20203_v28 }
0x149c   :  { %17528 = vmatpush3.bf16.msra.mxu1 %v20204_v47 }
0x149d   :  { %17529 = vmatprep.subr.bf16.mxu1 %v20205_v49 }
0x14a0   :  { %17530 = vmatpush3.bf16.msra.mxu1 %v20206_v60 }
0x1556   :  { %v15021_v48 = vpop.f32.mrb[232].mxu1 }
0x1557   :  { %v15028_v25 = vadd.f32 %v15021_v48, %v14740_v53  ;;  %v15023_v40 = vpop.f32.mrb[233].mxu1 }
0x1558   :  { %v15029_v37 = vadd.f32 %v15023_v40, %v14742_v39  ;;  %v15025_v33 = vpop.f32.mrb[234].mxu1 }
0x1559   :  { %v15026_v45 = vpop.f32.mrb[235].mxu1 }
0x155e   :  { %v15305_v61 = vpop.f32.mrb[196].mxu0 }
0x155f   :  { %v15312_v32 = vadd.f32 %v15305_v61, %v15028_v25  ;;  %v15307_v17 = vpop.f32.mrb[197].mxu0 }
0x1560   :  { %v15313_v42 = vadd.f32 %v15307_v17, %v15029_v37  ;;  %v15309_v56 = vpop.f32.mrb[198].mxu0 }
0x1561   :  { %v15326_v12 = vadd.f32 %v15319_v20, %v15312_v32  ;;  %v15310_v0 = vpop.f32.mrb[199].mxu0 }
0x1562   :  { %v15327_v58 = vadd.f32 %v15323_v36, %v15313_v42 }
0x1563   :  { %v15328_v63 = vmax.f32 %v15326_v12, 0.0 }
0x1564   :  { %v15329_v24 = vmax.f32 %v15327_v58, 0.0 }
0x1565   :  { %v15330_v18 = vpack.c.bf16 %v15328_v63, %v15328_v63 }
0x1566   :  { %v15331_v62 = vpack.c.bf16 %v15329_v24, %v15329_v24  ;;  %v15509_v55 = vcombine.low %v15328_v63, %v15329_v24 }
0x1568   :  { %15499 = vmatprep.mubr.bf16.mxu1 %v15331_v62  ;;  %17176 = vst.sshfl [vmem:[#allocation32] sm:$0x33 pattern:$0x76325410] %v15509_v55 }
0x1569   :  { %15500 = vmatmul.mubr.bf16.vlgmr.msra.gmra.mrb[236].mxu1 %v15330_v18 }
0x156a   :  { %20636 = shalt.err (!%p20633_p2)
}
0x156b   :  { %s22061_s8 = sld [smem:[#allocation53_spill]] }
0x1571   :  { %s20637_s5 = scalar_lea.hbm %s22061_s8, 64 }
0x1572   :  { %p20638_p3 = scmp.ne.s32.totalorder %s22061_s8, %s20637_s5  ;;  %p20641_p4 = scmp.lt.u32.totalorder %s20637_s5, %s22061_s8 }
0x1574   :  { %p20643_p5 = pnand %p20641_p4, %p20638_p3 }
0x1576   :  { %20646 = shalt.err (!%p20643_p5)
}
0x1577   :  { %15529 = dma.vmem_to_hbm [thread:$0]  %s15527_s13, 64, %s22061_s8, [#allocation4]   ;;  %v17159_v4 = vld [vmem:[#allocation31] ss:$0 sm:$0xff] }
0x1578   :  { %s20729_s0 = smov [#allocation33]  }
0x1579   :  { %s15536_s9 = sshll.u32 %s20729_s0, 4  ;;  %s15537_s9 = int_to_ptr.vmem [resolvable:$true] %s15536_s9 }
0x157a   :  { %s20647_s15 = scalar_lea.vmem %s15537_s9, 32  ;;  %p20652_p7 = scmp.lt.s32.totalorder %s15537_s9, %s15537_s9 }
0x157b   :  { %p20648_p6 = scmp.ne.s32.totalorder %s15537_s9, %s20647_s15  ;;  %p20653_p8 = scmp.lt.s32.totalorder %s20647_s15, %s20647_s15 }
0x157d   :  { %p20654_p9 = por %p20653_p8, %p20652_p7 }
0x157f   :  { %p20655_p10 = pnand %p20654_p9, %p20648_p6 }
0x163c   :  { %v17531_v21 = vpop.f32.mrb[236].mxu1 }
0x163d   :  { %v17532_v16 = vpop.f32.mrb[237].mxu1 }
0x163e   :  { %v17533_v1 = vadd.f32 %v17532_v16, %v17531_v21  ;;  %v17534_v51 = vpop.f32.mrb[238].mxu1 }
0x163f   :  { %v17535_v22 = vpop.f32.mrb[239].mxu1 }
0x1640   :  { %v15502_v23 = vadd.f32 %v17533_v1, %v17159_v4 }
0x1642   :  { %15519 = vst [vmem:[#allocation33] sm:$0x3] %v15502_v23 }
0x1643   :  { %20658 = shalt.err (!%p20655_p10)
}
0x1644   :  { %s22062_s27 = sld [smem:[#allocation54_spill]] }
0x164a   :  { %s20659_s6 = scalar_lea.hbm %s22062_s27, 32 }
0x164b   :  { %p20660_p11 = scmp.ne.s32.totalorder %s22062_s27, %s20659_s6  ;;  %p20663_p12 = scmp.lt.u32.totalorder %s20659_s6, %s22062_s27 }
0x164d   :  { %p20665_p13 = pnand %p20663_p12, %p20660_p11 }
0x164f   :  { %20668 = shalt.err (!%p20665_p13)
}
0x1650   :  { %15539 = dma.vmem_to_hbm [thread:$0]  %s15537_s9, 32, %s22062_s27, [#allocation34]  }
0x1651   :  { %20689 = dma.done.wait [#allocation4], 64  }
0x1652   :  { %20690 = vsyncadd [#allocation4], 4294967232 }
0x1653   :  { %20691 = dma.done.wait [#allocation34], 32  }
0x1654   :  { %20692 = vsyncadd [#allocation34], 4294967264 }
0x1655   :  { %15546 = vsyncpa [#allocation3], 1 }
0x1656   :  { %15547 = vsyncpa [#allocation6], 1 }
0x1657   :  { %15548 = vsyncpa [#allocation9], 1 }
0x1658   :  { %15549 = vsyncpa [#allocation12], 1 }
0x1659   :  { %15550 = vsyncpa [#allocation15], 1 }
0x165a   :  { %15551 = vsyncpa [#allocation18], 1 }
0x165b   :  { %15552 = vsyncpa [#allocation21], 1 }
0x165c   :  { %15553 = vsyncpa [#allocation24], 1 }
0x165d   :  { %15554 = vsyncpa [#allocation27], 1 }
0x165e   :  { %15555 = vsyncpa [#allocation30], 1 }
0x165f   :  { %15556 = vsyncpa [#allocation4], 1 }
0x1660   :  { %15557 = vsyncpa [#allocation34], 1 }

</bundles_post_ra>
